<compile_context>
chip_gen: v7x
topology: tpu7x:2x2x1
jax: 0.10.0
libtpu: 0.0.40
codegen_flags: <defaults>
</compile_context>

<pallas_src>
import jax
import jax.numpy as jnp
from jax.experimental import pallas as pl
from jax.experimental.pallas import tpu as pltpu

# ----------------------------- model constants -----------------------------
N_BATCH = 2
C_IN = 4
H = W = 16
C1 = C2 = 8                 # logical conv output channels
HP, WP = H // 2, W // 2     # pooled spatial dims
FC1_IN = C2 * HP * WP       # 512
FC1_OUT = 32
N_CLASSES = 10
LANES = 128                 # lane-dense padding for every GEMM output dim

# Padded-image scratch layout: H padded by 1 on each side (untiled dim);
# the image's w=0 column lives at sublane offset 8 inside a 32-sublane buffer
# so every in-kernel *store* is tile aligned; tap loads read at offsets 7/8/9.
PAD_H = H + 2               # 18
PAD_W = 32
W_OFF = 8


# ------------------------- kernel 1: feature extractor ---------------------
def _features_kernel(x_ref, w1_ref, b1_ref, w2_ref, b2_ref, out_ref,
                     xp1, xp2, acc):
    # Zero the padded-image scratch buffers (borders act as conv zero-padding).
    xp1[...] = jnp.zeros(xp1.shape, xp1.dtype)
    xp2[...] = jnp.zeros(xp2.shape, xp2.dtype)

    # ---- conv1 (4 -> 128-padded) as 9 shifted matmuls + bias + ReLU ----
    xp1[:, 1:1 + H, W_OFF:W_OFF + W, :] = x_ref[...]
    acc[...] = jnp.zeros(acc.shape, acc.dtype)
    for t in range(9):
        ky, kx = t // 3, t % 3
        lhs = xp1[:, ky:ky + H, W_OFF - 1 + kx:W_OFF - 1 + kx + W, :]
        lhs = lhs.reshape(N_BATCH * H * W, C_IN)
        acc[...] += jnp.dot(lhs, w1_ref[t], preferred_element_type=jnp.float32)
    h1 = jnp.maximum(acc[...] + b1_ref[...], 0.0)                 # (512, 128)

    # ---- conv2 (128-padded -> 128-padded) + bias + ReLU ----
    xp2[:, 1:1 + H, W_OFF:W_OFF + W, :] = h1.reshape(N_BATCH, H, W, LANES)
    acc[...] = jnp.zeros(acc.shape, acc.dtype)
    for t in range(9):
        ky, kx = t // 3, t % 3
        lhs = xp2[:, ky:ky + H, W_OFF - 1 + kx:W_OFF - 1 + kx + W, :]
        lhs = lhs.reshape(N_BATCH * H * W, LANES)
        acc[...] += jnp.dot(lhs, w2_ref[t], preferred_element_type=jnp.float32)
    acc[...] = jnp.maximum(acc[...] + b2_ref[...], 0.0)           # rows = n*256 + h*16 + w

    # ---- 2x2 max pool (stride 2) ----
    # pool over w: pair adjacent rows via stride-2 loads
    n_half = N_BATCH * H * WP                                     # 256
    ev = acc[pl.ds(0, n_half, stride=2), :]                       # (256, 128)
    od = acc[pl.ds(1, n_half, stride=2), :]
    mw = jnp.maximum(ev, od)                                      # rows = n*128 + h*8 + wo
    # pool over h: split rows into (n, ho, hd, wo) and max over hd
    mwr = mw.reshape(N_BATCH, HP, 2, WP, LANES)
    pooled = jnp.maximum(mwr[:, :, 0], mwr[:, :, 1])              # (2, 8, 8, 128)
    out_ref[...] = pooled.reshape(N_BATCH * HP * WP, LANES)       # rows = n*64 + ho*8 + wo


# --------------------------- kernel 2: classifier ---------------------------
def _classifier_kernel(f_ref, w1_ref, b1_ref, w2_ref, b2_ref, out_ref):
    h = jnp.dot(f_ref[...], w1_ref[...], preferred_element_type=jnp.float32)
    h = jnp.maximum(h + b1_ref[...], 0.0)
    o = jnp.dot(h, w2_ref[...], preferred_element_type=jnp.float32)
    out_ref[...] = (o + b2_ref[...]).astype(out_ref.dtype)


# ------------------------------ pallas wrappers -----------------------------
def _full_spec(shape):
    nd = len(shape)
    return pl.BlockSpec(shape, lambda i: (0,) * nd)


def _features(x_nhwc, w1p, b1p, w2p, b2p):
    m = N_BATCH * HP * WP                                         # 128
    return pl.pallas_call(
        _features_kernel,
        out_shape=jax.ShapeDtypeStruct((m, LANES), jnp.float32),
        grid=(1,),
        in_specs=[_full_spec(x_nhwc.shape), _full_spec(w1p.shape),
                  _full_spec(b1p.shape), _full_spec(w2p.shape),
                  _full_spec(b2p.shape)],
        out_specs=_full_spec((m, LANES)),
        scratch_shapes=[
            pltpu.VMEM((N_BATCH, PAD_H, PAD_W, C_IN), jnp.float32),   # padded conv1 input
            pltpu.VMEM((N_BATCH, PAD_H, PAD_W, LANES), jnp.float32),  # padded conv2 input
            pltpu.VMEM((N_BATCH * H * W, LANES), jnp.float32),        # f32 GEMM accumulator
        ],
        compiler_params=pltpu.CompilerParams(dimension_semantics=("arbitrary",)),
    )(x_nhwc, w1p, b1p, w2p, b2p)


def _classifier(feat, w1p, b1p, w2p, b2p):
    return pl.pallas_call(
        _classifier_kernel,
        out_shape=jax.ShapeDtypeStruct((N_BATCH, LANES), jnp.float32),
        grid=(1,),
        in_specs=[_full_spec(feat.shape), _full_spec(w1p.shape),
                  _full_spec(b1p.shape), _full_spec(w2p.shape),
                  _full_spec(b2p.shape)],
        out_specs=_full_spec((N_BATCH, LANES)),
        compiler_params=pltpu.CompilerParams(dimension_semantics=("arbitrary",)),
    )(feat, w1p, b1p, w2p, b2p)


# ------------------------------ parameter pack ------------------------------
def _pack_params(p):
    """One-time repack: conv weights -> (tap, cin, 128-lane) GEMM form, biases &
    FC weights zero-padded to 128 lanes, and wfc1 rows permuted to the kernels'
    (ho, wo, c) flatten order (so the PyTorch NCHW flatten transpose vanishes)."""
    # conv1: (Cout, Cin, K, K) -> (ky, kx, ci, co) -> (9, ci, co), pad co -> 128
    w1 = p["w1"].transpose(2, 3, 1, 0).reshape(9, C_IN, C1)
    w1p = jnp.zeros((9, C_IN, LANES), jnp.float32).at[:, :, :C1].set(w1)
    b1p = jnp.zeros((1, LANES), jnp.float32).at[0, :C1].set(p["b1"])

    w2 = p["w2"].transpose(2, 3, 1, 0).reshape(9, C1, C2)
    w2p = jnp.zeros((9, LANES, LANES), jnp.float32).at[:, :C1, :C2].set(w2)
    b2p = jnp.zeros((1, LANES), jnp.float32).at[0, :C2].set(p["b2"])

    # wfc1 rows are in PyTorch flatten order k = c*64 + ho*8 + wo; the features
    # kernel emits (ho, wo, c) order -> permute once here, pad out dim to 128.
    wfc1 = p["wfc1"].reshape(C2, HP, WP, FC1_OUT).transpose(1, 2, 0, 3)
    wfc1 = wfc1.reshape(FC1_IN, FC1_OUT)
    wfc1p = jnp.zeros((FC1_IN, LANES), jnp.float32).at[:, :FC1_OUT].set(wfc1)
    bfc1p = jnp.zeros((1, LANES), jnp.float32).at[0, :FC1_OUT].set(p["bfc1"])

    wfc2p = jnp.zeros((LANES, LANES), jnp.float32).at[:FC1_OUT, :N_CLASSES].set(p["wfc2"])
    bfc2p = jnp.zeros((1, LANES), jnp.float32).at[0, :N_CLASSES].set(p["bfc2"])
    return w1p, b1p, w2p, b2p, wfc1p, bfc1p, wfc2p, bfc2p


# ------------------------------ forward pass --------------------------------
def conv_classifier_forward(x_nchw, params):
    w1p, b1p, w2p, b2p, wfc1p, bfc1p, wfc2p, bfc2p = _pack_params(params)
    x_nhwc = x_nchw.transpose(0, 2, 3, 1)                      # NCHW -> NHWC
    pooled = _features(x_nhwc, w1p, b1p, w2p, b2p)             # (128, 128) rows = n*64+ho*8+wo
    feat = pooled[:, :C2].reshape(N_BATCH, FC1_IN)             # (2, 512), (ho, wo, c) order
    logits = _classifier(feat, wfc1p, bfc1p, wfc2p, bfc2p)     # (2, 128) lane-dense
    return logits[:, :N_CLASSES]


def init_params(key):
    """Deterministic PyTorch-style uniform(-1/sqrt(fan_in), 1/sqrt(fan_in)) init."""
    ks = jax.random.split(key, 8)

    def u(k, shape, fan_in):
        bound = 1.0 / jnp.sqrt(jnp.float32(fan_in))
        return jax.random.uniform(k, shape, jnp.float32, -bound, bound)

    p = {}
    p["w1"] = u(ks[0], (C1, C_IN, 3, 3), C_IN * 9)       # Conv2d(4 -> 8, k=3)
    p["b1"] = u(ks[1], (C1,), C_IN * 9)
    p["w2"] = u(ks[2], (C2, C1, 3, 3), C1 * 9)           # Conv2d(8 -> 8, k=3)
    p["b2"] = u(ks[3], (C2,), C1 * 9)
    p["wfc1"] = u(ks[4], (FC1_IN, FC1_OUT), FC1_IN)      # Linear(512 -> 32), stored (in, out)
    p["bfc1"] = u(ks[5], (FC1_OUT,), FC1_IN)
    p["wfc2"] = u(ks[6], (FC1_OUT, N_CLASSES), FC1_OUT)  # Linear(32 -> 10), stored (in, out)
    p["bfc2"] = u(ks[7], (N_CLASSES,), FC1_OUT)
    return p


if __name__ == "__main__":
    key = jax.random.PRNGKey(0)
    kx_, kp = jax.random.split(key)
    x = jax.random.normal(kx_, (N_BATCH, C_IN, H, W), jnp.float32)  # NCHW
    params = init_params(kp)

    out = jax.jit(conv_classifier_forward)(x, params)
    out = jax.block_until_ready(out)
    assert out.shape == (N_BATCH, N_CLASSES) and out.dtype == jnp.float32
    print("KERNEL_OK")
</pallas_src>

<mosaic_0001>
module attributes {stable_mosaic.version = 11 : i64} {
  func.func @_features_kernel(%arg0: i32, %arg1: memref<2x16x16x4xf32, #tpu.memory_space<vmem>>, %arg2: memref<9x4x128xf32, #tpu.memory_space<vmem>>, %arg3: memref<1x128xf32, #tpu.memory_space<vmem>>, %arg4: memref<9x128x128xf32, #tpu.memory_space<vmem>>, %arg5: memref<1x128xf32, #tpu.memory_space<vmem>>, %arg6: memref<128x128xf32, #tpu.memory_space<vmem>>, %arg7: memref<2x18x32x4xf32, #tpu.memory_space<vmem>>, %arg8: memref<2x18x32x128xf32, #tpu.memory_space<vmem>>, %arg9: memref<512x128xf32, #tpu.memory_space<vmem>>) attributes {dimension_semantics = [#tpu.dimension_semantics<arbitrary>], iteration_bounds = array<i64: 1>, scalar_prefetch = 0 : i64, scratch_operands = 3 : i64, tpu.core_type = #tpu.core_type<tc>, window_params = [{pipeline_mode = #tpu.pipeline_mode<synchronous>, transform_indices = @transform_0, window_bounds = array<i64: 2, 16, 16, 4>}, {pipeline_mode = #tpu.pipeline_mode<synchronous>, transform_indices = @transform_1, window_bounds = array<i64: 9, 4, 128>}, {pipeline_mode = #tpu.pipeline_mode<synchronous>, transform_indices = @transform_2, window_bounds = array<i64: 1, 128>}, {pipeline_mode = #tpu.pipeline_mode<synchronous>, transform_indices = @transform_3, window_bounds = array<i64: 9, 128, 128>}, {pipeline_mode = #tpu.pipeline_mode<synchronous>, transform_indices = @transform_4, window_bounds = array<i64: 1, 128>}, {pipeline_mode = #tpu.pipeline_mode<synchronous>, transform_indices = @transform_5, window_bounds = array<i64: 128, 128>}]} {
    %cst = arith.constant 0.000000e+00 : f32
    %0 = vector.broadcast %cst : f32 to vector<2x18x32x4xf32>
    %c0 = arith.constant 0 : index
    %c0_0 = arith.constant 0 : index
    %c0_1 = arith.constant 0 : index
    %c0_2 = arith.constant 0 : index
    %1 = vector.load %arg7[%c0, %c0_0, %c0_1, %c0_2] : memref<2x18x32x4xf32, #tpu.memory_space<vmem>>, vector<2x18x32x4xf32>
    tpu.vector_store %arg7[%c0, %c0_0, %c0_1, %c0_2], %0 {strides = array<i32>} : memref<2x18x32x4xf32, #tpu.memory_space<vmem>>, vector<2x18x32x4xf32>,
    %cst_3 = arith.constant 0.000000e+00 : f32
    %2 = vector.broadcast %cst_3 : f32 to vector<2x18x32x128xf32>
    %c0_4 = arith.constant 0 : index
    %c0_5 = arith.constant 0 : index
    %c0_6 = arith.constant 0 : index
    %c0_7 = arith.constant 0 : index
    %3 = vector.load %arg8[%c0_4, %c0_5, %c0_6, %c0_7] : memref<2x18x32x128xf32, #tpu.memory_space<vmem>>, vector<2x18x32x128xf32>
    tpu.vector_store %arg8[%c0_4, %c0_5, %c0_6, %c0_7], %2 {strides = array<i32>} : memref<2x18x32x128xf32, #tpu.memory_space<vmem>>, vector<2x18x32x128xf32>,
    %c0_8 = arith.constant 0 : index
    %c0_9 = arith.constant 0 : index
    %c0_10 = arith.constant 0 : index
    %c0_11 = arith.constant 0 : index
    %4 = vector.load %arg1[%c0_8, %c0_9, %c0_10, %c0_11] : memref<2x16x16x4xf32, #tpu.memory_space<vmem>>, vector<2x16x16x4xf32>
    %c0_12 = arith.constant 0 : index
    %c1 = arith.constant 1 : index
    %c8 = arith.constant 8 : index
    %c0_13 = arith.constant 0 : index
    %5 = vector.load %arg7[%c0_12, %c1, %c8, %c0_13] : memref<2x18x32x4xf32, #tpu.memory_space<vmem>>, vector<2x16x16x4xf32>
    tpu.vector_store %arg7[%c0_12, %c1, %c8, %c0_13], %4 {strides = array<i32>} : memref<2x18x32x4xf32, #tpu.memory_space<vmem>>, vector<2x16x16x4xf32>,
    %cst_14 = arith.constant 0.000000e+00 : f32
    %6 = vector.broadcast %cst_14 : f32 to vector<512x128xf32>
    %c0_15 = arith.constant 0 : index
    %c0_16 = arith.constant 0 : index
    %7 = vector.load %arg9[%c0_15, %c0_16] : memref<512x128xf32, #tpu.memory_space<vmem>>, vector<512x128xf32>
    tpu.vector_store %arg9[%c0_15, %c0_16], %6 {strides = array<i32>} : memref<512x128xf32, #tpu.memory_space<vmem>>, vector<512x128xf32>,
    %c0_17 = arith.constant 0 : index
    %c0_18 = arith.constant 0 : index
    %c7 = arith.constant 7 : index
    %c0_19 = arith.constant 0 : index
    %8 = vector.load %arg7[%c0_17, %c0_18, %c7, %c0_19] : memref<2x18x32x4xf32, #tpu.memory_space<vmem>>, vector<2x16x16x4xf32>
    %9 = vector.shape_cast %8 : vector<2x16x16x4xf32> to vector<512x4xf32>
    %c0_20 = arith.constant 0 : index
    %c0_21 = arith.constant 0 : index
    %10 = vector.load %arg9[%c0_20, %c0_21] : memref<512x128xf32, #tpu.memory_space<vmem>>, vector<512x128xf32>
    %c0_22 = arith.constant 0 : index
    %c0_23 = arith.constant 0 : index
    %c0_24 = arith.constant 0 : index
    %11 = vector.load %arg2[%c0_22, %c0_23, %c0_24] : memref<9x4x128xf32, #tpu.memory_space<vmem>>, vector<1x4x128xf32>
    %12 = vector.shape_cast %11 : vector<1x4x128xf32> to vector<4x128xf32>
    %cst_25 = arith.constant dense<0.000000e+00> : vector<512x128xf32>
    %13 = tpu.matmul %9, %12, %cst_25 {dimension_numbers = #tpu.dot_dimension_numbers<[1], [0], [0], [1], [0, 0, 1, 1], [], []>} : vector<512x4xf32>, vector<4x128xf32>, vector<512x128xf32> -> vector<512x128xf32>
    %14 = arith.addf %10, %13 : vector<512x128xf32>
    %c0_26 = arith.constant 0 : index
    %c0_27 = arith.constant 0 : index
    %15 = vector.load %arg9[%c0_26, %c0_27] : memref<512x128xf32, #tpu.memory_space<vmem>>, vector<512x128xf32>
    tpu.vector_store %arg9[%c0_26, %c0_27], %14 {strides = array<i32>} : memref<512x128xf32, #tpu.memory_space<vmem>>, vector<512x128xf32>,
    %c0_28 = arith.constant 0 : index
    %c0_29 = arith.constant 0 : index
    %c8_30 = arith.constant 8 : index
    %c0_31 = arith.constant 0 : index
    %16 = vector.load %arg7[%c0_28, %c0_29, %c8_30, %c0_31] : memref<2x18x32x4xf32, #tpu.memory_space<vmem>>, vector<2x16x16x4xf32>
    %17 = vector.shape_cast %16 : vector<2x16x16x4xf32> to vector<512x4xf32>
    %c0_32 = arith.constant 0 : index
    %c0_33 = arith.constant 0 : index
    %18 = vector.load %arg9[%c0_32, %c0_33] : memref<512x128xf32, #tpu.memory_space<vmem>>, vector<512x128xf32>
    %c1_34 = arith.constant 1 : index
    %c0_35 = arith.constant 0 : index
    %c0_36 = arith.constant 0 : index
    %19 = vector.load %arg2[%c1_34, %c0_35, %c0_36] : memref<9x4x128xf32, #tpu.memory_space<vmem>>, vector<1x4x128xf32>
    %20 = vector.shape_cast %19 : vector<1x4x128xf32> to vector<4x128xf32>
    %cst_37 = arith.constant dense<0.000000e+00> : vector<512x128xf32>
    %21 = tpu.matmul %17, %20, %cst_37 {dimension_numbers = #tpu.dot_dimension_numbers<[1], [0], [0], [1], [0, 0, 1, 1], [], []>} : vector<512x4xf32>, vector<4x128xf32>, vector<512x128xf32> -> vector<512x128xf32>
    %22 = arith.addf %18, %21 : vector<512x128xf32>
    %c0_38 = arith.constant 0 : index
    %c0_39 = arith.constant 0 : index
    %23 = vector.load %arg9[%c0_38, %c0_39] : memref<512x128xf32, #tpu.memory_space<vmem>>, vector<512x128xf32>
    tpu.vector_store %arg9[%c0_38, %c0_39], %22 {strides = array<i32>} : memref<512x128xf32, #tpu.memory_space<vmem>>, vector<512x128xf32>,
    %c0_40 = arith.constant 0 : index
    %c0_41 = arith.constant 0 : index
    %c9 = arith.constant 9 : index
    %c0_42 = arith.constant 0 : index
    %24 = vector.load %arg7[%c0_40, %c0_41, %c9, %c0_42] : memref<2x18x32x4xf32, #tpu.memory_space<vmem>>, vector<2x16x16x4xf32>
    %25 = vector.shape_cast %24 : vector<2x16x16x4xf32> to vector<512x4xf32>
    %c0_43 = arith.constant 0 : index
    %c0_44 = arith.constant 0 : index
    %26 = vector.load %arg9[%c0_43, %c0_44] : memref<512x128xf32, #tpu.memory_space<vmem>>, vector<512x128xf32>
    %c2 = arith.constant 2 : index
    %c0_45 = arith.constant 0 : index
    %c0_46 = arith.constant 0 : index
    %27 = vector.load %arg2[%c2, %c0_45, %c0_46] : memref<9x4x128xf32, #tpu.memory_space<vmem>>, vector<1x4x128xf32>
    %28 = vector.shape_cast %27 : vector<1x4x128xf32> to vector<4x128xf32>
    %cst_47 = arith.constant dense<0.000000e+00> : vector<512x128xf32>
    %29 = tpu.matmul %25, %28, %cst_47 {dimension_numbers = #tpu.dot_dimension_numbers<[1], [0], [0], [1], [0, 0, 1, 1], [], []>} : vector<512x4xf32>, vector<4x128xf32>, vector<512x128xf32> -> vector<512x128xf32>
    %30 = arith.addf %26, %29 : vector<512x128xf32>
    %c0_48 = arith.constant 0 : index
    %c0_49 = arith.constant 0 : index
    %31 = vector.load %arg9[%c0_48, %c0_49] : memref<512x128xf32, #tpu.memory_space<vmem>>, vector<512x128xf32>
    tpu.vector_store %arg9[%c0_48, %c0_49], %30 {strides = array<i32>} : memref<512x128xf32, #tpu.memory_space<vmem>>, vector<512x128xf32>,
    %c0_50 = arith.constant 0 : index
    %c1_51 = arith.constant 1 : index
    %c7_52 = arith.constant 7 : index
    %c0_53 = arith.constant 0 : index
    %32 = vector.load %arg7[%c0_50, %c1_51, %c7_52, %c0_53] : memref<2x18x32x4xf32, #tpu.memory_space<vmem>>, vector<2x16x16x4xf32>
    %33 = vector.shape_cast %32 : vector<2x16x16x4xf32> to vector<512x4xf32>
    %c0_54 = arith.constant 0 : index
    %c0_55 = arith.constant 0 : index
    %34 = vector.load %arg9[%c0_54, %c0_55] : memref<512x128xf32, #tpu.memory_space<vmem>>, vector<512x128xf32>
    %c3 = arith.constant 3 : index
    %c0_56 = arith.constant 0 : index
    %c0_57 = arith.constant 0 : index
    %35 = vector.load %arg2[%c3, %c0_56, %c0_57] : memref<9x4x128xf32, #tpu.memory_space<vmem>>, vector<1x4x128xf32>
    %36 = vector.shape_cast %35 : vector<1x4x128xf32> to vector<4x128xf32>
    %cst_58 = arith.constant dense<0.000000e+00> : vector<512x128xf32>
    %37 = tpu.matmul %33, %36, %cst_58 {dimension_numbers = #tpu.dot_dimension_numbers<[1], [0], [0], [1], [0, 0, 1, 1], [], []>} : vector<512x4xf32>, vector<4x128xf32>, vector<512x128xf32> -> vector<512x128xf32>
    %38 = arith.addf %34, %37 : vector<512x128xf32>
    %c0_59 = arith.constant 0 : index
    %c0_60 = arith.constant 0 : index
    %39 = vector.load %arg9[%c0_59, %c0_60] : memref<512x128xf32, #tpu.memory_space<vmem>>, vector<512x128xf32>
    tpu.vector_store %arg9[%c0_59, %c0_60], %38 {strides = array<i32>} : memref<512x128xf32, #tpu.memory_space<vmem>>, vector<512x128xf32>,
    %c0_61 = arith.constant 0 : index
    %c1_62 = arith.constant 1 : index
    %c8_63 = arith.constant 8 : index
    %c0_64 = arith.constant 0 : index
    %40 = vector.load %arg7[%c0_61, %c1_62, %c8_63, %c0_64] : memref<2x18x32x4xf32, #tpu.memory_space<vmem>>, vector<2x16x16x4xf32>
    %41 = vector.shape_cast %40 : vector<2x16x16x4xf32> to vector<512x4xf32>
    %c0_65 = arith.constant 0 : index
    %c0_66 = arith.constant 0 : index
    %42 = vector.load %arg9[%c0_65, %c0_66] : memref<512x128xf32, #tpu.memory_space<vmem>>, vector<512x128xf32>
    %c4 = arith.constant 4 : index
    %c0_67 = arith.constant 0 : index
    %c0_68 = arith.constant 0 : index
    %43 = vector.load %arg2[%c4, %c0_67, %c0_68] : memref<9x4x128xf32, #tpu.memory_space<vmem>>, vector<1x4x128xf32>
    %44 = vector.shape_cast %43 : vector<1x4x128xf32> to vector<4x128xf32>
    %cst_69 = arith.constant dense<0.000000e+00> : vector<512x128xf32>
    %45 = tpu.matmul %41, %44, %cst_69 {dimension_numbers = #tpu.dot_dimension_numbers<[1], [0], [0], [1], [0, 0, 1, 1], [], []>} : vector<512x4xf32>, vector<4x128xf32>, vector<512x128xf32> -> vector<512x128xf32>
    %46 = arith.addf %42, %45 : vector<512x128xf32>
    %c0_70 = arith.constant 0 : index
    %c0_71 = arith.constant 0 : index
    %47 = vector.load %arg9[%c0_70, %c0_71] : memref<512x128xf32, #tpu.memory_space<vmem>>, vector<512x128xf32>
    tpu.vector_store %arg9[%c0_70, %c0_71], %46 {strides = array<i32>} : memref<512x128xf32, #tpu.memory_space<vmem>>, vector<512x128xf32>,
    %c0_72 = arith.constant 0 : index
    %c1_73 = arith.constant 1 : index
    %c9_74 = arith.constant 9 : index
    %c0_75 = arith.constant 0 : index
    %48 = vector.load %arg7[%c0_72, %c1_73, %c9_74, %c0_75] : memref<2x18x32x4xf32, #tpu.memory_space<vmem>>, vector<2x16x16x4xf32>
    %49 = vector.shape_cast %48 : vector<2x16x16x4xf32> to vector<512x4xf32>
    %c0_76 = arith.constant 0 : index
    %c0_77 = arith.constant 0 : index
    %50 = vector.load %arg9[%c0_76, %c0_77] : memref<512x128xf32, #tpu.memory_space<vmem>>, vector<512x128xf32>
    %c5 = arith.constant 5 : index
    %c0_78 = arith.constant 0 : index
    %c0_79 = arith.constant 0 : index
    %51 = vector.load %arg2[%c5, %c0_78, %c0_79] : memref<9x4x128xf32, #tpu.memory_space<vmem>>, vector<1x4x128xf32>
    %52 = vector.shape_cast %51 : vector<1x4x128xf32> to vector<4x128xf32>
    %cst_80 = arith.constant dense<0.000000e+00> : vector<512x128xf32>
    %53 = tpu.matmul %49, %52, %cst_80 {dimension_numbers = #tpu.dot_dimension_numbers<[1], [0], [0], [1], [0, 0, 1, 1], [], []>} : vector<512x4xf32>, vector<4x128xf32>, vector<512x128xf32> -> vector<512x128xf32>
    %54 = arith.addf %50, %53 : vector<512x128xf32>
    %c0_81 = arith.constant 0 : index
    %c0_82 = arith.constant 0 : index
    %55 = vector.load %arg9[%c0_81, %c0_82] : memref<512x128xf32, #tpu.memory_space<vmem>>, vector<512x128xf32>
    tpu.vector_store %arg9[%c0_81, %c0_82], %54 {strides = array<i32>} : memref<512x128xf32, #tpu.memory_space<vmem>>, vector<512x128xf32>,
    %c0_83 = arith.constant 0 : index
    %c2_84 = arith.constant 2 : index
    %c7_85 = arith.constant 7 : index
    %c0_86 = arith.constant 0 : index
    %56 = vector.load %arg7[%c0_83, %c2_84, %c7_85, %c0_86] : memref<2x18x32x4xf32, #tpu.memory_space<vmem>>, vector<2x16x16x4xf32>
    %57 = vector.shape_cast %56 : vector<2x16x16x4xf32> to vector<512x4xf32>
    %c0_87 = arith.constant 0 : index
    %c0_88 = arith.constant 0 : index
    %58 = vector.load %arg9[%c0_87, %c0_88] : memref<512x128xf32, #tpu.memory_space<vmem>>, vector<512x128xf32>
    %c6 = arith.constant 6 : index
    %c0_89 = arith.constant 0 : index
    %c0_90 = arith.constant 0 : index
    %59 = vector.load %arg2[%c6, %c0_89, %c0_90] : memref<9x4x128xf32, #tpu.memory_space<vmem>>, vector<1x4x128xf32>
    %60 = vector.shape_cast %59 : vector<1x4x128xf32> to vector<4x128xf32>
    %cst_91 = arith.constant dense<0.000000e+00> : vector<512x128xf32>
    %61 = tpu.matmul %57, %60, %cst_91 {dimension_numbers = #tpu.dot_dimension_numbers<[1], [0], [0], [1], [0, 0, 1, 1], [], []>} : vector<512x4xf32>, vector<4x128xf32>, vector<512x128xf32> -> vector<512x128xf32>
    %62 = arith.addf %58, %61 : vector<512x128xf32>
    %c0_92 = arith.constant 0 : index
    %c0_93 = arith.constant 0 : index
    %63 = vector.load %arg9[%c0_92, %c0_93] : memref<512x128xf32, #tpu.memory_space<vmem>>, vector<512x128xf32>
    tpu.vector_store %arg9[%c0_92, %c0_93], %62 {strides = array<i32>} : memref<512x128xf32, #tpu.memory_space<vmem>>, vector<512x128xf32>,
    %c0_94 = arith.constant 0 : index
    %c2_95 = arith.constant 2 : index
    %c8_96 = arith.constant 8 : index
    %c0_97 = arith.constant 0 : index
    %64 = vector.load %arg7[%c0_94, %c2_95, %c8_96, %c0_97] : memref<2x18x32x4xf32, #tpu.memory_space<vmem>>, vector<2x16x16x4xf32>
    %65 = vector.shape_cast %64 : vector<2x16x16x4xf32> to vector<512x4xf32>
    %c0_98 = arith.constant 0 : index
    %c0_99 = arith.constant 0 : index
    %66 = vector.load %arg9[%c0_98, %c0_99] : memref<512x128xf32, #tpu.memory_space<vmem>>, vector<512x128xf32>
    %c7_100 = arith.constant 7 : index
    %c0_101 = arith.constant 0 : index
    %c0_102 = arith.constant 0 : index
    %67 = vector.load %arg2[%c7_100, %c0_101, %c0_102] : memref<9x4x128xf32, #tpu.memory_space<vmem>>, vector<1x4x128xf32>
    %68 = vector.shape_cast %67 : vector<1x4x128xf32> to vector<4x128xf32>
    %cst_103 = arith.constant dense<0.000000e+00> : vector<512x128xf32>
    %69 = tpu.matmul %65, %68, %cst_103 {dimension_numbers = #tpu.dot_dimension_numbers<[1], [0], [0], [1], [0, 0, 1, 1], [], []>} : vector<512x4xf32>, vector<4x128xf32>, vector<512x128xf32> -> vector<512x128xf32>
    %70 = arith.addf %66, %69 : vector<512x128xf32>
    %c0_104 = arith.constant 0 : index
    %c0_105 = arith.constant 0 : index
    %71 = vector.load %arg9[%c0_104, %c0_105] : memref<512x128xf32, #tpu.memory_space<vmem>>, vector<512x128xf32>
    tpu.vector_store %arg9[%c0_104, %c0_105], %70 {strides = array<i32>} : memref<512x128xf32, #tpu.memory_space<vmem>>, vector<512x128xf32>,
    %c0_106 = arith.constant 0 : index
    %c2_107 = arith.constant 2 : index
    %c9_108 = arith.constant 9 : index
    %c0_109 = arith.constant 0 : index
    %72 = vector.load %arg7[%c0_106, %c2_107, %c9_108, %c0_109] : memref<2x18x32x4xf32, #tpu.memory_space<vmem>>, vector<2x16x16x4xf32>
    %73 = vector.shape_cast %72 : vector<2x16x16x4xf32> to vector<512x4xf32>
    %c0_110 = arith.constant 0 : index
    %c0_111 = arith.constant 0 : index
    %74 = vector.load %arg9[%c0_110, %c0_111] : memref<512x128xf32, #tpu.memory_space<vmem>>, vector<512x128xf32>
    %c8_112 = arith.constant 8 : index
    %c0_113 = arith.constant 0 : index
    %c0_114 = arith.constant 0 : index
    %75 = vector.load %arg2[%c8_112, %c0_113, %c0_114] : memref<9x4x128xf32, #tpu.memory_space<vmem>>, vector<1x4x128xf32>
    %76 = vector.shape_cast %75 : vector<1x4x128xf32> to vector<4x128xf32>
    %cst_115 = arith.constant dense<0.000000e+00> : vector<512x128xf32>
    %77 = tpu.matmul %73, %76, %cst_115 {dimension_numbers = #tpu.dot_dimension_numbers<[1], [0], [0], [1], [0, 0, 1, 1], [], []>} : vector<512x4xf32>, vector<4x128xf32>, vector<512x128xf32> -> vector<512x128xf32>
    %78 = arith.addf %74, %77 : vector<512x128xf32>
    %c0_116 = arith.constant 0 : index
    %c0_117 = arith.constant 0 : index
    %79 = vector.load %arg9[%c0_116, %c0_117] : memref<512x128xf32, #tpu.memory_space<vmem>>, vector<512x128xf32>
    tpu.vector_store %arg9[%c0_116, %c0_117], %78 {strides = array<i32>} : memref<512x128xf32, #tpu.memory_space<vmem>>, vector<512x128xf32>,
    %c0_118 = arith.constant 0 : index
    %c0_119 = arith.constant 0 : index
    %80 = vector.load %arg9[%c0_118, %c0_119] : memref<512x128xf32, #tpu.memory_space<vmem>>, vector<512x128xf32>
    %c0_120 = arith.constant 0 : index
    %c0_121 = arith.constant 0 : index
    %81 = vector.load %arg3[%c0_120, %c0_121] : memref<1x128xf32, #tpu.memory_space<vmem>>, vector<1x128xf32>
    %82 = vector.broadcast %81 : vector<1x128xf32> to vector<512x128xf32>
    %83 = arith.addf %80, %82 : vector<512x128xf32>
    %cst_122 = arith.constant 0.000000e+00 : f32
    %84 = vector.broadcast %cst_122 : f32 to vector<512x128xf32>
    %85 = arith.maximumf %83, %84 : vector<512x128xf32>
    %86 = vector.shape_cast %85 : vector<512x128xf32> to vector<2x16x16x128xf32>
    %c0_123 = arith.constant 0 : index
    %c1_124 = arith.constant 1 : index
    %c8_125 = arith.constant 8 : index
    %c0_126 = arith.constant 0 : index
    %87 = vector.load %arg8[%c0_123, %c1_124, %c8_125, %c0_126] : memref<2x18x32x128xf32, #tpu.memory_space<vmem>>, vector<2x16x16x128xf32>
    tpu.vector_store %arg8[%c0_123, %c1_124, %c8_125, %c0_126], %86 {strides = array<i32>} : memref<2x18x32x128xf32, #tpu.memory_space<vmem>>, vector<2x16x16x128xf32>,
    %cst_127 = arith.constant 0.000000e+00 : f32
    %88 = vector.broadcast %cst_127 : f32 to vector<512x128xf32>
    %c0_128 = arith.constant 0 : index
    %c0_129 = arith.constant 0 : index
    %89 = vector.load %arg9[%c0_128, %c0_129] : memref<512x128xf32, #tpu.memory_space<vmem>>, vector<512x128xf32>
    tpu.vector_store %arg9[%c0_128, %c0_129], %88 {strides = array<i32>} : memref<512x128xf32, #tpu.memory_space<vmem>>, vector<512x128xf32>,
    %c0_130 = arith.constant 0 : index
    %c0_131 = arith.constant 0 : index
    %c7_132 = arith.constant 7 : index
    %c0_133 = arith.constant 0 : index
    %90 = vector.load %arg8[%c0_130, %c0_131, %c7_132, %c0_133] : memref<2x18x32x128xf32, #tpu.memory_space<vmem>>, vector<2x16x16x128xf32>
    %91 = vector.shape_cast %90 : vector<2x16x16x128xf32> to vector<512x128xf32>
    %c0_134 = arith.constant 0 : index
    %c0_135 = arith.constant 0 : index
    %92 = vector.load %arg9[%c0_134, %c0_135] : memref<512x128xf32, #tpu.memory_space<vmem>>, vector<512x128xf32>
    %c0_136 = arith.constant 0 : index
    %c0_137 = arith.constant 0 : index
    %c0_138 = arith.constant 0 : index
    %93 = vector.load %arg4[%c0_136, %c0_137, %c0_138] : memref<9x128x128xf32, #tpu.memory_space<vmem>>, vector<1x128x128xf32>
    %94 = vector.shape_cast %93 : vector<1x128x128xf32> to vector<128x128xf32>
    %cst_139 = arith.constant dense<0.000000e+00> : vector<512x128xf32>
    %95 = tpu.matmul %91, %94, %cst_139 {dimension_numbers = #tpu.dot_dimension_numbers<[1], [0], [0], [1], [0, 0, 1, 1], [], []>} : vector<512x128xf32>, vector<128x128xf32>, vector<512x128xf32> -> vector<512x128xf32>
    %96 = arith.addf %92, %95 : vector<512x128xf32>
    %c0_140 = arith.constant 0 : index
    %c0_141 = arith.constant 0 : index
    %97 = vector.load %arg9[%c0_140, %c0_141] : memref<512x128xf32, #tpu.memory_space<vmem>>, vector<512x128xf32>
    tpu.vector_store %arg9[%c0_140, %c0_141], %96 {strides = array<i32>} : memref<512x128xf32, #tpu.memory_space<vmem>>, vector<512x128xf32>,
    %c0_142 = arith.constant 0 : index
    %c0_143 = arith.constant 0 : index
    %c8_144 = arith.constant 8 : index
    %c0_145 = arith.constant 0 : index
    %98 = vector.load %arg8[%c0_142, %c0_143, %c8_144, %c0_145] : memref<2x18x32x128xf32, #tpu.memory_space<vmem>>, vector<2x16x16x128xf32>
    %99 = vector.shape_cast %98 : vector<2x16x16x128xf32> to vector<512x128xf32>
    %c0_146 = arith.constant 0 : index
    %c0_147 = arith.constant 0 : index
    %100 = vector.load %arg9[%c0_146, %c0_147] : memref<512x128xf32, #tpu.memory_space<vmem>>, vector<512x128xf32>
    %c1_148 = arith.constant 1 : index
    %c0_149 = arith.constant 0 : index
    %c0_150 = arith.constant 0 : index
    %101 = vector.load %arg4[%c1_148, %c0_149, %c0_150] : memref<9x128x128xf32, #tpu.memory_space<vmem>>, vector<1x128x128xf32>
    %102 = vector.shape_cast %101 : vector<1x128x128xf32> to vector<128x128xf32>
    %cst_151 = arith.constant dense<0.000000e+00> : vector<512x128xf32>
    %103 = tpu.matmul %99, %102, %cst_151 {dimension_numbers = #tpu.dot_dimension_numbers<[1], [0], [0], [1], [0, 0, 1, 1], [], []>} : vector<512x128xf32>, vector<128x128xf32>, vector<512x128xf32> -> vector<512x128xf32>
    %104 = arith.addf %100, %103 : vector<512x128xf32>
    %c0_152 = arith.constant 0 : index
    %c0_153 = arith.constant 0 : index
    %105 = vector.load %arg9[%c0_152, %c0_153] : memref<512x128xf32, #tpu.memory_space<vmem>>, vector<512x128xf32>
    tpu.vector_store %arg9[%c0_152, %c0_153], %104 {strides = array<i32>} : memref<512x128xf32, #tpu.memory_space<vmem>>, vector<512x128xf32>,
    %c0_154 = arith.constant 0 : index
    %c0_155 = arith.constant 0 : index
    %c9_156 = arith.constant 9 : index
    %c0_157 = arith.constant 0 : index
    %106 = vector.load %arg8[%c0_154, %c0_155, %c9_156, %c0_157] : memref<2x18x32x128xf32, #tpu.memory_space<vmem>>, vector<2x16x16x128xf32>
    %107 = vector.shape_cast %106 : vector<2x16x16x128xf32> to vector<512x128xf32>
    %c0_158 = arith.constant 0 : index
    %c0_159 = arith.constant 0 : index
    %108 = vector.load %arg9[%c0_158, %c0_159] : memref<512x128xf32, #tpu.memory_space<vmem>>, vector<512x128xf32>
    %c2_160 = arith.constant 2 : index
    %c0_161 = arith.constant 0 : index
    %c0_162 = arith.constant 0 : index
    %109 = vector.load %arg4[%c2_160, %c0_161, %c0_162] : memref<9x128x128xf32, #tpu.memory_space<vmem>>, vector<1x128x128xf32>
    %110 = vector.shape_cast %109 : vector<1x128x128xf32> to vector<128x128xf32>
    %cst_163 = arith.constant dense<0.000000e+00> : vector<512x128xf32>
    %111 = tpu.matmul %107, %110, %cst_163 {dimension_numbers = #tpu.dot_dimension_numbers<[1], [0], [0], [1], [0, 0, 1, 1], [], []>} : vector<512x128xf32>, vector<128x128xf32>, vector<512x128xf32> -> vector<512x128xf32>
    %112 = arith.addf %108, %111 : vector<512x128xf32>
    %c0_164 = arith.constant 0 : index
    %c0_165 = arith.constant 0 : index
    %113 = vector.load %arg9[%c0_164, %c0_165] : memref<512x128xf32, #tpu.memory_space<vmem>>, vector<512x128xf32>
    tpu.vector_store %arg9[%c0_164, %c0_165], %112 {strides = array<i32>} : memref<512x128xf32, #tpu.memory_space<vmem>>, vector<512x128xf32>,
    %c0_166 = arith.constant 0 : index
    %c1_167 = arith.constant 1 : index
    %c7_168 = arith.constant 7 : index
    %c0_169 = arith.constant 0 : index
    %114 = vector.load %arg8[%c0_166, %c1_167, %c7_168, %c0_169] : memref<2x18x32x128xf32, #tpu.memory_space<vmem>>, vector<2x16x16x128xf32>
    %115 = vector.shape_cast %114 : vector<2x16x16x128xf32> to vector<512x128xf32>
    %c0_170 = arith.constant 0 : index
    %c0_171 = arith.constant 0 : index
    %116 = vector.load %arg9[%c0_170, %c0_171] : memref<512x128xf32, #tpu.memory_space<vmem>>, vector<512x128xf32>
    %c3_172 = arith.constant 3 : index
    %c0_173 = arith.constant 0 : index
    %c0_174 = arith.constant 0 : index
    %117 = vector.load %arg4[%c3_172, %c0_173, %c0_174] : memref<9x128x128xf32, #tpu.memory_space<vmem>>, vector<1x128x128xf32>
    %118 = vector.shape_cast %117 : vector<1x128x128xf32> to vector<128x128xf32>
    %cst_175 = arith.constant dense<0.000000e+00> : vector<512x128xf32>
    %119 = tpu.matmul %115, %118, %cst_175 {dimension_numbers = #tpu.dot_dimension_numbers<[1], [0], [0], [1], [0, 0, 1, 1], [], []>} : vector<512x128xf32>, vector<128x128xf32>, vector<512x128xf32> -> vector<512x128xf32>
    %120 = arith.addf %116, %119 : vector<512x128xf32>
    %c0_176 = arith.constant 0 : index
    %c0_177 = arith.constant 0 : index
    %121 = vector.load %arg9[%c0_176, %c0_177] : memref<512x128xf32, #tpu.memory_space<vmem>>, vector<512x128xf32>
    tpu.vector_store %arg9[%c0_176, %c0_177], %120 {strides = array<i32>} : memref<512x128xf32, #tpu.memory_space<vmem>>, vector<512x128xf32>,
    %c0_178 = arith.constant 0 : index
    %c1_179 = arith.constant 1 : index
    %c8_180 = arith.constant 8 : index
    %c0_181 = arith.constant 0 : index
    %122 = vector.load %arg8[%c0_178, %c1_179, %c8_180, %c0_181] : memref<2x18x32x128xf32, #tpu.memory_space<vmem>>, vector<2x16x16x128xf32>
    %123 = vector.shape_cast %122 : vector<2x16x16x128xf32> to vector<512x128xf32>
    %c0_182 = arith.constant 0 : index
    %c0_183 = arith.constant 0 : index
    %124 = vector.load %arg9[%c0_182, %c0_183] : memref<512x128xf32, #tpu.memory_space<vmem>>, vector<512x128xf32>
    %c4_184 = arith.constant 4 : index
    %c0_185 = arith.constant 0 : index
    %c0_186 = arith.constant 0 : index
    %125 = vector.load %arg4[%c4_184, %c0_185, %c0_186] : memref<9x128x128xf32, #tpu.memory_space<vmem>>, vector<1x128x128xf32>
    %126 = vector.shape_cast %125 : vector<1x128x128xf32> to vector<128x128xf32>
    %cst_187 = arith.constant dense<0.000000e+00> : vector<512x128xf32>
    %127 = tpu.matmul %123, %126, %cst_187 {dimension_numbers = #tpu.dot_dimension_numbers<[1], [0], [0], [1], [0, 0, 1, 1], [], []>} : vector<512x128xf32>, vector<128x128xf32>, vector<512x128xf32> -> vector<512x128xf32>
    %128 = arith.addf %124, %127 : vector<512x128xf32>
    %c0_188 = arith.constant 0 : index
    %c0_189 = arith.constant 0 : index
    %129 = vector.load %arg9[%c0_188, %c0_189] : memref<512x128xf32, #tpu.memory_space<vmem>>, vector<512x128xf32>
    tpu.vector_store %arg9[%c0_188, %c0_189], %128 {strides = array<i32>} : memref<512x128xf32, #tpu.memory_space<vmem>>, vector<512x128xf32>,
    %c0_190 = arith.constant 0 : index
    %c1_191 = arith.constant 1 : index
    %c9_192 = arith.constant 9 : index
    %c0_193 = arith.constant 0 : index
    %130 = vector.load %arg8[%c0_190, %c1_191, %c9_192, %c0_193] : memref<2x18x32x128xf32, #tpu.memory_space<vmem>>, vector<2x16x16x128xf32>
    %131 = vector.shape_cast %130 : vector<2x16x16x128xf32> to vector<512x128xf32>
    %c0_194 = arith.constant 0 : index
    %c0_195 = arith.constant 0 : index
    %132 = vector.load %arg9[%c0_194, %c0_195] : memref<512x128xf32, #tpu.memory_space<vmem>>, vector<512x128xf32>
    %c5_196 = arith.constant 5 : index
    %c0_197 = arith.constant 0 : index
    %c0_198 = arith.constant 0 : index
    %133 = vector.load %arg4[%c5_196, %c0_197, %c0_198] : memref<9x128x128xf32, #tpu.memory_space<vmem>>, vector<1x128x128xf32>
    %134 = vector.shape_cast %133 : vector<1x128x128xf32> to vector<128x128xf32>
    %cst_199 = arith.constant dense<0.000000e+00> : vector<512x128xf32>
    %135 = tpu.matmul %131, %134, %cst_199 {dimension_numbers = #tpu.dot_dimension_numbers<[1], [0], [0], [1], [0, 0, 1, 1], [], []>} : vector<512x128xf32>, vector<128x128xf32>, vector<512x128xf32> -> vector<512x128xf32>
    %136 = arith.addf %132, %135 : vector<512x128xf32>
    %c0_200 = arith.constant 0 : index
    %c0_201 = arith.constant 0 : index
    %137 = vector.load %arg9[%c0_200, %c0_201] : memref<512x128xf32, #tpu.memory_space<vmem>>, vector<512x128xf32>
    tpu.vector_store %arg9[%c0_200, %c0_201], %136 {strides = array<i32>} : memref<512x128xf32, #tpu.memory_space<vmem>>, vector<512x128xf32>,
    %c0_202 = arith.constant 0 : index
    %c2_203 = arith.constant 2 : index
    %c7_204 = arith.constant 7 : index
    %c0_205 = arith.constant 0 : index
    %138 = vector.load %arg8[%c0_202, %c2_203, %c7_204, %c0_205] : memref<2x18x32x128xf32, #tpu.memory_space<vmem>>, vector<2x16x16x128xf32>
    %139 = vector.shape_cast %138 : vector<2x16x16x128xf32> to vector<512x128xf32>
    %c0_206 = arith.constant 0 : index
    %c0_207 = arith.constant 0 : index
    %140 = vector.load %arg9[%c0_206, %c0_207] : memref<512x128xf32, #tpu.memory_space<vmem>>, vector<512x128xf32>
    %c6_208 = arith.constant 6 : index
    %c0_209 = arith.constant 0 : index
    %c0_210 = arith.constant 0 : index
    %141 = vector.load %arg4[%c6_208, %c0_209, %c0_210] : memref<9x128x128xf32, #tpu.memory_space<vmem>>, vector<1x128x128xf32>
    %142 = vector.shape_cast %141 : vector<1x128x128xf32> to vector<128x128xf32>
    %cst_211 = arith.constant dense<0.000000e+00> : vector<512x128xf32>
    %143 = tpu.matmul %139, %142, %cst_211 {dimension_numbers = #tpu.dot_dimension_numbers<[1], [0], [0], [1], [0, 0, 1, 1], [], []>} : vector<512x128xf32>, vector<128x128xf32>, vector<512x128xf32> -> vector<512x128xf32>
    %144 = arith.addf %140, %143 : vector<512x128xf32>
    %c0_212 = arith.constant 0 : index
    %c0_213 = arith.constant 0 : index
    %145 = vector.load %arg9[%c0_212, %c0_213] : memref<512x128xf32, #tpu.memory_space<vmem>>, vector<512x128xf32>
    tpu.vector_store %arg9[%c0_212, %c0_213], %144 {strides = array<i32>} : memref<512x128xf32, #tpu.memory_space<vmem>>, vector<512x128xf32>,
    %c0_214 = arith.constant 0 : index
    %c2_215 = arith.constant 2 : index
    %c8_216 = arith.constant 8 : index
    %c0_217 = arith.constant 0 : index
    %146 = vector.load %arg8[%c0_214, %c2_215, %c8_216, %c0_217] : memref<2x18x32x128xf32, #tpu.memory_space<vmem>>, vector<2x16x16x128xf32>
    %147 = vector.shape_cast %146 : vector<2x16x16x128xf32> to vector<512x128xf32>
    %c0_218 = arith.constant 0 : index
    %c0_219 = arith.constant 0 : index
    %148 = vector.load %arg9[%c0_218, %c0_219] : memref<512x128xf32, #tpu.memory_space<vmem>>, vector<512x128xf32>
    %c7_220 = arith.constant 7 : index
    %c0_221 = arith.constant 0 : index
    %c0_222 = arith.constant 0 : index
    %149 = vector.load %arg4[%c7_220, %c0_221, %c0_222] : memref<9x128x128xf32, #tpu.memory_space<vmem>>, vector<1x128x128xf32>
    %150 = vector.shape_cast %149 : vector<1x128x128xf32> to vector<128x128xf32>
    %cst_223 = arith.constant dense<0.000000e+00> : vector<512x128xf32>
    %151 = tpu.matmul %147, %150, %cst_223 {dimension_numbers = #tpu.dot_dimension_numbers<[1], [0], [0], [1], [0, 0, 1, 1], [], []>} : vector<512x128xf32>, vector<128x128xf32>, vector<512x128xf32> -> vector<512x128xf32>
    %152 = arith.addf %148, %151 : vector<512x128xf32>
    %c0_224 = arith.constant 0 : index
    %c0_225 = arith.constant 0 : index
    %153 = vector.load %arg9[%c0_224, %c0_225] : memref<512x128xf32, #tpu.memory_space<vmem>>, vector<512x128xf32>
    tpu.vector_store %arg9[%c0_224, %c0_225], %152 {strides = array<i32>} : memref<512x128xf32, #tpu.memory_space<vmem>>, vector<512x128xf32>,
    %c0_226 = arith.constant 0 : index
    %c2_227 = arith.constant 2 : index
    %c9_228 = arith.constant 9 : index
    %c0_229 = arith.constant 0 : index
    %154 = vector.load %arg8[%c0_226, %c2_227, %c9_228, %c0_229] : memref<2x18x32x128xf32, #tpu.memory_space<vmem>>, vector<2x16x16x128xf32>
    %155 = vector.shape_cast %154 : vector<2x16x16x128xf32> to vector<512x128xf32>
    %c0_230 = arith.constant 0 : index
    %c0_231 = arith.constant 0 : index
    %156 = vector.load %arg9[%c0_230, %c0_231] : memref<512x128xf32, #tpu.memory_space<vmem>>, vector<512x128xf32>
    %c8_232 = arith.constant 8 : index
    %c0_233 = arith.constant 0 : index
    %c0_234 = arith.constant 0 : index
    %157 = vector.load %arg4[%c8_232, %c0_233, %c0_234] : memref<9x128x128xf32, #tpu.memory_space<vmem>>, vector<1x128x128xf32>
    %158 = vector.shape_cast %157 : vector<1x128x128xf32> to vector<128x128xf32>
    %cst_235 = arith.constant dense<0.000000e+00> : vector<512x128xf32>
    %159 = tpu.matmul %155, %158, %cst_235 {dimension_numbers = #tpu.dot_dimension_numbers<[1], [0], [0], [1], [0, 0, 1, 1], [], []>} : vector<512x128xf32>, vector<128x128xf32>, vector<512x128xf32> -> vector<512x128xf32>
    %160 = arith.addf %156, %159 : vector<512x128xf32>
    %c0_236 = arith.constant 0 : index
    %c0_237 = arith.constant 0 : index
    %161 = vector.load %arg9[%c0_236, %c0_237] : memref<512x128xf32, #tpu.memory_space<vmem>>, vector<512x128xf32>
    tpu.vector_store %arg9[%c0_236, %c0_237], %160 {strides = array<i32>} : memref<512x128xf32, #tpu.memory_space<vmem>>, vector<512x128xf32>,
    %c0_238 = arith.constant 0 : index
    %c0_239 = arith.constant 0 : index
    %162 = vector.load %arg9[%c0_238, %c0_239] : memref<512x128xf32, #tpu.memory_space<vmem>>, vector<512x128xf32>
    %c0_240 = arith.constant 0 : index
    %c0_241 = arith.constant 0 : index
    %163 = vector.load %arg5[%c0_240, %c0_241] : memref<1x128xf32, #tpu.memory_space<vmem>>, vector<1x128xf32>
    %164 = vector.broadcast %163 : vector<1x128xf32> to vector<512x128xf32>
    %165 = arith.addf %162, %164 : vector<512x128xf32>
    %cst_242 = arith.constant 0.000000e+00 : f32
    %166 = vector.broadcast %cst_242 : f32 to vector<512x128xf32>
    %167 = arith.maximumf %165, %166 : vector<512x128xf32>
    %c0_243 = arith.constant 0 : index
    %c0_244 = arith.constant 0 : index
    %168 = vector.load %arg9[%c0_243, %c0_244] : memref<512x128xf32, #tpu.memory_space<vmem>>, vector<512x128xf32>
    tpu.vector_store %arg9[%c0_243, %c0_244], %167 {strides = array<i32>} : memref<512x128xf32, #tpu.memory_space<vmem>>, vector<512x128xf32>,
    %c0_245 = arith.constant 0 : index
    %c0_246 = arith.constant 0 : index
    %169 = tpu.strided_load %arg9[%c0_245, %c0_246] {strides = array<i32: 2, 1>} : memref<512x128xf32, #tpu.memory_space<vmem>>, vector<256x128xf32>
    %c1_247 = arith.constant 1 : index
    %c0_248 = arith.constant 0 : index
    %170 = tpu.strided_load %arg9[%c1_247, %c0_248] {strides = array<i32: 2, 1>} : memref<512x128xf32, #tpu.memory_space<vmem>>, vector<256x128xf32>
    %171 = arith.maximumf %169, %170 : vector<256x128xf32>
    %172 = vector.shape_cast %171 : vector<256x128xf32> to vector<2x8x2x8x128xf32>
    %173 = vector.extract_strided_slice %172 {offsets = [0, 0, 0, 0, 0], sizes = [2, 8, 1, 8, 128], strides = [1, 1, 1, 1, 1]} : vector<2x8x2x8x128xf32> to vector<2x8x1x8x128xf32>
    %174 = vector.shape_cast %173 : vector<2x8x1x8x128xf32> to vector<2x8x8x128xf32>
    %175 = vector.extract_strided_slice %172 {offsets = [0, 0, 1, 0, 0], sizes = [2, 8, 1, 8, 128], strides = [1, 1, 1, 1, 1]} : vector<2x8x2x8x128xf32> to vector<2x8x1x8x128xf32>
    %176 = vector.shape_cast %175 : vector<2x8x1x8x128xf32> to vector<2x8x8x128xf32>
    %177 = arith.maximumf %174, %176 : vector<2x8x8x128xf32>
    %178 = vector.shape_cast %177 : vector<2x8x8x128xf32> to vector<128x128xf32>
    %c0_249 = arith.constant 0 : index
    %c0_250 = arith.constant 0 : index
    %179 = vector.load %arg6[%c0_249, %c0_250] : memref<128x128xf32, #tpu.memory_space<vmem>>, vector<128x128xf32>
    tpu.vector_store %arg6[%c0_249, %c0_250], %178 {strides = array<i32>} : memref<128x128xf32, #tpu.memory_space<vmem>>, vector<128x128xf32>,
    return
  }
  func.func @transform_0(%arg0: i32) -> (i32, i32, i32, i32) {
    %c0_i32 = arith.constant 0 : i32
    %c0_i32_0 = arith.constant 0 : i32
    %c0_i32_1 = arith.constant 0 : i32
    %c0_i32_2 = arith.constant 0 : i32
    %c0_i32_3 = arith.constant 0 : i32
    return %c0_i32, %c0_i32_0, %c0_i32_1, %c0_i32_2 : i32, i32, i32, i32
  }
  func.func @transform_1(%arg0: i32) -> (i32, i32, i32) {
    %c0_i32 = arith.constant 0 : i32
    %c0_i32_0 = arith.constant 0 : i32
    %c0_i32_1 = arith.constant 0 : i32
    %c0_i32_2 = arith.constant 0 : i32
    return %c0_i32, %c0_i32_0, %c0_i32_1 : i32, i32, i32
  }
  func.func @transform_2(%arg0: i32) -> (i32, i32) {
    %c0_i32 = arith.constant 0 : i32
    %c0_i32_0 = arith.constant 0 : i32
    %c0_i32_1 = arith.constant 0 : i32
    return %c0_i32, %c0_i32_0 : i32, i32
  }
  func.func @transform_3(%arg0: i32) -> (i32, i32, i32) {
    %c0_i32 = arith.constant 0 : i32
    %c0_i32_0 = arith.constant 0 : i32
    %c0_i32_1 = arith.constant 0 : i32
    %c0_i32_2 = arith.constant 0 : i32
    return %c0_i32, %c0_i32_0, %c0_i32_1 : i32, i32, i32
  }
  func.func @transform_4(%arg0: i32) -> (i32, i32) {
    %c0_i32 = arith.constant 0 : i32
    %c0_i32_0 = arith.constant 0 : i32
    %c0_i32_1 = arith.constant 0 : i32
    return %c0_i32, %c0_i32_0 : i32, i32
  }
  func.func @transform_5(%arg0: i32) -> (i32, i32) {
    %c0_i32 = arith.constant 0 : i32
    %c0_i32_0 = arith.constant 0 : i32
    %c0_i32_1 = arith.constant 0 : i32
    return %c0_i32, %c0_i32_0 : i32, i32
  }
}

module attributes {stable_mosaic.version = 11 : i64} {
  func.func @_classifier_kernel(%arg0: i32, %arg1: memref<2x512xf32, #tpu.memory_space<vmem>>, %arg2: memref<512x128xf32, #tpu.memory_space<vmem>>, %arg3: memref<1x128xf32, #tpu.memory_space<vmem>>, %arg4: memref<128x128xf32, #tpu.memory_space<vmem>>, %arg5: memref<1x128xf32, #tpu.memory_space<vmem>>, %arg6: memref<2x128xf32, #tpu.memory_space<vmem>>) attributes {dimension_semantics = [#tpu.dimension_semantics<arbitrary>], iteration_bounds = array<i64: 1>, scalar_prefetch = 0 : i64, scratch_operands = 0 : i64, tpu.core_type = #tpu.core_type<tc>, window_params = [{pipeline_mode = #tpu.pipeline_mode<synchronous>, transform_indices = @transform_0, window_bounds = array<i64: 2, 512>}, {pipeline_mode = #tpu.pipeline_mode<synchronous>, transform_indices = @transform_1, window_bounds = array<i64: 512, 128>}, {pipeline_mode = #tpu.pipeline_mode<synchronous>, transform_indices = @transform_2, window_bounds = array<i64: 1, 128>}, {pipeline_mode = #tpu.pipeline_mode<synchronous>, transform_indices = @transform_3, window_bounds = array<i64: 128, 128>}, {pipeline_mode = #tpu.pipeline_mode<synchronous>, transform_indices = @transform_4, window_bounds = array<i64: 1, 128>}, {pipeline_mode = #tpu.pipeline_mode<synchronous>, transform_indices = @transform_5, window_bounds = array<i64: 2, 128>}]} {
    %c0 = arith.constant 0 : index
    %c0_0 = arith.constant 0 : index
    %0 = vector.load %arg1[%c0, %c0_0] : memref<2x512xf32, #tpu.memory_space<vmem>>, vector<2x512xf32>
    %c0_1 = arith.constant 0 : index
    %c0_2 = arith.constant 0 : index
    %1 = vector.load %arg2[%c0_1, %c0_2] : memref<512x128xf32, #tpu.memory_space<vmem>>, vector<512x128xf32>
    %cst = arith.constant dense<0.000000e+00> : vector<2x128xf32>
    %2 = tpu.matmul %0, %1, %cst {dimension_numbers = #tpu.dot_dimension_numbers<[1], [0], [0], [1], [0, 0, 1, 1], [], []>} : vector<2x512xf32>, vector<512x128xf32>, vector<2x128xf32> -> vector<2x128xf32>
    %c0_3 = arith.constant 0 : index
    %c0_4 = arith.constant 0 : index
    %3 = vector.load %arg3[%c0_3, %c0_4] : memref<1x128xf32, #tpu.memory_space<vmem>>, vector<1x128xf32>
    %4 = vector.broadcast %3 : vector<1x128xf32> to vector<2x128xf32>
    %5 = arith.addf %2, %4 : vector<2x128xf32>
    %cst_5 = arith.constant 0.000000e+00 : f32
    %6 = vector.broadcast %cst_5 : f32 to vector<2x128xf32>
    %7 = arith.maximumf %5, %6 : vector<2x128xf32>
    %c0_6 = arith.constant 0 : index
    %c0_7 = arith.constant 0 : index
    %8 = vector.load %arg4[%c0_6, %c0_7] : memref<128x128xf32, #tpu.memory_space<vmem>>, vector<128x128xf32>
    %cst_8 = arith.constant dense<0.000000e+00> : vector<2x128xf32>
    %9 = tpu.matmul %7, %8, %cst_8 {dimension_numbers = #tpu.dot_dimension_numbers<[1], [0], [0], [1], [0, 0, 1, 1], [], []>} : vector<2x128xf32>, vector<128x128xf32>, vector<2x128xf32> -> vector<2x128xf32>
    %c0_9 = arith.constant 0 : index
    %c0_10 = arith.constant 0 : index
    %10 = vector.load %arg5[%c0_9, %c0_10] : memref<1x128xf32, #tpu.memory_space<vmem>>, vector<1x128xf32>
    %11 = vector.broadcast %10 : vector<1x128xf32> to vector<2x128xf32>
    %12 = arith.addf %9, %11 : vector<2x128xf32>
    %c0_11 = arith.constant 0 : index
    %c0_12 = arith.constant 0 : index
    %13 = vector.load %arg6[%c0_11, %c0_12] : memref<2x128xf32, #tpu.memory_space<vmem>>, vector<2x128xf32>
    tpu.vector_store %arg6[%c0_11, %c0_12], %12 {strides = array<i32>} : memref<2x128xf32, #tpu.memory_space<vmem>>, vector<2x128xf32>,
    return
  }
  func.func @transform_0(%arg0: i32) -> (i32, i32) {
    %c0_i32 = arith.constant 0 : i32
    %c0_i32_0 = arith.constant 0 : i32
    %c0_i32_1 = arith.constant 0 : i32
    return %c0_i32, %c0_i32_0 : i32, i32
  }
  func.func @transform_1(%arg0: i32) -> (i32, i32) {
    %c0_i32 = arith.constant 0 : i32
    %c0_i32_0 = arith.constant 0 : i32
    %c0_i32_1 = arith.constant 0 : i32
    return %c0_i32, %c0_i32_0 : i32, i32
  }
  func.func @transform_2(%arg0: i32) -> (i32, i32) {
    %c0_i32 = arith.constant 0 : i32
    %c0_i32_0 = arith.constant 0 : i32
    %c0_i32_1 = arith.constant 0 : i32
    return %c0_i32, %c0_i32_0 : i32, i32
  }
  func.func @transform_3(%arg0: i32) -> (i32, i32) {
    %c0_i32 = arith.constant 0 : i32
    %c0_i32_0 = arith.constant 0 : i32
    %c0_i32_1 = arith.constant 0 : i32
    return %c0_i32, %c0_i32_0 : i32, i32
  }
  func.func @transform_4(%arg0: i32) -> (i32, i32) {
    %c0_i32 = arith.constant 0 : i32
    %c0_i32_0 = arith.constant 0 : i32
    %c0_i32_1 = arith.constant 0 : i32
    return %c0_i32, %c0_i32_0 : i32, i32
  }
  func.func @transform_5(%arg0: i32) -> (i32, i32) {
    %c0_i32 = arith.constant 0 : i32
    %c0_i32_0 = arith.constant 0 : i32
    %c0_i32_1 = arith.constant 0 : i32
    return %c0_i32, %c0_i32_0 : i32, i32
  }
}

</mosaic_0001>

<bundles_post_ra>
// kernel: conv_classifier_forward.3
= control target key start
LH: loop header
LB: loop body
LE: loop exit
PB: predicated region body
PF: predicated region fallthrough
CT: control target
= control target key end

     0   :  { %v606_v47 = vmov 1983009808   ;;  %v98_v49 = vlaneseq  ;;  %s902_s0 = inlined_call_operand.vmem [shape: f32[2,512], index: 0, kind: input, shape index: {}]   ;;  %s903_s1 = inlined_call_operand.vmem [shape: f32[512,128], index: 1, kind: input, shape index: {}]   ;;  %s904_s2 = inlined_call_operand.vmem [shape: f32[1,128], index: 2, kind: input, shape index: {}]   ;;  %s905_s3 = inlined_call_operand.vmem [shape: f32[128,128], index: 3, kind: input, shape index: {}]   ;;  %s906_s4 = inlined_call_operand.vmem [shape: f32[1,128], index: 4, kind: input, shape index: {}]   ;;  %s907_s5 = inlined_call_operand.hbm [shape: f32[2,128], index: 5, kind: output, shape index: {}]  }
   0x1   :  { %v38_v0 = vld [vmem:[%s903_s1 + $0x80] sm:$0xff]  ;;  %v39_v1 = vld [vmem:[%s903_s1 + $0x88] sm:$0xff]  ;;  %v40_v11 = vld [vmem:[%s903_s1 + $0x90] sm:$0xff]  ;;  %v96_v48 = vunpack.c.l.s4 %v606_v47 }
   0x2   :  { %v22_v2 = vld [vmem:[%s903_s1] sm:$0xff]  ;;  %v488_v3 = vpack.c.bf16 %v39_v1, %v38_v0  ;;  %v23_v4 = vld [vmem:[%s903_s1 + $0x8] sm:$0xff]  ;;  %v41_v13 = vld [vmem:[%s903_s1 + $0x98] sm:$0xff]  ;;  %v99_v0 = vshrl.u32 %v98_v49, 7 }
   0x3   :  { %v70_v5 = vld [vmem:[%s903_s1 + $0x180] sm:$0xff]  ;;  %v71_v6 = vld [vmem:[%s903_s1 + $0x188] sm:$0xff]  ;;  %v490_v7 = vpack.c.bf16 %v23_v4, %v22_v2  ;;  %v24_v14 = vld [vmem:[%s903_s1 + $0x10] sm:$0xff]  ;;  %v492_v16 = vpack.c.bf16 %v41_v13, %v40_v11  ;;  %v97_v63 = vunpack.c.0.s8 %v96_v48 }
   0x4   :  { %v520_v8 = vpack.c.bf16 %v71_v6, %v70_v5  ;;  %v54_v9 = vld [vmem:[%s903_s1 + $0x100] sm:$0xff]  ;;  %v55_v10 = vld [vmem:[%s903_s1 + $0x108] sm:$0xff]  ;;  %489 = vmatprep.subr.bf16.mxu0 %v488_v3  ;;  %v25_v15 = vld [vmem:[%s903_s1 + $0x18] sm:$0xff] }
   0x5   :  { %v522_v12 = vpack.c.bf16 %v55_v10, %v54_v9  ;;  %491 = vmatpush3.bf16.msra.mxu0 %v490_v7  ;;  %v494_v17 = vpack.c.bf16 %v25_v15, %v24_v14  ;;  %v72_v18 = vld [vmem:[%s903_s1 + $0x190] sm:$0xff]  ;;  %v73_v19 = vld [vmem:[%s903_s1 + $0x198] sm:$0xff]  ;;  %v42_v23 = vld [vmem:[%s903_s1 + $0xa0] sm:$0xff]  ;;  %v100_v13 = vsub.s32 %v97_v63, %v99_v0 }
   0x6   :  { %521 = vmatprep.subr.bf16.mxu1 %v520_v8  ;;  %v56_v20 = vld [vmem:[%s903_s1 + $0x110] sm:$0xff]  ;;  %v524_v21 = vpack.c.bf16 %v73_v19, %v72_v18  ;;  %v57_v22 = vld [vmem:[%s903_s1 + $0x118] sm:$0xff]  ;;  %v43_v24 = vld [vmem:[%s903_s1 + $0xa8] sm:$0xff]  ;;  %493 = vmatprep.subr.bf16.mxu0 %v492_v16 }
   0x7   :  { %523 = vmatpush3.bf16.msra.mxu1 %v522_v12  ;;  %v526_v25 = vpack.c.bf16 %v57_v22, %v56_v20  ;;  %v496_v26 = vpack.c.bf16 %v43_v24, %v42_v23  ;;  %v26_v27 = vld [vmem:[%s903_s1 + $0x20] sm:$0xff]  ;;  %v27_v28 = vld [vmem:[%s903_s1 + $0x28] sm:$0xff]  ;;  %v44_v35 = vld [vmem:[%s903_s1 + $0xb0] sm:$0xff] }
   0x8   :  { %v74_v29 = vld [vmem:[%s903_s1 + $0x1a0] sm:$0xff]  ;;  %525 = vmatprep.subr.bf16.mxu1 %v524_v21  ;;  %v75_v30 = vld [vmem:[%s903_s1 + $0x1a8] sm:$0xff]  ;;  %v498_v33 = vpack.c.bf16 %v27_v28, %v26_v27  ;;  %v45_v36 = vld [vmem:[%s903_s1 + $0xb8] sm:$0xff] }
   0x9   :  { %v58_v31 = vld [vmem:[%s903_s1 + $0x120] sm:$0xff]  ;;  %v59_v32 = vld [vmem:[%s903_s1 + $0x128] sm:$0xff]  ;;  %495 = vmatpush3.bf16.msra.mxu0 %v494_v17  ;;  %v528_v34 = vpack.c.bf16 %v75_v30, %v74_v29  ;;  %v28_v37 = vld [vmem:[%s903_s1 + $0x30] sm:$0xff]  ;;  %v500_v39 = vpack.c.bf16 %v45_v36, %v44_v35 }
   0xa   :  { %497 = vmatprep.subr.bf16.mxu0 %v496_v26  ;;  %v530_v38 = vpack.c.bf16 %v59_v32, %v58_v31  ;;  %v29_v40 = vld [vmem:[%s903_s1 + $0x38] sm:$0xff]  ;;  %v76_v41 = vld [vmem:[%s903_s1 + $0x1b0] sm:$0xff]  ;;  %v46_v46 = vld [vmem:[%s903_s1 + $0xc0] sm:$0xff] }
   0xb   :  { %527 = vmatpush3.bf16.msra.mxu1 %v526_v25  ;;  %v77_v42 = vld [vmem:[%s903_s1 + $0x1b8] sm:$0xff]  ;;  %v60_v44 = vld [vmem:[%s903_s1 + $0x130] sm:$0xff]  ;;  %v47_v50 = vld [vmem:[%s903_s1 + $0xc8] sm:$0xff]  ;;  %v502_v51 = vpack.c.bf16 %v29_v40, %v28_v37 }
   0xc   :  { %529 = vmatprep.subr.bf16.mxu1 %v528_v34  ;;  %v532_v43 = vpack.c.bf16 %v77_v42, %v76_v41  ;;  %v61_v45 = vld [vmem:[%s903_s1 + $0x138] sm:$0xff]  ;;  %v78_v52 = vld [vmem:[%s903_s1 + $0x1c0] sm:$0xff]  ;;  %v79_v53 = vld [vmem:[%s903_s1 + $0x1c8] sm:$0xff]  ;;  %v504_v55 = vpack.c.bf16 %v47_v50, %v46_v46 }
   0xd   :  { %499 = vmatpush3.bf16.msra.mxu0 %v498_v33  ;;  %v534_v54 = vpack.c.bf16 %v61_v45, %v60_v44  ;;  %v30_v56 = vld [vmem:[%s903_s1 + $0x40] sm:$0xff]  ;;  %v31_v57 = vld [vmem:[%s903_s1 + $0x48] sm:$0xff]  ;;  %v536_v59 = vpack.c.bf16 %v79_v53, %v78_v52  ;;  %v48_v61 = vld [vmem:[%s903_s1 + $0xd0] sm:$0xff] }
   0xe   :  { %501 = vmatprep.subr.bf16.mxu0 %v500_v39  ;;  %v62_v58 = vld [vmem:[%s903_s1 + $0x140] sm:$0xff]  ;;  %v63_v60 = vld [vmem:[%s903_s1 + $0x148] sm:$0xff]  ;;  %v49_v62 = vld [vmem:[%s903_s1 + $0xd8] sm:$0xff]  ;;  %v506_v3 = vpack.c.bf16 %v31_v57, %v30_v56 }
   0xf   :  { %531 = vmatpush3.bf16.msra.mxu1 %v530_v38  ;;  %v80_v1 = vld [vmem:[%s903_s1 + $0x1d0] sm:$0xff]  ;;  %v81_v2 = vld [vmem:[%s903_s1 + $0x1d8] sm:$0xff]  ;;  %v538_v4 = vpack.c.bf16 %v63_v60, %v62_v58  ;;  %v508_v5 = vpack.c.bf16 %v49_v62, %v48_v61  ;;  %v50_v11 = vld [vmem:[%s903_s1 + $0xe0] sm:$0xff] }
  0x10   :  { %533 = vmatprep.subr.bf16.mxu1 %v532_v43  ;;  %v32_v6 = vld [vmem:[%s903_s1 + $0x50] sm:$0xff]  ;;  %v33_v7 = vld [vmem:[%s903_s1 + $0x58] sm:$0xff]  ;;  %v540_v9 = vpack.c.bf16 %v81_v2, %v80_v1  ;;  %v51_v12 = vld [vmem:[%s903_s1 + $0xe8] sm:$0xff] }
  0x11   :  { %503 = vmatpush3.bf16.msra.mxu0 %v502_v51  ;;  %v64_v8 = vld [vmem:[%s903_s1 + $0x150] sm:$0xff]  ;;  %v65_v10 = vld [vmem:[%s903_s1 + $0x158] sm:$0xff]  ;;  %v82_v14 = vld [vmem:[%s903_s1 + $0x1e0] sm:$0xff]  ;;  %v510_v16 = vpack.c.bf16 %v33_v7, %v32_v6  ;;  %v512_v19 = vpack.c.bf16 %v51_v12, %v50_v11 }
  0x12   :  { %505 = vmatprep.subr.bf16.mxu0 %v504_v55  ;;  %v83_v15 = vld [vmem:[%s903_s1 + $0x1e8] sm:$0xff]  ;;  %v34_v17 = vld [vmem:[%s903_s1 + $0x60] sm:$0xff]  ;;  %v542_v18 = vpack.c.bf16 %v65_v10, %v64_v8  ;;  %v52_v25 = vld [vmem:[%s903_s1 + $0xf0] sm:$0xff] }
  0x13   :  { %535 = vmatpush3.bf16.msra.mxu1 %v534_v54  ;;  %v35_v20 = vld [vmem:[%s903_s1 + $0x68] sm:$0xff]  ;;  %v66_v21 = vld [vmem:[%s903_s1 + $0x160] sm:$0xff]  ;;  %v544_v23 = vpack.c.bf16 %v83_v15, %v82_v14  ;;  %v53_v26 = vld [vmem:[%s903_s1 + $0xf8] sm:$0xff] }
  0x14   :  { %537 = vmatprep.subr.bf16.mxu1 %v536_v59  ;;  %v21_v22 = vld [vmem:[%s902_s0] sm:$0xff]  ;;  %v67_v24 = vld [vmem:[%s903_s1 + $0x168] sm:$0xff]  ;;  %v84_v29 = vld [vmem:[%s903_s1 + $0x1f0] sm:$0xff]  ;;  %v514_v31 = vpack.c.bf16 %v35_v20, %v34_v17  ;;  %v516_v35 = vpack.c.bf16 %v53_v26, %v52_v25 }
  0x15   :  { %507 = vmatpush3.bf16.msra.mxu0 %v506_v3  ;;  %v101_v27 = vrot.slane %v21_v22, %v100_v13  ;;  %v94_v28 = vcombine.high %v21_v22, %v21_v22  ;;  %v85_v30 = vld [vmem:[%s903_s1 + $0x1f8] sm:$0xff]  ;;  %v546_v34 = vpack.c.bf16 %v67_v24, %v66_v21  ;;  %v36_v36 = vld [vmem:[%s903_s1 + $0x70] sm:$0xff] }
  0x16   :  { %509 = vmatprep.subr.bf16.mxu0 %v508_v5  ;;  %v37_v37 = vld [vmem:[%s903_s1 + $0x78] sm:$0xff] }
  0x17   :  { %539 = vmatpush3.bf16.msra.mxu1 %v538_v4  ;;  %v109_v32 = vcombine.high %v101_v27, %v101_v27  ;;  %v108_v33 = vrot.slane %v94_v28, %v100_v13 }
  0x18   :  { %541 = vmatprep.subr.bf16.mxu1 %v540_v9 }
  0x19   :  { %511 = vmatpush3.bf16.msra.mxu0 %v510_v16 }
  0x1a   :  { %513 = vmatprep.subr.bf16.mxu0 %v512_v19 }
  0x1b   :  { %543 = vmatpush3.bf16.msra.mxu1 %v542_v18 }
  0x1c   :  { %10 = vsyncpa [#allocation3], 0  ;;  %545 = vmatprep.subr.bf16.mxu1 %v544_v23  ;;  %v548_v38 = vpack.c.bf16 %v85_v30, %v84_v29  ;;  %v68_v39 = vld [vmem:[%s903_s1 + $0x170] sm:$0xff]  ;;  %v69_v40 = vld [vmem:[%s903_s1 + $0x178] sm:$0xff]  ;;  %179 = vmatprep.mubr.f32.mxu0 %v109_v32  ;;  %v110_v41 = vcombine.high %v108_v33, %v108_v33  ;;  %v518_v42 = vpack.c.bf16 %v37_v37, %v36_v36  ;;  %v607_v47 = vmov 0.0|0.0   ;;  %s610_s29 = smov [#allocation2]  }
  0x1d   :  { %515 = vmatpush3.bf16.msra.mxu0 %v514_v31  ;;  %v550_v43 = vpack.c.bf16 %v69_v40, %v68_v39  ;;  %v256_v44 = vld [vmem:[%s905_s3] sm:$0xff]  ;;  %v257_v45 = vld [vmem:[%s905_s3 + $0x8] sm:$0xff]  ;;  %v258_v48 = vld [vmem:[%s905_s3 + $0x10] sm:$0xff]  ;;  %vm608_vm0 = vmmov 0   ;;  %v609_v5 = vmov 0.0   ;;  %s356_s30 = sshll.u32 %s610_s29, 4  ;;  %s357_s30 = int_to_ptr.vmem [resolvable:$true] %s356_s30 }
  0x1e   :  { %249 = vmatprep.mubr.f32.mxu1 %v110_v41  ;;  %517 = vmatprep.subr.bf16.mxu0 %v516_v35  ;;  %v553_v46 = vpack.c.bf16 %v257_v45, %v256_v44  ;;  %v259_v49 = vld [vmem:[%s905_s3 + $0x18] sm:$0xff]  ;;  %v260_v51 = vld [vmem:[%s905_s3 + $0x20] sm:$0xff]  ;;  %v261_v52 = vld [vmem:[%s905_s3 + $0x28] sm:$0xff]  ;;  %p587_p1 = scmp.lt.s32.totalorder %s357_s30, %s357_s30 }
  0x1f   :  { %547 = vmatpush3.bf16.msra.mxu1 %v546_v34  ;;  %v556_v50 = vpack.c.bf16 %v259_v49, %v258_v48  ;;  %v559_v53 = vpack.c.bf16 %v261_v52, %v260_v51  ;;  %v262_v54 = vld [vmem:[%s905_s3 + $0x30] sm:$0xff]  ;;  %v263_v55 = vld [vmem:[%s905_s3 + $0x38] sm:$0xff]  ;;  %v264_v57 = vld [vmem:[%s905_s3 + $0x40] sm:$0xff] }
  0x20   :  { %549 = vmatprep.subr.bf16.mxu1 %v548_v38  ;;  %v562_v56 = vpack.c.bf16 %v263_v55, %v262_v54  ;;  %v265_v58 = vld [vmem:[%s905_s3 + $0x48] sm:$0xff]  ;;  %v266_v60 = vld [vmem:[%s905_s3 + $0x50] sm:$0xff]  ;;  %v267_v61 = vld [vmem:[%s905_s3 + $0x58] sm:$0xff] }
  0x21   :  { %519 = vmatpush3.bf16.msra.mxu0 %v518_v42  ;;  %v565_v59 = vpack.c.bf16 %v265_v58, %v264_v57  ;;  %v568_v62 = vpack.c.bf16 %v267_v61, %v266_v60  ;;  %v268_v63 = vld [vmem:[%s905_s3 + $0x60] sm:$0xff]  ;;  %v269_v0 = vld [vmem:[%s905_s3 + $0x68] sm:$0xff]  ;;  %v270_v2 = vld [vmem:[%s905_s3 + $0x70] sm:$0xff] }
  0x22   :  { %552 = vmatprep.subr.bf16.mxu0 %v607_v47  ;;  %v571_v1 = vpack.c.bf16 %v269_v0, %v268_v63  ;;  %v271_v3 = vld [vmem:[%s905_s3 + $0x78] sm:$0xff]  ;;  %v364_v7 = vld [vmem:[%s904_s2] ss:$0 sm:$0xff]  ;;  %s582_s2 = scalar_lea.vmem %s357_s30, 32 }
  0x23   :  { %551 = vmatpush3.bf16.msra.mxu1 %v550_v43  ;;  %v574_v4 = vpack.c.bf16 %v271_v3, %v270_v2  ;;  %v365_v16 = vld [vmem:[%s906_s4] ss:$0 sm:$0xff]  ;;  %p583_p0 = scmp.ne.s32.totalorder %s357_s30, %s582_s2  ;;  %p588_p2 = scmp.lt.s32.totalorder %s582_s2, %s582_s2 }
  0x24   :  { %180 = vmatmul.mubr.f32.vlgmr.msra.gmra.mrb[0].mxu0 %v101_v27 }
  0x25   :  { %554 = vmatpush3.bf16.msra.mxu0 %v553_v46  ;;  %485 = vmatprep.mubr.msk.f32.mxu0 %vm608_vm0, %v609_v5  ;;  %p589_p3 = por %p588_p2, %p587_p1 }
  0x26   :  { %250 = vmatmul.mubr.f32.vlgmr.msra.gmra.mrb[0].mxu1 %v108_v33  ;;  %555 = vmatprep.subr.bf16.mxu0 %v607_v47 }
  0x27   :  { %p590_p4 = pnand %p589_p3, %p583_p0 }
  0x29   :  { %557 = vmatpush3.bf16.msra.mxu0 %v556_v50 }
  0x2a   :  { %558 = vmatprep.subr.bf16.mxu0 %v607_v47 }
  0x2d   :  { %560 = vmatpush3.bf16.msra.mxu0 %v559_v53 }
  0x2e   :  { %561 = vmatprep.subr.bf16.mxu0 %v607_v47 }
  0x31   :  { %563 = vmatpush3.bf16.msra.mxu0 %v562_v56 }
  0x32   :  { %564 = vmatprep.subr.bf16.mxu0 %v607_v47 }
  0x35   :  { %566 = vmatpush3.bf16.msra.mxu0 %v565_v59 }
  0x36   :  { %567 = vmatprep.subr.bf16.mxu0 %v607_v47 }
  0x39   :  { %569 = vmatpush3.bf16.msra.mxu0 %v568_v62 }
  0x3a   :  { %570 = vmatprep.subr.bf16.mxu0 %v607_v47 }
  0x3d   :  { %572 = vmatpush3.bf16.msra.mxu0 %v571_v1 }
  0x3e   :  { %573 = vmatprep.subr.bf16.mxu0 %v607_v47 }
  0x41   :  { %575 = vmatpush3.bf16.msra.mxu0 %v574_v4 }
  0xf7   :  { %v398_v6 = vpop.f32.mrb[0].mxu0 }
  0xf8   :  { %v399_v8 = vpop.f32.mrb[1].mxu0 }
  0xf9   :  { %v433_v9 = vpop.f32.mrb[0].mxu1  ;;  %v400_v10 = vadd.f32 %v399_v8, %v398_v6 }
  0xfa   :  { %v434_v11 = vpop.f32.mrb[1].mxu1 }
  0xfb   :  { %v435_v12 = vadd.f32 %v434_v11, %v433_v9  ;;  %v182_v13 = vadd.f32 %v400_v10, %v364_v7 }
  0xfd   :  { %v252_v14 = vadd.f32 %v435_v12, %v182_v13 }
  0xff   :  { %v255_v15 = vmax.f32 %v252_v14, 0.0 }
 0x101   :  { %486 = vmatmul.mubr.f32.vlgmr.msra.gmra.mrb[2].mxu0 %v255_v15 }
 0x1d4   :  { %v345_v17 = vpop.f32.mrb[2].mxu0 }
 0x1d5   :  { %v346_v18 = vadd.f32 %v365_v16, %v345_v17  ;;  %v487_v19 = vpop.f32.mrb[3].mxu0 }
 0x1d7   :  { %349 = vst [vmem:[#allocation2] sm:$0x3] %v346_v18 }
 0x1d8   :  { %593 = shalt.err (!%p590_p4)
}
 0x1d9   :  { %s594_s8 = scalar_lea.hbm %s907_s5, 32 }
 0x1da   :  { %p595_p5 = scmp.ne.s32.totalorder %s907_s5, %s594_s8  ;;  %p598_p6 = scmp.lt.u32.totalorder %s594_s8, %s907_s5 }
 0x1dc   :  { %p600_p7 = pnand %p598_p6, %p595_p5 }
 0x1de   :  { %603 = shalt.err (!%p600_p7)
}
 0x1df   :  { %359 = dma.vmem_to_hbm [thread:$0]  %s357_s30, 32, %s907_s5, [#allocation3]  }
 0x1e0   :  { %604 = dma.done.wait [#allocation3], 32  }
 0x1e1   :  { %605 = vsyncadd [#allocation3], 4294967264 }
 0x1e2   :  { %363 = vsyncpa [#allocation3], 1 }

// kernel: conv_classifier_forward.2
= control target key start
LH: loop header
LB: loop body
LE: loop exit
PB: predicated region body
PF: predicated region fallthrough
CT: control target
= control target key end

     0   :  { %vm823_vm0 = vcmask 1043456   ;;  %vm20_vm1 = vcmask 31744   ;;  %v20532_v1 = vmov 0.0   ;;  %s24311_s1 = inlined_call_operand.vmem [shape: f32[9,4,128], index: 1, kind: input, shape index: {}]   ;;  %s24312_s0 = inlined_call_operand.vmem [shape: f32[2,16,16,4], index: 0, kind: input, shape index: {}]   ;;  %s24313_s3 = inlined_call_operand.vmem [shape: f32[9,128,128], index: 3, kind: input, shape index: {}]   ;;  %s24314_s2 = inlined_call_operand.vmem [shape: f32[1,128], index: 2, kind: input, shape index: {}]   ;;  %s24315_s4 = inlined_call_operand.vmem [shape: f32[1,128], index: 4, kind: input, shape index: {}]   ;;  %s24316_s5 = inlined_call_operand.vmem [shape: f32[128,128], index: 5, kind: output, shape index: {}]  }
   0x1   :  { %v20566_v0 = vld [vmem:[%s24311_s1] sm:$0xf]  ;;  %21 = vst.msk [vmem:[#allocation2] sm:$0xff] %vm20_vm1, %v20532_v1  ;;  %22 = vst.msk [vmem:[#allocation2 + $0x8] sm:$0xff] %vm20_vm1, %v20532_v1  ;;  %v14818_v2 = vld [vmem:[%s24311_s1 + $0x4] sm:$0xf] }
   0x2   :  { %23 = vst.msk [vmem:[#allocation2 + $0x10] sm:$0xff] %vm20_vm1, %v20532_v1  ;;  %24 = vst.msk [vmem:[#allocation2 + $0x18] sm:$0xff] %vm20_vm1, %v20532_v1  ;;  %v309_v3 = vld [vmem:[%s24312_s0] sm:$0xff]  ;;  %16781 = vmatprep.subr.msk.mxu0 %vm823_vm0, %v20566_v0  ;;  %v310_v4 = vld [vmem:[%s24312_s0 + $0x8] sm:$0xff] }
   0x3   :  { %25 = vst.msk [vmem:[#allocation2 + $0x20] sm:$0xff] %vm20_vm1, %v20532_v1  ;;  %26 = vst.msk [vmem:[#allocation2 + $0x28] sm:$0xff] %vm20_vm1, %v20532_v1  ;;  %v311_v5 = vld [vmem:[%s24312_s0 + $0x10] sm:$0xff]  ;;  %v312_v6 = vld [vmem:[%s24312_s0 + $0x18] sm:$0xff]  ;;  %16782 = vmatpush3.msk.msra.mxu0 %vm823_vm0, %v20566_v0 }
   0x4   :  { %27 = vst.msk [vmem:[#allocation2 + $0x30] sm:$0xff] %vm20_vm1, %v20532_v1  ;;  %28 = vst.msk [vmem:[#allocation2 + $0x38] sm:$0xff] %vm20_vm1, %v20532_v1  ;;  %v313_v7 = vld [vmem:[%s24312_s0 + $0x20] sm:$0xff]  ;;  %v314_v8 = vld [vmem:[%s24312_s0 + $0x28] sm:$0xff]  ;;  %16879 = vmatprep.subr.msk.mxu0 %vm823_vm0, %v14818_v2 }
   0x5   :  { %29 = vst.msk [vmem:[#allocation2 + $0x40] sm:$0xff] %vm20_vm1, %v20532_v1  ;;  %30 = vst.msk [vmem:[#allocation2 + $0x48] sm:$0xff] %vm20_vm1, %v20532_v1  ;;  %v315_v9 = vld [vmem:[%s24312_s0 + $0x30] sm:$0xff]  ;;  %v316_v10 = vld [vmem:[%s24312_s0 + $0x38] sm:$0xff] }
   0x6   :  { %31 = vst.msk [vmem:[#allocation2 + $0x50] sm:$0xff] %vm20_vm1, %v20532_v1  ;;  %32 = vst.msk [vmem:[#allocation2 + $0x58] sm:$0xff] %vm20_vm1, %v20532_v1  ;;  %v317_v11 = vld [vmem:[%s24312_s0 + $0x40] sm:$0xff]  ;;  %v318_v12 = vld [vmem:[%s24312_s0 + $0x48] sm:$0xff] }
   0x7   :  { %33 = vst.msk [vmem:[#allocation2 + $0x60] sm:$0xff] %vm20_vm1, %v20532_v1  ;;  %34 = vst.msk [vmem:[#allocation2 + $0x68] sm:$0xff] %vm20_vm1, %v20532_v1  ;;  %v319_v13 = vld [vmem:[%s24312_s0 + $0x50] sm:$0xff]  ;;  %v320_v14 = vld [vmem:[%s24312_s0 + $0x58] sm:$0xff] }
   0x8   :  { %35 = vst.msk [vmem:[#allocation2 + $0x70] sm:$0xff] %vm20_vm1, %v20532_v1  ;;  %36 = vst.msk [vmem:[#allocation2 + $0x78] sm:$0xff] %vm20_vm1, %v20532_v1  ;;  %v321_v15 = vld [vmem:[%s24312_s0 + $0x60] sm:$0xff]  ;;  %v322_v16 = vld [vmem:[%s24312_s0 + $0x68] sm:$0xff] }
   0x9   :  { %37 = vst.msk [vmem:[#allocation2 + $0x80] sm:$0xff] %vm20_vm1, %v20532_v1  ;;  %38 = vst.msk [vmem:[#allocation2 + $0x88] sm:$0xff] %vm20_vm1, %v20532_v1  ;;  %v323_v17 = vld [vmem:[%s24312_s0 + $0x70] sm:$0xff]  ;;  %v324_v18 = vld [vmem:[%s24312_s0 + $0x78] sm:$0xff] }
   0xa   :  { %39 = vst.msk [vmem:[#allocation2 + $0x90] sm:$0xff] %vm20_vm1, %v20532_v1  ;;  %40 = vst.msk [vmem:[#allocation2 + $0x98] sm:$0xff] %vm20_vm1, %v20532_v1  ;;  %v325_v19 = vld [vmem:[%s24312_s0 + $0x80] sm:$0xff]  ;;  %v326_v20 = vld [vmem:[%s24312_s0 + $0x88] sm:$0xff] }
   0xb   :  { %41 = vst.msk [vmem:[#allocation2 + $0xa0] sm:$0xff] %vm20_vm1, %v20532_v1  ;;  %42 = vst.msk [vmem:[#allocation2 + $0xa8] sm:$0xff] %vm20_vm1, %v20532_v1  ;;  %v327_v21 = vld [vmem:[%s24312_s0 + $0x90] sm:$0xff]  ;;  %v502_v22 = vld [vmem:[#allocation2 + $0x7] sm:$0xff] }
   0xc   :  { %43 = vst.msk [vmem:[#allocation2 + $0xb0] sm:$0xff] %vm20_vm1, %v20532_v1  ;;  %44 = vst.msk [vmem:[#allocation2 + $0xb8] sm:$0xff] %vm20_vm1, %v20532_v1  ;;  %v503_v23 = vld [vmem:[#allocation2 + $0xf] sm:$0xff]  ;;  %v328_v24 = vld [vmem:[%s24312_s0 + $0x98] sm:$0xff]  ;;  %16783 = vmatprep.mubr.msk.f32.mxu0 %vm20_vm1, %v502_v22 }
   0xd   :  { %45 = vst.msk [vmem:[#allocation2 + $0xc0] sm:$0xff] %vm20_vm1, %v20532_v1  ;;  %46 = vst.msk [vmem:[#allocation2 + $0xc8] sm:$0xff] %vm20_vm1, %v20532_v1  ;;  %v329_v26 = vld [vmem:[%s24312_s0 + $0xa0] sm:$0xff]  ;;  %v330_v27 = vld [vmem:[%s24312_s0 + $0xa8] sm:$0xff]  ;;  %16784 = vmatmul.mubr.msk.f32.vlgmr.msra.gmra.mrb[0].mxu0 %vm20_vm1, %v503_v23 }
   0xe   :  { %47 = vst.msk [vmem:[#allocation2 + $0xd0] sm:$0xff] %vm20_vm1, %v20532_v1  ;;  %48 = vst.msk [vmem:[#allocation2 + $0xd8] sm:$0xff] %vm20_vm1, %v20532_v1  ;;  %16880 = vmatpush3.msk.msra.mxu0 %vm823_vm0, %v14818_v2  ;;  %v331_v32 = vld [vmem:[%s24312_s0 + $0xb0] sm:$0xff]  ;;  %v332_v33 = vld [vmem:[%s24312_s0 + $0xb8] sm:$0xff] }
   0xf   :  { %49 = vst.msk [vmem:[#allocation2 + $0xe0] sm:$0xff] %vm20_vm1, %v20532_v1  ;;  %50 = vst.msk [vmem:[#allocation2 + $0xe8] sm:$0xff] %vm20_vm1, %v20532_v1  ;;  %v333_v34 = vld [vmem:[%s24312_s0 + $0xc0] sm:$0xff]  ;;  %v334_v35 = vld [vmem:[%s24312_s0 + $0xc8] sm:$0xff] }
  0x10   :  { %51 = vst.msk [vmem:[#allocation2 + $0xf0] sm:$0xff] %vm20_vm1, %v20532_v1  ;;  %52 = vst.msk [vmem:[#allocation2 + $0xf8] sm:$0xff] %vm20_vm1, %v20532_v1  ;;  %v335_v36 = vld [vmem:[%s24312_s0 + $0xd0] sm:$0xff]  ;;  %v336_v37 = vld [vmem:[%s24312_s0 + $0xd8] sm:$0xff] }
  0x11   :  { %53 = vst.msk [vmem:[#allocation2 + $0x100] sm:$0xff] %vm20_vm1, %v20532_v1  ;;  %54 = vst.msk [vmem:[#allocation2 + $0x108] sm:$0xff] %vm20_vm1, %v20532_v1  ;;  %v337_v39 = vld [vmem:[%s24312_s0 + $0xe0] sm:$0xff]  ;;  %v338_v40 = vld [vmem:[%s24312_s0 + $0xe8] sm:$0xff] }
  0x12   :  { %55 = vst.msk [vmem:[#allocation2 + $0x110] sm:$0xff] %vm20_vm1, %v20532_v1  ;;  %56 = vst.msk [vmem:[#allocation2 + $0x118] sm:$0xff] %vm20_vm1, %v20532_v1  ;;  %v341_v42 = vld [vmem:[%s24312_s0 + $0x100] sm:$0xff]  ;;  %v342_v43 = vld [vmem:[%s24312_s0 + $0x108] sm:$0xff] }
  0x13   :  { %57 = vst.msk [vmem:[#allocation2 + $0x120] sm:$0xff] %vm20_vm1, %v20532_v1  ;;  %58 = vst.msk [vmem:[#allocation2 + $0x128] sm:$0xff] %vm20_vm1, %v20532_v1  ;;  %v343_v45 = vld [vmem:[%s24312_s0 + $0x110] sm:$0xff]  ;;  %v344_v46 = vld [vmem:[%s24312_s0 + $0x118] sm:$0xff] }
  0x14   :  { %59 = vst.msk [vmem:[#allocation2 + $0x130] sm:$0xff] %vm20_vm1, %v20532_v1  ;;  %60 = vst.msk [vmem:[#allocation2 + $0x138] sm:$0xff] %vm20_vm1, %v20532_v1  ;;  %v345_v47 = vld [vmem:[%s24312_s0 + $0x120] sm:$0xff]  ;;  %v346_v48 = vld [vmem:[%s24312_s0 + $0x128] sm:$0xff] }
  0x15   :  { %61 = vst.msk [vmem:[#allocation2 + $0x140] sm:$0xff] %vm20_vm1, %v20532_v1  ;;  %62 = vst.msk [vmem:[#allocation2 + $0x148] sm:$0xff] %vm20_vm1, %v20532_v1  ;;  %v347_v49 = vld [vmem:[%s24312_s0 + $0x130] sm:$0xff]  ;;  %v348_v50 = vld [vmem:[%s24312_s0 + $0x138] sm:$0xff] }
  0x16   :  { %63 = vst.msk [vmem:[#allocation2 + $0x150] sm:$0xff] %vm20_vm1, %v20532_v1  ;;  %64 = vst.msk [vmem:[#allocation2 + $0x158] sm:$0xff] %vm20_vm1, %v20532_v1  ;;  %v349_v51 = vld [vmem:[%s24312_s0 + $0x140] sm:$0xff]  ;;  %v350_v52 = vld [vmem:[%s24312_s0 + $0x148] sm:$0xff] }
  0x17   :  { %65 = vst.msk [vmem:[#allocation2 + $0x160] sm:$0xff] %vm20_vm1, %v20532_v1  ;;  %66 = vst.msk [vmem:[#allocation2 + $0x168] sm:$0xff] %vm20_vm1, %v20532_v1  ;;  %v351_v53 = vld [vmem:[%s24312_s0 + $0x150] sm:$0xff]  ;;  %v352_v55 = vld [vmem:[%s24312_s0 + $0x158] sm:$0xff] }
  0x18   :  { %67 = vst.msk [vmem:[#allocation2 + $0x170] sm:$0xff] %vm20_vm1, %v20532_v1  ;;  %68 = vst.msk [vmem:[#allocation2 + $0x178] sm:$0xff] %vm20_vm1, %v20532_v1  ;;  %v353_v56 = vld [vmem:[%s24312_s0 + $0x160] sm:$0xff]  ;;  %v354_v57 = vld [vmem:[%s24312_s0 + $0x168] sm:$0xff] }
  0x19   :  { %69 = vst.msk [vmem:[#allocation2 + $0x180] sm:$0xff] %vm20_vm1, %v20532_v1  ;;  %70 = vst.msk [vmem:[#allocation2 + $0x188] sm:$0xff] %vm20_vm1, %v20532_v1  ;;  %v355_v59 = vld [vmem:[%s24312_s0 + $0x170] sm:$0xff]  ;;  %v356_v61 = vld [vmem:[%s24312_s0 + $0x178] sm:$0xff] }
  0x1a   :  { %71 = vst.msk [vmem:[#allocation2 + $0x190] sm:$0xff] %vm20_vm1, %v20532_v1  ;;  %72 = vst.msk [vmem:[#allocation2 + $0x198] sm:$0xff] %vm20_vm1, %v20532_v1  ;;  %v357_v0 = vld [vmem:[%s24312_s0 + $0x180] sm:$0xff]  ;;  %v359_v2 = vld [vmem:[%s24312_s0 + $0x190] sm:$0xff] }
  0x1b   :  { %73 = vst.msk [vmem:[#allocation2 + $0x1a0] sm:$0xff] %vm20_vm1, %v20532_v1  ;;  %74 = vst.msk [vmem:[#allocation2 + $0x1a8] sm:$0xff] %vm20_vm1, %v20532_v1 }
  0x1c   :  { %75 = vst.msk [vmem:[#allocation2 + $0x1b0] sm:$0xff] %vm20_vm1, %v20532_v1  ;;  %76 = vst.msk [vmem:[#allocation2 + $0x1b8] sm:$0xff] %vm20_vm1, %v20532_v1 }
  0x1d   :  { %77 = vst.msk [vmem:[#allocation2 + $0x1c0] sm:$0xff] %vm20_vm1, %v20532_v1  ;;  %78 = vst.msk [vmem:[#allocation2 + $0x1c8] sm:$0xff] %vm20_vm1, %v20532_v1 }
  0x1e   :  { %79 = vst.msk [vmem:[#allocation2 + $0x1d0] sm:$0xff] %vm20_vm1, %v20532_v1  ;;  %80 = vst.msk [vmem:[#allocation2 + $0x1d8] sm:$0xff] %vm20_vm1, %v20532_v1 }
  0x1f   :  { %81 = vst.msk [vmem:[#allocation2 + $0x1e0] sm:$0xff] %vm20_vm1, %v20532_v1  ;;  %82 = vst.msk [vmem:[#allocation2 + $0x1e8] sm:$0xff] %vm20_vm1, %v20532_v1 }
  0x20   :  { %83 = vst.msk [vmem:[#allocation2 + $0x1f0] sm:$0xff] %vm20_vm1, %v20532_v1  ;;  %84 = vst.msk [vmem:[#allocation2 + $0x1f8] sm:$0xff] %vm20_vm1, %v20532_v1 }
  0x21   :  { %85 = vst.msk [vmem:[#allocation2 + $0x200] sm:$0xff] %vm20_vm1, %v20532_v1  ;;  %86 = vst.msk [vmem:[#allocation2 + $0x208] sm:$0xff] %vm20_vm1, %v20532_v1 }
  0x22   :  { %87 = vst.msk [vmem:[#allocation2 + $0x210] sm:$0xff] %vm20_vm1, %v20532_v1  ;;  %88 = vst.msk [vmem:[#allocation2 + $0x218] sm:$0xff] %vm20_vm1, %v20532_v1 }
  0x23   :  { %89 = vst.msk [vmem:[#allocation2 + $0x220] sm:$0xff] %vm20_vm1, %v20532_v1  ;;  %90 = vst.msk [vmem:[#allocation2 + $0x228] sm:$0xff] %vm20_vm1, %v20532_v1 }
  0x24   :  { %91 = vst.msk [vmem:[#allocation2 + $0x230] sm:$0xff] %vm20_vm1, %v20532_v1  ;;  %92 = vst.msk [vmem:[#allocation2 + $0x238] sm:$0xff] %vm20_vm1, %v20532_v1 }
  0x25   :  { %93 = vst.msk [vmem:[#allocation2 + $0x240] sm:$0xff] %vm20_vm1, %v20532_v1  ;;  %94 = vst.msk [vmem:[#allocation2 + $0x248] sm:$0xff] %vm20_vm1, %v20532_v1 }
  0x26   :  { %95 = vst.msk [vmem:[#allocation2 + $0x250] sm:$0xff] %vm20_vm1, %v20532_v1  ;;  %96 = vst.msk [vmem:[#allocation2 + $0x258] sm:$0xff] %vm20_vm1, %v20532_v1 }
  0x27   :  { %97 = vst.msk [vmem:[#allocation2 + $0x260] sm:$0xff] %vm20_vm1, %v20532_v1  ;;  %98 = vst.msk [vmem:[#allocation2 + $0x268] sm:$0xff] %vm20_vm1, %v20532_v1 }
  0x28   :  { %99 = vst.msk [vmem:[#allocation2 + $0x270] sm:$0xff] %vm20_vm1, %v20532_v1  ;;  %100 = vst.msk [vmem:[#allocation2 + $0x278] sm:$0xff] %vm20_vm1, %v20532_v1 }
  0x29   :  { %101 = vst.msk [vmem:[#allocation2 + $0x280] sm:$0xff] %vm20_vm1, %v20532_v1  ;;  %102 = vst.msk [vmem:[#allocation2 + $0x288] sm:$0xff] %vm20_vm1, %v20532_v1 }
  0x2a   :  { %103 = vst.msk [vmem:[#allocation2 + $0x290] sm:$0xff] %vm20_vm1, %v20532_v1  ;;  %104 = vst.msk [vmem:[#allocation2 + $0x298] sm:$0xff] %vm20_vm1, %v20532_v1 }
  0x2b   :  { %105 = vst.msk [vmem:[#allocation2 + $0x2a0] sm:$0xff] %vm20_vm1, %v20532_v1  ;;  %106 = vst.msk [vmem:[#allocation2 + $0x2a8] sm:$0xff] %vm20_vm1, %v20532_v1 }
  0x2c   :  { %107 = vst.msk [vmem:[#allocation2 + $0x2b0] sm:$0xff] %vm20_vm1, %v20532_v1  ;;  %108 = vst.msk [vmem:[#allocation2 + $0x2b8] sm:$0xff] %vm20_vm1, %v20532_v1 }
  0x2d   :  { %109 = vst.msk [vmem:[#allocation2 + $0x2c0] sm:$0xff] %vm20_vm1, %v20532_v1  ;;  %110 = vst.msk [vmem:[#allocation2 + $0x2c8] sm:$0xff] %vm20_vm1, %v20532_v1 }
  0x2e   :  { %111 = vst.msk [vmem:[#allocation2 + $0x2d0] sm:$0xff] %vm20_vm1, %v20532_v1  ;;  %112 = vst.msk [vmem:[#allocation2 + $0x2d8] sm:$0xff] %vm20_vm1, %v20532_v1 }
  0x2f   :  { %113 = vst.msk [vmem:[#allocation2 + $0x2e0] sm:$0xff] %vm20_vm1, %v20532_v1  ;;  %114 = vst.msk [vmem:[#allocation2 + $0x2e8] sm:$0xff] %vm20_vm1, %v20532_v1 }
  0x30   :  { %115 = vst.msk [vmem:[#allocation2 + $0x2f0] sm:$0xff] %vm20_vm1, %v20532_v1  ;;  %116 = vst.msk [vmem:[#allocation2 + $0x2f8] sm:$0xff] %vm20_vm1, %v20532_v1 }
  0x31   :  { %117 = vst.msk [vmem:[#allocation2 + $0x300] sm:$0xff] %vm20_vm1, %v20532_v1  ;;  %118 = vst.msk [vmem:[#allocation2 + $0x308] sm:$0xff] %vm20_vm1, %v20532_v1 }
  0x32   :  { %119 = vst.msk [vmem:[#allocation2 + $0x310] sm:$0xff] %vm20_vm1, %v20532_v1  ;;  %120 = vst.msk [vmem:[#allocation2 + $0x318] sm:$0xff] %vm20_vm1, %v20532_v1 }
  0x33   :  { %121 = vst.msk [vmem:[#allocation2 + $0x320] sm:$0xff] %vm20_vm1, %v20532_v1  ;;  %122 = vst.msk [vmem:[#allocation2 + $0x328] sm:$0xff] %vm20_vm1, %v20532_v1 }
  0x34   :  { %123 = vst.msk [vmem:[#allocation2 + $0x330] sm:$0xff] %vm20_vm1, %v20532_v1  ;;  %124 = vst.msk [vmem:[#allocation2 + $0x338] sm:$0xff] %vm20_vm1, %v20532_v1 }
  0x35   :  { %125 = vst.msk [vmem:[#allocation2 + $0x340] sm:$0xff] %vm20_vm1, %v20532_v1  ;;  %126 = vst.msk [vmem:[#allocation2 + $0x348] sm:$0xff] %vm20_vm1, %v20532_v1 }
  0x36   :  { %127 = vst.msk [vmem:[#allocation2 + $0x350] sm:$0xff] %vm20_vm1, %v20532_v1  ;;  %128 = vst.msk [vmem:[#allocation2 + $0x358] sm:$0xff] %vm20_vm1, %v20532_v1 }
  0x37   :  { %129 = vst.msk [vmem:[#allocation2 + $0x360] sm:$0xff] %vm20_vm1, %v20532_v1  ;;  %130 = vst.msk [vmem:[#allocation2 + $0x368] sm:$0xff] %vm20_vm1, %v20532_v1 }
  0x38   :  { %131 = vst.msk [vmem:[#allocation2 + $0x370] sm:$0xff] %vm20_vm1, %v20532_v1  ;;  %132 = vst.msk [vmem:[#allocation2 + $0x378] sm:$0xff] %vm20_vm1, %v20532_v1 }
  0x39   :  { %133 = vst.msk [vmem:[#allocation2 + $0x380] sm:$0xff] %vm20_vm1, %v20532_v1  ;;  %134 = vst.msk [vmem:[#allocation2 + $0x388] sm:$0xff] %vm20_vm1, %v20532_v1 }
  0x3a   :  { %135 = vst.msk [vmem:[#allocation2 + $0x390] sm:$0xff] %vm20_vm1, %v20532_v1  ;;  %136 = vst.msk [vmem:[#allocation2 + $0x398] sm:$0xff] %vm20_vm1, %v20532_v1 }
  0x3b   :  { %137 = vst.msk [vmem:[#allocation2 + $0x3a0] sm:$0xff] %vm20_vm1, %v20532_v1  ;;  %138 = vst.msk [vmem:[#allocation2 + $0x3a8] sm:$0xff] %vm20_vm1, %v20532_v1 }
  0x3c   :  { %139 = vst.msk [vmem:[#allocation2 + $0x3b0] sm:$0xff] %vm20_vm1, %v20532_v1  ;;  %140 = vst.msk [vmem:[#allocation2 + $0x3b8] sm:$0xff] %vm20_vm1, %v20532_v1 }
  0x3d   :  { %141 = vst.msk [vmem:[#allocation2 + $0x3c0] sm:$0xff] %vm20_vm1, %v20532_v1  ;;  %142 = vst.msk [vmem:[#allocation2 + $0x3c8] sm:$0xff] %vm20_vm1, %v20532_v1 }
  0x3e   :  { %143 = vst.msk [vmem:[#allocation2 + $0x3d0] sm:$0xff] %vm20_vm1, %v20532_v1  ;;  %144 = vst.msk [vmem:[#allocation2 + $0x3d8] sm:$0xff] %vm20_vm1, %v20532_v1 }
  0x3f   :  { %145 = vst.msk [vmem:[#allocation2 + $0x3e0] sm:$0xff] %vm20_vm1, %v20532_v1  ;;  %146 = vst.msk [vmem:[#allocation2 + $0x3e8] sm:$0xff] %vm20_vm1, %v20532_v1 }
  0x40   :  { %147 = vst.msk [vmem:[#allocation2 + $0x3f0] sm:$0xff] %vm20_vm1, %v20532_v1  ;;  %148 = vst.msk [vmem:[#allocation2 + $0x3f8] sm:$0xff] %vm20_vm1, %v20532_v1 }
  0x41   :  { %149 = vst.msk [vmem:[#allocation2 + $0x400] sm:$0xff] %vm20_vm1, %v20532_v1  ;;  %150 = vst.msk [vmem:[#allocation2 + $0x408] sm:$0xff] %vm20_vm1, %v20532_v1 }
  0x42   :  { %151 = vst.msk [vmem:[#allocation2 + $0x410] sm:$0xff] %vm20_vm1, %v20532_v1  ;;  %152 = vst.msk [vmem:[#allocation2 + $0x418] sm:$0xff] %vm20_vm1, %v20532_v1 }
  0x43   :  { %153 = vst.msk [vmem:[#allocation2 + $0x420] sm:$0xff] %vm20_vm1, %v20532_v1  ;;  %154 = vst.msk [vmem:[#allocation2 + $0x428] sm:$0xff] %vm20_vm1, %v20532_v1 }
  0x44   :  { %155 = vst.msk [vmem:[#allocation2 + $0x430] sm:$0xff] %vm20_vm1, %v20532_v1  ;;  %156 = vst.msk [vmem:[#allocation2 + $0x438] sm:$0xff] %vm20_vm1, %v20532_v1 }
  0x45   :  { %157 = vst.msk [vmem:[#allocation2 + $0x440] sm:$0xff] %vm20_vm1, %v20532_v1  ;;  %158 = vst.msk [vmem:[#allocation2 + $0x448] sm:$0xff] %vm20_vm1, %v20532_v1 }
  0x46   :  { %159 = vst.msk [vmem:[#allocation2 + $0x450] sm:$0xff] %vm20_vm1, %v20532_v1  ;;  %160 = vst.msk [vmem:[#allocation2 + $0x458] sm:$0xff] %vm20_vm1, %v20532_v1 }
  0x47   :  { %161 = vst.msk [vmem:[#allocation2 + $0x460] sm:$0xff] %vm20_vm1, %v20532_v1  ;;  %162 = vst.msk [vmem:[#allocation2 + $0x468] sm:$0xff] %vm20_vm1, %v20532_v1 }
  0x48   :  { %163 = vst.msk [vmem:[#allocation2 + $0x470] sm:$0xff] %vm20_vm1, %v20532_v1  ;;  %164 = vst.msk [vmem:[#allocation2 + $0x478] sm:$0xff] %vm20_vm1, %v20532_v1 }
  0x49   :  { %165 = vst [vmem:[#allocation3] sm:$0xff] %v20532_v1  ;;  %166 = vst [vmem:[#allocation3 + $0x8] sm:$0xff] %v20532_v1 }
  0x4a   :  { %167 = vst [vmem:[#allocation3 + $0x10] sm:$0xff] %v20532_v1  ;;  %168 = vst [vmem:[#allocation3 + $0x18] sm:$0xff] %v20532_v1 }
  0x4b   :  { %169 = vst [vmem:[#allocation3 + $0x20] sm:$0xff] %v20532_v1  ;;  %172 = vst [vmem:[#allocation3 + $0x38] sm:$0xff] %v20532_v1 }
  0x4c   :  { %173 = vst [vmem:[#allocation3 + $0x40] sm:$0xff] %v20532_v1  ;;  %176 = vst [vmem:[#allocation3 + $0x58] sm:$0xff] %v20532_v1 }
  0x4d   :  { %177 = vst [vmem:[#allocation3 + $0x60] sm:$0xff] %v20532_v1  ;;  %180 = vst [vmem:[#allocation3 + $0x78] sm:$0xff] %v20532_v1 }
  0x4e   :  { %181 = vst [vmem:[#allocation3 + $0x80] sm:$0xff] %v20532_v1  ;;  %184 = vst [vmem:[#allocation3 + $0x98] sm:$0xff] %v20532_v1 }
  0x4f   :  { %185 = vst [vmem:[#allocation3 + $0xa0] sm:$0xff] %v20532_v1  ;;  %188 = vst [vmem:[#allocation3 + $0xb8] sm:$0xff] %v20532_v1 }
  0x50   :  { %189 = vst [vmem:[#allocation3 + $0xc0] sm:$0xff] %v20532_v1  ;;  %192 = vst [vmem:[#allocation3 + $0xd8] sm:$0xff] %v20532_v1 }
  0x51   :  { %193 = vst [vmem:[#allocation3 + $0xe0] sm:$0xff] %v20532_v1  ;;  %196 = vst [vmem:[#allocation3 + $0xf8] sm:$0xff] %v20532_v1 }
  0x52   :  { %197 = vst [vmem:[#allocation3 + $0x100] sm:$0xff] %v20532_v1  ;;  %200 = vst [vmem:[#allocation3 + $0x118] sm:$0xff] %v20532_v1 }
  0x53   :  { %201 = vst [vmem:[#allocation3 + $0x120] sm:$0xff] %v20532_v1  ;;  %204 = vst [vmem:[#allocation3 + $0x138] sm:$0xff] %v20532_v1 }
  0x54   :  { %205 = vst [vmem:[#allocation3 + $0x140] sm:$0xff] %v20532_v1  ;;  %208 = vst [vmem:[#allocation3 + $0x158] sm:$0xff] %v20532_v1 }
  0x55   :  { %209 = vst [vmem:[#allocation3 + $0x160] sm:$0xff] %v20532_v1  ;;  %212 = vst [vmem:[#allocation3 + $0x178] sm:$0xff] %v20532_v1 }
  0x56   :  { %213 = vst [vmem:[#allocation3 + $0x180] sm:$0xff] %v20532_v1  ;;  %216 = vst [vmem:[#allocation3 + $0x198] sm:$0xff] %v20532_v1 }
  0x57   :  { %217 = vst [vmem:[#allocation3 + $0x1a0] sm:$0xff] %v20532_v1  ;;  %220 = vst [vmem:[#allocation3 + $0x1b8] sm:$0xff] %v20532_v1 }
  0x58   :  { %221 = vst [vmem:[#allocation3 + $0x1c0] sm:$0xff] %v20532_v1  ;;  %224 = vst [vmem:[#allocation3 + $0x1d8] sm:$0xff] %v20532_v1 }
  0x59   :  { %225 = vst [vmem:[#allocation3 + $0x1e0] sm:$0xff] %v20532_v1  ;;  %228 = vst [vmem:[#allocation3 + $0x1f8] sm:$0xff] %v20532_v1 }
  0x5a   :  { %229 = vst [vmem:[#allocation3 + $0x200] sm:$0xff] %v20532_v1  ;;  %232 = vst [vmem:[#allocation3 + $0x218] sm:$0xff] %v20532_v1 }
  0x5b   :  { %233 = vst [vmem:[#allocation3 + $0x220] sm:$0xff] %v20532_v1  ;;  %234 = vst [vmem:[#allocation3 + $0x228] sm:$0xff] %v20532_v1 }
  0x5c   :  { %235 = vst [vmem:[#allocation3 + $0x230] sm:$0xff] %v20532_v1  ;;  %236 = vst [vmem:[#allocation3 + $0x238] sm:$0xff] %v20532_v1 }
  0x5d   :  { %237 = vst [vmem:[#allocation3 + $0x240] sm:$0xff] %v20532_v1  ;;  %238 = vst [vmem:[#allocation3 + $0x248] sm:$0xff] %v20532_v1 }
  0x5e   :  { %239 = vst [vmem:[#allocation3 + $0x250] sm:$0xff] %v20532_v1  ;;  %240 = vst [vmem:[#allocation3 + $0x258] sm:$0xff] %v20532_v1 }
  0x5f   :  { %241 = vst [vmem:[#allocation3 + $0x260] sm:$0xff] %v20532_v1  ;;  %244 = vst [vmem:[#allocation3 + $0x278] sm:$0xff] %v20532_v1 }
  0x60   :  { %245 = vst [vmem:[#allocation3 + $0x280] sm:$0xff] %v20532_v1  ;;  %248 = vst [vmem:[#allocation3 + $0x298] sm:$0xff] %v20532_v1 }
  0x61   :  { %249 = vst [vmem:[#allocation3 + $0x2a0] sm:$0xff] %v20532_v1  ;;  %252 = vst [vmem:[#allocation3 + $0x2b8] sm:$0xff] %v20532_v1 }
  0x62   :  { %253 = vst [vmem:[#allocation3 + $0x2c0] sm:$0xff] %v20532_v1  ;;  %256 = vst [vmem:[#allocation3 + $0x2d8] sm:$0xff] %v20532_v1 }
  0x63   :  { %257 = vst [vmem:[#allocation3 + $0x2e0] sm:$0xff] %v20532_v1  ;;  %260 = vst [vmem:[#allocation3 + $0x2f8] sm:$0xff] %v20532_v1 }
  0x64   :  { %261 = vst [vmem:[#allocation3 + $0x300] sm:$0xff] %v20532_v1  ;;  %264 = vst [vmem:[#allocation3 + $0x318] sm:$0xff] %v20532_v1 }
  0x65   :  { %265 = vst [vmem:[#allocation3 + $0x320] sm:$0xff] %v20532_v1  ;;  %268 = vst [vmem:[#allocation3 + $0x338] sm:$0xff] %v20532_v1 }
  0x66   :  { %269 = vst [vmem:[#allocation3 + $0x340] sm:$0xff] %v20532_v1  ;;  %272 = vst [vmem:[#allocation3 + $0x358] sm:$0xff] %v20532_v1 }
  0x67   :  { %273 = vst [vmem:[#allocation3 + $0x360] sm:$0xff] %v20532_v1  ;;  %276 = vst [vmem:[#allocation3 + $0x378] sm:$0xff] %v20532_v1 }
  0x68   :  { %277 = vst [vmem:[#allocation3 + $0x380] sm:$0xff] %v20532_v1  ;;  %280 = vst [vmem:[#allocation3 + $0x398] sm:$0xff] %v20532_v1 }
  0x69   :  { %281 = vst [vmem:[#allocation3 + $0x3a0] sm:$0xff] %v20532_v1  ;;  %284 = vst [vmem:[#allocation3 + $0x3b8] sm:$0xff] %v20532_v1 }
  0x6a   :  { %285 = vst [vmem:[#allocation3 + $0x3c0] sm:$0xff] %v20532_v1  ;;  %288 = vst [vmem:[#allocation3 + $0x3d8] sm:$0xff] %v20532_v1 }
  0x6b   :  { %289 = vst [vmem:[#allocation3 + $0x3e0] sm:$0xff] %v20532_v1  ;;  %292 = vst [vmem:[#allocation3 + $0x3f8] sm:$0xff] %v20532_v1 }
  0x6c   :  { %293 = vst [vmem:[#allocation3 + $0x400] sm:$0xff] %v20532_v1  ;;  %296 = vst [vmem:[#allocation3 + $0x418] sm:$0xff] %v20532_v1 }
  0x6d   :  { %297 = vst [vmem:[#allocation3 + $0x420] sm:$0xff] %v20532_v1  ;;  %300 = vst [vmem:[#allocation3 + $0x438] sm:$0xff] %v20532_v1 }
  0x6e   :  { %301 = vst [vmem:[#allocation3 + $0x440] sm:$0xff] %v20532_v1  ;;  %304 = vst [vmem:[#allocation3 + $0x458] sm:$0xff] %v20532_v1 }
  0x6f   :  { %305 = vst [vmem:[#allocation3 + $0x460] sm:$0xff] %v20532_v1  ;;  %306 = vst [vmem:[#allocation3 + $0x468] sm:$0xff] %v20532_v1 }
  0x70   :  { %307 = vst [vmem:[#allocation3 + $0x470] sm:$0xff] %v20532_v1  ;;  %308 = vst [vmem:[#allocation3 + $0x478] sm:$0xff] %v20532_v1  ;;  %v358_v1 = vld [vmem:[%s24312_s0 + $0x188] sm:$0xff] }
  0x71   :  { %374 = vst.msk [vmem:[#allocation2 + $0x28] sm:$0xff] %vm20_vm1, %v309_v3  ;;  %375 = vst.msk [vmem:[#allocation2 + $0x30] sm:$0xff] %vm20_vm1, %v310_v4  ;;  %v360_v3 = vld [vmem:[%s24312_s0 + $0x198] sm:$0xff]  ;;  %v361_v4 = vld [vmem:[%s24312_s0 + $0x1a0] sm:$0xff] }
  0x72   :  { %376 = vst.msk [vmem:[#allocation2 + $0x48] sm:$0xff] %vm20_vm1, %v311_v5  ;;  %377 = vst.msk [vmem:[#allocation2 + $0x50] sm:$0xff] %vm20_vm1, %v312_v6  ;;  %v362_v5 = vld [vmem:[%s24312_s0 + $0x1a8] sm:$0xff] }
  0x73   :  { %378 = vst.msk [vmem:[#allocation2 + $0x68] sm:$0xff] %vm20_vm1, %v313_v7  ;;  %379 = vst.msk [vmem:[#allocation2 + $0x70] sm:$0xff] %vm20_vm1, %v314_v8  ;;  %v363_v7 = vld [vmem:[%s24312_s0 + $0x1b0] sm:$0xff]  ;;  %v364_v8 = vld [vmem:[%s24312_s0 + $0x1b8] sm:$0xff] }
  0x74   :  { %380 = vst.msk [vmem:[#allocation2 + $0x88] sm:$0xff] %vm20_vm1, %v315_v9  ;;  %381 = vst.msk [vmem:[#allocation2 + $0x90] sm:$0xff] %vm20_vm1, %v316_v10  ;;  %v365_v10 = vld [vmem:[%s24312_s0 + $0x1c0] sm:$0xff] }
  0x75   :  { %382 = vst.msk [vmem:[#allocation2 + $0xa8] sm:$0xff] %vm20_vm1, %v317_v11  ;;  %383 = vst.msk [vmem:[#allocation2 + $0xb0] sm:$0xff] %vm20_vm1, %v318_v12  ;;  %v366_v11 = vld [vmem:[%s24312_s0 + $0x1c8] sm:$0xff]  ;;  %v367_v12 = vld [vmem:[%s24312_s0 + $0x1d0] sm:$0xff] }
  0x76   :  { %384 = vst.msk [vmem:[#allocation2 + $0xc8] sm:$0xff] %vm20_vm1, %v319_v13  ;;  %385 = vst.msk [vmem:[#allocation2 + $0xd0] sm:$0xff] %vm20_vm1, %v320_v14  ;;  %v368_v13 = vld [vmem:[%s24312_s0 + $0x1d8] sm:$0xff]  ;;  %v369_v14 = vld [vmem:[%s24312_s0 + $0x1e0] sm:$0xff] }
  0x77   :  { %386 = vst.msk [vmem:[#allocation2 + $0xe8] sm:$0xff] %vm20_vm1, %v321_v15  ;;  %387 = vst.msk [vmem:[#allocation2 + $0xf0] sm:$0xff] %vm20_vm1, %v322_v16  ;;  %v370_v15 = vld [vmem:[%s24312_s0 + $0x1e8] sm:$0xff] }
  0x78   :  { %388 = vst.msk [vmem:[#allocation2 + $0x108] sm:$0xff] %vm20_vm1, %v323_v17  ;;  %389 = vst.msk [vmem:[#allocation2 + $0x110] sm:$0xff] %vm20_vm1, %v324_v18  ;;  %v21024_v25 = vld [vmem:[#allocation2 + $0x27] sm:$0xff]  ;;  %v21039_v28 = vld [vmem:[#allocation2 + $0x2f] sm:$0xff] }
  0x79   :  { %390 = vst.msk [vmem:[#allocation2 + $0x128] sm:$0xff] %vm20_vm1, %v325_v19  ;;  %391 = vst.msk [vmem:[#allocation2 + $0x130] sm:$0xff] %vm20_vm1, %v326_v20  ;;  %16786 = vmatprep.mubr.msk.f32.mxu0 %vm20_vm1, %v21024_v25  ;;  %v21041_v29 = vld [vmem:[#allocation2 + $0x47] sm:$0xff]  ;;  %v21047_v30 = vld [vmem:[#allocation2 + $0x4f] sm:$0xff] }
  0x7a   :  { %392 = vst.msk [vmem:[#allocation2 + $0x148] sm:$0xff] %vm20_vm1, %v327_v21  ;;  %393 = vst.msk [vmem:[#allocation2 + $0x150] sm:$0xff] %vm20_vm1, %v328_v24  ;;  %16787 = vmatmul.mubr.msk.f32.gmra.mrb[2].mxu0 %vm20_vm1, %v21039_v28  ;;  %v21049_v31 = vld [vmem:[#allocation2 + $0x67] sm:$0xff]  ;;  %v21076_v38 = vld [vmem:[#allocation2 + $0x6f] sm:$0xff] }
  0x7b   :  { %394 = vst.msk [vmem:[#allocation2 + $0x168] sm:$0xff] %vm20_vm1, %v329_v26  ;;  %395 = vst.msk [vmem:[#allocation2 + $0x170] sm:$0xff] %vm20_vm1, %v330_v27  ;;  %16789 = vmatprep.mubr.msk.f32.mxu0 %vm20_vm1, %v21041_v29  ;;  %v21087_v41 = vld [vmem:[#allocation2 + $0x87] sm:$0xff]  ;;  %v21097_v44 = vld [vmem:[#allocation2 + $0x8f] sm:$0xff] }
  0x7c   :  { %396 = vst.msk [vmem:[#allocation2 + $0x188] sm:$0xff] %vm20_vm1, %v331_v32  ;;  %397 = vst.msk [vmem:[#allocation2 + $0x190] sm:$0xff] %vm20_vm1, %v332_v33  ;;  %v21138_v54 = vld [vmem:[#allocation2 + $0xa7] sm:$0xff]  ;;  %v21159_v58 = vld [vmem:[#allocation2 + $0xaf] sm:$0xff] }
  0x7d   :  { %398 = vst.msk [vmem:[#allocation2 + $0x1a8] sm:$0xff] %vm20_vm1, %v333_v34  ;;  %399 = vst.msk [vmem:[#allocation2 + $0x1b0] sm:$0xff] %vm20_vm1, %v334_v35  ;;  %v21164_v60 = vld [vmem:[#allocation2 + $0xc7] sm:$0xff]  ;;  %v21175_v62 = vld [vmem:[#allocation2 + $0xcf] sm:$0xff] }
  0x7e   :  { %16790 = vmatmul.mubr.msk.f32.gmra.mrb[4].mxu0 %vm20_vm1, %v21047_v30  ;;  %400 = vst.msk [vmem:[#allocation2 + $0x1c8] sm:$0xff] %vm20_vm1, %v335_v36  ;;  %401 = vst.msk [vmem:[#allocation2 + $0x1d0] sm:$0xff] %vm20_vm1, %v336_v37  ;;  %v21177_v63 = vld [vmem:[#allocation2 + $0xe7] sm:$0xff]  ;;  %v21204_v6 = vld [vmem:[#allocation2 + $0xef] sm:$0xff] }
  0x7f   :  { %16792 = vmatprep.mubr.msk.f32.mxu0 %vm20_vm1, %v21049_v31  ;;  %402 = vst.msk [vmem:[#allocation2 + $0x1e8] sm:$0xff] %vm20_vm1, %v337_v39  ;;  %403 = vst.msk [vmem:[#allocation2 + $0x1f0] sm:$0xff] %vm20_vm1, %v338_v40  ;;  %v21215_v9 = vld [vmem:[#allocation2 + $0x107] sm:$0xff]  ;;  %v21251_v17 = vld [vmem:[#allocation2 + $0x10f] sm:$0xff] }
  0x80   :  { %406 = vst.msk [vmem:[#allocation2 + $0x268] sm:$0xff] %vm20_vm1, %v341_v42  ;;  %407 = vst.msk [vmem:[#allocation2 + $0x270] sm:$0xff] %vm20_vm1, %v342_v43  ;;  %v21247_v16 = vld [vmem:[%s24311_s1 + $0x8] sm:$0xf]  ;;  %v21262_v19 = vld [vmem:[#allocation2 + $0x12f] sm:$0xff] }
  0x81   :  { %408 = vst.msk [vmem:[#allocation2 + $0x288] sm:$0xff] %vm20_vm1, %v343_v45  ;;  %409 = vst.msk [vmem:[#allocation2 + $0x290] sm:$0xff] %vm20_vm1, %v344_v46  ;;  %16977 = vmatprep.subr.msk.mxu0 %vm823_vm0, %v21247_v16  ;;  %v21256_v18 = vld [vmem:[#allocation2 + $0x127] sm:$0xff]  ;;  %v21270_v21 = vld [vmem:[#allocation2 + $0x14f] sm:$0xff] }
  0x82   :  { %16793 = vmatmul.mubr.msk.f32.gmra.mrb[6].mxu0 %vm20_vm1, %v21076_v38  ;;  %410 = vst.msk [vmem:[#allocation2 + $0x2a8] sm:$0xff] %vm20_vm1, %v345_v47  ;;  %411 = vst.msk [vmem:[#allocation2 + $0x2b0] sm:$0xff] %vm20_vm1, %v346_v48  ;;  %v21264_v20 = vld [vmem:[#allocation2 + $0x147] sm:$0xff]  ;;  %v21278_v23 = vld [vmem:[#allocation2 + $0x16f] sm:$0xff] }
  0x83   :  { %16795 = vmatprep.mubr.msk.f32.mxu0 %vm20_vm1, %v21087_v41  ;;  %412 = vst.msk [vmem:[#allocation2 + $0x2c8] sm:$0xff] %vm20_vm1, %v347_v49  ;;  %413 = vst.msk [vmem:[#allocation2 + $0x2d0] sm:$0xff] %vm20_vm1, %v348_v50  ;;  %v21272_v22 = vld [vmem:[#allocation2 + $0x167] sm:$0xff]  ;;  %v21286_v26 = vld [vmem:[#allocation2 + $0x18f] sm:$0xff] }
  0x84   :  { %414 = vst.msk [vmem:[#allocation2 + $0x2e8] sm:$0xff] %vm20_vm1, %v349_v51  ;;  %415 = vst.msk [vmem:[#allocation2 + $0x2f0] sm:$0xff] %vm20_vm1, %v350_v52  ;;  %v21280_v24 = vld [vmem:[#allocation2 + $0x187] sm:$0xff]  ;;  %v21294_v32 = vld [vmem:[#allocation2 + $0x1af] sm:$0xff] }
  0x85   :  { %416 = vst.msk [vmem:[#allocation2 + $0x308] sm:$0xff] %vm20_vm1, %v351_v53  ;;  %417 = vst.msk [vmem:[#allocation2 + $0x310] sm:$0xff] %vm20_vm1, %v352_v55  ;;  %v21288_v27 = vld [vmem:[#allocation2 + $0x1a7] sm:$0xff]  ;;  %v21302_v34 = vld [vmem:[#allocation2 + $0x1cf] sm:$0xff] }
  0x86   :  { %16796 = vmatmul.mubr.msk.f32.gmra.mrb[8].mxu0 %vm20_vm1, %v21097_v44  ;;  %418 = vst.msk [vmem:[#allocation2 + $0x328] sm:$0xff] %vm20_vm1, %v353_v56  ;;  %419 = vst.msk [vmem:[#allocation2 + $0x330] sm:$0xff] %vm20_vm1, %v354_v57  ;;  %v21296_v33 = vld [vmem:[#allocation2 + $0x1c7] sm:$0xff]  ;;  %v21310_v36 = vld [vmem:[#allocation2 + $0x1ef] sm:$0xff] }
  0x87   :  { %16798 = vmatprep.mubr.msk.f32.mxu0 %vm20_vm1, %v21138_v54  ;;  %420 = vst.msk [vmem:[#allocation2 + $0x348] sm:$0xff] %vm20_vm1, %v355_v59  ;;  %421 = vst.msk [vmem:[#allocation2 + $0x350] sm:$0xff] %vm20_vm1, %v356_v61  ;;  %v21304_v35 = vld [vmem:[#allocation2 + $0x1e7] sm:$0xff]  ;;  %v535_v39 = vld [vmem:[#allocation2 + $0x24f] sm:$0xff] }
  0x88   :  { %422 = vst.msk [vmem:[#allocation2 + $0x368] sm:$0xff] %vm20_vm1, %v357_v0  ;;  %423 = vst.msk [vmem:[#allocation2 + $0x370] sm:$0xff] %vm20_vm1, %v358_v1  ;;  %v534_v37 = vld [vmem:[#allocation2 + $0x247] sm:$0xff]  ;;  %v21320_v42 = vld [vmem:[#allocation2 + $0x26f] sm:$0xff] }
  0x89   :  { %424 = vst.msk [vmem:[#allocation2 + $0x388] sm:$0xff] %vm20_vm1, %v359_v2  ;;  %425 = vst.msk [vmem:[#allocation2 + $0x390] sm:$0xff] %vm20_vm1, %v360_v3  ;;  %v21315_v40 = vld [vmem:[#allocation2 + $0x267] sm:$0xff]  ;;  %v21328_v45 = vld [vmem:[#allocation2 + $0x28f] sm:$0xff] }
  0x8a   :  { %16799 = vmatmul.mubr.msk.f32.gmra.mrb[10].mxu0 %vm20_vm1, %v21159_v58  ;;  %426 = vst.msk [vmem:[#allocation2 + $0x3a8] sm:$0xff] %vm20_vm1, %v361_v4  ;;  %427 = vst.msk [vmem:[#allocation2 + $0x3b0] sm:$0xff] %vm20_vm1, %v362_v5  ;;  %v21322_v43 = vld [vmem:[#allocation2 + $0x287] sm:$0xff]  ;;  %v21336_v47 = vld [vmem:[#allocation2 + $0x2af] sm:$0xff] }
  0x8b   :  { %16801 = vmatprep.mubr.msk.f32.mxu0 %vm20_vm1, %v21164_v60  ;;  %428 = vst.msk [vmem:[#allocation2 + $0x3c8] sm:$0xff] %vm20_vm1, %v363_v7  ;;  %429 = vst.msk [vmem:[#allocation2 + $0x3d0] sm:$0xff] %vm20_vm1, %v364_v8  ;;  %v21330_v46 = vld [vmem:[#allocation2 + $0x2a7] sm:$0xff]  ;;  %v21344_v49 = vld [vmem:[#allocation2 + $0x2cf] sm:$0xff] }
  0x8c   :  { %430 = vst.msk [vmem:[#allocation2 + $0x3e8] sm:$0xff] %vm20_vm1, %v365_v10  ;;  %431 = vst.msk [vmem:[#allocation2 + $0x3f0] sm:$0xff] %vm20_vm1, %v366_v11  ;;  %v21338_v48 = vld [vmem:[#allocation2 + $0x2c7] sm:$0xff]  ;;  %v21352_v51 = vld [vmem:[#allocation2 + $0x2ef] sm:$0xff] }
  0x8d   :  { %432 = vst.msk [vmem:[#allocation2 + $0x408] sm:$0xff] %vm20_vm1, %v367_v12  ;;  %433 = vst.msk [vmem:[#allocation2 + $0x410] sm:$0xff] %vm20_vm1, %v368_v13  ;;  %v21346_v50 = vld [vmem:[#allocation2 + $0x2e7] sm:$0xff]  ;;  %v21360_v53 = vld [vmem:[#allocation2 + $0x30f] sm:$0xff] }
  0x8e   :  { %16802 = vmatmul.mubr.msk.f32.gmra.mrb[12].mxu0 %vm20_vm1, %v21175_v62  ;;  %434 = vst.msk [vmem:[#allocation2 + $0x428] sm:$0xff] %vm20_vm1, %v369_v14  ;;  %435 = vst.msk [vmem:[#allocation2 + $0x430] sm:$0xff] %vm20_vm1, %v370_v15  ;;  %v21354_v52 = vld [vmem:[#allocation2 + $0x307] sm:$0xff]  ;;  %v21368_v56 = vld [vmem:[#allocation2 + $0x32f] sm:$0xff] }
  0x8f   :  { %16804 = vmatprep.mubr.msk.f32.mxu0 %vm20_vm1, %v21177_v63  ;;  %v21362_v55 = vld [vmem:[#allocation2 + $0x327] sm:$0xff]  ;;  %v21376_v59 = vld [vmem:[#allocation2 + $0x34f] sm:$0xff] }
  0x90   :  { %v21370_v57 = vld [vmem:[#allocation2 + $0x347] sm:$0xff]  ;;  %v21384_v0 = vld [vmem:[#allocation2 + $0x36f] sm:$0xff] }
  0x91   :  { %v21378_v61 = vld [vmem:[#allocation2 + $0x367] sm:$0xff]  ;;  %v21392_v2 = vld [vmem:[#allocation2 + $0x38f] sm:$0xff] }
  0x92   :  { %16805 = vmatmul.mubr.msk.f32.gmra.mrb[14].mxu0 %vm20_vm1, %v21204_v6  ;;  %v21386_v1 = vld [vmem:[#allocation2 + $0x387] sm:$0xff]  ;;  %v21400_v4 = vld [vmem:[#allocation2 + $0x3af] sm:$0xff] }
  0x93   :  { %16807 = vmatprep.mubr.msk.f32.mxu0 %vm20_vm1, %v21215_v9  ;;  %v21394_v3 = vld [vmem:[#allocation2 + $0x3a7] sm:$0xff]  ;;  %v21408_v7 = vld [vmem:[#allocation2 + $0x3cf] sm:$0xff] }
  0x94   :  { %v21402_v5 = vld [vmem:[#allocation2 + $0x3c7] sm:$0xff]  ;;  %v21416_v10 = vld [vmem:[#allocation2 + $0x3ef] sm:$0xff] }
  0x95   :  { %v21410_v8 = vld [vmem:[#allocation2 + $0x3e7] sm:$0xff]  ;;  %v21424_v12 = vld [vmem:[#allocation2 + $0x40f] sm:$0xff] }
  0x96   :  { %16808 = vmatmul.mubr.msk.f32.gmra.mrb[16].mxu0 %vm20_vm1, %v21251_v17  ;;  %v21418_v11 = vld [vmem:[#allocation2 + $0x407] sm:$0xff]  ;;  %24566 = vst [vmem:[#allocation6_spill] sm:$0xff] %v21424_v12  ;;  %v21432_v14 = vld [vmem:[#allocation2 + $0x42f] sm:$0xff] }
  0x97   :  { %16810 = vmatprep.mubr.msk.f32.mxu0 %vm20_vm1, %v21256_v18  ;;  %24565 = vst [vmem:[#allocation5_spill] sm:$0xff] %v21418_v11  ;;  %v21426_v13 = vld [vmem:[#allocation2 + $0x427] sm:$0xff]  ;;  %24568 = vst [vmem:[#allocation8_spill] sm:$0xff] %v21432_v14 }
  0x98   :  { %24567 = vst [vmem:[#allocation7_spill] sm:$0xff] %v21426_v13  ;;  %v1340_v15 = vld [vmem:[#allocation2 + $0x8] sm:$0xff] }
  0x9a   :  { %16811 = vmatmul.mubr.msk.f32.gmra.mrb[18].mxu0 %vm20_vm1, %v21262_v19 }
  0x9b   :  { %16813 = vmatprep.mubr.msk.f32.mxu0 %vm20_vm1, %v21264_v20 }
  0x9e   :  { %16814 = vmatmul.mubr.msk.f32.gmra.mrb[20].mxu0 %vm20_vm1, %v21270_v21 }
  0x9f   :  { %16816 = vmatprep.mubr.msk.f32.mxu0 %vm20_vm1, %v21272_v22 }
  0xa2   :  { %16817 = vmatmul.mubr.msk.f32.gmra.mrb[22].mxu0 %vm20_vm1, %v21278_v23 }
  0xa3   :  { %16819 = vmatprep.mubr.msk.f32.mxu0 %vm20_vm1, %v21280_v24 }
  0xa6   :  { %16820 = vmatmul.mubr.msk.f32.gmra.mrb[24].mxu0 %vm20_vm1, %v21286_v26 }
  0xa7   :  { %16822 = vmatprep.mubr.msk.f32.mxu0 %vm20_vm1, %v21288_v27 }
  0xaa   :  { %16823 = vmatmul.mubr.msk.f32.gmra.mrb[26].mxu0 %vm20_vm1, %v21294_v32 }
  0xab   :  { %16825 = vmatprep.mubr.msk.f32.mxu0 %vm20_vm1, %v21296_v33 }
  0xae   :  { %16826 = vmatmul.mubr.msk.f32.gmra.mrb[28].mxu0 %vm20_vm1, %v21302_v34 }
  0xaf   :  { %16828 = vmatprep.mubr.msk.f32.mxu0 %vm20_vm1, %v21304_v35 }
  0xb2   :  { %16829 = vmatmul.mubr.msk.f32.gmra.mrb[30].mxu0 %vm20_vm1, %v21310_v36 }
  0xb3   :  { %16831 = vmatprep.mubr.msk.f32.mxu0 %vm20_vm1, %v534_v37  ;;  %v1341_v37 = vld [vmem:[#allocation2 + $0x10] sm:$0xff] }
  0xb6   :  { %16832 = vmatmul.mubr.msk.f32.gmra.mrb[32].mxu0 %vm20_vm1, %v535_v39  ;;  %v21437_v39 = vld [vmem:[#allocation2 + $0x28] sm:$0xff] }
  0xb7   :  { %16834 = vmatprep.mubr.msk.f32.mxu0 %vm20_vm1, %v21315_v40  ;;  %24569 = vst [vmem:[#allocation9_spill] sm:$0xff] %v21437_v39 }
  0xba   :  { %16835 = vmatmul.mubr.msk.f32.gmra.mrb[34].mxu0 %vm20_vm1, %v21320_v42 }
  0xbb   :  { %16837 = vmatprep.mubr.msk.f32.mxu0 %vm20_vm1, %v21322_v43 }
  0xbe   :  { %16838 = vmatmul.mubr.msk.f32.gmra.mrb[36].mxu0 %vm20_vm1, %v21328_v45 }
  0xbf   :  { %16840 = vmatprep.mubr.msk.f32.mxu0 %vm20_vm1, %v21330_v46 }
  0xc2   :  { %16841 = vmatmul.mubr.msk.f32.gmra.mrb[38].mxu0 %vm20_vm1, %v21336_v47 }
  0xc3   :  { %16843 = vmatprep.mubr.msk.f32.mxu0 %vm20_vm1, %v21338_v48 }
  0xc6   :  { %16844 = vmatmul.mubr.msk.f32.gmra.mrb[40].mxu0 %vm20_vm1, %v21344_v49 }
  0xc7   :  { %16846 = vmatprep.mubr.msk.f32.mxu0 %vm20_vm1, %v21346_v50 }
  0xca   :  { %16847 = vmatmul.mubr.msk.f32.gmra.mrb[42].mxu0 %vm20_vm1, %v21352_v51 }
  0xcb   :  { %16849 = vmatprep.mubr.msk.f32.mxu0 %vm20_vm1, %v21354_v52 }
  0xce   :  { %16850 = vmatmul.mubr.msk.f32.gmra.mrb[44].mxu0 %vm20_vm1, %v21360_v53 }
  0xcf   :  { %16852 = vmatprep.mubr.msk.f32.mxu0 %vm20_vm1, %v21362_v55 }
  0xd2   :  { %16853 = vmatmul.mubr.msk.f32.gmra.mrb[46].mxu0 %vm20_vm1, %v21368_v56 }
  0xd3   :  { %16855 = vmatprep.mubr.msk.f32.mxu0 %vm20_vm1, %v21370_v57 }
  0xd6   :  { %16856 = vmatmul.mubr.msk.f32.gmra.mrb[48].mxu0 %vm20_vm1, %v21376_v59 }
  0xd7   :  { %16858 = vmatprep.mubr.msk.f32.mxu0 %vm20_vm1, %v21378_v61 }
  0xda   :  { %16859 = vmatmul.mubr.msk.f32.gmra.mrb[50].mxu0 %vm20_vm1, %v21384_v0 }
  0xdb   :  { %16861 = vmatprep.mubr.msk.f32.mxu0 %vm20_vm1, %v21386_v1 }
  0xde   :  { %16862 = vmatmul.mubr.msk.f32.gmra.mrb[52].mxu0 %vm20_vm1, %v21392_v2 }
  0xdf   :  { %16864 = vmatprep.mubr.msk.f32.mxu0 %vm20_vm1, %v21394_v3 }
  0xe2   :  { %16865 = vmatmul.mubr.msk.f32.gmra.mrb[54].mxu0 %vm20_vm1, %v21400_v4 }
  0xe3   :  { %16867 = vmatprep.mubr.msk.f32.mxu0 %vm20_vm1, %v21402_v5 }
  0xe6   :  { %16868 = vmatmul.mubr.msk.f32.gmra.mrb[56].mxu0 %vm20_vm1, %v21408_v7 }
  0xe7   :  { %16870 = vmatprep.mubr.msk.f32.mxu0 %vm20_vm1, %v21410_v8 }
  0xea   :  { %16871 = vmatmul.mubr.msk.f32.gmra.mrb[58].mxu0 %vm20_vm1, %v21416_v10 }
  0xeb   :  { %16873 = vmatprep.mubr.msk.f32.mxu0 %vm20_vm1, %v21418_v11  ;;  %v21442_v11 = vld [vmem:[%s24311_s1 + $0xc] sm:$0xf] }
  0xee   :  { %16874 = vmatmul.mubr.msk.f32.gmra.mrb[60].mxu0 %vm20_vm1, %v21424_v12  ;;  %v21575_v12 = vld [vmem:[#allocation2 + $0x288] sm:$0xff] }
  0xef   :  { %16876 = vmatprep.mubr.msk.f32.mxu0 %vm20_vm1, %v21426_v13  ;;  %v21449_v13 = vld [vmem:[#allocation2 + $0x30] sm:$0xff]  ;;  %24601 = vst [vmem:[#allocation41_spill] sm:$0xff] %v21575_v12 }
  0xf0   :  { %24570 = vst [vmem:[#allocation10_spill] sm:$0xff] %v21449_v13 }
  0xf2   :  { %16877 = vmatmul.mubr.msk.f32.gmra.mrb[62].mxu0 %vm20_vm1, %v21432_v14  ;;  %v21451_v14 = vld [vmem:[#allocation2 + $0x48] sm:$0xff] }
  0xf3   :  { %16881 = vmatprep.mubr.msk.f32.mxu0 %vm20_vm1, %v1340_v15  ;;  %24571 = vst [vmem:[#allocation11_spill] sm:$0xff] %v21451_v14  ;;  %v21459_v15 = vld [vmem:[#allocation2 + $0x50] sm:$0xff] }
  0xf4   :  { %24572 = vst [vmem:[#allocation12_spill] sm:$0xff] %v21459_v15 }
  0xf6   :  { %16882 = vmatmul.mubr.msk.f32.vlgmr.msra.gmra.mrb[0].mxu0 %vm20_vm1, %v1341_v37  ;;  %v21461_v37 = vld [vmem:[#allocation2 + $0x68] sm:$0xff] }
  0xf7   :  { %16978 = vmatpush3.msk.msra.mxu0 %vm823_vm0, %v21247_v16  ;;  %16884 = vmatprep.mubr.msk.f32.mxu0 %vm20_vm1, %v21437_v39  ;;  %24573 = vst [vmem:[#allocation13_spill] sm:$0xff] %v21461_v37  ;;  %v21467_v16 = vld [vmem:[#allocation2 + $0x70] sm:$0xff]  ;;  %v21469_v39 = vld [vmem:[#allocation2 + $0x88] sm:$0xff] }
  0xf8   :  { %17075 = vmatprep.subr.msk.mxu0 %vm823_vm0, %v21442_v11  ;;  %24574 = vst [vmem:[#allocation14_spill] sm:$0xff] %v21467_v16  ;;  %24575 = vst [vmem:[#allocation15_spill] sm:$0xff] %v21469_v39 }
  0xfa   :  { %16885 = vmatmul.mubr.msk.f32.gmra.mrb[2].mxu0 %vm20_vm1, %v21449_v13  ;;  %v21477_v13 = vld [vmem:[#allocation2 + $0xa8] sm:$0xff] }
  0xfb   :  { %16887 = vmatprep.mubr.msk.f32.mxu0 %vm20_vm1, %v21451_v14  ;;  %v21475_v14 = vld [vmem:[#allocation2 + $0x90] sm:$0xff]  ;;  %24577 = vst [vmem:[#allocation17_spill] sm:$0xff] %v21477_v13 }
  0xfc   :  { %24576 = vst [vmem:[#allocation16_spill] sm:$0xff] %v21475_v14 }
  0xfe   :  { %16888 = vmatmul.mubr.msk.f32.gmra.mrb[4].mxu0 %vm20_vm1, %v21459_v15  ;;  %v21485_v15 = vld [vmem:[#allocation2 + $0xc8] sm:$0xff] }
  0xff   :  { %16890 = vmatprep.mubr.msk.f32.mxu0 %vm20_vm1, %v21461_v37  ;;  %v21483_v37 = vld [vmem:[#allocation2 + $0xb0] sm:$0xff]  ;;  %24579 = vst [vmem:[#allocation19_spill] sm:$0xff] %v21485_v15 }
 0x100   :  { %24578 = vst [vmem:[#allocation18_spill] sm:$0xff] %v21483_v37 }
 0x102   :  { %16891 = vmatmul.mubr.msk.f32.gmra.mrb[6].mxu0 %vm20_vm1, %v21467_v16  ;;  %v21493_v16 = vld [vmem:[#allocation2 + $0xe8] sm:$0xff] }
 0x103   :  { %16893 = vmatprep.mubr.msk.f32.mxu0 %vm20_vm1, %v21469_v39  ;;  %v21491_v39 = vld [vmem:[#allocation2 + $0xd0] sm:$0xff]  ;;  %24581 = vst [vmem:[#allocation21_spill] sm:$0xff] %v21493_v16 }
 0x104   :  { %24580 = vst [vmem:[#allocation20_spill] sm:$0xff] %v21491_v39 }
 0x106   :  { %16894 = vmatmul.mubr.msk.f32.gmra.mrb[8].mxu0 %vm20_vm1, %v21475_v14  ;;  %v21501_v14 = vld [vmem:[#allocation2 + $0x108] sm:$0xff] }
 0x107   :  { %16896 = vmatprep.mubr.msk.f32.mxu0 %vm20_vm1, %v21477_v13  ;;  %v21499_v13 = vld [vmem:[#allocation2 + $0xf0] sm:$0xff]  ;;  %24583 = vst [vmem:[#allocation23_spill] sm:$0xff] %v21501_v14 }
 0x108   :  { %24582 = vst [vmem:[#allocation22_spill] sm:$0xff] %v21499_v13 }
 0x10a   :  { %16897 = vmatmul.mubr.msk.f32.gmra.mrb[10].mxu0 %vm20_vm1, %v21483_v37  ;;  %v21509_v37 = vld [vmem:[#allocation2 + $0x128] sm:$0xff] }
 0x10b   :  { %16899 = vmatprep.mubr.msk.f32.mxu0 %vm20_vm1, %v21485_v15  ;;  %v21507_v15 = vld [vmem:[#allocation2 + $0x110] sm:$0xff]  ;;  %24585 = vst [vmem:[#allocation25_spill] sm:$0xff] %v21509_v37 }
 0x10c   :  { %24584 = vst [vmem:[#allocation24_spill] sm:$0xff] %v21507_v15 }
 0x10e   :  { %16900 = vmatmul.mubr.msk.f32.gmra.mrb[12].mxu0 %vm20_vm1, %v21491_v39  ;;  %v21517_v39 = vld [vmem:[#allocation2 + $0x148] sm:$0xff] }
 0x10f   :  { %16902 = vmatprep.mubr.msk.f32.mxu0 %vm20_vm1, %v21493_v16  ;;  %v21515_v16 = vld [vmem:[#allocation2 + $0x130] sm:$0xff]  ;;  %24587 = vst [vmem:[#allocation27_spill] sm:$0xff] %v21517_v39 }
 0x110   :  { %24586 = vst [vmem:[#allocation26_spill] sm:$0xff] %v21515_v16 }
 0x112   :  { %16903 = vmatmul.mubr.msk.f32.gmra.mrb[14].mxu0 %vm20_vm1, %v21499_v13  ;;  %v21525_v13 = vld [vmem:[#allocation2 + $0x168] sm:$0xff] }
 0x113   :  { %16905 = vmatprep.mubr.msk.f32.mxu0 %vm20_vm1, %v21501_v14  ;;  %v21523_v14 = vld [vmem:[#allocation2 + $0x150] sm:$0xff]  ;;  %24589 = vst [vmem:[#allocation29_spill] sm:$0xff] %v21525_v13 }
 0x114   :  { %24588 = vst [vmem:[#allocation28_spill] sm:$0xff] %v21523_v14 }
 0x116   :  { %16906 = vmatmul.mubr.msk.f32.gmra.mrb[16].mxu0 %vm20_vm1, %v21507_v15  ;;  %v21533_v15 = vld [vmem:[#allocation2 + $0x188] sm:$0xff] }
 0x117   :  { %16908 = vmatprep.mubr.msk.f32.mxu0 %vm20_vm1, %v21509_v37  ;;  %v21531_v37 = vld [vmem:[#allocation2 + $0x170] sm:$0xff]  ;;  %24591 = vst [vmem:[#allocation31_spill] sm:$0xff] %v21533_v15 }
 0x118   :  { %24590 = vst [vmem:[#allocation30_spill] sm:$0xff] %v21531_v37 }
 0x11a   :  { %16909 = vmatmul.mubr.msk.f32.gmra.mrb[18].mxu0 %vm20_vm1, %v21515_v16  ;;  %v21541_v16 = vld [vmem:[#allocation2 + $0x1a8] sm:$0xff] }
 0x11b   :  { %16911 = vmatprep.mubr.msk.f32.mxu0 %vm20_vm1, %v21517_v39  ;;  %v21539_v39 = vld [vmem:[#allocation2 + $0x190] sm:$0xff]  ;;  %24593 = vst [vmem:[#allocation33_spill] sm:$0xff] %v21541_v16 }
 0x11c   :  { %24592 = vst [vmem:[#allocation32_spill] sm:$0xff] %v21539_v39 }
 0x11e   :  { %16912 = vmatmul.mubr.msk.f32.gmra.mrb[20].mxu0 %vm20_vm1, %v21523_v14  ;;  %v21549_v14 = vld [vmem:[#allocation2 + $0x1c8] sm:$0xff] }
 0x11f   :  { %16914 = vmatprep.mubr.msk.f32.mxu0 %vm20_vm1, %v21525_v13  ;;  %v21547_v13 = vld [vmem:[#allocation2 + $0x1b0] sm:$0xff]  ;;  %24595 = vst [vmem:[#allocation35_spill] sm:$0xff] %v21549_v14 }
 0x120   :  { %24594 = vst [vmem:[#allocation34_spill] sm:$0xff] %v21547_v13 }
 0x122   :  { %16915 = vmatmul.mubr.msk.f32.gmra.mrb[22].mxu0 %vm20_vm1, %v21531_v37  ;;  %v21557_v37 = vld [vmem:[#allocation2 + $0x1e8] sm:$0xff] }
 0x123   :  { %16917 = vmatprep.mubr.msk.f32.mxu0 %vm20_vm1, %v21533_v15  ;;  %v21555_v15 = vld [vmem:[#allocation2 + $0x1d0] sm:$0xff]  ;;  %24597 = vst [vmem:[#allocation37_spill] sm:$0xff] %v21557_v37 }
 0x124   :  { %24596 = vst [vmem:[#allocation36_spill] sm:$0xff] %v21555_v15 }
 0x126   :  { %16918 = vmatmul.mubr.msk.f32.gmra.mrb[24].mxu0 %vm20_vm1, %v21539_v39  ;;  %v1372_v39 = vld [vmem:[#allocation2 + $0x248] sm:$0xff] }
 0x127   :  { %16920 = vmatprep.mubr.msk.f32.mxu0 %vm20_vm1, %v21541_v16  ;;  %v21563_v16 = vld [vmem:[#allocation2 + $0x1f0] sm:$0xff] }
 0x128   :  { %24598 = vst [vmem:[#allocation38_spill] sm:$0xff] %v21563_v16 }
 0x12a   :  { %16921 = vmatmul.mubr.msk.f32.gmra.mrb[26].mxu0 %vm20_vm1, %v21547_v13  ;;  %v1373_v13 = vld [vmem:[#allocation2 + $0x250] sm:$0xff] }
 0x12b   :  { %16923 = vmatprep.mubr.msk.f32.mxu0 %vm20_vm1, %v21549_v14  ;;  %v21568_v14 = vld [vmem:[#allocation2 + $0x268] sm:$0xff] }
 0x12c   :  { %24599 = vst [vmem:[#allocation39_spill] sm:$0xff] %v21568_v14 }
 0x12e   :  { %16924 = vmatmul.mubr.msk.f32.gmra.mrb[28].mxu0 %vm20_vm1, %v21555_v15  ;;  %v21573_v15 = vld [vmem:[#allocation2 + $0x270] sm:$0xff] }
 0x12f   :  { %16926 = vmatprep.mubr.msk.f32.mxu0 %vm20_vm1, %v21557_v37  ;;  %24600 = vst [vmem:[#allocation40_spill] sm:$0xff] %v21573_v15  ;;  %v21695_v37 = vld [vmem:[%s24311_s1 + $0x10] sm:$0xf] }
 0x132   :  { %16927 = vmatmul.mubr.msk.f32.gmra.mrb[30].mxu0 %vm20_vm1, %v21563_v16  ;;  %v21581_v16 = vld [vmem:[#allocation2 + $0x290] sm:$0xff] }
 0x133   :  { %16929 = vmatprep.mubr.msk.f32.mxu0 %vm20_vm1, %v1372_v39  ;;  %24602 = vst [vmem:[#allocation42_spill] sm:$0xff] %v21581_v16  ;;  %v21583_v39 = vld [vmem:[#allocation2 + $0x2a8] sm:$0xff] }
 0x134   :  { %24603 = vst [vmem:[#allocation43_spill] sm:$0xff] %v21583_v39 }
 0x136   :  { %16930 = vmatmul.mubr.msk.f32.gmra.mrb[32].mxu0 %vm20_vm1, %v1373_v13  ;;  %v21589_v13 = vld [vmem:[#allocation2 + $0x2b0] sm:$0xff] }
 0x137   :  { %16932 = vmatprep.mubr.msk.f32.mxu0 %vm20_vm1, %v21568_v14  ;;  %24604 = vst [vmem:[#allocation44_spill] sm:$0xff] %v21589_v13  ;;  %v21591_v14 = vld [vmem:[#allocation2 + $0x2c8] sm:$0xff] }
 0x138   :  { %24605 = vst [vmem:[#allocation45_spill] sm:$0xff] %v21591_v14 }
 0x13a   :  { %16933 = vmatmul.mubr.msk.f32.gmra.mrb[34].mxu0 %vm20_vm1, %v21573_v15  ;;  %v21599_v15 = vld [vmem:[#allocation2 + $0x2e8] sm:$0xff] }
 0x13b   :  { %16935 = vmatprep.mubr.msk.f32.mxu0 %vm20_vm1, %v21575_v12  ;;  %v21597_v12 = vld [vmem:[#allocation2 + $0x2d0] sm:$0xff]  ;;  %24607 = vst [vmem:[#allocation47_spill] sm:$0xff] %v21599_v15 }
 0x13c   :  { %24606 = vst [vmem:[#allocation46_spill] sm:$0xff] %v21597_v12 }
 0x13e   :  { %16936 = vmatmul.mubr.msk.f32.gmra.mrb[36].mxu0 %vm20_vm1, %v21581_v16  ;;  %v21607_v16 = vld [vmem:[#allocation2 + $0x308] sm:$0xff] }
 0x13f   :  { %16938 = vmatprep.mubr.msk.f32.mxu0 %vm20_vm1, %v21583_v39  ;;  %v21605_v39 = vld [vmem:[#allocation2 + $0x2f0] sm:$0xff]  ;;  %24609 = vst [vmem:[#allocation49_spill] sm:$0xff] %v21607_v16 }
 0x140   :  { %24608 = vst [vmem:[#allocation48_spill] sm:$0xff] %v21605_v39 }
 0x142   :  { %16939 = vmatmul.mubr.msk.f32.gmra.mrb[38].mxu0 %vm20_vm1, %v21589_v13  ;;  %v21615_v13 = vld [vmem:[#allocation2 + $0x328] sm:$0xff] }
 0x143   :  { %16941 = vmatprep.mubr.msk.f32.mxu0 %vm20_vm1, %v21591_v14  ;;  %v21613_v14 = vld [vmem:[#allocation2 + $0x310] sm:$0xff]  ;;  %24611 = vst [vmem:[#allocation51_spill] sm:$0xff] %v21615_v13 }
 0x144   :  { %24610 = vst [vmem:[#allocation50_spill] sm:$0xff] %v21613_v14 }
 0x146   :  { %16942 = vmatmul.mubr.msk.f32.gmra.mrb[40].mxu0 %vm20_vm1, %v21597_v12  ;;  %v21623_v12 = vld [vmem:[#allocation2 + $0x348] sm:$0xff] }
 0x147   :  { %16944 = vmatprep.mubr.msk.f32.mxu0 %vm20_vm1, %v21599_v15  ;;  %v21621_v15 = vld [vmem:[#allocation2 + $0x330] sm:$0xff]  ;;  %24613 = vst [vmem:[#allocation53_spill] sm:$0xff] %v21623_v12 }
 0x148   :  { %24612 = vst [vmem:[#allocation52_spill] sm:$0xff] %v21621_v15 }
 0x14a   :  { %16945 = vmatmul.mubr.msk.f32.gmra.mrb[42].mxu0 %vm20_vm1, %v21605_v39  ;;  %v21631_v39 = vld [vmem:[#allocation2 + $0x368] sm:$0xff] }
 0x14b   :  { %16947 = vmatprep.mubr.msk.f32.mxu0 %vm20_vm1, %v21607_v16  ;;  %v21629_v16 = vld [vmem:[#allocation2 + $0x350] sm:$0xff]  ;;  %24615 = vst [vmem:[#allocation55_spill] sm:$0xff] %v21631_v39 }
 0x14c   :  { %24614 = vst [vmem:[#allocation54_spill] sm:$0xff] %v21629_v16 }
 0x14e   :  { %16948 = vmatmul.mubr.msk.f32.gmra.mrb[44].mxu0 %vm20_vm1, %v21613_v14  ;;  %v21639_v14 = vld [vmem:[#allocation2 + $0x388] sm:$0xff] }
 0x14f   :  { %16950 = vmatprep.mubr.msk.f32.mxu0 %vm20_vm1, %v21615_v13  ;;  %v21637_v13 = vld [vmem:[#allocation2 + $0x370] sm:$0xff]  ;;  %24617 = vst [vmem:[#allocation57_spill] sm:$0xff] %v21639_v14 }
 0x150   :  { %24616 = vst [vmem:[#allocation56_spill] sm:$0xff] %v21637_v13 }
 0x152   :  { %16951 = vmatmul.mubr.msk.f32.gmra.mrb[46].mxu0 %vm20_vm1, %v21621_v15  ;;  %v21647_v15 = vld [vmem:[#allocation2 + $0x3a8] sm:$0xff] }
 0x153   :  { %16953 = vmatprep.mubr.msk.f32.mxu0 %vm20_vm1, %v21623_v12  ;;  %v21645_v12 = vld [vmem:[#allocation2 + $0x390] sm:$0xff]  ;;  %24619 = vst [vmem:[#allocation59_spill] sm:$0xff] %v21647_v15 }
 0x154   :  { %24618 = vst [vmem:[#allocation58_spill] sm:$0xff] %v21645_v12 }
 0x156   :  { %16954 = vmatmul.mubr.msk.f32.gmra.mrb[48].mxu0 %vm20_vm1, %v21629_v16  ;;  %v21655_v16 = vld [vmem:[#allocation2 + $0x3c8] sm:$0xff] }
 0x157   :  { %16956 = vmatprep.mubr.msk.f32.mxu0 %vm20_vm1, %v21631_v39  ;;  %v21653_v39 = vld [vmem:[#allocation2 + $0x3b0] sm:$0xff]  ;;  %24621 = vst [vmem:[#allocation61_spill] sm:$0xff] %v21655_v16 }
 0x158   :  { %24620 = vst [vmem:[#allocation60_spill] sm:$0xff] %v21653_v39 }
 0x15a   :  { %16957 = vmatmul.mubr.msk.f32.gmra.mrb[50].mxu0 %vm20_vm1, %v21637_v13  ;;  %v21663_v13 = vld [vmem:[#allocation2 + $0x3e8] sm:$0xff] }
 0x15b   :  { %16959 = vmatprep.mubr.msk.f32.mxu0 %vm20_vm1, %v21639_v14  ;;  %v21661_v14 = vld [vmem:[#allocation2 + $0x3d0] sm:$0xff]  ;;  %24623 = vst [vmem:[#allocation63_spill] sm:$0xff] %v21663_v13 }
 0x15c   :  { %24622 = vst [vmem:[#allocation62_spill] sm:$0xff] %v21661_v14 }
 0x15e   :  { %16960 = vmatmul.mubr.msk.f32.gmra.mrb[52].mxu0 %vm20_vm1, %v21645_v12  ;;  %v21671_v12 = vld [vmem:[#allocation2 + $0x408] sm:$0xff] }
 0x15f   :  { %16962 = vmatprep.mubr.msk.f32.mxu0 %vm20_vm1, %v21647_v15  ;;  %v21669_v15 = vld [vmem:[#allocation2 + $0x3f0] sm:$0xff]  ;;  %24625 = vst [vmem:[#allocation65_spill] sm:$0xff] %v21671_v12 }
 0x160   :  { %24624 = vst [vmem:[#allocation64_spill] sm:$0xff] %v21669_v15 }
 0x162   :  { %16963 = vmatmul.mubr.msk.f32.gmra.mrb[54].mxu0 %vm20_vm1, %v21653_v39  ;;  %v21679_v39 = vld [vmem:[#allocation2 + $0x428] sm:$0xff] }
 0x163   :  { %16965 = vmatprep.mubr.msk.f32.mxu0 %vm20_vm1, %v21655_v16  ;;  %v21677_v16 = vld [vmem:[#allocation2 + $0x410] sm:$0xff]  ;;  %24627 = vst [vmem:[#allocation67_spill] sm:$0xff] %v21679_v39 }
 0x164   :  { %24626 = vst [vmem:[#allocation66_spill] sm:$0xff] %v21677_v16 }
 0x166   :  { %16966 = vmatmul.mubr.msk.f32.gmra.mrb[56].mxu0 %vm20_vm1, %v21661_v14  ;;  %v2178_v14 = vld [vmem:[#allocation2 + $0x9] sm:$0xff] }
 0x167   :  { %16968 = vmatprep.mubr.msk.f32.mxu0 %vm20_vm1, %v21663_v13  ;;  %v21685_v13 = vld [vmem:[#allocation2 + $0x430] sm:$0xff] }
 0x168   :  { %24628 = vst [vmem:[#allocation68_spill] sm:$0xff] %v21685_v13 }
 0x16a   :  { %16969 = vmatmul.mubr.msk.f32.gmra.mrb[58].mxu0 %vm20_vm1, %v21669_v15  ;;  %v2179_v15 = vld [vmem:[#allocation2 + $0x11] sm:$0xff] }
 0x16b   :  { %16971 = vmatprep.mubr.msk.f32.mxu0 %vm20_vm1, %v21671_v12  ;;  %v21690_v12 = vld [vmem:[#allocation2 + $0x29] sm:$0xff] }
 0x16c   :  { %24629 = vst [vmem:[#allocation69_spill] sm:$0xff] %v21690_v12 }
 0x16e   :  { %16972 = vmatmul.mubr.msk.f32.gmra.mrb[60].mxu0 %vm20_vm1, %v21677_v16  ;;  %v2210_v16 = vld [vmem:[#allocation2 + $0x249] sm:$0xff] }
 0x16f   :  { %16974 = vmatprep.mubr.msk.f32.mxu0 %vm20_vm1, %v21679_v39  ;;  %v21702_v39 = vld [vmem:[#allocation2 + $0x31] sm:$0xff] }
 0x170   :  { %24630 = vst [vmem:[#allocation70_spill] sm:$0xff] %v21702_v39 }
 0x172   :  { %16975 = vmatmul.mubr.msk.f32.gmra.mrb[62].mxu0 %vm20_vm1, %v21685_v13  ;;  %v21704_v13 = vld [vmem:[#allocation2 + $0x49] sm:$0xff] }
 0x173   :  { %16979 = vmatprep.mubr.msk.f32.mxu0 %vm20_vm1, %v2178_v14  ;;  %24631 = vst [vmem:[#allocation71_spill] sm:$0xff] %v21704_v13  ;;  %v21712_v14 = vld [vmem:[#allocation2 + $0x51] sm:$0xff] }
 0x174   :  { %24632 = vst [vmem:[#allocation72_spill] sm:$0xff] %v21712_v14 }
 0x176   :  { %16980 = vmatmul.mubr.msk.f32.vlgmr.msra.gmra.mrb[0].mxu0 %vm20_vm1, %v2179_v15  ;;  %v21714_v15 = vld [vmem:[#allocation2 + $0x69] sm:$0xff] }
 0x177   :  { %17076 = vmatpush3.msk.msra.mxu0 %vm823_vm0, %v21442_v11  ;;  %16982 = vmatprep.mubr.msk.f32.mxu0 %vm20_vm1, %v21690_v12  ;;  %24633 = vst [vmem:[#allocation73_spill] sm:$0xff] %v21714_v15  ;;  %v21720_v11 = vld [vmem:[#allocation2 + $0x71] sm:$0xff]  ;;  %v21722_v12 = vld [vmem:[#allocation2 + $0x89] sm:$0xff] }
 0x178   :  { %17173 = vmatprep.subr.msk.mxu0 %vm823_vm0, %v21695_v37  ;;  %24634 = vst [vmem:[#allocation74_spill] sm:$0xff] %v21720_v11  ;;  %24635 = vst [vmem:[#allocation75_spill] sm:$0xff] %v21722_v12 }
 0x17a   :  { %16983 = vmatmul.mubr.msk.f32.gmra.mrb[2].mxu0 %vm20_vm1, %v21702_v39  ;;  %v21730_v39 = vld [vmem:[#allocation2 + $0xa9] sm:$0xff] }
 0x17b   :  { %16985 = vmatprep.mubr.msk.f32.mxu0 %vm20_vm1, %v21704_v13  ;;  %v21728_v13 = vld [vmem:[#allocation2 + $0x91] sm:$0xff]  ;;  %24637 = vst [vmem:[#allocation77_spill] sm:$0xff] %v21730_v39 }
 0x17c   :  { %24636 = vst [vmem:[#allocation76_spill] sm:$0xff] %v21728_v13 }
 0x17e   :  { %16986 = vmatmul.mubr.msk.f32.gmra.mrb[4].mxu0 %vm20_vm1, %v21712_v14  ;;  %v21738_v14 = vld [vmem:[#allocation2 + $0xc9] sm:$0xff] }
 0x17f   :  { %16988 = vmatprep.mubr.msk.f32.mxu0 %vm20_vm1, %v21714_v15  ;;  %v21736_v15 = vld [vmem:[#allocation2 + $0xb1] sm:$0xff]  ;;  %24639 = vst [vmem:[#allocation79_spill] sm:$0xff] %v21738_v14 }
 0x180   :  { %24638 = vst [vmem:[#allocation78_spill] sm:$0xff] %v21736_v15 }
 0x182   :  { %16989 = vmatmul.mubr.msk.f32.gmra.mrb[6].mxu0 %vm20_vm1, %v21720_v11  ;;  %v21746_v11 = vld [vmem:[#allocation2 + $0xe9] sm:$0xff] }
 0x183   :  { %16991 = vmatprep.mubr.msk.f32.mxu0 %vm20_vm1, %v21722_v12  ;;  %v21744_v12 = vld [vmem:[#allocation2 + $0xd1] sm:$0xff]  ;;  %24641 = vst [vmem:[#allocation81_spill] sm:$0xff] %v21746_v11 }
 0x184   :  { %24640 = vst [vmem:[#allocation80_spill] sm:$0xff] %v21744_v12 }
 0x186   :  { %16992 = vmatmul.mubr.msk.f32.gmra.mrb[8].mxu0 %vm20_vm1, %v21728_v13  ;;  %v21754_v13 = vld [vmem:[#allocation2 + $0x109] sm:$0xff] }
 0x187   :  { %16994 = vmatprep.mubr.msk.f32.mxu0 %vm20_vm1, %v21730_v39  ;;  %v21752_v39 = vld [vmem:[#allocation2 + $0xf1] sm:$0xff]  ;;  %24643 = vst [vmem:[#allocation83_spill] sm:$0xff] %v21754_v13 }
 0x188   :  { %24642 = vst [vmem:[#allocation82_spill] sm:$0xff] %v21752_v39 }
 0x18a   :  { %16995 = vmatmul.mubr.msk.f32.gmra.mrb[10].mxu0 %vm20_vm1, %v21736_v15  ;;  %v21762_v15 = vld [vmem:[#allocation2 + $0x129] sm:$0xff] }
 0x18b   :  { %16997 = vmatprep.mubr.msk.f32.mxu0 %vm20_vm1, %v21738_v14  ;;  %v21760_v14 = vld [vmem:[#allocation2 + $0x111] sm:$0xff]  ;;  %24645 = vst [vmem:[#allocation85_spill] sm:$0xff] %v21762_v15 }
 0x18c   :  { %24644 = vst [vmem:[#allocation84_spill] sm:$0xff] %v21760_v14 }
 0x18e   :  { %16998 = vmatmul.mubr.msk.f32.gmra.mrb[12].mxu0 %vm20_vm1, %v21744_v12  ;;  %v21770_v12 = vld [vmem:[#allocation2 + $0x149] sm:$0xff] }
 0x18f   :  { %17000 = vmatprep.mubr.msk.f32.mxu0 %vm20_vm1, %v21746_v11  ;;  %v21768_v11 = vld [vmem:[#allocation2 + $0x131] sm:$0xff]  ;;  %24647 = vst [vmem:[#allocation87_spill] sm:$0xff] %v21770_v12 }
 0x190   :  { %24646 = vst [vmem:[#allocation86_spill] sm:$0xff] %v21768_v11 }
 0x192   :  { %17001 = vmatmul.mubr.msk.f32.gmra.mrb[14].mxu0 %vm20_vm1, %v21752_v39  ;;  %v21778_v39 = vld [vmem:[#allocation2 + $0x169] sm:$0xff] }
 0x193   :  { %17003 = vmatprep.mubr.msk.f32.mxu0 %vm20_vm1, %v21754_v13  ;;  %v21776_v13 = vld [vmem:[#allocation2 + $0x151] sm:$0xff]  ;;  %24649 = vst [vmem:[#allocation89_spill] sm:$0xff] %v21778_v39 }
 0x194   :  { %24648 = vst [vmem:[#allocation88_spill] sm:$0xff] %v21776_v13 }
 0x196   :  { %17004 = vmatmul.mubr.msk.f32.gmra.mrb[16].mxu0 %vm20_vm1, %v21760_v14  ;;  %v21786_v14 = vld [vmem:[#allocation2 + $0x189] sm:$0xff] }
 0x197   :  { %17006 = vmatprep.mubr.msk.f32.mxu0 %vm20_vm1, %v21762_v15  ;;  %v21784_v15 = vld [vmem:[#allocation2 + $0x171] sm:$0xff]  ;;  %24651 = vst [vmem:[#allocation91_spill] sm:$0xff] %v21786_v14 }
 0x198   :  { %24650 = vst [vmem:[#allocation90_spill] sm:$0xff] %v21784_v15 }
 0x19a   :  { %17007 = vmatmul.mubr.msk.f32.gmra.mrb[18].mxu0 %vm20_vm1, %v21768_v11  ;;  %v21794_v11 = vld [vmem:[#allocation2 + $0x1a9] sm:$0xff] }
 0x19b   :  { %17009 = vmatprep.mubr.msk.f32.mxu0 %vm20_vm1, %v21770_v12  ;;  %v21792_v12 = vld [vmem:[#allocation2 + $0x191] sm:$0xff]  ;;  %24653 = vst [vmem:[#allocation93_spill] sm:$0xff] %v21794_v11 }
 0x19c   :  { %24652 = vst [vmem:[#allocation92_spill] sm:$0xff] %v21792_v12 }
 0x19e   :  { %17010 = vmatmul.mubr.msk.f32.gmra.mrb[20].mxu0 %vm20_vm1, %v21776_v13  ;;  %v21802_v13 = vld [vmem:[#allocation2 + $0x1c9] sm:$0xff] }
 0x19f   :  { %17012 = vmatprep.mubr.msk.f32.mxu0 %vm20_vm1, %v21778_v39  ;;  %v21800_v39 = vld [vmem:[#allocation2 + $0x1b1] sm:$0xff]  ;;  %24655 = vst [vmem:[#allocation95_spill] sm:$0xff] %v21802_v13 }
 0x1a0   :  { %24654 = vst [vmem:[#allocation94_spill] sm:$0xff] %v21800_v39 }
 0x1a2   :  { %17013 = vmatmul.mubr.msk.f32.gmra.mrb[22].mxu0 %vm20_vm1, %v21784_v15  ;;  %v339_v15 = vld [vmem:[%s24312_s0 + $0xf0] sm:$0xff] }
 0x1a3   :  { %17015 = vmatprep.mubr.msk.f32.mxu0 %vm20_vm1, %v21786_v14  ;;  %404 = vst.msk [vmem:[#allocation2 + $0x208] sm:$0xff] %vm20_vm1, %v339_v15  ;;  %v340_v14 = vld [vmem:[%s24312_s0 + $0xf8] sm:$0xff] }
 0x1a4   :  { %405 = vst.msk [vmem:[#allocation2 + $0x210] sm:$0xff] %vm20_vm1, %v340_v14  ;;  %v21824_v15 = vld [vmem:[#allocation2 + $0x1f1] sm:$0xff] }
 0x1a5   :  { %24657 = vst [vmem:[#allocation97_spill] sm:$0xff] %v21824_v15  ;;  %v2211_v14 = vld [vmem:[#allocation2 + $0x251] sm:$0xff] }
 0x1a6   :  { %17016 = vmatmul.mubr.msk.f32.gmra.mrb[24].mxu0 %vm20_vm1, %v21792_v12  ;;  %v21818_v12 = vld [vmem:[#allocation2 + $0x1e9] sm:$0xff] }
 0x1a7   :  { %17018 = vmatprep.mubr.msk.f32.mxu0 %vm20_vm1, %v21794_v11  ;;  %v21816_v11 = vld [vmem:[#allocation2 + $0x1d1] sm:$0xff] }
 0x1a8   :  { %24656 = vst [vmem:[#allocation96_spill] sm:$0xff] %v21816_v11 }
 0x1aa   :  { %17019 = vmatmul.mubr.msk.f32.gmra.mrb[26].mxu0 %vm20_vm1, %v21800_v39  ;;  %v21836_v39 = vld [vmem:[#allocation2 + $0x289] sm:$0xff] }
 0x1ab   :  { %17021 = vmatprep.mubr.msk.f32.mxu0 %vm20_vm1, %v21802_v13  ;;  %v21829_v13 = vld [vmem:[#allocation2 + $0x269] sm:$0xff]  ;;  %24660 = vst [vmem:[#allocation100_spill] sm:$0xff] %v21836_v39 }
 0x1ac   :  { %24658 = vst [vmem:[#allocation98_spill] sm:$0xff] %v21829_v13 }
 0x1ae   :  { %17022 = vmatmul.mubr.msk.f32.gmra.mrb[28].mxu0 %vm20_vm1, %v21816_v11  ;;  %v21834_v11 = vld [vmem:[#allocation2 + $0x271] sm:$0xff] }
 0x1af   :  { %17024 = vmatprep.mubr.msk.f32.mxu0 %vm20_vm1, %v21818_v12  ;;  %24659 = vst [vmem:[#allocation99_spill] sm:$0xff] %v21834_v11 }
 0x1b2   :  { %17025 = vmatmul.mubr.msk.f32.gmra.mrb[30].mxu0 %vm20_vm1, %v21824_v15  ;;  %v21842_v15 = vld [vmem:[#allocation2 + $0x291] sm:$0xff] }
 0x1b3   :  { %17027 = vmatprep.mubr.msk.f32.mxu0 %vm20_vm1, %v2210_v16  ;;  %24661 = vst [vmem:[#allocation101_spill] sm:$0xff] %v21842_v15  ;;  %v21844_v16 = vld [vmem:[#allocation2 + $0x2a9] sm:$0xff] }
 0x1b4   :  { %24662 = vst [vmem:[#allocation102_spill] sm:$0xff] %v21844_v16 }
 0x1b6   :  { %17028 = vmatmul.mubr.msk.f32.gmra.mrb[32].mxu0 %vm20_vm1, %v2211_v14  ;;  %v21850_v14 = vld [vmem:[#allocation2 + $0x2b1] sm:$0xff] }
 0x1b7   :  { %17030 = vmatprep.mubr.msk.f32.mxu0 %vm20_vm1, %v21829_v13  ;;  %24663 = vst [vmem:[#allocation103_spill] sm:$0xff] %v21850_v14  ;;  %v21852_v13 = vld [vmem:[#allocation2 + $0x2c9] sm:$0xff] }
 0x1b8   :  { %24664 = vst [vmem:[#allocation104_spill] sm:$0xff] %v21852_v13 }
 0x1ba   :  { %17031 = vmatmul.mubr.msk.f32.gmra.mrb[34].mxu0 %vm20_vm1, %v21834_v11  ;;  %v21860_v11 = vld [vmem:[#allocation2 + $0x2e9] sm:$0xff] }
 0x1bb   :  { %17033 = vmatprep.mubr.msk.f32.mxu0 %vm20_vm1, %v21836_v39  ;;  %v21858_v39 = vld [vmem:[#allocation2 + $0x2d1] sm:$0xff]  ;;  %24666 = vst [vmem:[#allocation106_spill] sm:$0xff] %v21860_v11 }
 0x1bc   :  { %24665 = vst [vmem:[#allocation105_spill] sm:$0xff] %v21858_v39 }
 0x1be   :  { %17034 = vmatmul.mubr.msk.f32.gmra.mrb[36].mxu0 %vm20_vm1, %v21842_v15  ;;  %v21868_v15 = vld [vmem:[#allocation2 + $0x309] sm:$0xff] }
 0x1bf   :  { %17036 = vmatprep.mubr.msk.f32.mxu0 %vm20_vm1, %v21844_v16  ;;  %v21866_v16 = vld [vmem:[#allocation2 + $0x2f1] sm:$0xff]  ;;  %24668 = vst [vmem:[#allocation108_spill] sm:$0xff] %v21868_v15 }
 0x1c0   :  { %24667 = vst [vmem:[#allocation107_spill] sm:$0xff] %v21866_v16 }
 0x1c2   :  { %17037 = vmatmul.mubr.msk.f32.gmra.mrb[38].mxu0 %vm20_vm1, %v21850_v14  ;;  %v21876_v14 = vld [vmem:[#allocation2 + $0x329] sm:$0xff] }
 0x1c3   :  { %17039 = vmatprep.mubr.msk.f32.mxu0 %vm20_vm1, %v21852_v13  ;;  %v21874_v13 = vld [vmem:[#allocation2 + $0x311] sm:$0xff]  ;;  %24670 = vst [vmem:[#allocation110_spill] sm:$0xff] %v21876_v14 }
 0x1c4   :  { %24669 = vst [vmem:[#allocation109_spill] sm:$0xff] %v21874_v13 }
 0x1c6   :  { %17040 = vmatmul.mubr.msk.f32.gmra.mrb[40].mxu0 %vm20_vm1, %v21858_v39  ;;  %v21884_v39 = vld [vmem:[#allocation2 + $0x349] sm:$0xff] }
 0x1c7   :  { %17042 = vmatprep.mubr.msk.f32.mxu0 %vm20_vm1, %v21860_v11  ;;  %v21882_v11 = vld [vmem:[#allocation2 + $0x331] sm:$0xff]  ;;  %24672 = vst [vmem:[#allocation112_spill] sm:$0xff] %v21884_v39 }
 0x1c8   :  { %24671 = vst [vmem:[#allocation111_spill] sm:$0xff] %v21882_v11 }
 0x1ca   :  { %17043 = vmatmul.mubr.msk.f32.gmra.mrb[42].mxu0 %vm20_vm1, %v21866_v16  ;;  %v21892_v16 = vld [vmem:[#allocation2 + $0x369] sm:$0xff] }
 0x1cb   :  { %17045 = vmatprep.mubr.msk.f32.mxu0 %vm20_vm1, %v21868_v15  ;;  %v21890_v15 = vld [vmem:[#allocation2 + $0x351] sm:$0xff]  ;;  %24674 = vst [vmem:[#allocation114_spill] sm:$0xff] %v21892_v16 }
 0x1cc   :  { %24673 = vst [vmem:[#allocation113_spill] sm:$0xff] %v21890_v15 }
 0x1ce   :  { %17046 = vmatmul.mubr.msk.f32.gmra.mrb[44].mxu0 %vm20_vm1, %v21874_v13  ;;  %v21900_v13 = vld [vmem:[#allocation2 + $0x389] sm:$0xff] }
 0x1cf   :  { %17048 = vmatprep.mubr.msk.f32.mxu0 %vm20_vm1, %v21876_v14  ;;  %v21898_v14 = vld [vmem:[#allocation2 + $0x371] sm:$0xff]  ;;  %24676 = vst [vmem:[#allocation116_spill] sm:$0xff] %v21900_v13 }
 0x1d0   :  { %24675 = vst [vmem:[#allocation115_spill] sm:$0xff] %v21898_v14 }
 0x1d2   :  { %17049 = vmatmul.mubr.msk.f32.gmra.mrb[46].mxu0 %vm20_vm1, %v21882_v11  ;;  %v21908_v11 = vld [vmem:[#allocation2 + $0x3a9] sm:$0xff] }
 0x1d3   :  { %17051 = vmatprep.mubr.msk.f32.mxu0 %vm20_vm1, %v21884_v39  ;;  %v21906_v39 = vld [vmem:[#allocation2 + $0x391] sm:$0xff]  ;;  %24678 = vst [vmem:[#allocation118_spill] sm:$0xff] %v21908_v11 }
 0x1d4   :  { %24677 = vst [vmem:[#allocation117_spill] sm:$0xff] %v21906_v39 }
 0x1d6   :  { %17052 = vmatmul.mubr.msk.f32.gmra.mrb[48].mxu0 %vm20_vm1, %v21890_v15  ;;  %v21916_v15 = vld [vmem:[#allocation2 + $0x3c9] sm:$0xff] }
 0x1d7   :  { %17054 = vmatprep.mubr.msk.f32.mxu0 %vm20_vm1, %v21892_v16  ;;  %v21914_v16 = vld [vmem:[#allocation2 + $0x3b1] sm:$0xff]  ;;  %24680 = vst [vmem:[#allocation120_spill] sm:$0xff] %v21916_v15 }
 0x1d8   :  { %24679 = vst [vmem:[#allocation119_spill] sm:$0xff] %v21914_v16 }
 0x1da   :  { %17055 = vmatmul.mubr.msk.f32.gmra.mrb[50].mxu0 %vm20_vm1, %v21898_v14  ;;  %v21924_v14 = vld [vmem:[#allocation2 + $0x3e9] sm:$0xff] }
 0x1db   :  { %17057 = vmatprep.mubr.msk.f32.mxu0 %vm20_vm1, %v21900_v13  ;;  %v21922_v13 = vld [vmem:[#allocation2 + $0x3d1] sm:$0xff]  ;;  %24682 = vst [vmem:[#allocation122_spill] sm:$0xff] %v21924_v14 }
 0x1dc   :  { %24681 = vst [vmem:[#allocation121_spill] sm:$0xff] %v21922_v13 }
 0x1de   :  { %17058 = vmatmul.mubr.msk.f32.gmra.mrb[52].mxu0 %vm20_vm1, %v21906_v39  ;;  %v21932_v39 = vld [vmem:[#allocation2 + $0x409] sm:$0xff] }
 0x1df   :  { %17060 = vmatprep.mubr.msk.f32.mxu0 %vm20_vm1, %v21908_v11  ;;  %v21930_v11 = vld [vmem:[#allocation2 + $0x3f1] sm:$0xff] }
 0x1e2   :  { %17061 = vmatmul.mubr.msk.f32.gmra.mrb[54].mxu0 %vm20_vm1, %v21914_v16  ;;  %v371_v16 = vld [vmem:[%s24312_s0 + $0x1f0] sm:$0xff] }
 0x1e3   :  { %17063 = vmatprep.mubr.msk.f32.mxu0 %vm20_vm1, %v21916_v15  ;;  %436 = vst.msk [vmem:[#allocation2 + $0x448] sm:$0xff] %vm20_vm1, %v371_v16  ;;  %v372_v15 = vld [vmem:[%s24312_s0 + $0x1f8] sm:$0xff] }
 0x1e4   :  { %437 = vst.msk [vmem:[#allocation2 + $0x450] sm:$0xff] %vm20_vm1, %v372_v15  ;;  %v21954_v16 = vld [vmem:[#allocation2 + $0x431] sm:$0xff] }
 0x1e5   :  { %v21963_v15 = vld [vmem:[%s24311_s1 + $0x14] sm:$0xf] }
 0x1e6   :  { %17064 = vmatmul.mubr.msk.f32.gmra.mrb[56].mxu0 %vm20_vm1, %v21922_v13  ;;  %v21948_v13 = vld [vmem:[#allocation2 + $0x429] sm:$0xff] }
 0x1e7   :  { %17066 = vmatprep.mubr.msk.f32.mxu0 %vm20_vm1, %v21924_v14  ;;  %v21946_v14 = vld [vmem:[#allocation2 + $0x411] sm:$0xff] }
 0x1ea   :  { %17067 = vmatmul.mubr.msk.f32.gmra.mrb[58].mxu0 %vm20_vm1, %v21930_v11 }
 0x1eb   :  { %17069 = vmatprep.mubr.msk.f32.mxu0 %vm20_vm1, %v21932_v39 }
 0x1ee   :  { %17070 = vmatmul.mubr.msk.f32.gmra.mrb[60].mxu0 %vm20_vm1, %v21946_v14 }
 0x1ef   :  { %17072 = vmatprep.mubr.msk.f32.mxu0 %vm20_vm1, %v21948_v13 }
 0x1f2   :  { %17073 = vmatmul.mubr.msk.f32.gmra.mrb[62].mxu0 %vm20_vm1, %v21954_v16 }
 0x1f3   :  { %17077 = vmatprep.mubr.msk.f32.mxu0 %vm20_vm1, %v21024_v25  ;;  %v22025_v25 = vld [vmem:[#allocation2 + $0x207] sm:$0xff] }
 0x1f6   :  { %17078 = vmatmul.mubr.msk.f32.vlgmr.msra.gmra.mrb[0].mxu0 %vm20_vm1, %v21039_v28  ;;  %v22031_v28 = vld [vmem:[#allocation2 + $0x20f] sm:$0xff] }
 0x1f7   :  { %17174 = vmatpush3.msk.msra.mxu0 %vm823_vm0, %v21695_v37  ;;  %17080 = vmatprep.mubr.msk.f32.mxu0 %vm20_vm1, %v21041_v29  ;;  %v24683_v29 = vld [vmem:[#allocation5_spill] sm:$0xff]  ;;  %v24732_v37 = vld [vmem:[#allocation54_spill] sm:$0xff] }
 0x1f8   :  { %17271 = vmatprep.subr.msk.mxu0 %vm823_vm0, %v21963_v15 }
 0x1fa   :  { %17081 = vmatmul.mubr.msk.f32.gmra.mrb[2].mxu0 %vm20_vm1, %v21047_v30  ;;  %v24684_v30 = vld [vmem:[#allocation6_spill] sm:$0xff] }
 0x1fb   :  { %17083 = vmatprep.mubr.msk.f32.mxu0 %vm20_vm1, %v21049_v31  ;;  %v24685_v31 = vld [vmem:[#allocation7_spill] sm:$0xff] }
 0x1fe   :  { %17084 = vmatmul.mubr.msk.f32.gmra.mrb[4].mxu0 %vm20_vm1, %v21076_v38  ;;  %v22093_v38 = vld [vmem:[#allocation2 + $0x447] sm:$0xff] }
 0x1ff   :  { %17086 = vmatprep.mubr.msk.f32.mxu0 %vm20_vm1, %v21087_v41  ;;  %v24686_v41 = vld [vmem:[#allocation8_spill] sm:$0xff] }
 0x202   :  { %17087 = vmatmul.mubr.msk.f32.gmra.mrb[6].mxu0 %vm20_vm1, %v21097_v44  ;;  %v22099_v44 = vld [vmem:[#allocation2 + $0x44f] sm:$0xff] }
 0x203   :  { %17089 = vmatprep.mubr.msk.f32.mxu0 %vm20_vm1, %v21138_v54  ;;  %v24687_v54 = vld [vmem:[#allocation9_spill] sm:$0xff] }
 0x206   :  { %17090 = vmatmul.mubr.msk.f32.gmra.mrb[8].mxu0 %vm20_vm1, %v21159_v58  ;;  %v22108_v58 = vld [vmem:[%s24311_s1 + $0x18] sm:$0xf] }
 0x207   :  { %17092 = vmatprep.mubr.msk.f32.mxu0 %vm20_vm1, %v21164_v60  ;;  %v24688_v60 = vld [vmem:[#allocation10_spill] sm:$0xff] }
 0x20a   :  { %17093 = vmatmul.mubr.msk.f32.gmra.mrb[10].mxu0 %vm20_vm1, %v21175_v62  ;;  %v24689_v62 = vld [vmem:[#allocation11_spill] sm:$0xff] }
 0x20b   :  { %17095 = vmatprep.mubr.msk.f32.mxu0 %vm20_vm1, %v21177_v63  ;;  %v24690_v63 = vld [vmem:[#allocation12_spill] sm:$0xff] }
 0x20e   :  { %17096 = vmatmul.mubr.msk.f32.gmra.mrb[12].mxu0 %vm20_vm1, %v21204_v6  ;;  %v24691_v6 = vld [vmem:[#allocation13_spill] sm:$0xff] }
 0x20f   :  { %17098 = vmatprep.mubr.msk.f32.mxu0 %vm20_vm1, %v21215_v9  ;;  %v24692_v9 = vld [vmem:[#allocation14_spill] sm:$0xff] }
 0x212   :  { %17099 = vmatmul.mubr.msk.f32.gmra.mrb[14].mxu0 %vm20_vm1, %v21251_v17  ;;  %v24693_v17 = vld [vmem:[#allocation15_spill] sm:$0xff] }
 0x213   :  { %17101 = vmatprep.mubr.msk.f32.mxu0 %vm20_vm1, %v21256_v18  ;;  %v24694_v18 = vld [vmem:[#allocation16_spill] sm:$0xff] }
 0x216   :  { %17102 = vmatmul.mubr.msk.f32.gmra.mrb[16].mxu0 %vm20_vm1, %v21262_v19  ;;  %v24695_v19 = vld [vmem:[#allocation17_spill] sm:$0xff] }
 0x217   :  { %17104 = vmatprep.mubr.msk.f32.mxu0 %vm20_vm1, %v21264_v20  ;;  %v24696_v20 = vld [vmem:[#allocation18_spill] sm:$0xff] }
 0x21a   :  { %17105 = vmatmul.mubr.msk.f32.gmra.mrb[18].mxu0 %vm20_vm1, %v21270_v21  ;;  %v24697_v21 = vld [vmem:[#allocation19_spill] sm:$0xff] }
 0x21b   :  { %17107 = vmatprep.mubr.msk.f32.mxu0 %vm20_vm1, %v21272_v22  ;;  %v24698_v22 = vld [vmem:[#allocation20_spill] sm:$0xff] }
 0x21e   :  { %17108 = vmatmul.mubr.msk.f32.gmra.mrb[20].mxu0 %vm20_vm1, %v21278_v23  ;;  %v24699_v23 = vld [vmem:[#allocation21_spill] sm:$0xff] }
 0x21f   :  { %17110 = vmatprep.mubr.msk.f32.mxu0 %vm20_vm1, %v21280_v24  ;;  %v24700_v24 = vld [vmem:[#allocation22_spill] sm:$0xff] }
 0x222   :  { %17111 = vmatmul.mubr.msk.f32.gmra.mrb[22].mxu0 %vm20_vm1, %v21286_v26  ;;  %v24701_v26 = vld [vmem:[#allocation23_spill] sm:$0xff] }
 0x223   :  { %17113 = vmatprep.mubr.msk.f32.mxu0 %vm20_vm1, %v21288_v27  ;;  %v24702_v27 = vld [vmem:[#allocation24_spill] sm:$0xff] }
 0x226   :  { %17114 = vmatmul.mubr.msk.f32.gmra.mrb[24].mxu0 %vm20_vm1, %v21294_v32  ;;  %v24703_v32 = vld [vmem:[#allocation25_spill] sm:$0xff] }
 0x227   :  { %17116 = vmatprep.mubr.msk.f32.mxu0 %vm20_vm1, %v21296_v33  ;;  %v24704_v33 = vld [vmem:[#allocation26_spill] sm:$0xff] }
 0x22a   :  { %17117 = vmatmul.mubr.msk.f32.gmra.mrb[26].mxu0 %vm20_vm1, %v21302_v34  ;;  %v24705_v34 = vld [vmem:[#allocation27_spill] sm:$0xff] }
 0x22b   :  { %17119 = vmatprep.mubr.msk.f32.mxu0 %vm20_vm1, %v21304_v35  ;;  %v24706_v35 = vld [vmem:[#allocation28_spill] sm:$0xff] }
 0x22e   :  { %17120 = vmatmul.mubr.msk.f32.gmra.mrb[28].mxu0 %vm20_vm1, %v21310_v36  ;;  %v24707_v36 = vld [vmem:[#allocation29_spill] sm:$0xff] }
 0x22f   :  { %17122 = vmatprep.mubr.msk.f32.mxu0 %vm20_vm1, %v22025_v25 }
 0x232   :  { %17123 = vmatmul.mubr.msk.f32.gmra.mrb[30].mxu0 %vm20_vm1, %v22031_v28 }
 0x233   :  { %17125 = vmatprep.mubr.msk.f32.mxu0 %vm20_vm1, %v21315_v40  ;;  %v24708_v40 = vld [vmem:[#allocation30_spill] sm:$0xff] }
 0x236   :  { %17126 = vmatmul.mubr.msk.f32.gmra.mrb[32].mxu0 %vm20_vm1, %v21320_v42  ;;  %v24709_v42 = vld [vmem:[#allocation31_spill] sm:$0xff] }
 0x237   :  { %17128 = vmatprep.mubr.msk.f32.mxu0 %vm20_vm1, %v21322_v43  ;;  %v24710_v43 = vld [vmem:[#allocation32_spill] sm:$0xff] }
 0x23a   :  { %17129 = vmatmul.mubr.msk.f32.gmra.mrb[34].mxu0 %vm20_vm1, %v21328_v45  ;;  %v24711_v45 = vld [vmem:[#allocation33_spill] sm:$0xff] }
 0x23b   :  { %17131 = vmatprep.mubr.msk.f32.mxu0 %vm20_vm1, %v21330_v46  ;;  %v24712_v46 = vld [vmem:[#allocation34_spill] sm:$0xff] }
 0x23e   :  { %17132 = vmatmul.mubr.msk.f32.gmra.mrb[36].mxu0 %vm20_vm1, %v21336_v47  ;;  %v24713_v47 = vld [vmem:[#allocation35_spill] sm:$0xff] }
 0x23f   :  { %17134 = vmatprep.mubr.msk.f32.mxu0 %vm20_vm1, %v21338_v48  ;;  %v24714_v48 = vld [vmem:[#allocation36_spill] sm:$0xff] }
 0x242   :  { %17135 = vmatmul.mubr.msk.f32.gmra.mrb[38].mxu0 %vm20_vm1, %v21344_v49  ;;  %v24715_v49 = vld [vmem:[#allocation37_spill] sm:$0xff] }
 0x243   :  { %17137 = vmatprep.mubr.msk.f32.mxu0 %vm20_vm1, %v21346_v50  ;;  %v22170_v50 = vld [vmem:[#allocation2 + $0x208] sm:$0xff] }
 0x246   :  { %17138 = vmatmul.mubr.msk.f32.gmra.mrb[40].mxu0 %vm20_vm1, %v21352_v51  ;;  %v24716_v51 = vld [vmem:[#allocation38_spill] sm:$0xff] }
 0x247   :  { %17140 = vmatprep.mubr.msk.f32.mxu0 %vm20_vm1, %v21354_v52  ;;  %v22176_v52 = vld [vmem:[#allocation2 + $0x210] sm:$0xff] }
 0x24a   :  { %17141 = vmatmul.mubr.msk.f32.gmra.mrb[42].mxu0 %vm20_vm1, %v21360_v53  ;;  %v24717_v53 = vld [vmem:[#allocation39_spill] sm:$0xff] }
 0x24b   :  { %17143 = vmatprep.mubr.msk.f32.mxu0 %vm20_vm1, %v21362_v55  ;;  %v24718_v55 = vld [vmem:[#allocation40_spill] sm:$0xff] }
 0x24e   :  { %17144 = vmatmul.mubr.msk.f32.gmra.mrb[44].mxu0 %vm20_vm1, %v21368_v56  ;;  %v24719_v56 = vld [vmem:[#allocation41_spill] sm:$0xff] }
 0x24f   :  { %17146 = vmatprep.mubr.msk.f32.mxu0 %vm20_vm1, %v21370_v57  ;;  %v24720_v57 = vld [vmem:[#allocation42_spill] sm:$0xff] }
 0x252   :  { %17147 = vmatmul.mubr.msk.f32.gmra.mrb[46].mxu0 %vm20_vm1, %v21376_v59  ;;  %v24721_v59 = vld [vmem:[#allocation43_spill] sm:$0xff] }
 0x253   :  { %17149 = vmatprep.mubr.msk.f32.mxu0 %vm20_vm1, %v21378_v61  ;;  %v24722_v61 = vld [vmem:[#allocation44_spill] sm:$0xff] }
 0x256   :  { %17150 = vmatmul.mubr.msk.f32.gmra.mrb[48].mxu0 %vm20_vm1, %v21384_v0  ;;  %v24723_v0 = vld [vmem:[#allocation45_spill] sm:$0xff] }
 0x257   :  { %17152 = vmatprep.mubr.msk.f32.mxu0 %vm20_vm1, %v21386_v1  ;;  %v24724_v1 = vld [vmem:[#allocation46_spill] sm:$0xff] }
 0x25a   :  { %17153 = vmatmul.mubr.msk.f32.gmra.mrb[50].mxu0 %vm20_vm1, %v21392_v2  ;;  %v24725_v2 = vld [vmem:[#allocation47_spill] sm:$0xff] }
 0x25b   :  { %17155 = vmatprep.mubr.msk.f32.mxu0 %vm20_vm1, %v21394_v3  ;;  %v24726_v3 = vld [vmem:[#allocation48_spill] sm:$0xff] }
 0x25e   :  { %17156 = vmatmul.mubr.msk.f32.gmra.mrb[52].mxu0 %vm20_vm1, %v21400_v4  ;;  %v24727_v4 = vld [vmem:[#allocation49_spill] sm:$0xff] }
 0x25f   :  { %17158 = vmatprep.mubr.msk.f32.mxu0 %vm20_vm1, %v21402_v5  ;;  %v24728_v5 = vld [vmem:[#allocation50_spill] sm:$0xff] }
 0x262   :  { %17159 = vmatmul.mubr.msk.f32.gmra.mrb[54].mxu0 %vm20_vm1, %v21408_v7  ;;  %v24729_v7 = vld [vmem:[#allocation51_spill] sm:$0xff] }
 0x263   :  { %17161 = vmatprep.mubr.msk.f32.mxu0 %vm20_vm1, %v21410_v8  ;;  %v24730_v8 = vld [vmem:[#allocation52_spill] sm:$0xff] }
 0x266   :  { %17162 = vmatmul.mubr.msk.f32.gmra.mrb[56].mxu0 %vm20_vm1, %v21416_v10  ;;  %v24731_v10 = vld [vmem:[#allocation53_spill] sm:$0xff] }
 0x267   :  { %17164 = vmatprep.mubr.msk.f32.mxu0 %vm20_vm1, %v24683_v29  ;;  %v24734_v29 = vld [vmem:[#allocation56_spill] sm:$0xff] }
 0x26a   :  { %17165 = vmatmul.mubr.msk.f32.gmra.mrb[58].mxu0 %vm20_vm1, %v24684_v30  ;;  %v24735_v30 = vld [vmem:[#allocation57_spill] sm:$0xff] }
 0x26b   :  { %17167 = vmatprep.mubr.msk.f32.mxu0 %vm20_vm1, %v24685_v31  ;;  %v24736_v31 = vld [vmem:[#allocation58_spill] sm:$0xff] }
 0x26e   :  { %17168 = vmatmul.mubr.msk.f32.gmra.mrb[60].mxu0 %vm20_vm1, %v24686_v41  ;;  %v24737_v41 = vld [vmem:[#allocation59_spill] sm:$0xff] }
 0x26f   :  { %17170 = vmatprep.mubr.msk.f32.mxu0 %vm20_vm1, %v22093_v38 }
 0x272   :  { %17171 = vmatmul.mubr.msk.f32.gmra.mrb[62].mxu0 %vm20_vm1, %v22099_v44 }
 0x273   :  { %17175 = vmatprep.mubr.msk.f32.mxu0 %vm20_vm1, %v24687_v54  ;;  %v24738_v54 = vld [vmem:[#allocation60_spill] sm:$0xff] }
 0x276   :  { %17176 = vmatmul.mubr.msk.f32.vlgmr.msra.gmra.mrb[0].mxu0 %vm20_vm1, %v24688_v60  ;;  %v24739_v60 = vld [vmem:[#allocation61_spill] sm:$0xff] }
 0x277   :  { %17272 = vmatpush3.msk.msra.mxu0 %vm823_vm0, %v21963_v15  ;;  %17178 = vmatprep.mubr.msk.f32.mxu0 %vm20_vm1, %v24689_v62  ;;  %v24733_v15 = vld [vmem:[#allocation55_spill] sm:$0xff]  ;;  %v24740_v62 = vld [vmem:[#allocation62_spill] sm:$0xff] }
 0x278   :  { %17369 = vmatprep.subr.msk.mxu0 %vm823_vm0, %v22108_v58 }
 0x27a   :  { %17179 = vmatmul.mubr.msk.f32.gmra.mrb[2].mxu0 %vm20_vm1, %v24690_v63  ;;  %v24741_v63 = vld [vmem:[#allocation63_spill] sm:$0xff] }
 0x27b   :  { %17181 = vmatprep.mubr.msk.f32.mxu0 %vm20_vm1, %v24691_v6  ;;  %v24742_v6 = vld [vmem:[#allocation64_spill] sm:$0xff] }
 0x27e   :  { %17182 = vmatmul.mubr.msk.f32.gmra.mrb[4].mxu0 %vm20_vm1, %v24692_v9  ;;  %v24743_v9 = vld [vmem:[#allocation65_spill] sm:$0xff] }
 0x27f   :  { %17184 = vmatprep.mubr.msk.f32.mxu0 %vm20_vm1, %v24693_v17  ;;  %v24744_v17 = vld [vmem:[#allocation66_spill] sm:$0xff] }
 0x282   :  { %17185 = vmatmul.mubr.msk.f32.gmra.mrb[6].mxu0 %vm20_vm1, %v24694_v18  ;;  %v24745_v18 = vld [vmem:[#allocation67_spill] sm:$0xff] }
 0x283   :  { %17187 = vmatprep.mubr.msk.f32.mxu0 %vm20_vm1, %v24695_v19  ;;  %v22238_v19 = vld [vmem:[#allocation2 + $0x448] sm:$0xff] }
 0x286   :  { %17188 = vmatmul.mubr.msk.f32.gmra.mrb[8].mxu0 %vm20_vm1, %v24696_v20  ;;  %v24746_v20 = vld [vmem:[#allocation68_spill] sm:$0xff] }
 0x287   :  { %17190 = vmatprep.mubr.msk.f32.mxu0 %vm20_vm1, %v24697_v21  ;;  %v22244_v21 = vld [vmem:[#allocation2 + $0x450] sm:$0xff] }
 0x28a   :  { %17191 = vmatmul.mubr.msk.f32.gmra.mrb[10].mxu0 %vm20_vm1, %v24698_v22  ;;  %v24747_v22 = vld [vmem:[#allocation69_spill] sm:$0xff] }
 0x28b   :  { %17193 = vmatprep.mubr.msk.f32.mxu0 %vm20_vm1, %v24699_v23  ;;  %v22253_v23 = vld [vmem:[%s24311_s1 + $0x1c] sm:$0xf] }
 0x28e   :  { %17194 = vmatmul.mubr.msk.f32.gmra.mrb[12].mxu0 %vm20_vm1, %v24700_v24  ;;  %v24748_v24 = vld [vmem:[#allocation70_spill] sm:$0xff] }
 0x28f   :  { %17196 = vmatprep.mubr.msk.f32.mxu0 %vm20_vm1, %v24701_v26  ;;  %v24749_v26 = vld [vmem:[#allocation71_spill] sm:$0xff] }
 0x292   :  { %17197 = vmatmul.mubr.msk.f32.gmra.mrb[14].mxu0 %vm20_vm1, %v24702_v27  ;;  %v24750_v27 = vld [vmem:[#allocation72_spill] sm:$0xff] }
 0x293   :  { %17199 = vmatprep.mubr.msk.f32.mxu0 %vm20_vm1, %v24703_v32  ;;  %v24751_v32 = vld [vmem:[#allocation73_spill] sm:$0xff] }
 0x296   :  { %17200 = vmatmul.mubr.msk.f32.gmra.mrb[16].mxu0 %vm20_vm1, %v24704_v33  ;;  %v24752_v33 = vld [vmem:[#allocation74_spill] sm:$0xff] }
 0x297   :  { %17202 = vmatprep.mubr.msk.f32.mxu0 %vm20_vm1, %v24705_v34  ;;  %v24753_v34 = vld [vmem:[#allocation75_spill] sm:$0xff] }
 0x29a   :  { %17203 = vmatmul.mubr.msk.f32.gmra.mrb[18].mxu0 %vm20_vm1, %v24706_v35  ;;  %v24754_v35 = vld [vmem:[#allocation76_spill] sm:$0xff] }
 0x29b   :  { %17205 = vmatprep.mubr.msk.f32.mxu0 %vm20_vm1, %v24707_v36  ;;  %v24756_v36 = vld [vmem:[#allocation78_spill] sm:$0xff] }
 0x29e   :  { %17206 = vmatmul.mubr.msk.f32.gmra.mrb[20].mxu0 %vm20_vm1, %v24708_v40  ;;  %v24757_v40 = vld [vmem:[#allocation79_spill] sm:$0xff] }
 0x29f   :  { %17208 = vmatprep.mubr.msk.f32.mxu0 %vm20_vm1, %v24709_v42  ;;  %v24758_v42 = vld [vmem:[#allocation80_spill] sm:$0xff] }
 0x2a2   :  { %17209 = vmatmul.mubr.msk.f32.gmra.mrb[22].mxu0 %vm20_vm1, %v24710_v43  ;;  %v24759_v43 = vld [vmem:[#allocation81_spill] sm:$0xff] }
 0x2a3   :  { %17211 = vmatprep.mubr.msk.f32.mxu0 %vm20_vm1, %v24711_v45  ;;  %v24760_v45 = vld [vmem:[#allocation82_spill] sm:$0xff] }
 0x2a6   :  { %17212 = vmatmul.mubr.msk.f32.gmra.mrb[24].mxu0 %vm20_vm1, %v24712_v46  ;;  %v24761_v46 = vld [vmem:[#allocation83_spill] sm:$0xff] }
 0x2a7   :  { %17214 = vmatprep.mubr.msk.f32.mxu0 %vm20_vm1, %v24713_v47  ;;  %v24762_v47 = vld [vmem:[#allocation84_spill] sm:$0xff] }
 0x2aa   :  { %17215 = vmatmul.mubr.msk.f32.gmra.mrb[26].mxu0 %vm20_vm1, %v24714_v48  ;;  %v24763_v48 = vld [vmem:[#allocation85_spill] sm:$0xff] }
 0x2ab   :  { %17217 = vmatprep.mubr.msk.f32.mxu0 %vm20_vm1, %v24715_v49  ;;  %v24764_v49 = vld [vmem:[#allocation86_spill] sm:$0xff] }
 0x2ae   :  { %17218 = vmatmul.mubr.msk.f32.gmra.mrb[28].mxu0 %vm20_vm1, %v24716_v51  ;;  %v24765_v51 = vld [vmem:[#allocation87_spill] sm:$0xff] }
 0x2af   :  { %17220 = vmatprep.mubr.msk.f32.mxu0 %vm20_vm1, %v22170_v50 }
 0x2b2   :  { %17221 = vmatmul.mubr.msk.f32.gmra.mrb[30].mxu0 %vm20_vm1, %v22176_v52 }
 0x2b3   :  { %17223 = vmatprep.mubr.msk.f32.mxu0 %vm20_vm1, %v24717_v53  ;;  %v24766_v53 = vld [vmem:[#allocation88_spill] sm:$0xff] }
 0x2b6   :  { %17224 = vmatmul.mubr.msk.f32.gmra.mrb[32].mxu0 %vm20_vm1, %v24718_v55  ;;  %v24767_v55 = vld [vmem:[#allocation89_spill] sm:$0xff] }
 0x2b7   :  { %17226 = vmatprep.mubr.msk.f32.mxu0 %vm20_vm1, %v24719_v56  ;;  %v24768_v56 = vld [vmem:[#allocation90_spill] sm:$0xff] }
 0x2ba   :  { %17227 = vmatmul.mubr.msk.f32.gmra.mrb[34].mxu0 %vm20_vm1, %v24720_v57  ;;  %v24769_v57 = vld [vmem:[#allocation91_spill] sm:$0xff] }
 0x2bb   :  { %17229 = vmatprep.mubr.msk.f32.mxu0 %vm20_vm1, %v24721_v59  ;;  %v24770_v59 = vld [vmem:[#allocation92_spill] sm:$0xff] }
 0x2be   :  { %17230 = vmatmul.mubr.msk.f32.gmra.mrb[36].mxu0 %vm20_vm1, %v24722_v61  ;;  %v24771_v61 = vld [vmem:[#allocation93_spill] sm:$0xff] }
 0x2bf   :  { %17232 = vmatprep.mubr.msk.f32.mxu0 %vm20_vm1, %v24723_v0  ;;  %v24772_v0 = vld [vmem:[#allocation94_spill] sm:$0xff] }
 0x2c2   :  { %17233 = vmatmul.mubr.msk.f32.gmra.mrb[38].mxu0 %vm20_vm1, %v24724_v1  ;;  %v24773_v1 = vld [vmem:[#allocation95_spill] sm:$0xff] }
 0x2c3   :  { %17235 = vmatprep.mubr.msk.f32.mxu0 %vm20_vm1, %v24725_v2  ;;  %v24774_v2 = vld [vmem:[#allocation96_spill] sm:$0xff] }
 0x2c6   :  { %17236 = vmatmul.mubr.msk.f32.gmra.mrb[40].mxu0 %vm20_vm1, %v24726_v3  ;;  %v22315_v3 = vld [vmem:[#allocation2 + $0x209] sm:$0xff] }
 0x2c7   :  { %17238 = vmatprep.mubr.msk.f32.mxu0 %vm20_vm1, %v24727_v4  ;;  %v24775_v4 = vld [vmem:[#allocation97_spill] sm:$0xff] }
 0x2ca   :  { %17239 = vmatmul.mubr.msk.f32.gmra.mrb[42].mxu0 %vm20_vm1, %v24728_v5  ;;  %v22321_v5 = vld [vmem:[#allocation2 + $0x211] sm:$0xff] }
 0x2cb   :  { %17241 = vmatprep.mubr.msk.f32.mxu0 %vm20_vm1, %v24729_v7  ;;  %v24776_v7 = vld [vmem:[#allocation98_spill] sm:$0xff] }
 0x2ce   :  { %17242 = vmatmul.mubr.msk.f32.gmra.mrb[44].mxu0 %vm20_vm1, %v24730_v8  ;;  %v24777_v8 = vld [vmem:[#allocation99_spill] sm:$0xff] }
 0x2cf   :  { %17244 = vmatprep.mubr.msk.f32.mxu0 %vm20_vm1, %v24731_v10  ;;  %v24779_v10 = vld [vmem:[#allocation101_spill] sm:$0xff] }
 0x2d2   :  { %17245 = vmatmul.mubr.msk.f32.gmra.mrb[46].mxu0 %vm20_vm1, %v24732_v37  ;;  %v24780_v37 = vld [vmem:[#allocation102_spill] sm:$0xff] }
 0x2d3   :  { %17247 = vmatprep.mubr.msk.f32.mxu0 %vm20_vm1, %v24733_v15  ;;  %v24781_v15 = vld [vmem:[#allocation103_spill] sm:$0xff] }
 0x2d6   :  { %17248 = vmatmul.mubr.msk.f32.gmra.mrb[48].mxu0 %vm20_vm1, %v24734_v29  ;;  %v24782_v29 = vld [vmem:[#allocation104_spill] sm:$0xff] }
 0x2d7   :  { %17250 = vmatprep.mubr.msk.f32.mxu0 %vm20_vm1, %v24735_v30  ;;  %v24783_v30 = vld [vmem:[#allocation105_spill] sm:$0xff] }
 0x2da   :  { %17251 = vmatmul.mubr.msk.f32.gmra.mrb[50].mxu0 %vm20_vm1, %v24736_v31  ;;  %v24784_v31 = vld [vmem:[#allocation106_spill] sm:$0xff] }
 0x2db   :  { %17253 = vmatprep.mubr.msk.f32.mxu0 %vm20_vm1, %v24737_v41  ;;  %v24785_v41 = vld [vmem:[#allocation107_spill] sm:$0xff] }
 0x2de   :  { %17254 = vmatmul.mubr.msk.f32.gmra.mrb[52].mxu0 %vm20_vm1, %v24738_v54  ;;  %v24786_v54 = vld [vmem:[#allocation108_spill] sm:$0xff] }
 0x2df   :  { %17256 = vmatprep.mubr.msk.f32.mxu0 %vm20_vm1, %v24739_v60  ;;  %v24787_v60 = vld [vmem:[#allocation109_spill] sm:$0xff] }
 0x2e2   :  { %17257 = vmatmul.mubr.msk.f32.gmra.mrb[54].mxu0 %vm20_vm1, %v24740_v62  ;;  %v24788_v62 = vld [vmem:[#allocation110_spill] sm:$0xff] }
 0x2e3   :  { %17259 = vmatprep.mubr.msk.f32.mxu0 %vm20_vm1, %v24741_v63  ;;  %v24789_v63 = vld [vmem:[#allocation111_spill] sm:$0xff] }
 0x2e6   :  { %17260 = vmatmul.mubr.msk.f32.gmra.mrb[56].mxu0 %vm20_vm1, %v24742_v6  ;;  %v24790_v6 = vld [vmem:[#allocation112_spill] sm:$0xff] }
 0x2e7   :  { %17262 = vmatprep.mubr.msk.f32.mxu0 %vm20_vm1, %v24743_v9  ;;  %v24791_v9 = vld [vmem:[#allocation113_spill] sm:$0xff] }
 0x2ea   :  { %17263 = vmatmul.mubr.msk.f32.gmra.mrb[58].mxu0 %vm20_vm1, %v24744_v17  ;;  %v24792_v17 = vld [vmem:[#allocation114_spill] sm:$0xff] }
 0x2eb   :  { %17265 = vmatprep.mubr.msk.f32.mxu0 %vm20_vm1, %v24745_v18  ;;  %v24793_v18 = vld [vmem:[#allocation115_spill] sm:$0xff] }
 0x2ee   :  { %17266 = vmatmul.mubr.msk.f32.gmra.mrb[60].mxu0 %vm20_vm1, %v24746_v20  ;;  %v24794_v20 = vld [vmem:[#allocation116_spill] sm:$0xff] }
 0x2ef   :  { %17268 = vmatprep.mubr.msk.f32.mxu0 %vm20_vm1, %v22238_v19 }
 0x2f2   :  { %17269 = vmatmul.mubr.msk.f32.gmra.mrb[62].mxu0 %vm20_vm1, %v22244_v21 }
 0x2f3   :  { %17273 = vmatprep.mubr.msk.f32.mxu0 %vm20_vm1, %v24747_v22  ;;  %v24795_v22 = vld [vmem:[#allocation117_spill] sm:$0xff] }
 0x2f6   :  { %17274 = vmatmul.mubr.msk.f32.vlgmr.msra.gmra.mrb[0].mxu0 %vm20_vm1, %v24748_v24  ;;  %v24796_v24 = vld [vmem:[#allocation118_spill] sm:$0xff] }
 0x2f7   :  { %17370 = vmatpush3.msk.msra.mxu0 %vm823_vm0, %v22108_v58  ;;  %17276 = vmatprep.mubr.msk.f32.mxu0 %vm20_vm1, %v24749_v26  ;;  %v24755_v58 = vld [vmem:[#allocation77_spill] sm:$0xff]  ;;  %v24797_v26 = vld [vmem:[#allocation119_spill] sm:$0xff] }
 0x2f8   :  { %17467 = vmatprep.subr.msk.mxu0 %vm823_vm0, %v22253_v23 }
 0x2fa   :  { %17277 = vmatmul.mubr.msk.f32.gmra.mrb[2].mxu0 %vm20_vm1, %v24750_v27  ;;  %v24798_v27 = vld [vmem:[#allocation120_spill] sm:$0xff] }
 0x2fb   :  { %17279 = vmatprep.mubr.msk.f32.mxu0 %vm20_vm1, %v24751_v32  ;;  %v24799_v32 = vld [vmem:[#allocation121_spill] sm:$0xff] }
 0x2fe   :  { %17280 = vmatmul.mubr.msk.f32.gmra.mrb[4].mxu0 %vm20_vm1, %v24752_v33  ;;  %v24800_v33 = vld [vmem:[#allocation122_spill] sm:$0xff] }
 0x2ff   :  { %17282 = vmatprep.mubr.msk.f32.mxu0 %vm20_vm1, %v24753_v34  ;;  %v22383_v34 = vld [vmem:[#allocation2 + $0x449] sm:$0xff] }
 0x302   :  { %17283 = vmatmul.mubr.msk.f32.gmra.mrb[6].mxu0 %vm20_vm1, %v24754_v35  ;;  %v22389_v35 = vld [vmem:[#allocation2 + $0x451] sm:$0xff] }
 0x303   :  { %17285 = vmatprep.mubr.msk.f32.mxu0 %vm20_vm1, %v24755_v58  ;;  %v5535_v58 = vld [vmem:[#allocation2 + $0x87] sm:$0xff] }
 0x306   :  { %17286 = vmatmul.mubr.msk.f32.gmra.mrb[8].mxu0 %vm20_vm1, %v24756_v36  ;;  %v5536_v36 = vld [vmem:[#allocation2 + $0x8f] sm:$0xff] }
 0x307   :  { %17288 = vmatprep.mubr.msk.f32.mxu0 %vm20_vm1, %v24757_v40  ;;  %v5537_v40 = vld [vmem:[#allocation2 + $0xa7] sm:$0xff] }
 0x30a   :  { %17289 = vmatmul.mubr.msk.f32.gmra.mrb[10].mxu0 %vm20_vm1, %v24758_v42  ;;  %v5538_v42 = vld [vmem:[#allocation2 + $0xaf] sm:$0xff] }
 0x30b   :  { %17291 = vmatprep.mubr.msk.f32.mxu0 %vm20_vm1, %v24759_v43  ;;  %v5539_v43 = vld [vmem:[#allocation2 + $0xc7] sm:$0xff] }
 0x30e   :  { %17292 = vmatmul.mubr.msk.f32.gmra.mrb[12].mxu0 %vm20_vm1, %v24760_v45  ;;  %v5541_v45 = vld [vmem:[#allocation2 + $0xe7] sm:$0xff] }
 0x30f   :  { %17294 = vmatprep.mubr.msk.f32.mxu0 %vm20_vm1, %v24761_v46  ;;  %v5542_v46 = vld [vmem:[#allocation2 + $0xef] sm:$0xff] }
 0x312   :  { %17295 = vmatmul.mubr.msk.f32.gmra.mrb[14].mxu0 %vm20_vm1, %v24762_v47  ;;  %v5543_v47 = vld [vmem:[#allocation2 + $0x107] sm:$0xff] }
 0x313   :  { %17297 = vmatprep.mubr.msk.f32.mxu0 %vm20_vm1, %v24763_v48  ;;  %v5544_v48 = vld [vmem:[#allocation2 + $0x10f] sm:$0xff] }
 0x316   :  { %17298 = vmatmul.mubr.msk.f32.gmra.mrb[16].mxu0 %vm20_vm1, %v24764_v49  ;;  %v5545_v49 = vld [vmem:[#allocation2 + $0x127] sm:$0xff] }
 0x317   :  { %17300 = vmatprep.mubr.msk.f32.mxu0 %vm20_vm1, %v24765_v51  ;;  %v5546_v51 = vld [vmem:[#allocation2 + $0x12f] sm:$0xff] }
 0x31a   :  { %17301 = vmatmul.mubr.msk.f32.gmra.mrb[18].mxu0 %vm20_vm1, %v24766_v53  ;;  %v5547_v53 = vld [vmem:[#allocation2 + $0x147] sm:$0xff] }
 0x31b   :  { %17303 = vmatprep.mubr.msk.f32.mxu0 %vm20_vm1, %v24767_v55  ;;  %v5548_v55 = vld [vmem:[#allocation2 + $0x14f] sm:$0xff] }
 0x31e   :  { %17304 = vmatmul.mubr.msk.f32.gmra.mrb[20].mxu0 %vm20_vm1, %v24768_v56  ;;  %v5549_v56 = vld [vmem:[#allocation2 + $0x167] sm:$0xff] }
 0x31f   :  { %17306 = vmatprep.mubr.msk.f32.mxu0 %vm20_vm1, %v24769_v57  ;;  %v5550_v57 = vld [vmem:[#allocation2 + $0x16f] sm:$0xff] }
 0x322   :  { %17307 = vmatmul.mubr.msk.f32.gmra.mrb[22].mxu0 %vm20_vm1, %v24770_v59  ;;  %v5551_v59 = vld [vmem:[#allocation2 + $0x187] sm:$0xff] }
 0x323   :  { %17309 = vmatprep.mubr.msk.f32.mxu0 %vm20_vm1, %v24771_v61  ;;  %v5552_v61 = vld [vmem:[#allocation2 + $0x18f] sm:$0xff] }
 0x326   :  { %17310 = vmatmul.mubr.msk.f32.gmra.mrb[24].mxu0 %vm20_vm1, %v24772_v0  ;;  %v5553_v0 = vld [vmem:[#allocation2 + $0x1a7] sm:$0xff] }
 0x327   :  { %17312 = vmatprep.mubr.msk.f32.mxu0 %vm20_vm1, %v24773_v1  ;;  %v5554_v1 = vld [vmem:[#allocation2 + $0x1af] sm:$0xff] }
 0x32a   :  { %17313 = vmatmul.mubr.msk.f32.gmra.mrb[26].mxu0 %vm20_vm1, %v24774_v2  ;;  %v5555_v2 = vld [vmem:[#allocation2 + $0x1c7] sm:$0xff] }
 0x32b   :  { %17315 = vmatprep.mubr.msk.f32.mxu0 %vm20_vm1, %v21818_v12  ;;  %v24778_v12 = vld [vmem:[#allocation100_spill] sm:$0xff] }
 0x32e   :  { %17316 = vmatmul.mubr.msk.f32.gmra.mrb[28].mxu0 %vm20_vm1, %v24775_v4  ;;  %v5556_v4 = vld [vmem:[#allocation2 + $0x1cf] sm:$0xff] }
 0x32f   :  { %17318 = vmatprep.mubr.msk.f32.mxu0 %vm20_vm1, %v22315_v3 }
 0x332   :  { %17319 = vmatmul.mubr.msk.f32.gmra.mrb[30].mxu0 %vm20_vm1, %v22321_v5 }
 0x333   :  { %17321 = vmatprep.mubr.msk.f32.mxu0 %vm20_vm1, %v24776_v7  ;;  %v5557_v7 = vld [vmem:[#allocation2 + $0x1e7] sm:$0xff] }
 0x336   :  { %17322 = vmatmul.mubr.msk.f32.gmra.mrb[32].mxu0 %vm20_vm1, %v24777_v8  ;;  %v5558_v8 = vld [vmem:[#allocation2 + $0x1ef] sm:$0xff] }
 0x337   :  { %17324 = vmatprep.mubr.msk.f32.mxu0 %vm20_vm1, %v24778_v12  ;;  %v5561_v12 = vld [vmem:[#allocation2 + $0x227] sm:$0xff] }
 0x33a   :  { %17325 = vmatmul.mubr.msk.f32.gmra.mrb[34].mxu0 %vm20_vm1, %v24779_v10  ;;  %v5562_v10 = vld [vmem:[#allocation2 + $0x22f] sm:$0xff] }
 0x33b   :  { %17327 = vmatprep.mubr.msk.f32.mxu0 %vm20_vm1, %v24780_v37  ;;  %v5563_v37 = vld [vmem:[#allocation2 + $0x287] sm:$0xff] }
 0x33e   :  { %17328 = vmatmul.mubr.msk.f32.gmra.mrb[36].mxu0 %vm20_vm1, %v24781_v15  ;;  %v5564_v15 = vld [vmem:[#allocation2 + $0x28f] sm:$0xff] }
 0x33f   :  { %17330 = vmatprep.mubr.msk.f32.mxu0 %vm20_vm1, %v24782_v29  ;;  %v5565_v29 = vld [vmem:[#allocation2 + $0x2a7] sm:$0xff] }
 0x342   :  { %17331 = vmatmul.mubr.msk.f32.gmra.mrb[38].mxu0 %vm20_vm1, %v24783_v30  ;;  %v5566_v30 = vld [vmem:[#allocation2 + $0x2af] sm:$0xff] }
 0x343   :  { %17333 = vmatprep.mubr.msk.f32.mxu0 %vm20_vm1, %v24784_v31  ;;  %v5569_v31 = vld [vmem:[#allocation2 + $0x2e7] sm:$0xff] }
 0x346   :  { %17334 = vmatmul.mubr.msk.f32.gmra.mrb[40].mxu0 %vm20_vm1, %v24785_v41  ;;  %v5570_v41 = vld [vmem:[#allocation2 + $0x2ef] sm:$0xff] }
 0x347   :  { %17336 = vmatprep.mubr.msk.f32.mxu0 %vm20_vm1, %v24786_v54  ;;  %v5571_v54 = vld [vmem:[#allocation2 + $0x307] sm:$0xff] }
 0x34a   :  { %17337 = vmatmul.mubr.msk.f32.gmra.mrb[42].mxu0 %vm20_vm1, %v24787_v60  ;;  %v5572_v60 = vld [vmem:[#allocation2 + $0x30f] sm:$0xff] }
 0x34b   :  { %17339 = vmatprep.mubr.msk.f32.mxu0 %vm20_vm1, %v24788_v62  ;;  %v5573_v62 = vld [vmem:[#allocation2 + $0x327] sm:$0xff] }
 0x34e   :  { %17340 = vmatmul.mubr.msk.f32.gmra.mrb[44].mxu0 %vm20_vm1, %v24789_v63  ;;  %v5574_v63 = vld [vmem:[#allocation2 + $0x32f] sm:$0xff] }
 0x34f   :  { %17342 = vmatprep.mubr.msk.f32.mxu0 %vm20_vm1, %v24790_v6  ;;  %v5575_v6 = vld [vmem:[#allocation2 + $0x347] sm:$0xff] }
 0x352   :  { %17343 = vmatmul.mubr.msk.f32.gmra.mrb[46].mxu0 %vm20_vm1, %v24791_v9  ;;  %v5576_v9 = vld [vmem:[#allocation2 + $0x34f] sm:$0xff] }
 0x353   :  { %17345 = vmatprep.mubr.msk.f32.mxu0 %vm20_vm1, %v24792_v17  ;;  %v5577_v17 = vld [vmem:[#allocation2 + $0x367] sm:$0xff] }
 0x356   :  { %17346 = vmatmul.mubr.msk.f32.gmra.mrb[48].mxu0 %vm20_vm1, %v24793_v18  ;;  %v5578_v18 = vld [vmem:[#allocation2 + $0x36f] sm:$0xff] }
 0x357   :  { %17348 = vmatprep.mubr.msk.f32.mxu0 %vm20_vm1, %v24794_v20  ;;  %v5579_v20 = vld [vmem:[#allocation2 + $0x387] sm:$0xff] }
 0x35a   :  { %17349 = vmatmul.mubr.msk.f32.gmra.mrb[50].mxu0 %vm20_vm1, %v24795_v22  ;;  %v5580_v22 = vld [vmem:[#allocation2 + $0x38f] sm:$0xff] }
 0x35b   :  { %17351 = vmatprep.mubr.msk.f32.mxu0 %vm20_vm1, %v24796_v24  ;;  %v5581_v24 = vld [vmem:[#allocation2 + $0x3a7] sm:$0xff] }
 0x35e   :  { %17352 = vmatmul.mubr.msk.f32.gmra.mrb[52].mxu0 %vm20_vm1, %v24797_v26  ;;  %v5582_v26 = vld [vmem:[#allocation2 + $0x3af] sm:$0xff] }
 0x35f   :  { %17354 = vmatprep.mubr.msk.f32.mxu0 %vm20_vm1, %v24798_v27  ;;  %v5583_v27 = vld [vmem:[#allocation2 + $0x3c7] sm:$0xff] }
 0x362   :  { %17355 = vmatmul.mubr.msk.f32.gmra.mrb[54].mxu0 %vm20_vm1, %v24799_v32  ;;  %v5584_v32 = vld [vmem:[#allocation2 + $0x3cf] sm:$0xff] }
 0x363   :  { %17357 = vmatprep.mubr.msk.f32.mxu0 %vm20_vm1, %v24800_v33  ;;  %v5585_v33 = vld [vmem:[#allocation2 + $0x3e7] sm:$0xff] }
 0x366   :  { %17358 = vmatmul.mubr.msk.f32.gmra.mrb[56].mxu0 %vm20_vm1, %v21930_v11  ;;  %v5531_v11 = vld [vmem:[#allocation2 + $0x47] sm:$0xff] }
 0x367   :  { %17360 = vmatprep.mubr.msk.f32.mxu0 %vm20_vm1, %v21932_v39  ;;  %v5532_v39 = vld [vmem:[#allocation2 + $0x4f] sm:$0xff] }
 0x36a   :  { %17361 = vmatmul.mubr.msk.f32.gmra.mrb[58].mxu0 %vm20_vm1, %v21946_v14  ;;  %v5533_v14 = vld [vmem:[#allocation2 + $0x67] sm:$0xff] }
 0x36b   :  { %17363 = vmatprep.mubr.msk.f32.mxu0 %vm20_vm1, %v21948_v13  ;;  %v22397_v13 = vld [vmem:[%s24311_s1 + $0x20] sm:$0xf] }
 0x36e   :  { %17364 = vmatmul.mubr.msk.f32.gmra.mrb[60].mxu0 %vm20_vm1, %v21954_v16  ;;  %v5534_v16 = vld [vmem:[#allocation2 + $0x6f] sm:$0xff] }
 0x36f   :  { %17366 = vmatprep.mubr.msk.f32.mxu0 %vm20_vm1, %v22383_v34 }
 0x372   :  { %17367 = vmatmul.mubr.msk.f32.gmra.mrb[62].mxu0 %vm20_vm1, %v22389_v35 }
 0x373   :  { %17371 = vmatprep.mubr.msk.f32.mxu0 %vm20_vm1, %v5531_v11  ;;  %v5586_v11 = vld [vmem:[#allocation2 + $0x3ef] sm:$0xff] }
 0x376   :  { %17372 = vmatmul.mubr.msk.f32.vlgmr.msra.gmra.mrb[0].mxu0 %vm20_vm1, %v5532_v39  ;;  %v5587_v39 = vld [vmem:[#allocation2 + $0x407] sm:$0xff] }
 0x377   :  { %17468 = vmatpush3.msk.msra.mxu0 %vm823_vm0, %v22253_v23  ;;  %17374 = vmatprep.mubr.msk.f32.mxu0 %vm20_vm1, %v5533_v14  ;;  %v5540_v23 = vld [vmem:[#allocation2 + $0xcf] sm:$0xff] }
 0x378   :  { %17565 = vmatprep.subr.msk.mxu0 %vm823_vm0, %v22397_v13  ;;  %v5588_v14 = vld [vmem:[#allocation2 + $0x40f] sm:$0xff] }
 0x37a   :  { %17375 = vmatmul.mubr.msk.f32.gmra.mrb[2].mxu0 %vm20_vm1, %v5534_v16  ;;  %v5589_v16 = vld [vmem:[#allocation2 + $0x427] sm:$0xff] }
 0x37b   :  { %17377 = vmatprep.mubr.msk.f32.mxu0 %vm20_vm1, %v5535_v58  ;;  %v5590_v58 = vld [vmem:[#allocation2 + $0x42f] sm:$0xff] }
 0x37e   :  { %17378 = vmatmul.mubr.msk.f32.gmra.mrb[4].mxu0 %vm20_vm1, %v5536_v36  ;;  %v5593_v36 = vld [vmem:[#allocation2 + $0x467] sm:$0xff] }
 0x37f   :  { %17380 = vmatprep.mubr.msk.f32.mxu0 %vm20_vm1, %v5537_v40  ;;  %v5594_v40 = vld [vmem:[#allocation2 + $0x46f] sm:$0xff] }
 0x382   :  { %17381 = vmatmul.mubr.msk.f32.gmra.mrb[6].mxu0 %vm20_vm1, %v5538_v42  ;;  %v6369_v42 = vld [vmem:[#allocation2 + $0x48] sm:$0xff] }
 0x383   :  { %17383 = vmatprep.mubr.msk.f32.mxu0 %vm20_vm1, %v5539_v43  ;;  %v6370_v43 = vld [vmem:[#allocation2 + $0x50] sm:$0xff] }
 0x386   :  { %17384 = vmatmul.mubr.msk.f32.gmra.mrb[8].mxu0 %vm20_vm1, %v5540_v23  ;;  %v6371_v23 = vld [vmem:[#allocation2 + $0x68] sm:$0xff] }
 0x387   :  { %17386 = vmatprep.mubr.msk.f32.mxu0 %vm20_vm1, %v5541_v45  ;;  %v6373_v45 = vld [vmem:[#allocation2 + $0x88] sm:$0xff] }
 0x38a   :  { %17387 = vmatmul.mubr.msk.f32.gmra.mrb[10].mxu0 %vm20_vm1, %v5542_v46  ;;  %v6375_v46 = vld [vmem:[#allocation2 + $0xa8] sm:$0xff] }
 0x38b   :  { %17389 = vmatprep.mubr.msk.f32.mxu0 %vm20_vm1, %v5543_v47  ;;  %v6376_v47 = vld [vmem:[#allocation2 + $0xb0] sm:$0xff] }
 0x38e   :  { %17390 = vmatmul.mubr.msk.f32.gmra.mrb[12].mxu0 %vm20_vm1, %v5544_v48  ;;  %v6377_v48 = vld [vmem:[#allocation2 + $0xc8] sm:$0xff] }
 0x38f   :  { %17392 = vmatprep.mubr.msk.f32.mxu0 %vm20_vm1, %v5545_v49  ;;  %v6379_v49 = vld [vmem:[#allocation2 + $0xe8] sm:$0xff] }
 0x392   :  { %17393 = vmatmul.mubr.msk.f32.gmra.mrb[14].mxu0 %vm20_vm1, %v5546_v51  ;;  %v6380_v51 = vld [vmem:[#allocation2 + $0xf0] sm:$0xff] }
 0x393   :  { %17395 = vmatprep.mubr.msk.f32.mxu0 %vm20_vm1, %v5547_v53  ;;  %v6381_v53 = vld [vmem:[#allocation2 + $0x108] sm:$0xff] }
 0x396   :  { %17396 = vmatmul.mubr.msk.f32.gmra.mrb[16].mxu0 %vm20_vm1, %v5548_v55  ;;  %v6382_v55 = vld [vmem:[#allocation2 + $0x110] sm:$0xff] }
 0x397   :  { %17398 = vmatprep.mubr.msk.f32.mxu0 %vm20_vm1, %v5549_v56  ;;  %v6383_v56 = vld [vmem:[#allocation2 + $0x128] sm:$0xff] }
 0x39a   :  { %17399 = vmatmul.mubr.msk.f32.gmra.mrb[18].mxu0 %vm20_vm1, %v5550_v57  ;;  %v6384_v57 = vld [vmem:[#allocation2 + $0x130] sm:$0xff] }
 0x39b   :  { %17401 = vmatprep.mubr.msk.f32.mxu0 %vm20_vm1, %v5551_v59  ;;  %v6385_v59 = vld [vmem:[#allocation2 + $0x148] sm:$0xff] }
 0x39e   :  { %17402 = vmatmul.mubr.msk.f32.gmra.mrb[20].mxu0 %vm20_vm1, %v5552_v61  ;;  %v6386_v61 = vld [vmem:[#allocation2 + $0x150] sm:$0xff] }
 0x39f   :  { %17404 = vmatprep.mubr.msk.f32.mxu0 %vm20_vm1, %v5553_v0  ;;  %v6387_v0 = vld [vmem:[#allocation2 + $0x168] sm:$0xff] }
 0x3a2   :  { %17405 = vmatmul.mubr.msk.f32.gmra.mrb[22].mxu0 %vm20_vm1, %v5554_v1  ;;  %v6388_v1 = vld [vmem:[#allocation2 + $0x170] sm:$0xff] }
 0x3a3   :  { %17407 = vmatprep.mubr.msk.f32.mxu0 %vm20_vm1, %v5555_v2  ;;  %v6389_v2 = vld [vmem:[#allocation2 + $0x188] sm:$0xff] }
 0x3a6   :  { %17408 = vmatmul.mubr.msk.f32.gmra.mrb[24].mxu0 %vm20_vm1, %v5556_v4  ;;  %v6390_v4 = vld [vmem:[#allocation2 + $0x190] sm:$0xff] }
 0x3a7   :  { %17410 = vmatprep.mubr.msk.f32.mxu0 %vm20_vm1, %v5557_v7  ;;  %v6391_v7 = vld [vmem:[#allocation2 + $0x1a8] sm:$0xff] }
 0x3aa   :  { %17411 = vmatmul.mubr.msk.f32.gmra.mrb[26].mxu0 %vm20_vm1, %v5558_v8  ;;  %v6392_v8 = vld [vmem:[#allocation2 + $0x1b0] sm:$0xff] }
 0x3ab   :  { %17413 = vmatprep.mubr.msk.f32.mxu0 %vm20_vm1, %v22025_v25  ;;  %v5567_v25 = vld [vmem:[#allocation2 + $0x2c7] sm:$0xff] }
 0x3ae   :  { %17414 = vmatmul.mubr.msk.f32.gmra.mrb[28].mxu0 %vm20_vm1, %v22031_v28  ;;  %v5568_v28 = vld [vmem:[#allocation2 + $0x2cf] sm:$0xff] }
 0x3af   :  { %17416 = vmatprep.mubr.msk.f32.mxu0 %vm20_vm1, %v5561_v12  ;;  %v6393_v12 = vld [vmem:[#allocation2 + $0x1c8] sm:$0xff] }
 0x3b2   :  { %17417 = vmatmul.mubr.msk.f32.gmra.mrb[30].mxu0 %vm20_vm1, %v5562_v10  ;;  %v6394_v10 = vld [vmem:[#allocation2 + $0x1d0] sm:$0xff] }
 0x3b3   :  { %17419 = vmatprep.mubr.msk.f32.mxu0 %vm20_vm1, %v5563_v37  ;;  %v6395_v37 = vld [vmem:[#allocation2 + $0x1e8] sm:$0xff] }
 0x3b6   :  { %17420 = vmatmul.mubr.msk.f32.gmra.mrb[32].mxu0 %vm20_vm1, %v5564_v15  ;;  %v6396_v15 = vld [vmem:[#allocation2 + $0x1f0] sm:$0xff] }
 0x3b7   :  { %17422 = vmatprep.mubr.msk.f32.mxu0 %vm20_vm1, %v5565_v29  ;;  %v6399_v29 = vld [vmem:[#allocation2 + $0x228] sm:$0xff] }
 0x3ba   :  { %17423 = vmatmul.mubr.msk.f32.gmra.mrb[34].mxu0 %vm20_vm1, %v5566_v30  ;;  %v6400_v30 = vld [vmem:[#allocation2 + $0x230] sm:$0xff] }
 0x3bb   :  { %17425 = vmatprep.mubr.msk.f32.mxu0 %vm20_vm1, %v5567_v25  ;;  %v6401_v25 = vld [vmem:[#allocation2 + $0x288] sm:$0xff] }
 0x3be   :  { %17426 = vmatmul.mubr.msk.f32.gmra.mrb[36].mxu0 %vm20_vm1, %v5568_v28  ;;  %v6402_v28 = vld [vmem:[#allocation2 + $0x290] sm:$0xff] }
 0x3bf   :  { %17428 = vmatprep.mubr.msk.f32.mxu0 %vm20_vm1, %v5569_v31  ;;  %v6403_v31 = vld [vmem:[#allocation2 + $0x2a8] sm:$0xff] }
 0x3c2   :  { %17429 = vmatmul.mubr.msk.f32.gmra.mrb[38].mxu0 %vm20_vm1, %v5570_v41  ;;  %v6404_v41 = vld [vmem:[#allocation2 + $0x2b0] sm:$0xff] }
 0x3c3   :  { %17431 = vmatprep.mubr.msk.f32.mxu0 %vm20_vm1, %v5571_v54  ;;  %v6407_v54 = vld [vmem:[#allocation2 + $0x2e8] sm:$0xff] }
 0x3c6   :  { %17432 = vmatmul.mubr.msk.f32.gmra.mrb[40].mxu0 %vm20_vm1, %v5572_v60  ;;  %v6408_v60 = vld [vmem:[#allocation2 + $0x2f0] sm:$0xff] }
 0x3c7   :  { %17434 = vmatprep.mubr.msk.f32.mxu0 %vm20_vm1, %v5573_v62  ;;  %v6409_v62 = vld [vmem:[#allocation2 + $0x308] sm:$0xff] }
 0x3ca   :  { %17435 = vmatmul.mubr.msk.f32.gmra.mrb[42].mxu0 %vm20_vm1, %v5574_v63  ;;  %v6410_v63 = vld [vmem:[#allocation2 + $0x310] sm:$0xff] }
 0x3cb   :  { %17437 = vmatprep.mubr.msk.f32.mxu0 %vm20_vm1, %v5575_v6  ;;  %v6411_v6 = vld [vmem:[#allocation2 + $0x328] sm:$0xff] }
 0x3ce   :  { %17438 = vmatmul.mubr.msk.f32.gmra.mrb[44].mxu0 %vm20_vm1, %v5576_v9  ;;  %v6412_v9 = vld [vmem:[#allocation2 + $0x330] sm:$0xff] }
 0x3cf   :  { %17440 = vmatprep.mubr.msk.f32.mxu0 %vm20_vm1, %v5577_v17  ;;  %v6413_v17 = vld [vmem:[#allocation2 + $0x348] sm:$0xff] }
 0x3d2   :  { %17441 = vmatmul.mubr.msk.f32.gmra.mrb[46].mxu0 %vm20_vm1, %v5578_v18  ;;  %v6414_v18 = vld [vmem:[#allocation2 + $0x350] sm:$0xff] }
 0x3d3   :  { %17443 = vmatprep.mubr.msk.f32.mxu0 %vm20_vm1, %v5579_v20  ;;  %v6415_v20 = vld [vmem:[#allocation2 + $0x368] sm:$0xff] }
 0x3d6   :  { %17444 = vmatmul.mubr.msk.f32.gmra.mrb[48].mxu0 %vm20_vm1, %v5580_v22  ;;  %v6416_v22 = vld [vmem:[#allocation2 + $0x370] sm:$0xff] }
 0x3d7   :  { %17446 = vmatprep.mubr.msk.f32.mxu0 %vm20_vm1, %v5581_v24  ;;  %v6417_v24 = vld [vmem:[#allocation2 + $0x388] sm:$0xff] }
 0x3da   :  { %17447 = vmatmul.mubr.msk.f32.gmra.mrb[50].mxu0 %vm20_vm1, %v5582_v26  ;;  %v6418_v26 = vld [vmem:[#allocation2 + $0x390] sm:$0xff] }
 0x3db   :  { %17449 = vmatprep.mubr.msk.f32.mxu0 %vm20_vm1, %v5583_v27  ;;  %v6419_v27 = vld [vmem:[#allocation2 + $0x3a8] sm:$0xff] }
 0x3de   :  { %17450 = vmatmul.mubr.msk.f32.gmra.mrb[52].mxu0 %vm20_vm1, %v5584_v32  ;;  %v6420_v32 = vld [vmem:[#allocation2 + $0x3b0] sm:$0xff] }
 0x3df   :  { %17452 = vmatprep.mubr.msk.f32.mxu0 %vm20_vm1, %v5585_v33  ;;  %v6421_v33 = vld [vmem:[#allocation2 + $0x3c8] sm:$0xff] }
 0x3e2   :  { %17453 = vmatmul.mubr.msk.f32.gmra.mrb[54].mxu0 %vm20_vm1, %v5586_v11  ;;  %v6422_v11 = vld [vmem:[#allocation2 + $0x3d0] sm:$0xff] }
 0x3e3   :  { %17455 = vmatprep.mubr.msk.f32.mxu0 %vm20_vm1, %v5587_v39  ;;  %v6423_v39 = vld [vmem:[#allocation2 + $0x3e8] sm:$0xff] }
 0x3e6   :  { %17456 = vmatmul.mubr.msk.f32.gmra.mrb[56].mxu0 %vm20_vm1, %v5588_v14  ;;  %v6424_v14 = vld [vmem:[#allocation2 + $0x3f0] sm:$0xff] }
 0x3e7   :  { %17458 = vmatprep.mubr.msk.f32.mxu0 %vm20_vm1, %v5589_v16  ;;  %v6425_v16 = vld [vmem:[#allocation2 + $0x408] sm:$0xff] }
 0x3ea   :  { %17459 = vmatmul.mubr.msk.f32.gmra.mrb[58].mxu0 %vm20_vm1, %v5590_v58  ;;  %v6426_v58 = vld [vmem:[#allocation2 + $0x410] sm:$0xff] }
 0x3eb   :  { %17461 = vmatprep.mubr.msk.f32.mxu0 %vm20_vm1, %v22093_v38  ;;  %v6372_v38 = vld [vmem:[#allocation2 + $0x70] sm:$0xff] }
 0x3ee   :  { %17462 = vmatmul.mubr.msk.f32.gmra.mrb[60].mxu0 %vm20_vm1, %v22099_v44  ;;  %v6374_v44 = vld [vmem:[#allocation2 + $0x90] sm:$0xff] }
 0x3ef   :  { %17464 = vmatprep.mubr.msk.f32.mxu0 %vm20_vm1, %v5593_v36  ;;  %v6427_v36 = vld [vmem:[#allocation2 + $0x428] sm:$0xff] }
 0x3f2   :  { %17465 = vmatmul.mubr.msk.f32.gmra.mrb[62].mxu0 %vm20_vm1, %v5594_v40  ;;  %v6428_v40 = vld [vmem:[#allocation2 + $0x430] sm:$0xff] }
 0x3f3   :  { %17469 = vmatprep.mubr.msk.f32.mxu0 %vm20_vm1, %v6369_v42  ;;  %v6431_v42 = vld [vmem:[#allocation2 + $0x468] sm:$0xff] }
 0x3f6   :  { %17470 = vmatmul.mubr.msk.f32.vlgmr.msra.gmra.mrb[0].mxu0 %vm20_vm1, %v6370_v43  ;;  %v6432_v43 = vld [vmem:[#allocation2 + $0x470] sm:$0xff] }
 0x3f7   :  { %17566 = vmatpush3.msk.msra.mxu0 %vm823_vm0, %v22397_v13  ;;  %17472 = vmatprep.mubr.msk.f32.mxu0 %vm20_vm1, %v6371_v23  ;;  %v6378_v13 = vld [vmem:[#allocation2 + $0xd0] sm:$0xff] }
 0x3f8   :  { %v7207_v23 = vld [vmem:[#allocation2 + $0x49] sm:$0xff] }
 0x3fa   :  { %17473 = vmatmul.mubr.msk.f32.gmra.mrb[2].mxu0 %vm20_vm1, %v6372_v38  ;;  %v7208_v38 = vld [vmem:[#allocation2 + $0x51] sm:$0xff] }
 0x3fb   :  { %17475 = vmatprep.mubr.msk.f32.mxu0 %vm20_vm1, %v6373_v45  ;;  %v8501_v45 = vld [vmem:[%s24313_s3] sm:$0xff] }
 0x3fe   :  { %17476 = vmatmul.mubr.msk.f32.gmra.mrb[4].mxu0 %vm20_vm1, %v6374_v44  ;;  %v7209_v44 = vld [vmem:[#allocation2 + $0x69] sm:$0xff] }
 0x3ff   :  { %17478 = vmatprep.mubr.msk.f32.mxu0 %vm20_vm1, %v6375_v46 }
 0x402   :  { %17479 = vmatmul.mubr.msk.f32.gmra.mrb[6].mxu0 %vm20_vm1, %v6376_v47  ;;  %v8504_v47 = vld [vmem:[%s24313_s3 + $0x18] sm:$0xff] }
 0x403   :  { %17481 = vmatprep.mubr.msk.f32.mxu0 %vm20_vm1, %v6377_v48 }
 0x406   :  { %17482 = vmatmul.mubr.msk.f32.gmra.mrb[8].mxu0 %vm20_vm1, %v6378_v13  ;;  %v8505_v13 = vld [vmem:[%s24313_s3 + $0x20] sm:$0xff] }
 0x407   :  { %17484 = vmatprep.mubr.msk.f32.mxu0 %vm20_vm1, %v6379_v49  ;;  %v8506_v49 = vld [vmem:[%s24313_s3 + $0x28] sm:$0xff] }
 0x40a   :  { %17485 = vmatmul.mubr.msk.f32.gmra.mrb[10].mxu0 %vm20_vm1, %v6380_v51  ;;  %v7210_v51 = vld [vmem:[#allocation2 + $0x71] sm:$0xff] }
 0x40b   :  { %17487 = vmatprep.mubr.msk.f32.mxu0 %vm20_vm1, %v6381_v53  ;;  %v7211_v53 = vld [vmem:[#allocation2 + $0x89] sm:$0xff] }
 0x40e   :  { %17488 = vmatmul.mubr.msk.f32.gmra.mrb[12].mxu0 %vm20_vm1, %v6382_v55  ;;  %v18823_v55 = vpack.c.bf16 %v8506_v49, %v8505_v13  ;;  %v7256_v13 = vld [vmem:[#allocation2 + $0x391] sm:$0xff]  ;;  %v7257_v49 = vld [vmem:[#allocation2 + $0x3a9] sm:$0xff] }
 0x40f   :  { %17490 = vmatprep.mubr.msk.f32.mxu0 %vm20_vm1, %v6383_v56  ;;  %v7212_v56 = vld [vmem:[#allocation2 + $0x91] sm:$0xff] }
 0x412   :  { %17491 = vmatmul.mubr.msk.f32.gmra.mrb[14].mxu0 %vm20_vm1, %v6384_v57  ;;  %v7213_v57 = vld [vmem:[#allocation2 + $0xa9] sm:$0xff] }
 0x413   :  { %17493 = vmatprep.mubr.msk.f32.mxu0 %vm20_vm1, %v6385_v59  ;;  %v7214_v59 = vld [vmem:[#allocation2 + $0xb1] sm:$0xff] }
 0x416   :  { %17494 = vmatmul.mubr.msk.f32.gmra.mrb[16].mxu0 %vm20_vm1, %v6386_v61  ;;  %v7215_v61 = vld [vmem:[#allocation2 + $0xc9] sm:$0xff] }
 0x417   :  { %17496 = vmatprep.mubr.msk.f32.mxu0 %vm20_vm1, %v6387_v0  ;;  %v7216_v0 = vld [vmem:[#allocation2 + $0xd1] sm:$0xff] }
 0x41a   :  { %17497 = vmatmul.mubr.msk.f32.gmra.mrb[18].mxu0 %vm20_vm1, %v6388_v1  ;;  %v7217_v1 = vld [vmem:[#allocation2 + $0xe9] sm:$0xff] }
 0x41b   :  { %17499 = vmatprep.mubr.msk.f32.mxu0 %vm20_vm1, %v6389_v2  ;;  %v7218_v2 = vld [vmem:[#allocation2 + $0xf1] sm:$0xff] }
 0x41e   :  { %17500 = vmatmul.mubr.msk.f32.gmra.mrb[20].mxu0 %vm20_vm1, %v6390_v4  ;;  %v7219_v4 = vld [vmem:[#allocation2 + $0x109] sm:$0xff] }
 0x41f   :  { %17502 = vmatprep.mubr.msk.f32.mxu0 %vm20_vm1, %v6391_v7  ;;  %v7220_v7 = vld [vmem:[#allocation2 + $0x111] sm:$0xff] }
 0x422   :  { %17503 = vmatmul.mubr.msk.f32.gmra.mrb[22].mxu0 %vm20_vm1, %v6392_v8  ;;  %v7221_v8 = vld [vmem:[#allocation2 + $0x129] sm:$0xff] }
 0x423   :  { %17505 = vmatprep.mubr.msk.f32.mxu0 %vm20_vm1, %v6393_v12  ;;  %v7222_v12 = vld [vmem:[#allocation2 + $0x131] sm:$0xff] }
 0x426   :  { %17506 = vmatmul.mubr.msk.f32.gmra.mrb[24].mxu0 %vm20_vm1, %v6394_v10  ;;  %v7223_v10 = vld [vmem:[#allocation2 + $0x149] sm:$0xff] }
 0x427   :  { %17508 = vmatprep.mubr.msk.f32.mxu0 %vm20_vm1, %v6395_v37  ;;  %v7224_v37 = vld [vmem:[#allocation2 + $0x151] sm:$0xff] }
 0x42a   :  { %17509 = vmatmul.mubr.msk.f32.gmra.mrb[26].mxu0 %vm20_vm1, %v6396_v15  ;;  %v7225_v15 = vld [vmem:[#allocation2 + $0x169] sm:$0xff] }
 0x42b   :  { %17511 = vmatprep.mubr.msk.f32.mxu0 %vm20_vm1, %v22170_v50  ;;  %v6405_v50 = vld [vmem:[#allocation2 + $0x2c8] sm:$0xff] }
 0x42e   :  { %17512 = vmatmul.mubr.msk.f32.gmra.mrb[28].mxu0 %vm20_vm1, %v22176_v52  ;;  %v6406_v52 = vld [vmem:[#allocation2 + $0x2d0] sm:$0xff] }
 0x42f   :  { %17514 = vmatprep.mubr.msk.f32.mxu0 %vm20_vm1, %v6399_v29  ;;  %v7226_v29 = vld [vmem:[#allocation2 + $0x171] sm:$0xff] }
 0x432   :  { %17515 = vmatmul.mubr.msk.f32.gmra.mrb[30].mxu0 %vm20_vm1, %v6400_v30  ;;  %v7227_v30 = vld [vmem:[#allocation2 + $0x189] sm:$0xff] }
 0x433   :  { %17517 = vmatprep.mubr.msk.f32.mxu0 %vm20_vm1, %v6401_v25  ;;  %v7228_v25 = vld [vmem:[#allocation2 + $0x191] sm:$0xff] }
 0x436   :  { %17518 = vmatmul.mubr.msk.f32.gmra.mrb[32].mxu0 %vm20_vm1, %v6402_v28  ;;  %v7229_v28 = vld [vmem:[#allocation2 + $0x1a9] sm:$0xff] }
 0x437   :  { %17520 = vmatprep.mubr.msk.f32.mxu0 %vm20_vm1, %v6403_v31  ;;  %v7230_v31 = vld [vmem:[#allocation2 + $0x1b1] sm:$0xff] }
 0x43a   :  { %17521 = vmatmul.mubr.msk.f32.gmra.mrb[34].mxu0 %vm20_vm1, %v6404_v41  ;;  %v7231_v41 = vld [vmem:[#allocation2 + $0x1c9] sm:$0xff] }
 0x43b   :  { %17523 = vmatprep.mubr.msk.f32.mxu0 %vm20_vm1, %v6405_v50  ;;  %v7232_v50 = vld [vmem:[#allocation2 + $0x1d1] sm:$0xff] }
 0x43e   :  { %17524 = vmatmul.mubr.msk.f32.gmra.mrb[36].mxu0 %vm20_vm1, %v6406_v52  ;;  %v7233_v52 = vld [vmem:[#allocation2 + $0x1e9] sm:$0xff] }
 0x43f   :  { %17526 = vmatprep.mubr.msk.f32.mxu0 %vm20_vm1, %v6407_v54  ;;  %v7234_v54 = vld [vmem:[#allocation2 + $0x1f1] sm:$0xff] }
 0x442   :  { %17527 = vmatmul.mubr.msk.f32.gmra.mrb[38].mxu0 %vm20_vm1, %v6408_v60  ;;  %v7237_v60 = vld [vmem:[#allocation2 + $0x229] sm:$0xff] }
 0x443   :  { %17529 = vmatprep.mubr.msk.f32.mxu0 %vm20_vm1, %v6409_v62  ;;  %v7238_v62 = vld [vmem:[#allocation2 + $0x231] sm:$0xff] }
 0x446   :  { %17530 = vmatmul.mubr.msk.f32.gmra.mrb[40].mxu0 %vm20_vm1, %v6410_v63  ;;  %v7239_v63 = vld [vmem:[#allocation2 + $0x289] sm:$0xff] }
 0x447   :  { %17532 = vmatprep.mubr.msk.f32.mxu0 %vm20_vm1, %v6411_v6  ;;  %v7240_v6 = vld [vmem:[#allocation2 + $0x291] sm:$0xff] }
 0x44a   :  { %17533 = vmatmul.mubr.msk.f32.gmra.mrb[42].mxu0 %vm20_vm1, %v6412_v9  ;;  %v7241_v9 = vld [vmem:[#allocation2 + $0x2a9] sm:$0xff] }
 0x44b   :  { %17535 = vmatprep.mubr.msk.f32.mxu0 %vm20_vm1, %v6413_v17  ;;  %v7242_v17 = vld [vmem:[#allocation2 + $0x2b1] sm:$0xff] }
 0x44e   :  { %17536 = vmatmul.mubr.msk.f32.gmra.mrb[44].mxu0 %vm20_vm1, %v6414_v18  ;;  %v7245_v18 = vld [vmem:[#allocation2 + $0x2e9] sm:$0xff] }
 0x44f   :  { %17538 = vmatprep.mubr.msk.f32.mxu0 %vm20_vm1, %v6415_v20  ;;  %v7246_v20 = vld [vmem:[#allocation2 + $0x2f1] sm:$0xff] }
 0x452   :  { %17539 = vmatmul.mubr.msk.f32.gmra.mrb[46].mxu0 %vm20_vm1, %v6416_v22  ;;  %v8507_v22 = vld [vmem:[%s24313_s3 + $0x30] sm:$0xff] }
 0x453   :  { %17541 = vmatprep.mubr.msk.f32.mxu0 %vm20_vm1, %v6417_v24  ;;  %v8508_v24 = vld [vmem:[%s24313_s3 + $0x38] sm:$0xff] }
 0x456   :  { %17542 = vmatmul.mubr.msk.f32.gmra.mrb[48].mxu0 %vm20_vm1, %v6418_v26  ;;  %v7247_v26 = vld [vmem:[#allocation2 + $0x309] sm:$0xff] }
 0x457   :  { %17544 = vmatprep.mubr.msk.f32.mxu0 %vm20_vm1, %v6419_v27  ;;  %v18827_v27 = vpack.c.bf16 %v8508_v24, %v8507_v22 }
 0x45a   :  { %17545 = vmatmul.mubr.msk.f32.gmra.mrb[50].mxu0 %vm20_vm1, %v6420_v32  ;;  %v7248_v32 = vld [vmem:[#allocation2 + $0x311] sm:$0xff] }
 0x45b   :  { %17547 = vmatprep.mubr.msk.f32.mxu0 %vm20_vm1, %v6421_v33  ;;  %v8509_v33 = vld [vmem:[%s24313_s3 + $0x40] sm:$0xff] }
 0x45e   :  { %17548 = vmatmul.mubr.msk.f32.gmra.mrb[52].mxu0 %vm20_vm1, %v6422_v11  ;;  %v8510_v11 = vld [vmem:[%s24313_s3 + $0x48] sm:$0xff] }
 0x45f   :  { %17550 = vmatprep.mubr.msk.f32.mxu0 %vm20_vm1, %v6423_v39  ;;  %v7249_v39 = vld [vmem:[#allocation2 + $0x329] sm:$0xff] }
 0x462   :  { %17551 = vmatmul.mubr.msk.f32.gmra.mrb[54].mxu0 %vm20_vm1, %v6424_v14  ;;  %v18831_v14 = vpack.c.bf16 %v8510_v11, %v8509_v33 }
 0x463   :  { %17553 = vmatprep.mubr.msk.f32.mxu0 %vm20_vm1, %v6425_v16  ;;  %v7250_v16 = vld [vmem:[#allocation2 + $0x331] sm:$0xff] }
 0x466   :  { %17554 = vmatmul.mubr.msk.f32.gmra.mrb[56].mxu0 %vm20_vm1, %v6426_v58  ;;  %v8511_v58 = vld [vmem:[%s24313_s3 + $0x50] sm:$0xff] }
 0x467   :  { %17556 = vmatprep.mubr.msk.f32.mxu0 %vm20_vm1, %v6427_v36  ;;  %v8512_v36 = vld [vmem:[%s24313_s3 + $0x58] sm:$0xff] }
 0x46a   :  { %17557 = vmatmul.mubr.msk.f32.gmra.mrb[58].mxu0 %vm20_vm1, %v6428_v40  ;;  %v7251_v40 = vld [vmem:[#allocation2 + $0x349] sm:$0xff] }
 0x46b   :  { %17559 = vmatprep.mubr.msk.f32.mxu0 %vm20_vm1, %v22238_v19  ;;  %v8502_v19 = vld [vmem:[%s24313_s3 + $0x8] sm:$0xff] }
 0x46c   :  { %v18815_v46 = vpack.c.bf16 %v8502_v19, %v8501_v45  ;;  %v7253_v45 = vld [vmem:[#allocation2 + $0x369] sm:$0xff] }
 0x46e   :  { %17560 = vmatmul.mubr.msk.f32.gmra.mrb[60].mxu0 %vm20_vm1, %v22244_v21  ;;  %v8503_v21 = vld [vmem:[%s24313_s3 + $0x10] sm:$0xff]  ;;  %18816 = vmatprep.subr.bf16.mxu0 %v18815_v46 }
 0x46f   :  { %17562 = vmatprep.mubr.msk.f32.mxu0 %vm20_vm1, %v6431_v42  ;;  %v18819_v48 = vpack.c.bf16 %v8504_v47, %v8503_v21  ;;  %19103 = vmatprep.subr.bf16.mxu1 %v18815_v46  ;;  %v18835_v42 = vpack.c.bf16 %v8512_v36, %v8511_v58  ;;  %v7254_v21 = vld [vmem:[#allocation2 + $0x371] sm:$0xff]  ;;  %v7255_v47 = vld [vmem:[#allocation2 + $0x389] sm:$0xff] }
 0x470   :  { %19111 = vmatpush3.bf16.msra.mxu1 %v18815_v46 }
 0x471   :  { %19104 = vmatprep.subr.bf16.mxu1 %v18819_v48 }
 0x472   :  { %17563 = vmatmul.mubr.msk.f32.gmra.mrb[62].mxu0 %vm20_vm1, %v6432_v43  ;;  %v7252_v43 = vld [vmem:[#allocation2 + $0x351] sm:$0xff] }
 0x473   :  { %17567 = vmatprep.mubr.msk.f32.mxu0 %vm20_vm1, %v7207_v23  ;;  %v8513_v23 = vld [vmem:[%s24313_s3 + $0x60] sm:$0xff] }
 0x474   :  { %19112 = vmatpush3.bf16.msra.mxu1 %v18819_v48 }
 0x475   :  { %19105 = vmatprep.subr.bf16.mxu1 %v18823_v55 }
 0x476   :  { %17568 = vmatmul.mubr.msk.f32.vlgmr.msra.gmra.mrb[0].mxu0 %vm20_vm1, %v7208_v38  ;;  %v8514_v38 = vld [vmem:[%s24313_s3 + $0x68] sm:$0xff] }
 0x477   :  { %17570 = vmatprep.mubr.msk.f32.mxu0 %vm20_vm1, %v7209_v44  ;;  %18818 = vmatpush3.bf16.msra.mxu0 %v18815_v46  ;;  %v18839_v19 = vpack.c.bf16 %v8514_v38, %v8513_v23  ;;  %v8515_v44 = vld [vmem:[%s24313_s3 + $0x70] sm:$0xff]  ;;  %v8516_v46 = vld [vmem:[%s24313_s3 + $0x78] sm:$0xff] }
 0x478   :  { %18820 = vmatprep.subr.bf16.mxu0 %v18819_v48  ;;  %19113 = vmatpush3.bf16.msra.mxu1 %v18823_v55 }
 0x479   :  { %19106 = vmatprep.subr.bf16.mxu1 %v18827_v27 }
 0x47a   :  { %17571 = vmatmul.mubr.msk.f32.gmra.mrb[2].mxu0 %vm20_vm1, %v7210_v51  ;;  %v7258_v51 = vld [vmem:[#allocation2 + $0x3b1] sm:$0xff] }
 0x47b   :  { %17573 = vmatprep.mubr.msk.f32.mxu0 %vm20_vm1, %v7211_v53  ;;  %18822 = vmatpush3.bf16.msra.mxu0 %v18819_v48  ;;  %v18843_v48 = vpack.c.bf16 %v8516_v46, %v8515_v44  ;;  %v7259_v53 = vld [vmem:[#allocation2 + $0x3c9] sm:$0xff] }
 0x47c   :  { %18824 = vmatprep.subr.bf16.mxu0 %v18823_v55  ;;  %19114 = vmatpush3.bf16.msra.mxu1 %v18827_v27 }
 0x47d   :  { %19107 = vmatprep.subr.bf16.mxu1 %v18831_v14 }
 0x47e   :  { %17574 = vmatmul.mubr.msk.f32.gmra.mrb[4].mxu0 %vm20_vm1, %v7212_v56  ;;  %v7261_v56 = vld [vmem:[#allocation2 + $0x3e9] sm:$0xff] }
 0x47f   :  { %17576 = vmatprep.mubr.msk.f32.mxu0 %vm20_vm1, %v7213_v57  ;;  %18826 = vmatpush3.bf16.msra.mxu0 %v18823_v55  ;;  %v7260_v55 = vld [vmem:[#allocation2 + $0x3d1] sm:$0xff] }
 0x480   :  { %18828 = vmatprep.subr.bf16.mxu0 %v18827_v27  ;;  %19115 = vmatpush3.bf16.msra.mxu1 %v18831_v14  ;;  %v7262_v57 = vld [vmem:[#allocation2 + $0x3f1] sm:$0xff] }
 0x481   :  { %19108 = vmatprep.subr.bf16.mxu1 %v18835_v42 }
 0x482   :  { %17577 = vmatmul.mubr.msk.f32.gmra.mrb[6].mxu0 %vm20_vm1, %v7214_v59  ;;  %v7263_v59 = vld [vmem:[#allocation2 + $0x409] sm:$0xff] }
 0x483   :  { %17579 = vmatprep.mubr.msk.f32.mxu0 %vm20_vm1, %v7215_v61  ;;  %18830 = vmatpush3.bf16.msra.mxu0 %v18827_v27  ;;  %v7264_v61 = vld [vmem:[#allocation2 + $0x411] sm:$0xff] }
 0x484   :  { %18832 = vmatprep.subr.bf16.mxu0 %v18831_v14  ;;  %19116 = vmatpush3.bf16.msra.mxu1 %v18835_v42 }
 0x485   :  { %19109 = vmatprep.subr.bf16.mxu1 %v18839_v19 }
 0x486   :  { %17580 = vmatmul.mubr.msk.f32.gmra.mrb[8].mxu0 %vm20_vm1, %v7216_v0  ;;  %v7265_v0 = vld [vmem:[#allocation2 + $0x429] sm:$0xff] }
 0x487   :  { %17582 = vmatprep.mubr.msk.f32.mxu0 %vm20_vm1, %v7217_v1  ;;  %18834 = vmatpush3.bf16.msra.mxu0 %v18831_v14  ;;  %v7266_v1 = vld [vmem:[#allocation2 + $0x431] sm:$0xff] }
 0x488   :  { %18836 = vmatprep.subr.bf16.mxu0 %v18835_v42  ;;  %19117 = vmatpush3.bf16.msra.mxu1 %v18839_v19 }
 0x489   :  { %19110 = vmatprep.subr.bf16.mxu1 %v18843_v48 }
 0x48a   :  { %17583 = vmatmul.mubr.msk.f32.gmra.mrb[10].mxu0 %vm20_vm1, %v7218_v2  ;;  %v7269_v2 = vld [vmem:[#allocation2 + $0x469] sm:$0xff] }
 0x48b   :  { %17585 = vmatprep.mubr.msk.f32.mxu0 %vm20_vm1, %v7219_v4  ;;  %18838 = vmatpush3.bf16.msra.mxu0 %v18835_v42  ;;  %v7270_v4 = vld [vmem:[#allocation2 + $0x471] sm:$0xff] }
 0x48c   :  { %18840 = vmatprep.subr.bf16.mxu0 %v18839_v19  ;;  %19118 = vmatpush3.bf16.msra.mxu1 %v18843_v48 }
 0x48e   :  { %17586 = vmatmul.mubr.msk.f32.gmra.mrb[12].mxu0 %vm20_vm1, %v7220_v7  ;;  %v8373_v7 = vld [vmem:[#allocation3 + $0x7] sm:$0xff] }
 0x48f   :  { %17588 = vmatprep.mubr.msk.f32.mxu0 %vm20_vm1, %v7221_v8  ;;  %18842 = vmatpush3.bf16.msra.mxu0 %v18839_v19  ;;  %v15347_v8 = vld [vmem:[%s24313_s3 + $0x80] sm:$0xff] }
 0x490   :  { %18844 = vmatprep.subr.bf16.mxu0 %v18843_v48 }
 0x492   :  { %17589 = vmatmul.mubr.msk.f32.gmra.mrb[14].mxu0 %vm20_vm1, %v7222_v12  ;;  %v15348_v12 = vld [vmem:[%s24313_s3 + $0x88] sm:$0xff] }
 0x493   :  { %17591 = vmatprep.mubr.msk.f32.mxu0 %vm20_vm1, %v7223_v10  ;;  %18846 = vmatpush3.bf16.msra.mxu0 %v18843_v48  ;;  %v22661_v10 = vpack.c.bf16 %v15348_v12, %v15347_v8  ;;  %v15349_v48 = vld [vmem:[%s24313_s3 + $0x90] sm:$0xff] }
 0x495   :  { %18848 = vmatprep.subr.bf16.mxu1 %v22661_v10 }
 0x496   :  { %17592 = vmatmul.mubr.msk.f32.gmra.mrb[16].mxu0 %vm20_vm1, %v7224_v37  ;;  %v22668_v37 = vld [vmem:[%s24314_s2] ss:$0 sm:$0xff] }
 0x497   :  { %17594 = vmatprep.mubr.msk.f32.mxu0 %vm20_vm1, %v7225_v15  ;;  %v22670_v15 = vld [vmem:[#allocation3] sm:$0xff] }
 0x49a   :  { %17595 = vmatmul.mubr.msk.f32.gmra.mrb[18].mxu0 %vm20_vm1, %v7226_v29 }
 0x49b   :  { %17597 = vmatprep.mubr.msk.f32.mxu0 %vm20_vm1, %v7227_v30 }
 0x49e   :  { %17598 = vmatmul.mubr.msk.f32.gmra.mrb[20].mxu0 %vm20_vm1, %v7228_v25 }
 0x49f   :  { %17600 = vmatprep.mubr.msk.f32.mxu0 %vm20_vm1, %v7229_v28 }
 0x4a2   :  { %17601 = vmatmul.mubr.msk.f32.gmra.mrb[22].mxu0 %vm20_vm1, %v7230_v31 }
 0x4a3   :  { %17603 = vmatprep.mubr.msk.f32.mxu0 %vm20_vm1, %v7231_v41 }
 0x4a6   :  { %17604 = vmatmul.mubr.msk.f32.gmra.mrb[24].mxu0 %vm20_vm1, %v7232_v50 }
 0x4a7   :  { %17606 = vmatprep.mubr.msk.f32.mxu0 %vm20_vm1, %v7233_v52 }
 0x4aa   :  { %17607 = vmatmul.mubr.msk.f32.gmra.mrb[26].mxu0 %vm20_vm1, %v7234_v54 }
 0x4ab   :  { %17609 = vmatprep.mubr.msk.f32.mxu0 %vm20_vm1, %v22315_v3  ;;  %v7243_v3 = vld [vmem:[#allocation2 + $0x2c9] sm:$0xff] }
 0x4ae   :  { %17610 = vmatmul.mubr.msk.f32.gmra.mrb[28].mxu0 %vm20_vm1, %v22321_v5  ;;  %v7244_v5 = vld [vmem:[#allocation2 + $0x2d1] sm:$0xff] }
 0x4af   :  { %17612 = vmatprep.mubr.msk.f32.mxu0 %vm20_vm1, %v7237_v60 }
 0x4b2   :  { %17613 = vmatmul.mubr.msk.f32.gmra.mrb[30].mxu0 %vm20_vm1, %v7238_v62 }
 0x4b3   :  { %17615 = vmatprep.mubr.msk.f32.mxu0 %vm20_vm1, %v7239_v63 }
 0x4b6   :  { %17616 = vmatmul.mubr.msk.f32.gmra.mrb[32].mxu0 %vm20_vm1, %v7240_v6 }
 0x4b7   :  { %17618 = vmatprep.mubr.msk.f32.mxu0 %vm20_vm1, %v7241_v9 }
 0x4ba   :  { %17619 = vmatmul.mubr.msk.f32.gmra.mrb[34].mxu0 %vm20_vm1, %v7242_v17 }
 0x4bb   :  { %17621 = vmatprep.mubr.msk.f32.mxu0 %vm20_vm1, %v7243_v3 }
 0x4be   :  { %17622 = vmatmul.mubr.msk.f32.gmra.mrb[36].mxu0 %vm20_vm1, %v7244_v5 }
 0x4bf   :  { %17624 = vmatprep.mubr.msk.f32.mxu0 %vm20_vm1, %v7245_v18 }
 0x4c2   :  { %17625 = vmatmul.mubr.msk.f32.gmra.mrb[38].mxu0 %vm20_vm1, %v7246_v20 }
 0x4c3   :  { %17627 = vmatprep.mubr.msk.f32.mxu0 %vm20_vm1, %v7247_v26 }
 0x4c6   :  { %17628 = vmatmul.mubr.msk.f32.gmra.mrb[40].mxu0 %vm20_vm1, %v7248_v32 }
 0x4c7   :  { %17630 = vmatprep.mubr.msk.f32.mxu0 %vm20_vm1, %v7249_v39 }
 0x4ca   :  { %17631 = vmatmul.mubr.msk.f32.gmra.mrb[42].mxu0 %vm20_vm1, %v7250_v16 }
 0x4cb   :  { %17633 = vmatprep.mubr.msk.f32.mxu0 %vm20_vm1, %v7251_v40 }
 0x4ce   :  { %17634 = vmatmul.mubr.msk.f32.gmra.mrb[44].mxu0 %vm20_vm1, %v7252_v43 }
 0x4cf   :  { %17636 = vmatprep.mubr.msk.f32.mxu0 %vm20_vm1, %v7253_v45 }
 0x4d2   :  { %17637 = vmatmul.mubr.msk.f32.gmra.mrb[46].mxu0 %vm20_vm1, %v7254_v21 }
 0x4d3   :  { %17639 = vmatprep.mubr.msk.f32.mxu0 %vm20_vm1, %v7255_v47 }
 0x4d6   :  { %17640 = vmatmul.mubr.msk.f32.gmra.mrb[48].mxu0 %vm20_vm1, %v7256_v13  ;;  %v15350_v13 = vld [vmem:[%s24313_s3 + $0x98] sm:$0xff] }
 0x4d7   :  { %17642 = vmatprep.mubr.msk.f32.mxu0 %vm20_vm1, %v7257_v49 }
 0x4da   :  { %17643 = vmatmul.mubr.msk.f32.gmra.mrb[50].mxu0 %vm20_vm1, %v7258_v51 }
 0x4db   :  { %17645 = vmatprep.mubr.msk.f32.mxu0 %vm20_vm1, %v7259_v53 }
 0x4de   :  { %17646 = vmatmul.mubr.msk.f32.gmra.mrb[52].mxu0 %vm20_vm1, %v7260_v55 }
 0x4df   :  { %17648 = vmatprep.mubr.msk.f32.mxu0 %vm20_vm1, %v7261_v56 }
 0x4e2   :  { %17649 = vmatmul.mubr.msk.f32.gmra.mrb[54].mxu0 %vm20_vm1, %v7262_v57 }
 0x4e3   :  { %17651 = vmatprep.mubr.msk.f32.mxu0 %vm20_vm1, %v7263_v59 }
 0x4e6   :  { %17652 = vmatmul.mubr.msk.f32.gmra.mrb[56].mxu0 %vm20_vm1, %v7264_v61 }
 0x4e7   :  { %17654 = vmatprep.mubr.msk.f32.mxu0 %vm20_vm1, %v7265_v0  ;;  %v18851_v0 = vpack.c.bf16 %v15350_v13, %v15349_v48 }
 0x4ea   :  { %17655 = vmatmul.mubr.msk.f32.gmra.mrb[58].mxu0 %vm20_vm1, %v7266_v1 }
 0x4eb   :  { %17657 = vmatprep.mubr.msk.f32.mxu0 %vm20_vm1, %v22383_v34  ;;  %v8374_v34 = vld [vmem:[#allocation3 + $0xf] sm:$0xff] }
 0x4ee   :  { %17658 = vmatmul.mubr.msk.f32.gmra.mrb[60].mxu0 %vm20_vm1, %v22389_v35 }
 0x4ef   :  { %17660 = vmatprep.mubr.msk.f32.mxu0 %vm20_vm1, %v7269_v2 }
 0x4f2   :  { %17661 = vmatmul.mubr.msk.f32.gmra.mrb[62].mxu0 %vm20_vm1, %v7270_v4  ;;  %v15351_v4 = vld [vmem:[%s24313_s3 + $0xa0] sm:$0xff] }
 0x4f3   :  { %17695 = vmatprep.mubr.f32.mxu0 %v8373_v7  ;;  %v15352_v7 = vld [vmem:[%s24313_s3 + $0xa8] sm:$0xff] }
 0x4f6   :  { %17696 = vmatmul.mubr.f32.vlgmr.msra.gmra.mrb[64].mxu0 %v8374_v34 }
 0x549   :  { %v17569_v35 = vpop.f32.mrb[0].mxu0 }
 0x54a   :  { %v19121_v29 = vadd.f32 %v22670_v15, %v17569_v35  ;;  %v7598_v30 = vpop.f32.mrb[1].mxu0 }
 0x54b   :  { %v19124_v25 = vadd.f32 %v22670_v15, %v7598_v30 }
 0x54c   :  { %v8117_v28 = vadd.f32 %v19121_v29, %v22668_v37 }
 0x54d   :  { %v17572_v31 = vpop.f32.mrb[2].mxu0  ;;  %v8116_v41 = vadd.f32 %v19124_v25, %v22668_v37 }
 0x54e   :  { %v19127_v50 = vadd.f32 %v22670_v15, %v17572_v31  ;;  %v7608_v52 = vpop.f32.mrb[3].mxu0  ;;  %v8181_v54 = vmax.f32 %v8117_v28, 0.0  ;;  %v18855_v31 = vpack.c.bf16 %v15352_v7, %v15351_v4 }
 0x54f   :  { %v19130_v60 = vadd.f32 %v22670_v15, %v7608_v52  ;;  %v8180_v62 = vmax.f32 %v8116_v41, 0.0  ;;  %v15353_v52 = vld [vmem:[%s24313_s3 + $0xb0] sm:$0xff] }
 0x550   :  { %8246 = vst [vmem:[#allocation3 + $0x30] sm:$0xff] %v8181_v54  ;;  %v8119_v63 = vadd.f32 %v19127_v50, %v22668_v37 }
 0x551   :  { %v17575_v6 = vpop.f32.mrb[4].mxu0  ;;  %8245 = vst [vmem:[#allocation3 + $0x28] sm:$0xff] %v8180_v62  ;;  %v8118_v9 = vadd.f32 %v19130_v60, %v22668_v37 }
 0x552   :  { %v19133_v17 = vadd.f32 %v22670_v15, %v17575_v6  ;;  %v7618_v3 = vpop.f32.mrb[5].mxu0  ;;  %v8183_v5 = vmax.f32 %v8119_v63, 0.0 }
 0x553   :  { %v19136_v18 = vadd.f32 %v22670_v15, %v7618_v3  ;;  %v8182_v20 = vmax.f32 %v8118_v9, 0.0 }
 0x554   :  { %8248 = vst [vmem:[#allocation3 + $0x50] sm:$0xff] %v8183_v5  ;;  %v8121_v22 = vadd.f32 %v19133_v17, %v22668_v37 }
 0x555   :  { %v17578_v24 = vpop.f32.mrb[6].mxu0  ;;  %8247 = vst [vmem:[#allocation3 + $0x48] sm:$0xff] %v8182_v20  ;;  %v8120_v26 = vadd.f32 %v19136_v18, %v22668_v37 }
 0x556   :  { %v19139_v27 = vadd.f32 %v22670_v15, %v17578_v24  ;;  %v7628_v32 = vpop.f32.mrb[7].mxu0  ;;  %v8185_v33 = vmax.f32 %v8121_v22, 0.0  ;;  %v15355_v22 = vld [vmem:[%s24313_s3 + $0xc0] sm:$0xff]  ;;  %v15356_v24 = vld [vmem:[%s24313_s3 + $0xc8] sm:$0xff] }
 0x557   :  { %v19142_v11 = vadd.f32 %v22670_v15, %v7628_v32  ;;  %v8184_v39 = vmax.f32 %v8120_v26, 0.0 }
 0x558   :  { %v8123_v14 = vadd.f32 %v19139_v27, %v22668_v37  ;;  %v8375_v16 = vld [vmem:[#allocation3 + $0x27] sm:$0xff]  ;;  %v8376_v58 = vld [vmem:[#allocation3 + $0x2f] sm:$0xff]  ;;  %8250 = vst [vmem:[#allocation3 + $0x70] sm:$0xff] %v8185_v33 }
 0x559   :  { %v8122_v36 = vadd.f32 %v19142_v11, %v22668_v37  ;;  %v17581_v40 = vpop.f32.mrb[8].mxu0  ;;  %17698 = vmatprep.mubr.f32.mxu0 %v8375_v16  ;;  %8249 = vst [vmem:[#allocation3 + $0x68] sm:$0xff] %v8184_v39 }
 0x55a   :  { %v8187_v42 = vmax.f32 %v8123_v14, 0.0  ;;  %v19145_v43 = vadd.f32 %v22670_v15, %v17581_v40  ;;  %v7638_v23 = vpop.f32.mrb[9].mxu0  ;;  %17699 = vmatmul.mubr.f32.gmra.mrb[66].mxu0 %v8376_v58  ;;  %v18863_v58 = vpack.c.bf16 %v15356_v24, %v15355_v22 }
 0x55b   :  { %v8186_v38 = vmax.f32 %v8122_v36, 0.0  ;;  %v19148_v45 = vadd.f32 %v22670_v15, %v7638_v23 }
 0x55c   :  { %8252 = vst [vmem:[#allocation3 + $0x90] sm:$0xff] %v8187_v42  ;;  %v8125_v19 = vadd.f32 %v19145_v43, %v22668_v37  ;;  %v8377_v21 = vld [vmem:[#allocation3 + $0x47] sm:$0xff]  ;;  %v8378_v44 = vld [vmem:[#allocation3 + $0x4f] sm:$0xff]  ;;  %v15358_v43 = vld [vmem:[%s24313_s3 + $0xd8] sm:$0xff] }
 0x55d   :  { %8251 = vst [vmem:[#allocation3 + $0x88] sm:$0xff] %v8186_v38  ;;  %v8124_v46 = vadd.f32 %v19148_v45, %v22668_v37  ;;  %v17584_v47 = vpop.f32.mrb[10].mxu0  ;;  %17701 = vmatprep.mubr.f32.mxu0 %v8377_v21  ;;  %v15357_v42 = vld [vmem:[%s24313_s3 + $0xd0] sm:$0xff] }
 0x55e   :  { %v8189_v49 = vmax.f32 %v8125_v19, 0.0  ;;  %v19151_v51 = vadd.f32 %v22670_v15, %v17584_v47  ;;  %v7648_v53 = vpop.f32.mrb[11].mxu0  ;;  %17702 = vmatmul.mubr.f32.gmra.mrb[68].mxu0 %v8378_v44  ;;  %v18867_v48 = vpack.c.bf16 %v15358_v43, %v15357_v42 }
 0x55f   :  { %v8188_v55 = vmax.f32 %v8124_v46, 0.0  ;;  %v19154_v56 = vadd.f32 %v22670_v15, %v7648_v53  ;;  %v15360_v53 = vld [vmem:[%s24313_s3 + $0xe8] sm:$0xff] }
 0x560   :  { %8254 = vst [vmem:[#allocation3 + $0xb0] sm:$0xff] %v8189_v49  ;;  %v8127_v57 = vadd.f32 %v19151_v51, %v22668_v37  ;;  %v8379_v59 = vld [vmem:[#allocation3 + $0x67] sm:$0xff]  ;;  %v8380_v61 = vld [vmem:[#allocation3 + $0x6f] sm:$0xff] }
 0x561   :  { %8253 = vst [vmem:[#allocation3 + $0xa8] sm:$0xff] %v8188_v55  ;;  %v8126_v1 = vadd.f32 %v19154_v56, %v22668_v37  ;;  %v17587_v2 = vpop.f32.mrb[12].mxu0  ;;  %17704 = vmatprep.mubr.f32.mxu1 %v8379_v59  ;;  %v15359_v51 = vld [vmem:[%s24313_s3 + $0xe0] sm:$0xff] }
 0x562   :  { %v8191_v8 = vmax.f32 %v8127_v57, 0.0  ;;  %v19157_v12 = vadd.f32 %v22670_v15, %v17587_v2  ;;  %v7658_v34 = vpop.f32.mrb[13].mxu0  ;;  %17705 = vmatmul.mubr.f32.vlgmr.msra.gmra.mrb[0].mxu1 %v8380_v61  ;;  %v18871_v4 = vpack.c.bf16 %v15360_v53, %v15359_v51 }
 0x563   :  { %v8190_v35 = vmax.f32 %v8126_v1, 0.0  ;;  %v19160_v29 = vadd.f32 %v22670_v15, %v7658_v34  ;;  %18850 = vmatpush3.bf16.msra.mxu1 %v22661_v10  ;;  %v15354_v10 = vld [vmem:[%s24313_s3 + $0xb8] sm:$0xff] }
 0x564   :  { %8256 = vst [vmem:[#allocation3 + $0xd0] sm:$0xff] %v8191_v8  ;;  %v8129_v30 = vadd.f32 %v19157_v12, %v22668_v37  ;;  %v8381_v25 = vld [vmem:[#allocation3 + $0x87] sm:$0xff]  ;;  %v8382_v28 = vld [vmem:[#allocation3 + $0x8f] sm:$0xff]  ;;  %18852 = vmatprep.subr.bf16.mxu1 %v18851_v0  ;;  %v18859_v5 = vpack.c.bf16 %v15354_v10, %v15353_v52  ;;  %v15362_v34 = vld [vmem:[%s24313_s3 + $0xf8] sm:$0xff] }
 0x565   :  { %8255 = vst [vmem:[#allocation3 + $0xc8] sm:$0xff] %v8190_v35  ;;  %v8128_v41 = vadd.f32 %v19160_v29, %v22668_v37  ;;  %v17590_v50 = vpop.f32.mrb[14].mxu0  ;;  %17707 = vmatprep.mubr.f32.mxu1 %v8381_v25  ;;  %v15361_v12 = vld [vmem:[%s24313_s3 + $0xf0] sm:$0xff] }
 0x566   :  { %v8193_v54 = vmax.f32 %v8129_v30, 0.0  ;;  %v19163_v60 = vadd.f32 %v22670_v15, %v17590_v50  ;;  %v7668_v62 = vpop.f32.mrb[15].mxu0  ;;  %17708 = vmatmul.mubr.f32.gmra.mrb[2].mxu1 %v8382_v28  ;;  %v18875_v52 = vpack.c.bf16 %v15362_v34, %v15361_v12 }
 0x567   :  { %v8192_v63 = vmax.f32 %v8128_v41, 0.0  ;;  %v19166_v6 = vadd.f32 %v22670_v15, %v7668_v62  ;;  %18854 = vmatpush3.bf16.msra.mxu1 %v18851_v0  ;;  %v15364_v62 = vld [vmem:[%s24313_s3 + $0x108] sm:$0xff] }
 0x568   :  { %8258 = vst [vmem:[#allocation3 + $0xf0] sm:$0xff] %v8193_v54  ;;  %v8131_v9 = vadd.f32 %v19163_v60, %v22668_v37  ;;  %v8383_v17 = vld [vmem:[#allocation3 + $0xa7] sm:$0xff]  ;;  %v8384_v3 = vld [vmem:[#allocation3 + $0xaf] sm:$0xff]  ;;  %18856 = vmatprep.subr.bf16.mxu1 %v18855_v31 }
 0x569   :  { %8257 = vst [vmem:[#allocation3 + $0xe8] sm:$0xff] %v8192_v63  ;;  %v8130_v18 = vadd.f32 %v19166_v6, %v22668_v37  ;;  %v17593_v20 = vpop.f32.mrb[16].mxu0  ;;  %17710 = vmatprep.mubr.f32.mxu1 %v8383_v17  ;;  %v15363_v60 = vld [vmem:[%s24313_s3 + $0x100] sm:$0xff] }
 0x56a   :  { %v8195_v26 = vmax.f32 %v8131_v9, 0.0  ;;  %v19169_v27 = vadd.f32 %v22670_v15, %v17593_v20  ;;  %v7678_v32 = vpop.f32.mrb[17].mxu0  ;;  %17711 = vmatmul.mubr.f32.gmra.mrb[4].mxu1 %v8384_v3  ;;  %v22772_v22 = vpack.c.bf16 %v15364_v62, %v15363_v60 }
 0x56b   :  { %v8194_v33 = vmax.f32 %v8130_v18, 0.0  ;;  %v19172_v11 = vadd.f32 %v22670_v15, %v7678_v32  ;;  %18858 = vmatpush3.bf16.msra.mxu1 %v18855_v31 }
 0x56c   :  { %8260 = vst [vmem:[#allocation3 + $0x110] sm:$0xff] %v8195_v26  ;;  %v8133_v39 = vadd.f32 %v19169_v27, %v22668_v37  ;;  %v8385_v14 = vld [vmem:[#allocation3 + $0xc7] sm:$0xff]  ;;  %v8386_v16 = vld [vmem:[#allocation3 + $0xcf] sm:$0xff]  ;;  %18860 = vmatprep.subr.bf16.mxu1 %v18859_v5 }
 0x56d   :  { %8259 = vst [vmem:[#allocation3 + $0x108] sm:$0xff] %v8194_v33  ;;  %v8132_v36 = vadd.f32 %v19172_v11, %v22668_v37  ;;  %v17596_v40 = vpop.f32.mrb[18].mxu0  ;;  %17713 = vmatprep.mubr.f32.mxu1 %v8385_v14 }
 0x56e   :  { %v8197_v23 = vmax.f32 %v8133_v39, 0.0  ;;  %v19175_v38 = vadd.f32 %v22670_v15, %v17596_v40  ;;  %v7688_v45 = vpop.f32.mrb[19].mxu0  ;;  %17714 = vmatmul.mubr.f32.gmra.mrb[6].mxu1 %v8386_v16 }
 0x56f   :  { %v8196_v19 = vmax.f32 %v8132_v36, 0.0  ;;  %v19178_v21 = vadd.f32 %v22670_v15, %v7688_v45  ;;  %18862 = vmatpush3.bf16.msra.mxu1 %v18859_v5 }
 0x570   :  { %8262 = vst [vmem:[#allocation3 + $0x130] sm:$0xff] %v8197_v23  ;;  %v8135_v44 = vadd.f32 %v19175_v38, %v22668_v37  ;;  %v8387_v46 = vld [vmem:[#allocation3 + $0xe7] sm:$0xff]  ;;  %v8388_v47 = vld [vmem:[#allocation3 + $0xef] sm:$0xff]  ;;  %18864 = vmatprep.subr.bf16.mxu1 %v18863_v58 }
 0x571   :  { %8261 = vst [vmem:[#allocation3 + $0x128] sm:$0xff] %v8196_v19  ;;  %v8134_v13 = vadd.f32 %v19178_v21, %v22668_v37  ;;  %v17599_v49 = vpop.f32.mrb[20].mxu0  ;;  %17716 = vmatprep.mubr.f32.mxu1 %v8387_v46 }
 0x572   :  { %v8199_v55 = vmax.f32 %v8135_v44, 0.0  ;;  %v19181_v56 = vadd.f32 %v22670_v15, %v17599_v49  ;;  %v7698_v57 = vpop.f32.mrb[21].mxu0  ;;  %17717 = vmatmul.mubr.f32.gmra.mrb[8].mxu1 %v8388_v47 }
 0x573   :  { %v8198_v59 = vmax.f32 %v8134_v13, 0.0  ;;  %v19184_v61 = vadd.f32 %v22670_v15, %v7698_v57  ;;  %18866 = vmatpush3.bf16.msra.mxu1 %v18863_v58 }
 0x574   :  { %8264 = vst [vmem:[#allocation3 + $0x150] sm:$0xff] %v8199_v55  ;;  %v8137_v0 = vadd.f32 %v19181_v56, %v22668_v37  ;;  %v8389_v1 = vld [vmem:[#allocation3 + $0x107] sm:$0xff]  ;;  %v8390_v2 = vld [vmem:[#allocation3 + $0x10f] sm:$0xff]  ;;  %18868 = vmatprep.subr.bf16.mxu1 %v18867_v48 }
 0x575   :  { %8263 = vst [vmem:[#allocation3 + $0x148] sm:$0xff] %v8198_v59  ;;  %v8136_v7 = vadd.f32 %v19184_v61, %v22668_v37  ;;  %v17602_v8 = vpop.f32.mrb[22].mxu0  ;;  %17719 = vmatprep.mubr.f32.mxu1 %v8389_v1 }
 0x576   :  { %v8201_v35 = vmax.f32 %v8137_v0, 0.0  ;;  %v19187_v29 = vadd.f32 %v22670_v15, %v17602_v8  ;;  %v7708_v30 = vpop.f32.mrb[23].mxu0  ;;  %17720 = vmatmul.mubr.f32.gmra.mrb[10].mxu1 %v8390_v2 }
 0x577   :  { %v8200_v25 = vmax.f32 %v8136_v7, 0.0  ;;  %v19190_v28 = vadd.f32 %v22670_v15, %v7708_v30  ;;  %18870 = vmatpush3.bf16.msra.mxu1 %v18867_v48 }
 0x578   :  { %8266 = vst [vmem:[#allocation3 + $0x170] sm:$0xff] %v8201_v35  ;;  %v8139_v31 = vadd.f32 %v19187_v29, %v22668_v37  ;;  %v8391_v41 = vld [vmem:[#allocation3 + $0x127] sm:$0xff]  ;;  %v8392_v50 = vld [vmem:[#allocation3 + $0x12f] sm:$0xff]  ;;  %18872 = vmatprep.subr.bf16.mxu1 %v18871_v4 }
 0x579   :  { %8265 = vst [vmem:[#allocation3 + $0x168] sm:$0xff] %v8200_v25  ;;  %v8138_v10 = vadd.f32 %v19190_v28, %v22668_v37  ;;  %v17605_v54 = vpop.f32.mrb[24].mxu0  ;;  %17722 = vmatprep.mubr.f32.mxu1 %v8391_v41 }
 0x57a   :  { %v8203_v63 = vmax.f32 %v8139_v31, 0.0  ;;  %v19193_v6 = vadd.f32 %v22670_v15, %v17605_v54  ;;  %v7718_v9 = vpop.f32.mrb[25].mxu0  ;;  %17723 = vmatmul.mubr.f32.gmra.mrb[12].mxu1 %v8392_v50  ;;  %v8405_v54 = vld [vmem:[#allocation3 + $0x247] sm:$0xff] }
 0x57b   :  { %v8202_v17 = vmax.f32 %v8138_v10, 0.0  ;;  %v19196_v3 = vadd.f32 %v22670_v15, %v7718_v9  ;;  %18874 = vmatpush3.bf16.msra.mxu1 %v18871_v4 }
 0x57c   :  { %8268 = vst [vmem:[#allocation3 + $0x190] sm:$0xff] %v8203_v63  ;;  %v8141_v5 = vadd.f32 %v19193_v6, %v22668_v37  ;;  %v8393_v18 = vld [vmem:[#allocation3 + $0x147] sm:$0xff]  ;;  %v8394_v20 = vld [vmem:[#allocation3 + $0x14f] sm:$0xff]  ;;  %18876 = vmatprep.subr.bf16.mxu1 %v18875_v52 }
 0x57d   :  { %8267 = vst [vmem:[#allocation3 + $0x188] sm:$0xff] %v8202_v17  ;;  %v8140_v24 = vadd.f32 %v19196_v3, %v22668_v37  ;;  %v17608_v26 = vpop.f32.mrb[26].mxu0  ;;  %17725 = vmatprep.mubr.f32.mxu1 %v8393_v18 }
 0x57e   :  { %v8205_v27 = vmax.f32 %v8141_v5, 0.0  ;;  %v19199_v32 = vadd.f32 %v22670_v15, %v17608_v26  ;;  %v7728_v33 = vpop.f32.mrb[27].mxu0  ;;  %17726 = vmatmul.mubr.f32.gmra.mrb[14].mxu1 %v8394_v20  ;;  %v8406_v5 = vld [vmem:[#allocation3 + $0x24f] sm:$0xff] }
 0x57f   :  { %v8204_v11 = vmax.f32 %v8140_v24, 0.0  ;;  %v19202_v39 = vadd.f32 %v22670_v15, %v7728_v33  ;;  %18878 = vmatpush3.bf16.msra.mxu1 %v18875_v52 }
 0x580   :  { %8270 = vst [vmem:[#allocation3 + $0x1b0] sm:$0xff] %v8205_v27  ;;  %v8143_v14 = vadd.f32 %v19199_v32, %v22668_v37  ;;  %v8395_v16 = vld [vmem:[#allocation3 + $0x167] sm:$0xff]  ;;  %v8396_v58 = vld [vmem:[#allocation3 + $0x16f] sm:$0xff]  ;;  %18880 = vmatprep.subr.bf16.mxu1 %v22772_v22 }
 0x581   :  { %8269 = vst [vmem:[#allocation3 + $0x1a8] sm:$0xff] %v8204_v11  ;;  %v8142_v36 = vadd.f32 %v19202_v39, %v22668_v37  ;;  %v17611_v40 = vpop.f32.mrb[28].mxu0  ;;  %17728 = vmatprep.mubr.f32.mxu1 %v8395_v16 }
 0x582   :  { %v8207_v42 = vmax.f32 %v8143_v14, 0.0  ;;  %v19205_v43 = vadd.f32 %v22670_v15, %v17611_v40  ;;  %v7738_v23 = vpop.f32.mrb[29].mxu0  ;;  %17729 = vmatmul.mubr.f32.gmra.mrb[16].mxu1 %v8396_v58 }
 0x583   :  { %v8206_v38 = vmax.f32 %v8142_v36, 0.0  ;;  %v19208_v45 = vadd.f32 %v22670_v15, %v7738_v23 }
 0x584   :  { %8272 = vst [vmem:[#allocation3 + $0x1d0] sm:$0xff] %v8207_v42  ;;  %v8145_v19 = vadd.f32 %v19205_v43, %v22668_v37  ;;  %v8397_v21 = vld [vmem:[#allocation3 + $0x187] sm:$0xff]  ;;  %v8398_v44 = vld [vmem:[#allocation3 + $0x18f] sm:$0xff] }
 0x585   :  { %8271 = vst [vmem:[#allocation3 + $0x1c8] sm:$0xff] %v8206_v38  ;;  %v8144_v46 = vadd.f32 %v19208_v45, %v22668_v37  ;;  %v17614_v47 = vpop.f32.mrb[30].mxu0  ;;  %17731 = vmatprep.mubr.f32.mxu1 %v8397_v21 }
 0x586   :  { %v8209_v48 = vmax.f32 %v8145_v19, 0.0  ;;  %v19211_v13 = vadd.f32 %v22670_v15, %v17614_v47  ;;  %v7748_v49 = vpop.f32.mrb[31].mxu0  ;;  %17732 = vmatmul.mubr.f32.gmra.mrb[18].mxu1 %v8398_v44 }
 0x587   :  { %v8208_v51 = vmax.f32 %v8144_v46, 0.0  ;;  %v19214_v53 = vadd.f32 %v22670_v15, %v7748_v49 }
 0x588   :  { %8274 = vst [vmem:[#allocation3 + $0x1f0] sm:$0xff] %v8209_v48  ;;  %v8147_v55 = vadd.f32 %v19211_v13, %v22668_v37  ;;  %v8399_v56 = vld [vmem:[#allocation3 + $0x1a7] sm:$0xff]  ;;  %v8400_v57 = vld [vmem:[#allocation3 + $0x1af] sm:$0xff] }
 0x589   :  { %8273 = vst [vmem:[#allocation3 + $0x1e8] sm:$0xff] %v8208_v51  ;;  %v8146_v59 = vadd.f32 %v19214_v53, %v22668_v37  ;;  %v17617_v61 = vpop.f32.mrb[32].mxu0  ;;  %17734 = vmatprep.mubr.f32.mxu1 %v8399_v56 }
 0x58a   :  { %v8211_v0 = vmax.f32 %v8147_v55, 0.0  ;;  %v19217_v1 = vadd.f32 %v22670_v15, %v17617_v61  ;;  %v7758_v2 = vpop.f32.mrb[33].mxu0  ;;  %17735 = vmatmul.mubr.f32.gmra.mrb[20].mxu1 %v8400_v57 }
 0x58b   :  { %v8210_v4 = vmax.f32 %v8146_v59, 0.0  ;;  %v19220_v7 = vadd.f32 %v22670_v15, %v7758_v2 }
 0x58c   :  { %8276 = vst [vmem:[#allocation3 + $0x210] sm:$0xff] %v8211_v0  ;;  %v8149_v8 = vadd.f32 %v19217_v1, %v22668_v37  ;;  %v8401_v12 = vld [vmem:[#allocation3 + $0x1c7] sm:$0xff]  ;;  %v8402_v34 = vld [vmem:[#allocation3 + $0x1cf] sm:$0xff] }
 0x58d   :  { %8275 = vst [vmem:[#allocation3 + $0x208] sm:$0xff] %v8210_v4  ;;  %v8148_v35 = vadd.f32 %v19220_v7, %v22668_v37  ;;  %v17620_v29 = vpop.f32.mrb[34].mxu0  ;;  %17737 = vmatprep.mubr.f32.mxu1 %v8401_v12 }
 0x58e   :  { %v8213_v30 = vmax.f32 %v8149_v8, 0.0  ;;  %v19223_v25 = vadd.f32 %v22670_v15, %v17620_v29  ;;  %v7768_v28 = vpop.f32.mrb[35].mxu0  ;;  %17738 = vmatmul.mubr.f32.gmra.mrb[22].mxu1 %v8402_v34 }
 0x58f   :  { %v8212_v31 = vmax.f32 %v8148_v35, 0.0  ;;  %v19226_v41 = vadd.f32 %v22670_v15, %v7768_v28 }
 0x590   :  { %8278 = vst [vmem:[#allocation3 + $0x270] sm:$0xff] %v8213_v30  ;;  %v8151_v50 = vadd.f32 %v19223_v25, %v22668_v37  ;;  %v8403_v52 = vld [vmem:[#allocation3 + $0x1e7] sm:$0xff]  ;;  %v8404_v10 = vld [vmem:[#allocation3 + $0x1ef] sm:$0xff] }
 0x591   :  { %8277 = vst [vmem:[#allocation3 + $0x268] sm:$0xff] %v8212_v31  ;;  %v22796_v60 = vadd.f32 %v19226_v41, %v22668_v37  ;;  %v17623_v62 = vpop.f32.mrb[36].mxu0  ;;  %17740 = vmatprep.mubr.f32.mxu1 %v8403_v52 }
 0x592   :  { %v8215_v63 = vmax.f32 %v8151_v50, 0.0  ;;  %v19229_v6 = vadd.f32 %v22670_v15, %v17623_v62  ;;  %v7778_v9 = vpop.f32.mrb[37].mxu0  ;;  %17741 = vmatmul.mubr.f32.gmra.mrb[24].mxu1 %v8404_v10 }
 0x593   :  { %v8214_v17 = vmax.f32 %v22796_v60, 0.0  ;;  %v19232_v3 = vadd.f32 %v22670_v15, %v7778_v9  ;;  %17743 = vmatprep.mubr.f32.mxu1 %v8405_v54 }
 0x594   :  { %8280 = vst [vmem:[#allocation3 + $0x290] sm:$0xff] %v8215_v63  ;;  %v22802_v18 = vadd.f32 %v19229_v6, %v22668_v37 }
 0x595   :  { %8279 = vst [vmem:[#allocation3 + $0x288] sm:$0xff] %v8214_v17  ;;  %v22807_v20 = vadd.f32 %v19232_v3, %v22668_v37  ;;  %v17626_v24 = vpop.f32.mrb[38].mxu0 }
 0x596   :  { %v8217_v26 = vmax.f32 %v22802_v18, 0.0  ;;  %v19235_v27 = vadd.f32 %v22670_v15, %v17626_v24  ;;  %v7788_v32 = vpop.f32.mrb[39].mxu0  ;;  %17744 = vmatmul.mubr.f32.gmra.mrb[26].mxu1 %v8406_v5 }
 0x597   :  { %v8216_v33 = vmax.f32 %v22807_v20, 0.0  ;;  %v19238_v11 = vadd.f32 %v22670_v15, %v7788_v32 }
 0x598   :  { %8282 = vst [vmem:[#allocation3 + $0x2b0] sm:$0xff] %v8217_v26  ;;  %v22816_v39 = vadd.f32 %v19235_v27, %v22668_v37  ;;  %v8407_v14 = vld [vmem:[#allocation3 + $0x267] sm:$0xff]  ;;  %v8408_v16 = vld [vmem:[#allocation3 + $0x26f] sm:$0xff] }
 0x599   :  { %8281 = vst [vmem:[#allocation3 + $0x2a8] sm:$0xff] %v8216_v33  ;;  %v22821_v58 = vadd.f32 %v19238_v11, %v22668_v37  ;;  %v17629_v36 = vpop.f32.mrb[40].mxu0  ;;  %17746 = vmatprep.mubr.f32.mxu1 %v8407_v14 }
 0x59a   :  { %v8219_v40 = vmax.f32 %v22816_v39, 0.0  ;;  %v19241_v42 = vadd.f32 %v22670_v15, %v17629_v36  ;;  %v7798_v43 = vpop.f32.mrb[41].mxu0  ;;  %17747 = vmatmul.mubr.f32.gmra.mrb[28].mxu1 %v8408_v16 }
 0x59b   :  { %v8218_v23 = vmax.f32 %v22821_v58, 0.0  ;;  %v19244_v38 = vadd.f32 %v22670_v15, %v7798_v43 }
 0x59c   :  { %8284 = vst [vmem:[#allocation3 + $0x2d0] sm:$0xff] %v8219_v40  ;;  %v22830_v45 = vadd.f32 %v19241_v42, %v22668_v37  ;;  %v8409_v19 = vld [vmem:[#allocation3 + $0x287] sm:$0xff]  ;;  %v8410_v21 = vld [vmem:[#allocation3 + $0x28f] sm:$0xff] }
 0x59d   :  { %8283 = vst [vmem:[#allocation3 + $0x2c8] sm:$0xff] %v8218_v23  ;;  %v22835_v44 = vadd.f32 %v19244_v38, %v22668_v37  ;;  %v17632_v46 = vpop.f32.mrb[42].mxu0  ;;  %17749 = vmatprep.mubr.f32.mxu1 %v8409_v19 }
 0x59e   :  { %v8221_v47 = vmax.f32 %v22830_v45, 0.0  ;;  %v19247_v48 = vadd.f32 %v22670_v15, %v17632_v46  ;;  %v7808_v13 = vpop.f32.mrb[43].mxu0  ;;  %17750 = vmatmul.mubr.f32.gmra.mrb[30].mxu1 %v8410_v21 }
 0x59f   :  { %v8220_v49 = vmax.f32 %v22835_v44, 0.0  ;;  %v19250_v51 = vadd.f32 %v22670_v15, %v7808_v13 }
 0x5a0   :  { %8286 = vst [vmem:[#allocation3 + $0x2f0] sm:$0xff] %v8221_v47  ;;  %v22844_v53 = vadd.f32 %v19247_v48, %v22668_v37  ;;  %v8411_v55 = vld [vmem:[#allocation3 + $0x2a7] sm:$0xff]  ;;  %v8412_v56 = vld [vmem:[#allocation3 + $0x2af] sm:$0xff] }
 0x5a1   :  { %8285 = vst [vmem:[#allocation3 + $0x2e8] sm:$0xff] %v8220_v49  ;;  %v22849_v57 = vadd.f32 %v19250_v51, %v22668_v37  ;;  %v17635_v59 = vpop.f32.mrb[44].mxu0  ;;  %17752 = vmatprep.mubr.f32.mxu1 %v8411_v55 }
 0x5a2   :  { %v8223_v61 = vmax.f32 %v22844_v53, 0.0  ;;  %v19253_v0 = vadd.f32 %v22670_v15, %v17635_v59  ;;  %v7818_v1 = vpop.f32.mrb[45].mxu0  ;;  %17753 = vmatmul.mubr.f32.gmra.mrb[32].mxu1 %v8412_v56  ;;  %v9688_v53 = vld [vmem:[#allocation3 + $0x9] sm:$0xff] }
 0x5a3   :  { %v8222_v2 = vmax.f32 %v22849_v57, 0.0  ;;  %v19256_v4 = vadd.f32 %v22670_v15, %v7818_v1  ;;  %v15381_v57 = vld [vmem:[%s24313_s3 + $0x190] sm:$0xff] }
 0x5a4   :  { %8288 = vst [vmem:[#allocation3 + $0x310] sm:$0xff] %v8223_v61  ;;  %v22858_v7 = vadd.f32 %v19253_v0, %v22668_v37  ;;  %v8413_v8 = vld [vmem:[#allocation3 + $0x2c7] sm:$0xff]  ;;  %v8414_v12 = vld [vmem:[#allocation3 + $0x2cf] sm:$0xff] }
 0x5a5   :  { %8287 = vst [vmem:[#allocation3 + $0x308] sm:$0xff] %v8222_v2  ;;  %v22863_v34 = vadd.f32 %v19256_v4, %v22668_v37  ;;  %v17638_v35 = vpop.f32.mrb[46].mxu0  ;;  %17755 = vmatprep.mubr.f32.mxu1 %v8413_v8 }
 0x5a6   :  { %v8225_v29 = vmax.f32 %v22858_v7, 0.0  ;;  %v19259_v30 = vadd.f32 %v22670_v15, %v17638_v35  ;;  %v7828_v25 = vpop.f32.mrb[47].mxu0  ;;  %17756 = vmatmul.mubr.f32.gmra.mrb[34].mxu1 %v8414_v12  ;;  %v9689_v7 = vld [vmem:[#allocation3 + $0x11] sm:$0xff] }
 0x5a7   :  { %v8224_v28 = vmax.f32 %v22863_v34, 0.0  ;;  %v19262_v31 = vadd.f32 %v22670_v15, %v7828_v25 }
 0x5a8   :  { %8290 = vst [vmem:[#allocation3 + $0x330] sm:$0xff] %v8225_v29  ;;  %v22872_v41 = vadd.f32 %v19259_v30, %v22668_v37  ;;  %v8415_v50 = vld [vmem:[#allocation3 + $0x2e7] sm:$0xff]  ;;  %v8416_v52 = vld [vmem:[#allocation3 + $0x2ef] sm:$0xff] }
 0x5a9   :  { %8289 = vst [vmem:[#allocation3 + $0x328] sm:$0xff] %v8224_v28  ;;  %v22877_v10 = vadd.f32 %v19262_v31, %v22668_v37  ;;  %v17641_v54 = vpop.f32.mrb[48].mxu0  ;;  %17758 = vmatprep.mubr.f32.mxu1 %v8415_v50 }
 0x5aa   :  { %v8227_v62 = vmax.f32 %v22872_v41, 0.0  ;;  %v19265_v63 = vadd.f32 %v22670_v15, %v17641_v54  ;;  %v7838_v6 = vpop.f32.mrb[49].mxu0  ;;  %17759 = vmatmul.mubr.f32.gmra.mrb[36].mxu1 %v8416_v52  ;;  %v23109_v41 = vld [vmem:[#allocation3 + $0x29] sm:$0xff] }
 0x5ab   :  { %v8226_v9 = vmax.f32 %v22877_v10, 0.0  ;;  %v19268_v3 = vadd.f32 %v22670_v15, %v7838_v6 }
 0x5ac   :  { %8292 = vst [vmem:[#allocation3 + $0x350] sm:$0xff] %v8227_v62  ;;  %v22886_v5 = vadd.f32 %v19265_v63, %v22668_v37  ;;  %v8417_v24 = vld [vmem:[#allocation3 + $0x307] sm:$0xff]  ;;  %v8418_v27 = vld [vmem:[#allocation3 + $0x30f] sm:$0xff] }
 0x5ad   :  { %8291 = vst [vmem:[#allocation3 + $0x348] sm:$0xff] %v8226_v9  ;;  %v22891_v32 = vadd.f32 %v19268_v3, %v22668_v37  ;;  %v17644_v11 = vpop.f32.mrb[50].mxu0  ;;  %17761 = vmatprep.mubr.f32.mxu1 %v8417_v24 }
 0x5ae   :  { %v8229_v14 = vmax.f32 %v22886_v5, 0.0  ;;  %v19271_v16 = vadd.f32 %v22670_v15, %v17644_v11  ;;  %v7848_v36 = vpop.f32.mrb[51].mxu0  ;;  %17762 = vmatmul.mubr.f32.gmra.mrb[38].mxu1 %v8418_v27  ;;  %v15386_v5 = vld [vmem:[%s24313_s3 + $0x1b8] sm:$0xff] }
 0x5af   :  { %v8228_v42 = vmax.f32 %v22891_v32, 0.0  ;;  %v19274_v43 = vadd.f32 %v22670_v15, %v7848_v36  ;;  %v23122_v32 = vld [vmem:[#allocation3 + $0x49] sm:$0xff] }
 0x5b0   :  { %8294 = vst [vmem:[#allocation3 + $0x370] sm:$0xff] %v8229_v14  ;;  %v22900_v38 = vadd.f32 %v19271_v16, %v22668_v37  ;;  %v8419_v19 = vld [vmem:[#allocation3 + $0x327] sm:$0xff]  ;;  %v8420_v21 = vld [vmem:[#allocation3 + $0x32f] sm:$0xff] }
 0x5b1   :  { %8293 = vst [vmem:[#allocation3 + $0x368] sm:$0xff] %v8228_v42  ;;  %v22905_v46 = vadd.f32 %v19274_v43, %v22668_v37  ;;  %v17647_v48 = vpop.f32.mrb[52].mxu0  ;;  %17764 = vmatprep.mubr.f32.mxu1 %v8419_v19 }
 0x5b2   :  { %v8231_v13 = vmax.f32 %v22900_v38, 0.0  ;;  %v19277_v51 = vadd.f32 %v22670_v15, %v17647_v48  ;;  %v7858_v55 = vpop.f32.mrb[53].mxu0  ;;  %17765 = vmatmul.mubr.f32.gmra.mrb[40].mxu1 %v8420_v21  ;;  %v15387_v38 = vld [vmem:[%s24313_s3 + $0x1c0] sm:$0xff] }
 0x5b3   :  { %v8230_v56 = vmax.f32 %v22905_v46, 0.0  ;;  %v19280_v59 = vadd.f32 %v22670_v15, %v7858_v55  ;;  %v15388_v46 = vld [vmem:[%s24313_s3 + $0x1c8] sm:$0xff] }
 0x5b4   :  { %8296 = vst [vmem:[#allocation3 + $0x390] sm:$0xff] %v8231_v13  ;;  %v22914_v0 = vadd.f32 %v19277_v51, %v22668_v37  ;;  %v8421_v1 = vld [vmem:[#allocation3 + $0x347] sm:$0xff]  ;;  %v8422_v4 = vld [vmem:[#allocation3 + $0x34f] sm:$0xff] }
 0x5b5   :  { %8295 = vst [vmem:[#allocation3 + $0x388] sm:$0xff] %v8230_v56  ;;  %v22919_v8 = vadd.f32 %v19280_v59, %v22668_v37  ;;  %v17650_v12 = vpop.f32.mrb[54].mxu0  ;;  %17767 = vmatprep.mubr.f32.mxu1 %v8421_v1 }
 0x5b6   :  { %v8233_v35 = vmax.f32 %v22914_v0, 0.0  ;;  %v19283_v30 = vadd.f32 %v22670_v15, %v17650_v12  ;;  %v7868_v25 = vpop.f32.mrb[55].mxu0  ;;  %17768 = vmatmul.mubr.f32.gmra.mrb[42].mxu1 %v8422_v4  ;;  %v23137_v0 = vld [vmem:[#allocation3 + $0x71] sm:$0xff] }
 0x5b7   :  { %v8232_v31 = vmax.f32 %v22919_v8, 0.0  ;;  %v19286_v50 = vadd.f32 %v22670_v15, %v7868_v25  ;;  %v15389_v8 = vld [vmem:[%s24313_s3 + $0x1d0] sm:$0xff] }
 0x5b8   :  { %8298 = vst [vmem:[#allocation3 + $0x3b0] sm:$0xff] %v8233_v35  ;;  %v22928_v52 = vadd.f32 %v19283_v30, %v22668_v37  ;;  %v8423_v54 = vld [vmem:[#allocation3 + $0x367] sm:$0xff]  ;;  %v8424_v63 = vld [vmem:[#allocation3 + $0x36f] sm:$0xff] }
 0x5b9   :  { %8297 = vst [vmem:[#allocation3 + $0x3a8] sm:$0xff] %v8232_v31  ;;  %v22933_v6 = vadd.f32 %v19286_v50, %v22668_v37  ;;  %v17653_v3 = vpop.f32.mrb[56].mxu0  ;;  %17770 = vmatprep.mubr.f32.mxu1 %v8423_v54 }
 0x5ba   :  { %v24439_v24 = vmax.f32 %v22928_v52, 0.0  ;;  %v19289_v27 = vadd.f32 %v22670_v15, %v17653_v3  ;;  %v7878_v11 = vpop.f32.mrb[57].mxu0  ;;  %17771 = vmatmul.mubr.f32.gmra.mrb[44].mxu1 %v8424_v63 }
 0x5bb   :  { %v8234_v16 = vmax.f32 %v22933_v6, 0.0  ;;  %v19292_v36 = vadd.f32 %v22670_v15, %v7878_v11  ;;  %v23149_v6 = vld [vmem:[#allocation3 + $0x91] sm:$0xff] }
 0x5bc   :  { %8300 = vst [vmem:[#allocation3 + $0x3d0] sm:$0xff] %v24439_v24  ;;  %v22942_v43 = vadd.f32 %v19289_v27, %v22668_v37  ;;  %v8425_v19 = vld [vmem:[#allocation3 + $0x387] sm:$0xff]  ;;  %v8426_v21 = vld [vmem:[#allocation3 + $0x38f] sm:$0xff] }
 0x5bd   :  { %8299 = vst [vmem:[#allocation3 + $0x3c8] sm:$0xff] %v8234_v16  ;;  %v22947_v48 = vadd.f32 %v19292_v36, %v22668_v37  ;;  %v17656_v51 = vpop.f32.mrb[58].mxu0  ;;  %17773 = vmatprep.mubr.f32.mxu1 %v8425_v19 }
 0x5be   :  { %v24437_v55 = vmax.f32 %v22942_v43, 0.0  ;;  %v19295_v59 = vadd.f32 %v22670_v15, %v17656_v51  ;;  %v7888_v1 = vpop.f32.mrb[59].mxu0  ;;  %17774 = vmatmul.mubr.f32.gmra.mrb[46].mxu1 %v8426_v21  ;;  %v24803_v45 = vmax.f32 %v22942_v43, 0.0  ;;  %v15392_v43 = vld [vmem:[%s24313_s3 + $0x1e8] sm:$0xff] }
 0x5bf   :  { %v24438_v4 = vmax.f32 %v22947_v48, 0.0  ;;  %v19298_v12 = vadd.f32 %v22670_v15, %v7888_v1 }
 0x5c0   :  { %8302 = vst [vmem:[#allocation3 + $0x3f0] sm:$0xff] %v24437_v55  ;;  %v22956_v30 = vadd.f32 %v19295_v59, %v22668_v37  ;;  %v8427_v25 = vld [vmem:[#allocation3 + $0x3a7] sm:$0xff]  ;;  %v8428_v50 = vld [vmem:[#allocation3 + $0x3af] sm:$0xff] }
 0x5c1   :  { %8301 = vst [vmem:[#allocation3 + $0x3e8] sm:$0xff] %v24438_v4  ;;  %v22961_v54 = vadd.f32 %v19298_v12, %v22668_v37  ;;  %v17659_v63 = vpop.f32.mrb[60].mxu0  ;;  %17776 = vmatprep.mubr.f32.mxu1 %v8427_v25 }
 0x5c2   :  { %v24435_v3 = vmax.f32 %v22956_v30, 0.0  ;;  %v19301_v27 = vadd.f32 %v22670_v15, %v17659_v63  ;;  %v7898_v11 = vpop.f32.mrb[61].mxu0  ;;  %17777 = vmatmul.mubr.f32.gmra.mrb[48].mxu1 %v8428_v50 }
 0x5c3   :  { %v24436_v36 = vmax.f32 %v22961_v54, 0.0  ;;  %v19304_v19 = vadd.f32 %v22670_v15, %v7898_v11  ;;  %v24804_v44 = vmax.f32 %v22961_v54, 0.0  ;;  %v23161_v54 = vld [vmem:[#allocation3 + $0xb1] sm:$0xff] }
 0x5c4   :  { %8304 = vst [vmem:[#allocation3 + $0x410] sm:$0xff] %v24435_v3  ;;  %v22970_v21 = vadd.f32 %v19301_v27, %v22668_v37  ;;  %v8429_v51 = vld [vmem:[#allocation3 + $0x3c7] sm:$0xff]  ;;  %v8430_v59 = vld [vmem:[#allocation3 + $0x3cf] sm:$0xff] }
 0x5c5   :  { %8303 = vst [vmem:[#allocation3 + $0x408] sm:$0xff] %v24436_v36  ;;  %v22975_v1 = vadd.f32 %v19304_v19, %v22668_v37  ;;  %v17662_v12 = vpop.f32.mrb[62].mxu0  ;;  %17779 = vmatprep.mubr.f32.mxu1 %v8429_v51 }
 0x5c6   :  { %v24440_v25 = vmax.f32 %v22970_v21, 0.0  ;;  %v19307_v50 = vadd.f32 %v22670_v15, %v17662_v12  ;;  %v7908_v63 = vpop.f32.mrb[63].mxu0  ;;  %17780 = vmatmul.mubr.f32.gmra.mrb[50].mxu1 %v8430_v59 }
 0x5c7   :  { %v24441_v11 = vmax.f32 %v22975_v1, 0.0  ;;  %v19310_v27 = vadd.f32 %v22670_v15, %v7908_v63 }
 0x5c8   :  { %8306 = vst [vmem:[#allocation3 + $0x430] sm:$0xff] %v24440_v25  ;;  %v8179_v3 = vadd.f32 %v19307_v50, %v22668_v37  ;;  %v8431_v36 = vld [vmem:[#allocation3 + $0x3e7] sm:$0xff]  ;;  %v8432_v19 = vld [vmem:[#allocation3 + $0x3ef] sm:$0xff] }
 0x5c9   :  { %8305 = vst [vmem:[#allocation3 + $0x428] sm:$0xff] %v24441_v11  ;;  %v8178_v51 = vadd.f32 %v19310_v27, %v22668_v37  ;;  %17782 = vmatprep.mubr.f32.mxu1 %v8431_v36  ;;  %v17697_v12 = vpop.f32.mrb[64].mxu0  ;;  %v15366_v36 = vld [vmem:[%s24313_s3 + $0x118] sm:$0xff]  ;;  %v9033_v27 = vld [vmem:[#allocation3 + $0x30] sm:$0xff] }
 0x5ca   :  { %v8243_v55 = vmax.f32 %v8179_v3, 0.0  ;;  %17783 = vmatmul.mubr.f32.gmra.mrb[52].mxu1 %v8432_v19  ;;  %v8903_v59 = vadd.f32 %v22670_v15, %v17697_v12  ;;  %v8583_v4 = vpop.f32.mrb[65].mxu0  ;;  %v15365_v3 = vld [vmem:[%s24313_s3 + $0x110] sm:$0xff]  ;;  %v9034_v12 = vld [vmem:[#allocation3 + $0x48] sm:$0xff] }
 0x5cb   :  { %v8242_v63 = vmax.f32 %v8178_v51, 0.0  ;;  %v8902_v24 = vadd.f32 %v22670_v15, %v8583_v4  ;;  %v15368_v4 = vld [vmem:[%s24313_s3 + $0x128] sm:$0xff]  ;;  %v15369_v19 = vld [vmem:[%s24313_s3 + $0x130] sm:$0xff]  ;;  %v15370_v51 = vld [vmem:[%s24313_s3 + $0x138] sm:$0xff] }
 0x5cc   :  { %8308 = vst [vmem:[#allocation3 + $0x450] sm:$0xff] %v8243_v55  ;;  %v8433_v25 = vld [vmem:[#allocation3 + $0x407] sm:$0xff]  ;;  %v8434_v50 = vld [vmem:[#allocation3 + $0x40f] sm:$0xff]  ;;  %19312 = vst [vmem:[#allocation4 + $0x8] sm:$0xff] %v8903_v59  ;;  %v18883_v55 = vpack.c.bf16 %v15366_v36, %v15365_v3 }
 0x5cd   :  { %8307 = vst [vmem:[#allocation3 + $0x448] sm:$0xff] %v8242_v63  ;;  %17785 = vmatprep.mubr.f32.mxu1 %v8433_v25  ;;  %19316 = vst [vmem:[#allocation4] sm:$0xff] %v8902_v24  ;;  %v15367_v24 = vld [vmem:[%s24313_s3 + $0x120] sm:$0xff]  ;;  %v9032_v25 = vld [vmem:[#allocation3 + $0x28] sm:$0xff] }
 0x5ce   :  { %17786 = vmatmul.mubr.f32.gmra.mrb[54].mxu1 %v8434_v50  ;;  %v9035_v59 = vld [vmem:[#allocation3 + $0x50] sm:$0xff]  ;;  %v15372_v63 = vld [vmem:[%s24313_s3 + $0x148] sm:$0xff] }
 0x5cf   :  { %v9036_v50 = vld [vmem:[#allocation3 + $0x68] sm:$0xff]  ;;  %v9037_v3 = vld [vmem:[#allocation3 + $0x70] sm:$0xff] }
 0x5d0   :  { %v8435_v11 = vld [vmem:[#allocation3 + $0x427] sm:$0xff]  ;;  %v8436_v37 = vld [vmem:[#allocation3 + $0x42f] sm:$0xff] }
 0x5d1   :  { %17788 = vmatprep.mubr.f32.mxu1 %v8435_v11  ;;  %v18887_v11 = vpack.c.bf16 %v15368_v4, %v15367_v24  ;;  %v15373_v36 = vld [vmem:[%s24313_s3 + $0x150] sm:$0xff]  ;;  %v9038_v24 = vld [vmem:[#allocation3 + $0x88] sm:$0xff] }
 0x5d2   :  { %17789 = vmatmul.mubr.f32.gmra.mrb[56].mxu1 %v8436_v37 }
 0x5d3   :  { %17823 = vmatprep.mubr.f32.mxu1 %v22670_v15 }
 0x5d6   :  { %17824 = vmatmul.mubr.f32.vlgmr.msra.gmra.mrb[58].mxu1 %v22670_v15  ;;  %v18891_v15 = vpack.c.bf16 %v15370_v51, %v15369_v19  ;;  %v9040_v19 = vld [vmem:[#allocation3 + $0xa8] sm:$0xff] }
 0x5d7   :  { %18882 = vmatpush3.bf16.msra.mxu1 %v22772_v22  ;;  %17826 = vmatprep.mubr.f32.mxu1 %v9032_v25  ;;  %v15371_v22 = vld [vmem:[%s24313_s3 + $0x140] sm:$0xff]  ;;  %v9039_v25 = vld [vmem:[#allocation3 + $0x90] sm:$0xff] }
 0x5d8   :  { %18884 = vmatprep.subr.bf16.mxu1 %v18883_v55  ;;  %v18895_v37 = vpack.c.bf16 %v15372_v63, %v15371_v22  ;;  %v9042_v22 = vld [vmem:[#allocation3 + $0xc8] sm:$0xff] }
 0x5da   :  { %17827 = vmatmul.mubr.f32.gmra.mrb[60].mxu1 %v9033_v27  ;;  %v15376_v27 = vld [vmem:[%s24313_s3 + $0x168] sm:$0xff] }
 0x5db   :  { %17829 = vmatprep.mubr.f32.mxu1 %v9034_v12  ;;  %18886 = vmatpush3.bf16.msra.mxu1 %v18883_v55  ;;  %v15374_v55 = vld [vmem:[%s24313_s3 + $0x158] sm:$0xff]  ;;  %v9041_v12 = vld [vmem:[#allocation3 + $0xb0] sm:$0xff] }
 0x5dc   :  { %18888 = vmatprep.subr.bf16.mxu1 %v18887_v11  ;;  %v18899_v4 = vpack.c.bf16 %v15374_v55, %v15373_v36  ;;  %v9044_v36 = vld [vmem:[#allocation3 + $0xe8] sm:$0xff] }
 0x5de   :  { %17830 = vmatmul.mubr.f32.gmra.mrb[62].mxu1 %v9035_v59  ;;  %v15378_v59 = vld [vmem:[%s24313_s3 + $0x178] sm:$0xff] }
 0x5df   :  { %17832 = vmatprep.mubr.f32.mxu1 %v9036_v50  ;;  %18890 = vmatpush3.bf16.msra.mxu1 %v18887_v11  ;;  %v15375_v11 = vld [vmem:[%s24313_s3 + $0x160] sm:$0xff]  ;;  %v9043_v50 = vld [vmem:[#allocation3 + $0xd0] sm:$0xff] }
 0x5e0   :  { %18892 = vmatprep.subr.bf16.mxu1 %v18891_v15  ;;  %v18903_v51 = vpack.c.bf16 %v15376_v27, %v15375_v11  ;;  %v9048_v11 = vld [vmem:[#allocation3 + $0x128] sm:$0xff]  ;;  %v9049_v27 = vld [vmem:[#allocation3 + $0x130] sm:$0xff] }
 0x5e2   :  { %17833 = vmatmul.mubr.f32.gmra.mrb[0].mxu1 %v9037_v3  ;;  %v15380_v3 = vld [vmem:[%s24313_s3 + $0x188] sm:$0xff] }
 0x5e3   :  { %17835 = vmatprep.mubr.f32.mxu1 %v9038_v24  ;;  %18894 = vmatpush3.bf16.msra.mxu1 %v18891_v15  ;;  %v15377_v15 = vld [vmem:[%s24313_s3 + $0x170] sm:$0xff] }
 0x5e4   :  { %18896 = vmatprep.subr.bf16.mxu1 %v18895_v37  ;;  %v18907_v63 = vpack.c.bf16 %v15378_v59, %v15377_v15  ;;  %v9045_v24 = vld [vmem:[#allocation3 + $0xf0] sm:$0xff]  ;;  %v9054_v59 = vld [vmem:[#allocation3 + $0x188] sm:$0xff] }
 0x5e5   :  { %v9053_v15 = vld [vmem:[#allocation3 + $0x170] sm:$0xff] }
 0x5e6   :  { %17836 = vmatmul.mubr.f32.gmra.mrb[2].mxu1 %v9039_v25  ;;  %v9047_v25 = vld [vmem:[#allocation3 + $0x110] sm:$0xff] }
 0x5e7   :  { %17838 = vmatprep.mubr.f32.mxu1 %v9040_v19  ;;  %18898 = vmatpush3.bf16.msra.mxu1 %v18895_v37  ;;  %v15379_v37 = vld [vmem:[%s24313_s3 + $0x180] sm:$0xff]  ;;  %v9050_v19 = vld [vmem:[#allocation3 + $0x148] sm:$0xff] }
 0x5e8   :  { %18900 = vmatprep.subr.bf16.mxu1 %v18899_v4  ;;  %v23040_v55 = vpack.c.bf16 %v15380_v3, %v15379_v37  ;;  %v9058_v37 = vld [vmem:[#allocation3 + $0x1c8] sm:$0xff]  ;;  %v9059_v3 = vld [vmem:[#allocation3 + $0x1d0] sm:$0xff] }
 0x5ea   :  { %17839 = vmatmul.mubr.f32.gmra.mrb[4].mxu1 %v9041_v12  ;;  %v9051_v12 = vld [vmem:[#allocation3 + $0x150] sm:$0xff] }
 0x5eb   :  { %17841 = vmatprep.mubr.f32.mxu1 %v9042_v22  ;;  %18902 = vmatpush3.bf16.msra.mxu1 %v18899_v4  ;;  %v9046_v4 = vld [vmem:[#allocation3 + $0x108] sm:$0xff]  ;;  %v9055_v22 = vld [vmem:[#allocation3 + $0x190] sm:$0xff] }
 0x5ec   :  { %18904 = vmatprep.subr.bf16.mxu1 %v18903_v51 }
 0x5ee   :  { %17842 = vmatmul.mubr.f32.gmra.mrb[6].mxu1 %v9043_v50  ;;  %v9057_v50 = vld [vmem:[#allocation3 + $0x1b0] sm:$0xff] }
 0x5ef   :  { %17844 = vmatprep.mubr.f32.mxu1 %v9044_v36  ;;  %18906 = vmatpush3.bf16.msra.mxu1 %v18903_v51  ;;  %v9052_v51 = vld [vmem:[#allocation3 + $0x168] sm:$0xff] }
 0x5f0   :  { %18908 = vmatprep.subr.bf16.mxu1 %v18907_v63  ;;  %v9060_v36 = vld [vmem:[#allocation3 + $0x1e8] sm:$0xff] }
 0x5f2   :  { %17845 = vmatmul.mubr.f32.gmra.mrb[8].mxu1 %v9045_v24  ;;  %v9061_v24 = vld [vmem:[#allocation3 + $0x1f0] sm:$0xff] }
 0x5f3   :  { %17847 = vmatprep.mubr.f32.mxu1 %v9046_v4  ;;  %18910 = vmatpush3.bf16.msra.mxu1 %v18907_v63  ;;  %v9056_v63 = vld [vmem:[#allocation3 + $0x1a8] sm:$0xff]  ;;  %v20529_v4 = vld [vmem:[#allocation3] sm:$0xff] }
 0x5f4   :  { %18912 = vmatprep.subr.bf16.mxu1 %v23040_v55 }
 0x5f6   :  { %17848 = vmatmul.mubr.f32.gmra.mrb[10].mxu1 %v9047_v25  ;;  %v9064_v25 = vld [vmem:[#allocation3 + $0x268] sm:$0xff] }
 0x5f7   :  { %17850 = vmatprep.mubr.f32.mxu1 %v9048_v11  ;;  %v9065_v11 = vld [vmem:[#allocation3 + $0x270] sm:$0xff] }
 0x5fa   :  { %17851 = vmatmul.mubr.f32.gmra.mrb[12].mxu1 %v9049_v27  ;;  %v9067_v27 = vld [vmem:[#allocation3 + $0x290] sm:$0xff] }
 0x5fb   :  { %17853 = vmatprep.mubr.f32.mxu1 %v9050_v19 }
 0x5fe   :  { %17854 = vmatmul.mubr.f32.gmra.mrb[14].mxu1 %v9051_v12  ;;  %v23173_v12 = vld [vmem:[#allocation3 + $0xd1] sm:$0xff] }
 0x5ff   :  { %17856 = vmatprep.mubr.f32.mxu1 %v9052_v51  ;;  %v15395_v51 = vld [vmem:[%s24313_s3 + $0x200] sm:$0xff] }
 0x602   :  { %17857 = vmatmul.mubr.f32.gmra.mrb[16].mxu1 %v9053_v15  ;;  %v15396_v15 = vld [vmem:[%s24313_s3 + $0x208] sm:$0xff] }
 0x603   :  { %17859 = vmatprep.mubr.f32.mxu1 %v9054_v59  ;;  %v23182_v59 = vld [vmem:[#allocation3 + $0xe9] sm:$0xff] }
 0x606   :  { %17860 = vmatmul.mubr.f32.gmra.mrb[18].mxu1 %v9055_v22  ;;  %v23185_v22 = vpack.c.bf16 %v15396_v15, %v15395_v51  ;;  %v23326_v51 = vld [vmem:[#allocation3 + $0x431] sm:$0xff] }
 0x607   :  { %17862 = vmatprep.mubr.f32.mxu1 %v9056_v63  ;;  %v23187_v63 = vld [vmem:[#allocation3 + $0xf1] sm:$0xff]  ;;  %24813 = vst [vmem:[#allocation10_spill] sm:$0xff] %v23326_v51 }
 0x608   :  { %v15397_v15 = vld [vmem:[%s24313_s3 + $0x210] sm:$0xff] }
 0x60a   :  { %17863 = vmatmul.mubr.f32.gmra.mrb[20].mxu1 %v9057_v50  ;;  %v23190_v50 = vld [vmem:[#allocation3 + $0x109] sm:$0xff] }
 0x60b   :  { %17865 = vmatprep.mubr.f32.mxu1 %v9058_v37  ;;  %v23194_v37 = vld [vmem:[#allocation3 + $0x111] sm:$0xff] }
 0x60e   :  { %17866 = vmatmul.mubr.f32.gmra.mrb[22].mxu1 %v9059_v3  ;;  %v23197_v3 = vld [vmem:[#allocation3 + $0x129] sm:$0xff] }
 0x60f   :  { %17868 = vmatprep.mubr.f32.mxu1 %v9060_v36  ;;  %v23200_v36 = vld [vmem:[#allocation3 + $0x131] sm:$0xff] }
 0x612   :  { %17869 = vmatmul.mubr.f32.gmra.mrb[24].mxu1 %v9061_v24  ;;  %v23203_v24 = vld [vmem:[#allocation3 + $0x149] sm:$0xff] }
 0x613   :  { %17871 = vmatprep.mubr.f32.mxu1 %v20529_v4 }
 0x616   :  { %17872 = vmatmul.mubr.f32.gmra.mrb[26].mxu1 %v20529_v4 }
 0x617   :  { %17874 = vmatprep.mubr.f32.mxu1 %v9064_v25  ;;  %v23209_v25 = vld [vmem:[#allocation3 + $0x169] sm:$0xff] }
 0x61a   :  { %17875 = vmatmul.mubr.f32.gmra.mrb[28].mxu1 %v9065_v11  ;;  %v23212_v11 = vld [vmem:[#allocation3 + $0x171] sm:$0xff] }
 0x61b   :  { %17877 = vmatprep.mubr.f32.mxu1 %v8214_v17 }
 0x61e   :  { %17878 = vmatmul.mubr.f32.gmra.mrb[30].mxu1 %v9067_v27  ;;  %v23215_v27 = vld [vmem:[#allocation3 + $0x189] sm:$0xff] }
 0x61f   :  { %17880 = vmatprep.mubr.f32.mxu1 %v8216_v33 }
 0x622   :  { %17881 = vmatmul.mubr.f32.gmra.mrb[32].mxu1 %v8217_v26 }
 0x623   :  { %17883 = vmatprep.mubr.f32.mxu1 %v8218_v23  ;;  %v24802_v23 = vmax.f32 %v22947_v48, 0.0  ;;  %v23158_v48 = vld [vmem:[#allocation3 + $0xa9] sm:$0xff] }
 0x626   :  { %17884 = vmatmul.mubr.f32.gmra.mrb[34].mxu1 %v8219_v40  ;;  %v24801_v40 = vmax.f32 %v22928_v52, 0.0 }
 0x627   :  { %17886 = vmatprep.mubr.f32.mxu1 %v8220_v49  ;;  %v24806_v49 = vmax.f32 %v22975_v1, 0.0  ;;  %v15394_v1 = vld [vmem:[%s24313_s3 + $0x1f8] sm:$0xff] }
 0x62a   :  { %17887 = vmatmul.mubr.f32.gmra.mrb[36].mxu1 %v8221_v47  ;;  %v24805_v47 = vmax.f32 %v22956_v30, 0.0 }
 0x62b   :  { %17889 = vmatprep.mubr.f32.mxu1 %v8222_v2  ;;  %v24807_v2 = vmax.f32 %v22970_v21, 0.0  ;;  %v15393_v21 = vld [vmem:[%s24313_s3 + $0x1f0] sm:$0xff] }
 0x62c   :  { %v18939_v19 = vpack.c.bf16 %v15394_v1, %v15393_v21  ;;  %v23317_v21 = vld [vmem:[#allocation3 + $0x409] sm:$0xff]  ;;  %v23320_v1 = vld [vmem:[#allocation3 + $0x411] sm:$0xff] }
 0x62d   :  { %v17700_v60 = vpop.f32.mrb[66].mxu0  ;;  %24810 = vst [vmem:[#allocation7_spill] sm:$0xff] %v23317_v21  ;;  %24811 = vst [vmem:[#allocation8_spill] sm:$0xff] %v23320_v1 }
 0x62e   :  { %v8905_v17 = vadd.f32 %v20529_v4, %v17700_v60  ;;  %v8593_v20 = vpop.f32.mrb[67].mxu0  ;;  %17890 = vmatmul.mubr.f32.gmra.mrb[38].mxu1 %v8223_v61  ;;  %v15382_v61 = vld [vmem:[%s24313_s3 + $0x198] sm:$0xff] }
 0x62f   :  { %v8904_v18 = vadd.f32 %v20529_v4, %v8593_v20  ;;  %17892 = vmatprep.mubr.f32.mxu1 %v8224_v28  ;;  %v18915_v34 = vpack.c.bf16 %v15382_v61, %v15381_v57  ;;  %v15384_v28 = vld [vmem:[%s24313_s3 + $0x1a8] sm:$0xff]  ;;  %v23218_v60 = vld [vmem:[#allocation3 + $0x191] sm:$0xff] }
 0x630   :  { %19320 = vst [vmem:[#allocation4 + $0x18] sm:$0xff] %v8905_v17  ;;  %v23221_v17 = vld [vmem:[#allocation3 + $0x1a9] sm:$0xff]  ;;  %v23224_v20 = vld [vmem:[#allocation3 + $0x1b1] sm:$0xff] }
 0x631   :  { %19324 = vst [vmem:[#allocation4 + $0x10] sm:$0xff] %v8904_v18  ;;  %v17703_v26 = vpop.f32.mrb[68].mxu0  ;;  %v23227_v18 = vld [vmem:[#allocation3 + $0x1c9] sm:$0xff]  ;;  %v23260_v61 = vld [vmem:[#allocation3 + $0x2d1] sm:$0xff] }
 0x632   :  { %v8907_v33 = vadd.f32 %v20529_v4, %v17703_v26  ;;  %v8603_v39 = vpop.f32.mrb[69].mxu0  ;;  %17893 = vmatmul.mubr.f32.gmra.mrb[40].mxu1 %v8225_v29  ;;  %v15383_v29 = vld [vmem:[%s24313_s3 + $0x1a0] sm:$0xff]  ;;  %v23230_v26 = vld [vmem:[#allocation3 + $0x1d1] sm:$0xff]  ;;  %v23257_v57 = vld [vmem:[#allocation3 + $0x2c9] sm:$0xff] }
 0x633   :  { %v8906_v58 = vadd.f32 %v20529_v4, %v8603_v39  ;;  %17895 = vmatprep.mubr.f32.mxu1 %v8226_v9  ;;  %v18919_v10 = vpack.c.bf16 %v15384_v28, %v15383_v29  ;;  %v15385_v9 = vld [vmem:[%s24313_s3 + $0x1b0] sm:$0xff] }
 0x634   :  { %19328 = vst [vmem:[#allocation4 + $0x28] sm:$0xff] %v8907_v33  ;;  %v23206_v4 = vld [vmem:[#allocation3 + $0x151] sm:$0xff]  ;;  %v23233_v33 = vld [vmem:[#allocation3 + $0x1e9] sm:$0xff] }
 0x635   :  { %19332 = vst [vmem:[#allocation4 + $0x20] sm:$0xff] %v8906_v58  ;;  %v9720_v39 = vld [vmem:[#allocation3 + $0x249] sm:$0xff]  ;;  %v23236_v58 = vld [vmem:[#allocation3 + $0x1f1] sm:$0xff] }
 0x636   :  { %17896 = vmatmul.mubr.f32.gmra.mrb[42].mxu1 %v8227_v62  ;;  %v23113_v62 = vld [vmem:[#allocation3 + $0x31] sm:$0xff]  ;;  %v23275_v28 = vld [vmem:[#allocation3 + $0x329] sm:$0xff] }
 0x637   :  { %17898 = vmatprep.mubr.f32.mxu1 %v8228_v42  ;;  %v23125_v42 = vld [vmem:[#allocation3 + $0x51] sm:$0xff] }
 0x638   :  { %v23272_v29 = vld [vmem:[#allocation3 + $0x311] sm:$0xff] }
 0x63a   :  { %17899 = vmatmul.mubr.f32.gmra.mrb[44].mxu1 %v8229_v14  ;;  %v18923_v14 = vpack.c.bf16 %v15386_v5, %v15385_v9  ;;  %v23281_v9 = vld [vmem:[#allocation3 + $0x349] sm:$0xff]  ;;  %v23284_v5 = vld [vmem:[#allocation3 + $0x351] sm:$0xff] }
 0x63b   :  { %17901 = vmatprep.mubr.f32.mxu1 %v8230_v56  ;;  %v18927_v56 = vpack.c.bf16 %v15388_v46, %v15387_v38  ;;  %v23290_v38 = vld [vmem:[#allocation3 + $0x371] sm:$0xff]  ;;  %v23293_v46 = vld [vmem:[#allocation3 + $0x389] sm:$0xff] }
 0x63e   :  { %17902 = vmatmul.mubr.f32.gmra.mrb[46].mxu1 %v8231_v13  ;;  %v23134_v13 = vld [vmem:[#allocation3 + $0x69] sm:$0xff] }
 0x63f   :  { %17904 = vmatprep.mubr.f32.mxu1 %v8232_v31  ;;  %v23146_v31 = vld [vmem:[#allocation3 + $0x89] sm:$0xff] }
 0x642   :  { %17905 = vmatmul.mubr.f32.gmra.mrb[48].mxu1 %v8233_v35  ;;  %v15390_v35 = vld [vmem:[%s24313_s3 + $0x1d8] sm:$0xff] }
 0x643   :  { %17907 = vmatprep.mubr.f32.mxu1 %v8234_v16  ;;  %v18931_v52 = vpack.c.bf16 %v15390_v35, %v15389_v8  ;;  %v15391_v16 = vld [vmem:[%s24313_s3 + $0x1e0] sm:$0xff]  ;;  %v23299_v8 = vld [vmem:[#allocation3 + $0x3a9] sm:$0xff]  ;;  %v23302_v35 = vld [vmem:[#allocation3 + $0x3b1] sm:$0xff] }
 0x644   :  { %v18935_v30 = vpack.c.bf16 %v15392_v43, %v15391_v16  ;;  %v23308_v16 = vld [vmem:[#allocation3 + $0x3d1] sm:$0xff]  ;;  %v23311_v43 = vld [vmem:[#allocation3 + $0x3e9] sm:$0xff] }
 0x645   :  { %24808 = vst [vmem:[#allocation5_spill] sm:$0xff] %v23311_v43 }
 0x646   :  { %17908 = vmatmul.mubr.f32.gmra.mrb[50].mxu1 %v24801_v40  ;;  %v9721_v40 = vld [vmem:[#allocation3 + $0x251] sm:$0xff] }
 0x647   :  { %17910 = vmatprep.mubr.f32.mxu1 %v24802_v23  ;;  %v23239_v23 = vld [vmem:[#allocation3 + $0x269] sm:$0xff] }
 0x64a   :  { %17911 = vmatmul.mubr.f32.gmra.mrb[52].mxu1 %v24803_v45  ;;  %v23242_v45 = vld [vmem:[#allocation3 + $0x271] sm:$0xff] }
 0x64b   :  { %17913 = vmatprep.mubr.f32.mxu1 %v24804_v44  ;;  %v23245_v44 = vld [vmem:[#allocation3 + $0x289] sm:$0xff] }
 0x64e   :  { %17914 = vmatmul.mubr.f32.gmra.mrb[54].mxu1 %v24805_v47  ;;  %v23248_v47 = vld [vmem:[#allocation3 + $0x291] sm:$0xff] }
 0x64f   :  { %17916 = vmatprep.mubr.f32.mxu1 %v24806_v49  ;;  %v23251_v49 = vld [vmem:[#allocation3 + $0x2a9] sm:$0xff] }
 0x652   :  { %17917 = vmatmul.mubr.f32.gmra.mrb[56].mxu1 %v24807_v2  ;;  %v23263_v2 = vld [vmem:[#allocation3 + $0x2e9] sm:$0xff] }
 0x653   :  { %17951 = vmatprep.mubr.f32.mxu1 %v9688_v53  ;;  %v23254_v53 = vld [vmem:[#allocation3 + $0x2b1] sm:$0xff] }
 0x656   :  { %17952 = vmatmul.mubr.f32.vlgmr.msra.gmra.mrb[58].mxu1 %v9689_v7  ;;  %v23266_v7 = vld [vmem:[#allocation3 + $0x2f1] sm:$0xff] }
 0x657   :  { %18914 = vmatpush3.bf16.msra.mxu1 %v23040_v55  ;;  %17954 = vmatprep.mubr.f32.mxu1 %v23109_v41  ;;  %v23170_v55 = vld [vmem:[#allocation3 + $0xc9] sm:$0xff] }
 0x658   :  { %18916 = vmatprep.subr.bf16.mxu1 %v18915_v34 }
 0x65a   :  { %17955 = vmatmul.mubr.f32.gmra.mrb[60].mxu1 %v23113_v62 }
 0x65b   :  { %17957 = vmatprep.mubr.f32.mxu1 %v23122_v32  ;;  %18918 = vmatpush3.bf16.msra.mxu1 %v18915_v34  ;;  %v23269_v34 = vld [vmem:[#allocation3 + $0x309] sm:$0xff] }
 0x65c   :  { %18920 = vmatprep.subr.bf16.mxu1 %v18919_v10 }
 0x65e   :  { %17958 = vmatmul.mubr.f32.gmra.mrb[62].mxu1 %v23125_v42 }
 0x65f   :  { %17960 = vmatprep.mubr.f32.mxu1 %v23134_v13  ;;  %18922 = vmatpush3.bf16.msra.mxu1 %v18919_v10  ;;  %v23278_v10 = vld [vmem:[#allocation3 + $0x331] sm:$0xff] }
 0x660   :  { %18924 = vmatprep.subr.bf16.mxu1 %v18923_v14 }
 0x662   :  { %17961 = vmatmul.mubr.f32.gmra.mrb[0].mxu1 %v23137_v0 }
 0x663   :  { %17963 = vmatprep.mubr.f32.mxu1 %v23146_v31  ;;  %18926 = vmatpush3.bf16.msra.mxu1 %v18923_v14  ;;  %v23287_v14 = vld [vmem:[#allocation3 + $0x369] sm:$0xff] }
 0x664   :  { %18928 = vmatprep.subr.bf16.mxu1 %v18927_v56 }
 0x666   :  { %17964 = vmatmul.mubr.f32.gmra.mrb[2].mxu1 %v23149_v6 }
 0x667   :  { %17966 = vmatprep.mubr.f32.mxu1 %v23158_v48  ;;  %18930 = vmatpush3.bf16.msra.mxu1 %v18927_v56  ;;  %v23296_v56 = vld [vmem:[#allocation3 + $0x391] sm:$0xff] }
 0x668   :  { %18932 = vmatprep.subr.bf16.mxu1 %v18931_v52 }
 0x66a   :  { %17967 = vmatmul.mubr.f32.gmra.mrb[4].mxu1 %v23161_v54 }
 0x66b   :  { %17969 = vmatprep.mubr.f32.mxu1 %v23170_v55  ;;  %18934 = vmatpush3.bf16.msra.mxu1 %v18931_v52  ;;  %v23305_v52 = vld [vmem:[#allocation3 + $0x3c9] sm:$0xff] }
 0x66c   :  { %18936 = vmatprep.subr.bf16.mxu1 %v18935_v30 }
 0x66e   :  { %17970 = vmatmul.mubr.f32.gmra.mrb[6].mxu1 %v23173_v12 }
 0x66f   :  { %17972 = vmatprep.mubr.f32.mxu1 %v23182_v59  ;;  %18938 = vmatpush3.bf16.msra.mxu1 %v18935_v30  ;;  %v23314_v30 = vld [vmem:[#allocation3 + $0x3f1] sm:$0xff] }
 0x670   :  { %18940 = vmatprep.subr.bf16.mxu1 %v18939_v19  ;;  %24809 = vst [vmem:[#allocation6_spill] sm:$0xff] %v23314_v30 }
 0x672   :  { %17973 = vmatmul.mubr.f32.gmra.mrb[8].mxu1 %v23187_v63 }
 0x673   :  { %17975 = vmatprep.mubr.f32.mxu1 %v23190_v50  ;;  %18942 = vmatpush3.bf16.msra.mxu1 %v18939_v19  ;;  %v23323_v19 = vld [vmem:[#allocation3 + $0x429] sm:$0xff] }
 0x674   :  { %18944 = vmatprep.subr.bf16.mxu1 %v23185_v22  ;;  %24812 = vst [vmem:[#allocation9_spill] sm:$0xff] %v23323_v19 }
 0x676   :  { %17976 = vmatmul.mubr.f32.gmra.mrb[10].mxu1 %v23194_v37 }
 0x677   :  { %17978 = vmatprep.mubr.f32.mxu1 %v23197_v3 }
 0x67a   :  { %17979 = vmatmul.mubr.f32.gmra.mrb[12].mxu1 %v23200_v36 }
 0x67b   :  { %17981 = vmatprep.mubr.f32.mxu1 %v23203_v24 }
 0x67e   :  { %17982 = vmatmul.mubr.f32.gmra.mrb[14].mxu1 %v23206_v4 }
 0x67f   :  { %17984 = vmatprep.mubr.f32.mxu1 %v23209_v25 }
 0x682   :  { %17985 = vmatmul.mubr.f32.gmra.mrb[16].mxu1 %v23212_v11 }
 0x683   :  { %17987 = vmatprep.mubr.f32.mxu1 %v23215_v27 }
 0x686   :  { %17988 = vmatmul.mubr.f32.gmra.mrb[18].mxu1 %v23218_v60 }
 0x687   :  { %17990 = vmatprep.mubr.f32.mxu1 %v23221_v17 }
 0x68a   :  { %17991 = vmatmul.mubr.f32.gmra.mrb[20].mxu1 %v23224_v20 }
 0x68b   :  { %17993 = vmatprep.mubr.f32.mxu1 %v23227_v18 }
 0x68e   :  { %17994 = vmatmul.mubr.f32.gmra.mrb[22].mxu1 %v23230_v26 }
 0x68f   :  { %17996 = vmatprep.mubr.f32.mxu1 %v23233_v33 }
 0x692   :  { %17997 = vmatmul.mubr.f32.gmra.mrb[24].mxu1 %v23236_v58 }
 0x693   :  { %17999 = vmatprep.mubr.f32.mxu1 %v9720_v39  ;;  %v15398_v39 = vld [vmem:[%s24313_s3 + $0x218] sm:$0xff] }
 0x696   :  { %18000 = vmatmul.mubr.f32.gmra.mrb[26].mxu1 %v9721_v40  ;;  %v10346_v40 = vld [vmem:[#allocation3 + $0x27] sm:$0xff] }
 0x697   :  { %18002 = vmatprep.mubr.f32.mxu1 %v23239_v23 }
 0x69a   :  { %18003 = vmatmul.mubr.f32.gmra.mrb[28].mxu1 %v23242_v45 }
 0x69b   :  { %18005 = vmatprep.mubr.f32.mxu1 %v23245_v44 }
 0x69e   :  { %18006 = vmatmul.mubr.f32.gmra.mrb[30].mxu1 %v23248_v47 }
 0x69f   :  { %18008 = vmatprep.mubr.f32.mxu1 %v23251_v49 }
 0x6a2   :  { %18009 = vmatmul.mubr.f32.gmra.mrb[32].mxu1 %v23254_v53 }
 0x6a3   :  { %18011 = vmatprep.mubr.f32.mxu1 %v23257_v57 }
 0x6a6   :  { %18012 = vmatmul.mubr.f32.gmra.mrb[34].mxu1 %v23260_v61 }
 0x6a7   :  { %18014 = vmatprep.mubr.f32.mxu1 %v23263_v2 }
 0x6aa   :  { %18015 = vmatmul.mubr.f32.gmra.mrb[36].mxu1 %v23266_v7 }
 0x6ab   :  { %18017 = vmatprep.mubr.f32.mxu1 %v23269_v34 }
 0x6ae   :  { %18018 = vmatmul.mubr.f32.gmra.mrb[38].mxu1 %v23272_v29 }
 0x6af   :  { %18020 = vmatprep.mubr.f32.mxu1 %v23275_v28 }
 0x6b2   :  { %18021 = vmatmul.mubr.f32.gmra.mrb[40].mxu1 %v23278_v10 }
 0x6b3   :  { %18023 = vmatprep.mubr.f32.mxu1 %v23281_v9 }
 0x6b6   :  { %18024 = vmatmul.mubr.f32.gmra.mrb[42].mxu1 %v23284_v5 }
 0x6b7   :  { %18026 = vmatprep.mubr.f32.mxu1 %v23287_v14 }
 0x6ba   :  { %18027 = vmatmul.mubr.f32.gmra.mrb[44].mxu1 %v23290_v38 }
 0x6bb   :  { %18029 = vmatprep.mubr.f32.mxu1 %v23293_v46 }
 0x6be   :  { %18030 = vmatmul.mubr.f32.gmra.mrb[46].mxu1 %v23296_v56 }
 0x6bf   :  { %18032 = vmatprep.mubr.f32.mxu1 %v23299_v8 }
 0x6c2   :  { %18033 = vmatmul.mubr.f32.gmra.mrb[48].mxu1 %v23302_v35 }
 0x6c3   :  { %18035 = vmatprep.mubr.f32.mxu1 %v23305_v52 }
 0x6c6   :  { %18036 = vmatmul.mubr.f32.gmra.mrb[50].mxu1 %v23308_v16 }
 0x6c7   :  { %18038 = vmatprep.mubr.f32.mxu1 %v23311_v43  ;;  %v23341_v43 = vld [vmem:[#allocation3 + $0x47] sm:$0xff] }
 0x6c8   :  { %24814 = vst [vmem:[#allocation11_spill] sm:$0xff] %v23341_v43 }
 0x6ca   :  { %18039 = vmatmul.mubr.f32.gmra.mrb[52].mxu1 %v23314_v30  ;;  %v15400_v30 = vld [vmem:[%s24313_s3 + $0x228] sm:$0xff] }
 0x6cb   :  { %18041 = vmatprep.mubr.f32.mxu1 %v23317_v21  ;;  %v18947_v21 = vpack.c.bf16 %v15398_v39, %v15397_v15  ;;  %v15401_v15 = vld [vmem:[%s24313_s3 + $0x230] sm:$0xff]  ;;  %v15402_v39 = vld [vmem:[%s24313_s3 + $0x238] sm:$0xff] }
 0x6ce   :  { %18042 = vmatmul.mubr.f32.gmra.mrb[54].mxu1 %v23320_v1  ;;  %v10347_v1 = vld [vmem:[#allocation3 + $0x2f] sm:$0xff] }
 0x6cf   :  { %18044 = vmatprep.mubr.f32.mxu1 %v23323_v19  ;;  %v15399_v19 = vld [vmem:[%s24313_s3 + $0x220] sm:$0xff] }
 0x6d2   :  { %18045 = vmatmul.mubr.f32.gmra.mrb[56].mxu1 %v23326_v51  ;;  %v18951_v51 = vpack.c.bf16 %v15400_v30, %v15399_v19  ;;  %v23357_v30 = vld [vmem:[#allocation3 + $0x6f] sm:$0xff]  ;;  %v15403_v19 = vld [vmem:[%s24313_s3 + $0x240] sm:$0xff] }
 0x6d3   :  { %18079 = vmatprep.mubr.f32.mxu1 %v10346_v40  ;;  %v23345_v40 = vld [vmem:[#allocation3 + $0x4f] sm:$0xff]  ;;  %24817 = vst [vmem:[#allocation14_spill] sm:$0xff] %v23357_v30 }
 0x6d4   :  { %24815 = vst [vmem:[#allocation12_spill] sm:$0xff] %v23345_v40 }
 0x6d6   :  { %18080 = vmatmul.mubr.f32.vlgmr.msra.gmra.mrb[58].mxu1 %v10347_v1  ;;  %v23354_v1 = vld [vmem:[#allocation3 + $0x67] sm:$0xff] }
 0x6d7   :  { %18946 = vmatpush3.bf16.msra.mxu1 %v23185_v22  ;;  %18082 = vmatprep.mubr.f32.mxu1 %v23341_v43  ;;  %24816 = vst [vmem:[#allocation13_spill] sm:$0xff] %v23354_v1  ;;  %v18955_v22 = vpack.c.bf16 %v15402_v39, %v15401_v15  ;;  %v15404_v43 = vld [vmem:[%s24313_s3 + $0x248] sm:$0xff]  ;;  %v15405_v39 = vld [vmem:[%s24313_s3 + $0x250] sm:$0xff] }
 0x6d8   :  { %18948 = vmatprep.subr.bf16.mxu1 %v18947_v21  ;;  %v23369_v15 = vld [vmem:[#allocation3 + $0x8f] sm:$0xff] }
 0x6d9   :  { %24819 = vst [vmem:[#allocation16_spill] sm:$0xff] %v23369_v15 }
 0x6da   :  { %18083 = vmatmul.mubr.f32.gmra.mrb[60].mxu1 %v23345_v40  ;;  %v23366_v40 = vld [vmem:[#allocation3 + $0x87] sm:$0xff] }
 0x6db   :  { %18085 = vmatprep.mubr.f32.mxu1 %v23354_v1  ;;  %18950 = vmatpush3.bf16.msra.mxu1 %v18947_v21  ;;  %24818 = vst [vmem:[#allocation15_spill] sm:$0xff] %v23366_v40  ;;  %v18959_v21 = vpack.c.bf16 %v15404_v43, %v15403_v19  ;;  %v15406_v1 = vld [vmem:[%s24313_s3 + $0x258] sm:$0xff]  ;;  %v23381_v43 = vld [vmem:[#allocation3 + $0xaf] sm:$0xff]  ;;  %v15407_v19 = vld [vmem:[%s24313_s3 + $0x260] sm:$0xff] }
 0x6dc   :  { %18952 = vmatprep.subr.bf16.mxu1 %v18951_v51  ;;  %24821 = vst [vmem:[#allocation18_spill] sm:$0xff] %v23381_v43 }
 0x6de   :  { %18086 = vmatmul.mubr.f32.gmra.mrb[62].mxu1 %v23357_v30  ;;  %v23378_v30 = vld [vmem:[#allocation3 + $0xa7] sm:$0xff] }
 0x6df   :  { %18088 = vmatprep.mubr.f32.mxu1 %v23366_v40  ;;  %18954 = vmatpush3.bf16.msra.mxu1 %v18951_v51  ;;  %24820 = vst [vmem:[#allocation17_spill] sm:$0xff] %v23378_v30  ;;  %v18963_v51 = vpack.c.bf16 %v15406_v1, %v15405_v39  ;;  %v15408_v40 = vld [vmem:[%s24313_s3 + $0x268] sm:$0xff]  ;;  %v15409_v39 = vld [vmem:[%s24313_s3 + $0x270] sm:$0xff] }
 0x6e0   :  { %18956 = vmatprep.subr.bf16.mxu1 %v18955_v22  ;;  %v23393_v1 = vld [vmem:[#allocation3 + $0xcf] sm:$0xff] }
 0x6e1   :  { %24823 = vst [vmem:[#allocation20_spill] sm:$0xff] %v23393_v1 }
 0x6e2   :  { %18089 = vmatmul.mubr.f32.gmra.mrb[0].mxu1 %v23369_v15  ;;  %v23390_v15 = vld [vmem:[#allocation3 + $0xc7] sm:$0xff] }
 0x6e3   :  { %18091 = vmatprep.mubr.f32.mxu1 %v23378_v30  ;;  %18958 = vmatpush3.bf16.msra.mxu1 %v18955_v22  ;;  %24822 = vst [vmem:[#allocation19_spill] sm:$0xff] %v23390_v15  ;;  %v18967_v22 = vpack.c.bf16 %v15408_v40, %v15407_v19  ;;  %v15410_v30 = vld [vmem:[%s24313_s3 + $0x278] sm:$0xff]  ;;  %v23405_v40 = vld [vmem:[#allocation3 + $0xef] sm:$0xff]  ;;  %v15411_v19 = vld [vmem:[%s24313_s3 + $0x280] sm:$0xff] }
 0x6e4   :  { %18960 = vmatprep.subr.bf16.mxu1 %v18959_v21  ;;  %24825 = vst [vmem:[#allocation22_spill] sm:$0xff] %v23405_v40 }
 0x6e6   :  { %18092 = vmatmul.mubr.f32.gmra.mrb[2].mxu1 %v23381_v43  ;;  %v23402_v43 = vld [vmem:[#allocation3 + $0xe7] sm:$0xff] }
 0x6e7   :  { %18094 = vmatprep.mubr.f32.mxu1 %v23390_v15  ;;  %18962 = vmatpush3.bf16.msra.mxu1 %v18959_v21  ;;  %24824 = vst [vmem:[#allocation21_spill] sm:$0xff] %v23402_v43  ;;  %v18971_v21 = vpack.c.bf16 %v15410_v30, %v15409_v39  ;;  %v15412_v15 = vld [vmem:[%s24313_s3 + $0x288] sm:$0xff] }
 0x6e8   :  { %18964 = vmatprep.subr.bf16.mxu1 %v18963_v51  ;;  %v23419_v30 = vld [vmem:[#allocation3 + $0x10f] sm:$0xff]  ;;  %v23422_v39 = vld [vmem:[#allocation3 + $0x127] sm:$0xff] }
 0x6e9   :  { %24827 = vst [vmem:[#allocation24_spill] sm:$0xff] %v23419_v30  ;;  %24828 = vst [vmem:[#allocation25_spill] sm:$0xff] %v23422_v39 }
 0x6ea   :  { %18095 = vmatmul.mubr.f32.gmra.mrb[4].mxu1 %v23393_v1  ;;  %v23414_v1 = vld [vmem:[#allocation3 + $0x107] sm:$0xff] }
 0x6eb   :  { %18097 = vmatprep.mubr.f32.mxu1 %v23402_v43  ;;  %18966 = vmatpush3.bf16.msra.mxu1 %v18963_v51  ;;  %24826 = vst [vmem:[#allocation23_spill] sm:$0xff] %v23414_v1  ;;  %v23417_v51 = vpack.c.bf16 %v15412_v15, %v15411_v19  ;;  %v23432_v15 = vld [vmem:[#allocation3 + $0x14f] sm:$0xff] }
 0x6ec   :  { %18968 = vmatprep.subr.bf16.mxu1 %v18967_v22  ;;  %24831 = vst [vmem:[#allocation28_spill] sm:$0xff] %v23432_v15  ;;  %v23438_v19 = vld [vmem:[#allocation3 + $0x16f] sm:$0xff] }
 0x6ed   :  { %24833 = vst [vmem:[#allocation30_spill] sm:$0xff] %v23438_v19  ;;  %v23573_v43 = vld [vmem:[#allocation3 + $0x48] sm:$0xff] }
 0x6ee   :  { %18098 = vmatmul.mubr.f32.gmra.mrb[6].mxu1 %v23405_v40  ;;  %v23426_v40 = vld [vmem:[#allocation3 + $0x12f] sm:$0xff]  ;;  %24874 = vst [vmem:[#allocation71_spill] sm:$0xff] %v23573_v43 }
 0x6ef   :  { %18100 = vmatprep.mubr.f32.mxu1 %v23414_v1  ;;  %18970 = vmatpush3.bf16.msra.mxu1 %v18967_v22  ;;  %24829 = vst [vmem:[#allocation26_spill] sm:$0xff] %v23426_v40  ;;  %v23429_v1 = vld [vmem:[#allocation3 + $0x147] sm:$0xff] }
 0x6f0   :  { %18972 = vmatprep.subr.bf16.mxu1 %v18971_v21  ;;  %24830 = vst [vmem:[#allocation27_spill] sm:$0xff] %v23429_v1  ;;  %v23435_v22 = vld [vmem:[#allocation3 + $0x167] sm:$0xff] }
 0x6f1   :  { %24832 = vst [vmem:[#allocation29_spill] sm:$0xff] %v23435_v22 }
 0x6f2   :  { %18101 = vmatmul.mubr.f32.gmra.mrb[8].mxu1 %v23419_v30  ;;  %v15416_v30 = vld [vmem:[%s24313_s3 + $0x2a8] sm:$0xff] }
 0x6f3   :  { %18103 = vmatprep.mubr.f32.mxu1 %v23422_v39  ;;  %18974 = vmatpush3.bf16.msra.mxu1 %v18971_v21  ;;  %v23441_v21 = vld [vmem:[#allocation3 + $0x187] sm:$0xff]  ;;  %v10379_v39 = vld [vmem:[#allocation3 + $0x26f] sm:$0xff] }
 0x6f4   :  { %18976 = vmatprep.subr.bf16.mxu1 %v23417_v51  ;;  %24834 = vst [vmem:[#allocation31_spill] sm:$0xff] %v23441_v21 }
 0x6f6   :  { %18104 = vmatmul.mubr.f32.gmra.mrb[10].mxu1 %v23426_v40  ;;  %v23444_v40 = vld [vmem:[#allocation3 + $0x18f] sm:$0xff] }
 0x6f7   :  { %18106 = vmatprep.mubr.f32.mxu1 %v23429_v1  ;;  %24835 = vst [vmem:[#allocation32_spill] sm:$0xff] %v23444_v40  ;;  %v23447_v1 = vld [vmem:[#allocation3 + $0x1a7] sm:$0xff] }
 0x6f8   :  { %24836 = vst [vmem:[#allocation33_spill] sm:$0xff] %v23447_v1 }
 0x6fa   :  { %18107 = vmatmul.mubr.f32.gmra.mrb[12].mxu1 %v23432_v15  ;;  %v23450_v15 = vld [vmem:[#allocation3 + $0x1af] sm:$0xff] }
 0x6fb   :  { %18109 = vmatprep.mubr.f32.mxu1 %v23435_v22  ;;  %24837 = vst [vmem:[#allocation34_spill] sm:$0xff] %v23450_v15  ;;  %v23453_v22 = vld [vmem:[#allocation3 + $0x1c7] sm:$0xff] }
 0x6fc   :  { %24838 = vst [vmem:[#allocation35_spill] sm:$0xff] %v23453_v22 }
 0x6fe   :  { %18110 = vmatmul.mubr.f32.gmra.mrb[14].mxu1 %v23438_v19  ;;  %v23456_v19 = vld [vmem:[#allocation3 + $0x1cf] sm:$0xff] }
 0x6ff   :  { %18112 = vmatprep.mubr.f32.mxu1 %v23441_v21  ;;  %24839 = vst [vmem:[#allocation36_spill] sm:$0xff] %v23456_v19  ;;  %v23459_v21 = vld [vmem:[#allocation3 + $0x1e7] sm:$0xff] }
 0x700   :  { %24840 = vst [vmem:[#allocation37_spill] sm:$0xff] %v23459_v21 }
 0x702   :  { %18113 = vmatmul.mubr.f32.gmra.mrb[16].mxu1 %v23444_v40  ;;  %v23462_v40 = vld [vmem:[#allocation3 + $0x1ef] sm:$0xff] }
 0x703   :  { %18115 = vmatprep.mubr.f32.mxu1 %v23447_v1  ;;  %24841 = vst [vmem:[#allocation38_spill] sm:$0xff] %v23462_v40  ;;  %v23465_v1 = vld [vmem:[#allocation3 + $0x207] sm:$0xff] }
 0x704   :  { %24842 = vst [vmem:[#allocation39_spill] sm:$0xff] %v23465_v1 }
 0x706   :  { %18116 = vmatmul.mubr.f32.gmra.mrb[18].mxu1 %v23450_v15  ;;  %v23468_v15 = vld [vmem:[#allocation3 + $0x20f] sm:$0xff] }
 0x707   :  { %18118 = vmatprep.mubr.f32.mxu1 %v23453_v22  ;;  %24843 = vst [vmem:[#allocation40_spill] sm:$0xff] %v23468_v15  ;;  %v10378_v22 = vld [vmem:[#allocation3 + $0x267] sm:$0xff] }
 0x70a   :  { %18119 = vmatmul.mubr.f32.gmra.mrb[20].mxu1 %v23456_v19  ;;  %v23471_v19 = vld [vmem:[#allocation3 + $0x287] sm:$0xff] }
 0x70b   :  { %18121 = vmatprep.mubr.f32.mxu1 %v23459_v21  ;;  %24844 = vst [vmem:[#allocation41_spill] sm:$0xff] %v23471_v19  ;;  %v23474_v21 = vld [vmem:[#allocation3 + $0x28f] sm:$0xff] }
 0x70c   :  { %24845 = vst [vmem:[#allocation42_spill] sm:$0xff] %v23474_v21 }
 0x70e   :  { %18122 = vmatmul.mubr.f32.gmra.mrb[22].mxu1 %v23462_v40  ;;  %v23477_v40 = vld [vmem:[#allocation3 + $0x2a7] sm:$0xff] }
 0x70f   :  { %18124 = vmatprep.mubr.f32.mxu1 %v23465_v1  ;;  %24846 = vst [vmem:[#allocation43_spill] sm:$0xff] %v23477_v40  ;;  %v23480_v1 = vld [vmem:[#allocation3 + $0x2af] sm:$0xff] }
 0x710   :  { %24847 = vst [vmem:[#allocation44_spill] sm:$0xff] %v23480_v1 }
 0x712   :  { %18125 = vmatmul.mubr.f32.gmra.mrb[24].mxu1 %v23468_v15  ;;  %v23483_v15 = vld [vmem:[#allocation3 + $0x2c7] sm:$0xff] }
 0x713   :  { %18127 = vmatprep.mubr.f32.mxu1 %v10378_v22  ;;  %24848 = vst [vmem:[#allocation45_spill] sm:$0xff] %v23483_v15  ;;  %v23489_v22 = vld [vmem:[#allocation3 + $0x2e7] sm:$0xff] }
 0x714   :  { %24850 = vst [vmem:[#allocation47_spill] sm:$0xff] %v23489_v22 }
 0x716   :  { %18128 = vmatmul.mubr.f32.gmra.mrb[26].mxu1 %v10379_v39  ;;  %v23486_v39 = vld [vmem:[#allocation3 + $0x2cf] sm:$0xff] }
 0x717   :  { %18130 = vmatprep.mubr.f32.mxu1 %v23471_v19  ;;  %24849 = vst [vmem:[#allocation46_spill] sm:$0xff] %v23486_v39 }
 0x71a   :  { %18131 = vmatmul.mubr.f32.gmra.mrb[28].mxu1 %v23474_v21  ;;  %v23492_v21 = vld [vmem:[#allocation3 + $0x2ef] sm:$0xff] }
 0x71b   :  { %18133 = vmatprep.mubr.f32.mxu1 %v23477_v40  ;;  %24851 = vst [vmem:[#allocation48_spill] sm:$0xff] %v23492_v21  ;;  %v23495_v40 = vld [vmem:[#allocation3 + $0x307] sm:$0xff] }
 0x71c   :  { %24852 = vst [vmem:[#allocation49_spill] sm:$0xff] %v23495_v40 }
 0x71e   :  { %18134 = vmatmul.mubr.f32.gmra.mrb[30].mxu1 %v23480_v1  ;;  %v23498_v1 = vld [vmem:[#allocation3 + $0x30f] sm:$0xff] }
 0x71f   :  { %18136 = vmatprep.mubr.f32.mxu1 %v23483_v15  ;;  %24853 = vst [vmem:[#allocation50_spill] sm:$0xff] %v23498_v1  ;;  %v23501_v15 = vld [vmem:[#allocation3 + $0x327] sm:$0xff] }
 0x720   :  { %24854 = vst [vmem:[#allocation51_spill] sm:$0xff] %v23501_v15 }
 0x722   :  { %18137 = vmatmul.mubr.f32.gmra.mrb[32].mxu1 %v23486_v39  ;;  %v23504_v39 = vld [vmem:[#allocation3 + $0x32f] sm:$0xff] }
 0x723   :  { %18139 = vmatprep.mubr.f32.mxu1 %v23489_v22  ;;  %24855 = vst [vmem:[#allocation52_spill] sm:$0xff] %v23504_v39  ;;  %v23507_v22 = vld [vmem:[#allocation3 + $0x347] sm:$0xff] }
 0x724   :  { %24856 = vst [vmem:[#allocation53_spill] sm:$0xff] %v23507_v22 }
 0x726   :  { %18140 = vmatmul.mubr.f32.gmra.mrb[34].mxu1 %v23492_v21  ;;  %v23510_v21 = vld [vmem:[#allocation3 + $0x34f] sm:$0xff] }
 0x727   :  { %18142 = vmatprep.mubr.f32.mxu1 %v23495_v40  ;;  %24857 = vst [vmem:[#allocation54_spill] sm:$0xff] %v23510_v21  ;;  %v23513_v40 = vld [vmem:[#allocation3 + $0x367] sm:$0xff] }
 0x728   :  { %24858 = vst [vmem:[#allocation55_spill] sm:$0xff] %v23513_v40 }
 0x72a   :  { %18143 = vmatmul.mubr.f32.gmra.mrb[36].mxu1 %v23498_v1  ;;  %v23516_v1 = vld [vmem:[#allocation3 + $0x36f] sm:$0xff] }
 0x72b   :  { %18145 = vmatprep.mubr.f32.mxu1 %v23501_v15  ;;  %24859 = vst [vmem:[#allocation56_spill] sm:$0xff] %v23516_v1  ;;  %v23519_v15 = vld [vmem:[#allocation3 + $0x387] sm:$0xff] }
 0x72c   :  { %24860 = vst [vmem:[#allocation57_spill] sm:$0xff] %v23519_v15 }
 0x72e   :  { %18146 = vmatmul.mubr.f32.gmra.mrb[38].mxu1 %v23504_v39  ;;  %v23522_v39 = vld [vmem:[#allocation3 + $0x38f] sm:$0xff] }
 0x72f   :  { %18148 = vmatprep.mubr.f32.mxu1 %v23507_v22  ;;  %24861 = vst [vmem:[#allocation58_spill] sm:$0xff] %v23522_v39  ;;  %v23525_v22 = vld [vmem:[#allocation3 + $0x3a7] sm:$0xff] }
 0x730   :  { %24862 = vst [vmem:[#allocation59_spill] sm:$0xff] %v23525_v22 }
 0x732   :  { %18149 = vmatmul.mubr.f32.gmra.mrb[40].mxu1 %v23510_v21  ;;  %v23528_v21 = vld [vmem:[#allocation3 + $0x3af] sm:$0xff] }
 0x733   :  { %18151 = vmatprep.mubr.f32.mxu1 %v23513_v40  ;;  %24863 = vst [vmem:[#allocation60_spill] sm:$0xff] %v23528_v21  ;;  %v23531_v40 = vld [vmem:[#allocation3 + $0x3c7] sm:$0xff] }
 0x734   :  { %24864 = vst [vmem:[#allocation61_spill] sm:$0xff] %v23531_v40 }
 0x736   :  { %18152 = vmatmul.mubr.f32.gmra.mrb[42].mxu1 %v23516_v1  ;;  %v23534_v1 = vld [vmem:[#allocation3 + $0x3cf] sm:$0xff] }
 0x737   :  { %18154 = vmatprep.mubr.f32.mxu1 %v23519_v15  ;;  %24865 = vst [vmem:[#allocation62_spill] sm:$0xff] %v23534_v1  ;;  %v23537_v15 = vld [vmem:[#allocation3 + $0x3e7] sm:$0xff] }
 0x738   :  { %24866 = vst [vmem:[#allocation63_spill] sm:$0xff] %v23537_v15 }
 0x73a   :  { %18155 = vmatmul.mubr.f32.gmra.mrb[44].mxu1 %v23522_v39  ;;  %v23540_v39 = vld [vmem:[#allocation3 + $0x3ef] sm:$0xff] }
 0x73b   :  { %18157 = vmatprep.mubr.f32.mxu1 %v23525_v22  ;;  %24867 = vst [vmem:[#allocation64_spill] sm:$0xff] %v23540_v39  ;;  %v23543_v22 = vld [vmem:[#allocation3 + $0x407] sm:$0xff] }
 0x73c   :  { %24868 = vst [vmem:[#allocation65_spill] sm:$0xff] %v23543_v22 }
 0x73e   :  { %18158 = vmatmul.mubr.f32.gmra.mrb[46].mxu1 %v23528_v21  ;;  %v23546_v21 = vld [vmem:[#allocation3 + $0x40f] sm:$0xff] }
 0x73f   :  { %18160 = vmatprep.mubr.f32.mxu1 %v23531_v40  ;;  %24869 = vst [vmem:[#allocation66_spill] sm:$0xff] %v23546_v21  ;;  %v23549_v40 = vld [vmem:[#allocation3 + $0x427] sm:$0xff] }
 0x740   :  { %24870 = vst [vmem:[#allocation67_spill] sm:$0xff] %v23549_v40 }
 0x742   :  { %18161 = vmatmul.mubr.f32.gmra.mrb[48].mxu1 %v23534_v1  ;;  %v23552_v1 = vld [vmem:[#allocation3 + $0x42f] sm:$0xff] }
 0x743   :  { %18163 = vmatprep.mubr.f32.mxu1 %v23537_v15  ;;  %24871 = vst [vmem:[#allocation68_spill] sm:$0xff] %v23552_v1  ;;  %v23555_v15 = vld [vmem:[#allocation3 + $0x447] sm:$0xff] }
 0x744   :  { %24872 = vst [vmem:[#allocation69_spill] sm:$0xff] %v23555_v15 }
 0x746   :  { %18164 = vmatmul.mubr.f32.gmra.mrb[50].mxu1 %v23540_v39  ;;  %v23558_v39 = vld [vmem:[#allocation3 + $0x44f] sm:$0xff] }
 0x747   :  { %18166 = vmatprep.mubr.f32.mxu1 %v23543_v22  ;;  %24873 = vst [vmem:[#allocation70_spill] sm:$0xff] %v23558_v39  ;;  %v15413_v22 = vld [vmem:[%s24313_s3 + $0x290] sm:$0xff] }
 0x74a   :  { %18167 = vmatmul.mubr.f32.gmra.mrb[52].mxu1 %v23546_v21  ;;  %v15414_v21 = vld [vmem:[%s24313_s3 + $0x298] sm:$0xff] }
 0x74b   :  { %18169 = vmatprep.mubr.f32.mxu1 %v23549_v40  ;;  %v11004_v40 = vld [vmem:[#allocation3 + $0x28] sm:$0xff]  ;;  %v18979_v19 = vpack.c.bf16 %v15414_v21, %v15413_v22  ;;  %v15417_v21 = vld [vmem:[%s24313_s3 + $0x2b0] sm:$0xff]  ;;  %v15418_v22 = vld [vmem:[%s24313_s3 + $0x2b8] sm:$0xff] }
 0x74e   :  { %18170 = vmatmul.mubr.f32.gmra.mrb[54].mxu1 %v23552_v1  ;;  %v11005_v1 = vld [vmem:[#allocation3 + $0x30] sm:$0xff] }
 0x74f   :  { %18172 = vmatprep.mubr.f32.mxu1 %v23555_v15  ;;  %v15415_v15 = vld [vmem:[%s24313_s3 + $0x2a0] sm:$0xff] }
 0x752   :  { %18173 = vmatmul.mubr.f32.gmra.mrb[56].mxu1 %v23558_v39  ;;  %v18983_v39 = vpack.c.bf16 %v15416_v30, %v15415_v15  ;;  %v23589_v30 = vld [vmem:[#allocation3 + $0x70] sm:$0xff]  ;;  %v15419_v15 = vld [vmem:[%s24313_s3 + $0x2c0] sm:$0xff] }
 0x753   :  { %18207 = vmatprep.mubr.f32.mxu1 %v11004_v40  ;;  %v23577_v40 = vld [vmem:[#allocation3 + $0x50] sm:$0xff]  ;;  %24877 = vst [vmem:[#allocation74_spill] sm:$0xff] %v23589_v30 }
 0x754   :  { %24875 = vst [vmem:[#allocation72_spill] sm:$0xff] %v23577_v40 }
 0x756   :  { %18208 = vmatmul.mubr.f32.vlgmr.msra.gmra.mrb[58].mxu1 %v11005_v1  ;;  %v23586_v1 = vld [vmem:[#allocation3 + $0x68] sm:$0xff] }
 0x757   :  { %18978 = vmatpush3.bf16.msra.mxu1 %v23417_v51  ;;  %18210 = vmatprep.mubr.f32.mxu1 %v23573_v43  ;;  %24876 = vst [vmem:[#allocation73_spill] sm:$0xff] %v23586_v1  ;;  %v18987_v51 = vpack.c.bf16 %v15418_v22, %v15417_v21  ;;  %v15420_v43 = vld [vmem:[%s24313_s3 + $0x2c8] sm:$0xff]  ;;  %v23601_v21 = vld [vmem:[#allocation3 + $0x90] sm:$0xff] }
 0x758   :  { %18980 = vmatprep.subr.bf16.mxu1 %v18979_v19  ;;  %24879 = vst [vmem:[#allocation76_spill] sm:$0xff] %v23601_v21  ;;  %v15421_v22 = vld [vmem:[%s24313_s3 + $0x2d0] sm:$0xff] }
 0x75a   :  { %18211 = vmatmul.mubr.f32.gmra.mrb[60].mxu1 %v23577_v40  ;;  %v23598_v40 = vld [vmem:[#allocation3 + $0x88] sm:$0xff] }
 0x75b   :  { %18213 = vmatprep.mubr.f32.mxu1 %v23586_v1  ;;  %18982 = vmatpush3.bf16.msra.mxu1 %v18979_v19  ;;  %24878 = vst [vmem:[#allocation75_spill] sm:$0xff] %v23598_v40  ;;  %v18991_v19 = vpack.c.bf16 %v15420_v43, %v15419_v15  ;;  %v15422_v1 = vld [vmem:[%s24313_s3 + $0x2d8] sm:$0xff]  ;;  %v23613_v43 = vld [vmem:[#allocation3 + $0xb0] sm:$0xff]  ;;  %v15423_v15 = vld [vmem:[%s24313_s3 + $0x2e0] sm:$0xff] }
 0x75c   :  { %18984 = vmatprep.subr.bf16.mxu1 %v18983_v39  ;;  %24881 = vst [vmem:[#allocation78_spill] sm:$0xff] %v23613_v43 }
 0x75e   :  { %18214 = vmatmul.mubr.f32.gmra.mrb[62].mxu1 %v23589_v30  ;;  %v23610_v30 = vld [vmem:[#allocation3 + $0xa8] sm:$0xff] }
 0x75f   :  { %18216 = vmatprep.mubr.f32.mxu1 %v23598_v40  ;;  %18986 = vmatpush3.bf16.msra.mxu1 %v18983_v39  ;;  %24880 = vst [vmem:[#allocation77_spill] sm:$0xff] %v23610_v30  ;;  %v18995_v39 = vpack.c.bf16 %v15422_v1, %v15421_v22  ;;  %v15424_v40 = vld [vmem:[%s24313_s3 + $0x2e8] sm:$0xff]  ;;  %v23625_v1 = vld [vmem:[#allocation3 + $0xd0] sm:$0xff] }
 0x760   :  { %18988 = vmatprep.subr.bf16.mxu1 %v18987_v51  ;;  %24883 = vst [vmem:[#allocation80_spill] sm:$0xff] %v23625_v1  ;;  %v15425_v22 = vld [vmem:[%s24313_s3 + $0x2f0] sm:$0xff] }
 0x762   :  { %18217 = vmatmul.mubr.f32.gmra.mrb[0].mxu1 %v23601_v21  ;;  %v23622_v21 = vld [vmem:[#allocation3 + $0xc8] sm:$0xff] }
 0x763   :  { %18219 = vmatprep.mubr.f32.mxu1 %v23610_v30  ;;  %18990 = vmatpush3.bf16.msra.mxu1 %v18987_v51  ;;  %24882 = vst [vmem:[#allocation79_spill] sm:$0xff] %v23622_v21  ;;  %v18999_v51 = vpack.c.bf16 %v15424_v40, %v15423_v15  ;;  %v15426_v30 = vld [vmem:[%s24313_s3 + $0x2f8] sm:$0xff]  ;;  %v23637_v40 = vld [vmem:[#allocation3 + $0xf0] sm:$0xff]  ;;  %v15427_v15 = vld [vmem:[%s24313_s3 + $0x300] sm:$0xff] }
 0x764   :  { %18992 = vmatprep.subr.bf16.mxu1 %v18991_v19  ;;  %24884 = vst [vmem:[#allocation81_spill] sm:$0xff] %v23637_v40 }
 0x766   :  { %18220 = vmatmul.mubr.f32.gmra.mrb[2].mxu1 %v23613_v43  ;;  %v23634_v43 = vld [vmem:[#allocation3 + $0xe8] sm:$0xff] }
 0x767   :  { %18222 = vmatprep.mubr.f32.mxu1 %v23622_v21  ;;  %18994 = vmatpush3.bf16.msra.mxu1 %v18991_v19  ;;  %v19003_v19 = vpack.c.bf16 %v15426_v30, %v15425_v22  ;;  %v15428_v21 = vld [vmem:[%s24313_s3 + $0x308] sm:$0xff]  ;;  %v23651_v30 = vld [vmem:[#allocation3 + $0x110] sm:$0xff] }
 0x768   :  { %18996 = vmatprep.subr.bf16.mxu1 %v18995_v39  ;;  %v23654_v22 = vld [vmem:[#allocation3 + $0x128] sm:$0xff] }
 0x769   :  { %24886 = vst [vmem:[#allocation83_spill] sm:$0xff] %v23654_v22 }
 0x76a   :  { %18223 = vmatmul.mubr.f32.gmra.mrb[4].mxu1 %v23625_v1  ;;  %v23646_v1 = vld [vmem:[#allocation3 + $0x108] sm:$0xff] }
 0x76b   :  { %18225 = vmatprep.mubr.f32.mxu1 %v23634_v43  ;;  %18998 = vmatpush3.bf16.msra.mxu1 %v18995_v39  ;;  %24885 = vst [vmem:[#allocation82_spill] sm:$0xff] %v23646_v1  ;;  %v23649_v39 = vpack.c.bf16 %v15428_v21, %v15427_v15  ;;  %v23664_v21 = vld [vmem:[#allocation3 + $0x150] sm:$0xff] }
 0x76c   :  { %19000 = vmatprep.subr.bf16.mxu1 %v18999_v51  ;;  %24889 = vst [vmem:[#allocation86_spill] sm:$0xff] %v23664_v21  ;;  %v23670_v15 = vld [vmem:[#allocation3 + $0x170] sm:$0xff] }
 0x76d   :  { %24891 = vst [vmem:[#allocation88_spill] sm:$0xff] %v23670_v15 }
 0x76e   :  { %18226 = vmatmul.mubr.f32.gmra.mrb[6].mxu1 %v23637_v40  ;;  %v23658_v40 = vld [vmem:[#allocation3 + $0x130] sm:$0xff] }
 0x76f   :  { %18228 = vmatprep.mubr.f32.mxu1 %v23646_v1  ;;  %19002 = vmatpush3.bf16.msra.mxu1 %v18999_v51  ;;  %24887 = vst [vmem:[#allocation84_spill] sm:$0xff] %v23658_v40  ;;  %v23661_v1 = vld [vmem:[#allocation3 + $0x148] sm:$0xff] }
 0x770   :  { %19004 = vmatprep.subr.bf16.mxu1 %v19003_v19  ;;  %24888 = vst [vmem:[#allocation85_spill] sm:$0xff] %v23661_v1  ;;  %v23667_v51 = vld [vmem:[#allocation3 + $0x168] sm:$0xff] }
 0x771   :  { %24890 = vst [vmem:[#allocation87_spill] sm:$0xff] %v23667_v51 }
 0x772   :  { %18229 = vmatmul.mubr.f32.gmra.mrb[8].mxu1 %v23651_v30 }
 0x773   :  { %18231 = vmatprep.mubr.f32.mxu1 %v23654_v22  ;;  %19006 = vmatpush3.bf16.msra.mxu1 %v19003_v19  ;;  %v23673_v19 = vld [vmem:[#allocation3 + $0x188] sm:$0xff]  ;;  %v11037_v22 = vld [vmem:[#allocation3 + $0x270] sm:$0xff] }
 0x774   :  { %19008 = vmatprep.subr.bf16.mxu1 %v23649_v39  ;;  %24892 = vst [vmem:[#allocation89_spill] sm:$0xff] %v23673_v19 }
 0x776   :  { %18232 = vmatmul.mubr.f32.gmra.mrb[10].mxu1 %v23658_v40  ;;  %v23676_v40 = vld [vmem:[#allocation3 + $0x190] sm:$0xff] }
 0x777   :  { %18234 = vmatprep.mubr.f32.mxu1 %v23661_v1  ;;  %24893 = vst [vmem:[#allocation90_spill] sm:$0xff] %v23676_v40  ;;  %v23679_v1 = vld [vmem:[#allocation3 + $0x1a8] sm:$0xff] }
 0x778   :  { %24894 = vst [vmem:[#allocation91_spill] sm:$0xff] %v23679_v1 }
 0x77a   :  { %18235 = vmatmul.mubr.f32.gmra.mrb[12].mxu1 %v23664_v21  ;;  %v23682_v21 = vld [vmem:[#allocation3 + $0x1b0] sm:$0xff] }
 0x77b   :  { %18237 = vmatprep.mubr.f32.mxu1 %v23667_v51  ;;  %24895 = vst [vmem:[#allocation92_spill] sm:$0xff] %v23682_v21  ;;  %v23685_v51 = vld [vmem:[#allocation3 + $0x1c8] sm:$0xff] }
 0x77c   :  { %24896 = vst [vmem:[#allocation93_spill] sm:$0xff] %v23685_v51 }
 0x77e   :  { %18238 = vmatmul.mubr.f32.gmra.mrb[14].mxu1 %v23670_v15  ;;  %v23688_v15 = vld [vmem:[#allocation3 + $0x1d0] sm:$0xff] }
 0x77f   :  { %18240 = vmatprep.mubr.f32.mxu1 %v23673_v19  ;;  %24897 = vst [vmem:[#allocation94_spill] sm:$0xff] %v23688_v15  ;;  %v23691_v19 = vld [vmem:[#allocation3 + $0x1e8] sm:$0xff] }
 0x780   :  { %24898 = vst [vmem:[#allocation95_spill] sm:$0xff] %v23691_v19 }
 0x782   :  { %18241 = vmatmul.mubr.f32.gmra.mrb[16].mxu1 %v23676_v40  ;;  %v23694_v40 = vld [vmem:[#allocation3 + $0x1f0] sm:$0xff] }
 0x783   :  { %18243 = vmatprep.mubr.f32.mxu1 %v23679_v1  ;;  %24899 = vst [vmem:[#allocation96_spill] sm:$0xff] %v23694_v40  ;;  %v23697_v1 = vld [vmem:[#allocation3 + $0x208] sm:$0xff] }
 0x784   :  { %24900 = vst [vmem:[#allocation97_spill] sm:$0xff] %v23697_v1 }
 0x786   :  { %18244 = vmatmul.mubr.f32.gmra.mrb[18].mxu1 %v23682_v21  ;;  %v23700_v21 = vld [vmem:[#allocation3 + $0x210] sm:$0xff] }
 0x787   :  { %18246 = vmatprep.mubr.f32.mxu1 %v23685_v51  ;;  %24901 = vst [vmem:[#allocation98_spill] sm:$0xff] %v23700_v21  ;;  %v11036_v51 = vld [vmem:[#allocation3 + $0x268] sm:$0xff] }
 0x78a   :  { %18247 = vmatmul.mubr.f32.gmra.mrb[20].mxu1 %v23688_v15  ;;  %v23703_v15 = vld [vmem:[#allocation3 + $0x288] sm:$0xff] }
 0x78b   :  { %18249 = vmatprep.mubr.f32.mxu1 %v23691_v19  ;;  %24902 = vst [vmem:[#allocation99_spill] sm:$0xff] %v23703_v15  ;;  %v23706_v19 = vld [vmem:[#allocation3 + $0x290] sm:$0xff] }
 0x78c   :  { %24903 = vst [vmem:[#allocation100_spill] sm:$0xff] %v23706_v19 }
 0x78e   :  { %18250 = vmatmul.mubr.f32.gmra.mrb[22].mxu1 %v23694_v40  ;;  %v23709_v40 = vld [vmem:[#allocation3 + $0x2a8] sm:$0xff] }
 0x78f   :  { %18252 = vmatprep.mubr.f32.mxu1 %v23697_v1  ;;  %24904 = vst [vmem:[#allocation101_spill] sm:$0xff] %v23709_v40  ;;  %v23712_v1 = vld [vmem:[#allocation3 + $0x2b0] sm:$0xff] }
 0x790   :  { %24905 = vst [vmem:[#allocation102_spill] sm:$0xff] %v23712_v1 }
 0x792   :  { %18253 = vmatmul.mubr.f32.gmra.mrb[24].mxu1 %v23700_v21  ;;  %v23715_v21 = vld [vmem:[#allocation3 + $0x2c8] sm:$0xff] }
 0x793   :  { %18255 = vmatprep.mubr.f32.mxu1 %v11036_v51  ;;  %24906 = vst [vmem:[#allocation103_spill] sm:$0xff] %v23715_v21  ;;  %v23721_v51 = vld [vmem:[#allocation3 + $0x2e8] sm:$0xff] }
 0x794   :  { %24908 = vst [vmem:[#allocation105_spill] sm:$0xff] %v23721_v51 }
 0x796   :  { %18256 = vmatmul.mubr.f32.gmra.mrb[26].mxu1 %v11037_v22  ;;  %v23718_v22 = vld [vmem:[#allocation3 + $0x2d0] sm:$0xff] }
 0x797   :  { %18258 = vmatprep.mubr.f32.mxu1 %v23703_v15  ;;  %24907 = vst [vmem:[#allocation104_spill] sm:$0xff] %v23718_v22 }
 0x79a   :  { %18259 = vmatmul.mubr.f32.gmra.mrb[28].mxu1 %v23706_v19  ;;  %v23724_v19 = vld [vmem:[#allocation3 + $0x2f0] sm:$0xff] }
 0x79b   :  { %18261 = vmatprep.mubr.f32.mxu1 %v23709_v40  ;;  %24909 = vst [vmem:[#allocation106_spill] sm:$0xff] %v23724_v19  ;;  %v23727_v40 = vld [vmem:[#allocation3 + $0x308] sm:$0xff] }
 0x79c   :  { %24910 = vst [vmem:[#allocation107_spill] sm:$0xff] %v23727_v40 }
 0x79e   :  { %18262 = vmatmul.mubr.f32.gmra.mrb[30].mxu1 %v23712_v1  ;;  %v23730_v1 = vld [vmem:[#allocation3 + $0x310] sm:$0xff] }
 0x79f   :  { %18264 = vmatprep.mubr.f32.mxu1 %v23715_v21  ;;  %24911 = vst [vmem:[#allocation108_spill] sm:$0xff] %v23730_v1  ;;  %v23733_v21 = vld [vmem:[#allocation3 + $0x328] sm:$0xff] }
 0x7a0   :  { %24912 = vst [vmem:[#allocation109_spill] sm:$0xff] %v23733_v21 }
 0x7a2   :  { %18265 = vmatmul.mubr.f32.gmra.mrb[32].mxu1 %v23718_v22  ;;  %v23736_v22 = vld [vmem:[#allocation3 + $0x330] sm:$0xff] }
 0x7a3   :  { %18267 = vmatprep.mubr.f32.mxu1 %v23721_v51  ;;  %24913 = vst [vmem:[#allocation110_spill] sm:$0xff] %v23736_v22  ;;  %v23739_v51 = vld [vmem:[#allocation3 + $0x348] sm:$0xff] }
 0x7a4   :  { %24914 = vst [vmem:[#allocation111_spill] sm:$0xff] %v23739_v51 }
 0x7a6   :  { %18268 = vmatmul.mubr.f32.gmra.mrb[34].mxu1 %v23724_v19  ;;  %v23742_v19 = vld [vmem:[#allocation3 + $0x350] sm:$0xff] }
 0x7a7   :  { %18270 = vmatprep.mubr.f32.mxu1 %v23727_v40  ;;  %24915 = vst [vmem:[#allocation112_spill] sm:$0xff] %v23742_v19  ;;  %v23745_v40 = vld [vmem:[#allocation3 + $0x368] sm:$0xff] }
 0x7a8   :  { %24916 = vst [vmem:[#allocation113_spill] sm:$0xff] %v23745_v40 }
 0x7aa   :  { %18271 = vmatmul.mubr.f32.gmra.mrb[36].mxu1 %v23730_v1  ;;  %v23748_v1 = vld [vmem:[#allocation3 + $0x370] sm:$0xff] }
 0x7ab   :  { %18273 = vmatprep.mubr.f32.mxu1 %v23733_v21  ;;  %24917 = vst [vmem:[#allocation114_spill] sm:$0xff] %v23748_v1  ;;  %v23751_v21 = vld [vmem:[#allocation3 + $0x388] sm:$0xff] }
 0x7ac   :  { %24918 = vst [vmem:[#allocation115_spill] sm:$0xff] %v23751_v21 }
 0x7ae   :  { %18274 = vmatmul.mubr.f32.gmra.mrb[38].mxu1 %v23736_v22  ;;  %v23754_v22 = vld [vmem:[#allocation3 + $0x390] sm:$0xff] }
 0x7af   :  { %18276 = vmatprep.mubr.f32.mxu1 %v23739_v51  ;;  %24919 = vst [vmem:[#allocation116_spill] sm:$0xff] %v23754_v22  ;;  %v23757_v51 = vld [vmem:[#allocation3 + $0x3a8] sm:$0xff] }
 0x7b0   :  { %24920 = vst [vmem:[#allocation117_spill] sm:$0xff] %v23757_v51 }
 0x7b2   :  { %18277 = vmatmul.mubr.f32.gmra.mrb[40].mxu1 %v23742_v19  ;;  %v23760_v19 = vld [vmem:[#allocation3 + $0x3b0] sm:$0xff] }
 0x7b3   :  { %18279 = vmatprep.mubr.f32.mxu1 %v23745_v40  ;;  %24921 = vst [vmem:[#allocation118_spill] sm:$0xff] %v23760_v19  ;;  %v23763_v40 = vld [vmem:[#allocation3 + $0x3c8] sm:$0xff] }
 0x7b4   :  { %24922 = vst [vmem:[#allocation119_spill] sm:$0xff] %v23763_v40 }
 0x7b6   :  { %18280 = vmatmul.mubr.f32.gmra.mrb[42].mxu1 %v23748_v1  ;;  %v23766_v1 = vld [vmem:[#allocation3 + $0x3d0] sm:$0xff] }
 0x7b7   :  { %18282 = vmatprep.mubr.f32.mxu1 %v23751_v21  ;;  %24923 = vst [vmem:[#allocation120_spill] sm:$0xff] %v23766_v1  ;;  %v23769_v21 = vld [vmem:[#allocation3 + $0x3e8] sm:$0xff] }
 0x7b8   :  { %24924 = vst [vmem:[#allocation121_spill] sm:$0xff] %v23769_v21 }
 0x7ba   :  { %18283 = vmatmul.mubr.f32.gmra.mrb[44].mxu1 %v23754_v22  ;;  %v23772_v22 = vld [vmem:[#allocation3 + $0x3f0] sm:$0xff] }
 0x7bb   :  { %18285 = vmatprep.mubr.f32.mxu1 %v23757_v51  ;;  %24925 = vst [vmem:[#allocation122_spill] sm:$0xff] %v23772_v22  ;;  %v23775_v51 = vld [vmem:[#allocation3 + $0x408] sm:$0xff] }
 0x7bc   :  { %24926 = vst [vmem:[#allocation123_spill] sm:$0xff] %v23775_v51 }
 0x7be   :  { %18286 = vmatmul.mubr.f32.gmra.mrb[46].mxu1 %v23760_v19  ;;  %v23778_v19 = vld [vmem:[#allocation3 + $0x410] sm:$0xff] }
 0x7bf   :  { %18288 = vmatprep.mubr.f32.mxu1 %v23763_v40  ;;  %24927 = vst [vmem:[#allocation124_spill] sm:$0xff] %v23778_v19  ;;  %v23781_v40 = vld [vmem:[#allocation3 + $0x428] sm:$0xff] }
 0x7c0   :  { %24928 = vst [vmem:[#allocation125_spill] sm:$0xff] %v23781_v40 }
 0x7c2   :  { %18289 = vmatmul.mubr.f32.gmra.mrb[48].mxu1 %v23766_v1  ;;  %v23784_v1 = vld [vmem:[#allocation3 + $0x430] sm:$0xff] }
 0x7c3   :  { %18291 = vmatprep.mubr.f32.mxu1 %v23769_v21  ;;  %24929 = vst [vmem:[#allocation126_spill] sm:$0xff] %v23784_v1  ;;  %v23787_v21 = vld [vmem:[#allocation3 + $0x448] sm:$0xff] }
 0x7c4   :  { %24930 = vst [vmem:[#allocation127_spill] sm:$0xff] %v23787_v21 }
 0x7c6   :  { %18292 = vmatmul.mubr.f32.gmra.mrb[50].mxu1 %v23772_v22  ;;  %v23790_v22 = vld [vmem:[#allocation3 + $0x450] sm:$0xff] }
 0x7c7   :  { %18294 = vmatprep.mubr.f32.mxu1 %v23775_v51  ;;  %v15429_v51 = vld [vmem:[%s24313_s3 + $0x310] sm:$0xff] }
 0x7ca   :  { %18295 = vmatmul.mubr.f32.gmra.mrb[52].mxu1 %v23778_v19  ;;  %v15430_v19 = vld [vmem:[%s24313_s3 + $0x318] sm:$0xff] }
 0x7cb   :  { %18297 = vmatprep.mubr.f32.mxu1 %v23781_v40  ;;  %v19011_v40 = vpack.c.bf16 %v15430_v19, %v15429_v51  ;;  %v15434_v19 = vld [vmem:[%s24313_s3 + $0x338] sm:$0xff]  ;;  %v24949_v51 = vld [vmem:[#allocation23_spill] sm:$0xff] }
 0x7ce   :  { %18298 = vmatmul.mubr.f32.gmra.mrb[54].mxu1 %v23784_v1  ;;  %v15431_v1 = vld [vmem:[%s24313_s3 + $0x320] sm:$0xff] }
 0x7cf   :  { %18300 = vmatprep.mubr.f32.mxu1 %v23787_v21  ;;  %v15432_v21 = vld [vmem:[%s24313_s3 + $0x328] sm:$0xff] }
 0x7d0   :  { %v19015_v15 = vpack.c.bf16 %v15432_v21, %v15431_v1  ;;  %v15436_v1 = vld [vmem:[%s24313_s3 + $0x348] sm:$0xff]  ;;  %v15442_v21 = vld [vmem:[%s24313_s3 + $0x378] sm:$0xff] }
 0x7d2   :  { %18301 = vmatmul.mubr.f32.gmra.mrb[56].mxu1 %v23790_v22 }
 0x7d3   :  { %18335 = vmatprep.mubr.f32.mxu1 %v23109_v41  ;;  %v15433_v41 = vld [vmem:[%s24313_s3 + $0x330] sm:$0xff] }
 0x7d6   :  { %18336 = vmatmul.mubr.f32.vlgmr.msra.gmra.mrb[58].mxu1 %v23113_v62  ;;  %v19019_v62 = vpack.c.bf16 %v15434_v19, %v15433_v41  ;;  %v15459_v19 = vld [vmem:[%s24313_s3 + $0x400] sm:$0xff] }
 0x7d7   :  { %19010 = vmatpush3.bf16.msra.mxu1 %v23649_v39  ;;  %18338 = vmatprep.mubr.f32.mxu1 %v23122_v32  ;;  %v15435_v32 = vld [vmem:[%s24313_s3 + $0x340] sm:$0xff]  ;;  %v15440_v39 = vld [vmem:[%s24313_s3 + $0x368] sm:$0xff] }
 0x7d8   :  { %19012 = vmatprep.subr.bf16.mxu1 %v19011_v40 }
 0x7da   :  { %18339 = vmatmul.mubr.f32.gmra.mrb[60].mxu1 %v23125_v42  ;;  %v19023_v42 = vpack.c.bf16 %v15436_v1, %v15435_v32  ;;  %v24950_v32 = vld [vmem:[#allocation24_spill] sm:$0xff]  ;;  %v24951_v1 = vld [vmem:[#allocation25_spill] sm:$0xff] }
 0x7db   :  { %18341 = vmatprep.mubr.f32.mxu1 %v23134_v13  ;;  %19014 = vmatpush3.bf16.msra.mxu1 %v19011_v40  ;;  %v15437_v13 = vld [vmem:[%s24313_s3 + $0x350] sm:$0xff]  ;;  %v15438_v40 = vld [vmem:[%s24313_s3 + $0x358] sm:$0xff] }
 0x7dc   :  { %19016 = vmatprep.subr.bf16.mxu1 %v19015_v15 }
 0x7de   :  { %18342 = vmatmul.mubr.f32.gmra.mrb[62].mxu1 %v23137_v0  ;;  %v19027_v0 = vpack.c.bf16 %v15438_v40, %v15437_v13  ;;  %v24952_v13 = vld [vmem:[#allocation26_spill] sm:$0xff]  ;;  %v24953_v40 = vld [vmem:[#allocation27_spill] sm:$0xff] }
 0x7df   :  { %18344 = vmatprep.mubr.f32.mxu1 %v23146_v31  ;;  %19018 = vmatpush3.bf16.msra.mxu1 %v19015_v15  ;;  %v15439_v31 = vld [vmem:[%s24313_s3 + $0x360] sm:$0xff]  ;;  %v15444_v15 = vld [vmem:[%s24313_s3 + $0x388] sm:$0xff] }
 0x7e0   :  { %19020 = vmatprep.subr.bf16.mxu1 %v19019_v62 }
 0x7e2   :  { %18345 = vmatmul.mubr.f32.gmra.mrb[0].mxu1 %v23149_v6  ;;  %v19031_v6 = vpack.c.bf16 %v15440_v39, %v15439_v31  ;;  %v24955_v31 = vld [vmem:[#allocation29_spill] sm:$0xff]  ;;  %v24956_v39 = vld [vmem:[#allocation30_spill] sm:$0xff] }
 0x7e3   :  { %18347 = vmatprep.mubr.f32.mxu1 %v23158_v48  ;;  %19022 = vmatpush3.bf16.msra.mxu1 %v19019_v62  ;;  %v15441_v48 = vld [vmem:[%s24313_s3 + $0x370] sm:$0xff]  ;;  %v15460_v62 = vld [vmem:[%s24313_s3 + $0x408] sm:$0xff] }
 0x7e4   :  { %19024 = vmatprep.subr.bf16.mxu1 %v19023_v42 }
 0x7e6   :  { %18348 = vmatmul.mubr.f32.gmra.mrb[2].mxu1 %v23161_v54  ;;  %v19035_v54 = vpack.c.bf16 %v15442_v21, %v15441_v48  ;;  %v24958_v48 = vld [vmem:[#allocation32_spill] sm:$0xff]  ;;  %v24959_v21 = vld [vmem:[#allocation33_spill] sm:$0xff] }
 0x7e7   :  { %18350 = vmatprep.mubr.f32.mxu1 %v23170_v55  ;;  %19026 = vmatpush3.bf16.msra.mxu1 %v19023_v42  ;;  %v15443_v55 = vld [vmem:[%s24313_s3 + $0x380] sm:$0xff]  ;;  %v19071_v42 = vpack.c.bf16 %v15460_v62, %v15459_v19 }
 0x7e8   :  { %19028 = vmatprep.subr.bf16.mxu1 %v19027_v0  ;;  %v15463_v62 = vld [vmem:[%s24313_s3 + $0x420] sm:$0xff] }
 0x7ea   :  { %18351 = vmatmul.mubr.f32.gmra.mrb[4].mxu1 %v23173_v12  ;;  %v19039_v12 = vpack.c.bf16 %v15444_v15, %v15443_v55  ;;  %v24961_v55 = vld [vmem:[#allocation35_spill] sm:$0xff]  ;;  %v24962_v15 = vld [vmem:[#allocation36_spill] sm:$0xff] }
 0x7eb   :  { %18353 = vmatprep.mubr.f32.mxu1 %v23182_v59  ;;  %19030 = vmatpush3.bf16.msra.mxu1 %v19027_v0  ;;  %v23872_v59 = vld [vmem:[#allocation3 + $0x209] sm:$0xff]  ;;  %v24954_v0 = vld [vmem:[#allocation28_spill] sm:$0xff] }
 0x7ec   :  { %19032 = vmatprep.subr.bf16.mxu1 %v19031_v6 }
 0x7ee   :  { %18354 = vmatmul.mubr.f32.gmra.mrb[6].mxu1 %v23187_v63  ;;  %v23875_v63 = vld [vmem:[#allocation3 + $0x211] sm:$0xff] }
 0x7ef   :  { %18356 = vmatprep.mubr.f32.mxu1 %v23190_v50  ;;  %19034 = vmatpush3.bf16.msra.mxu1 %v19031_v6  ;;  %v24931_v50 = vld [vmem:[#allocation5_spill] sm:$0xff]  ;;  %v24957_v6 = vld [vmem:[#allocation31_spill] sm:$0xff] }
 0x7f0   :  { %19036 = vmatprep.subr.bf16.mxu1 %v19035_v54 }
 0x7f2   :  { %18357 = vmatmul.mubr.f32.gmra.mrb[8].mxu1 %v23194_v37  ;;  %v24932_v37 = vld [vmem:[#allocation6_spill] sm:$0xff] }
 0x7f3   :  { %18359 = vmatprep.mubr.f32.mxu1 %v23197_v3  ;;  %19038 = vmatpush3.bf16.msra.mxu1 %v19035_v54  ;;  %v24933_v3 = vld [vmem:[#allocation7_spill] sm:$0xff]  ;;  %v24960_v54 = vld [vmem:[#allocation34_spill] sm:$0xff] }
 0x7f4   :  { %19040 = vmatprep.subr.bf16.mxu1 %v19039_v12 }
 0x7f6   :  { %18360 = vmatmul.mubr.f32.gmra.mrb[10].mxu1 %v23200_v36  ;;  %v24934_v36 = vld [vmem:[#allocation8_spill] sm:$0xff] }
 0x7f7   :  { %18362 = vmatprep.mubr.f32.mxu1 %v23203_v24  ;;  %v24935_v24 = vld [vmem:[#allocation9_spill] sm:$0xff] }
 0x7fa   :  { %18363 = vmatmul.mubr.f32.gmra.mrb[12].mxu1 %v23206_v4  ;;  %v24936_v4 = vld [vmem:[#allocation10_spill] sm:$0xff] }
 0x7fb   :  { %18365 = vmatprep.mubr.f32.mxu1 %v23209_v25  ;;  %v23908_v25 = vld [vmem:[#allocation3 + $0x449] sm:$0xff] }
 0x7fe   :  { %18366 = vmatmul.mubr.f32.gmra.mrb[14].mxu1 %v23212_v11  ;;  %v23911_v11 = vld [vmem:[#allocation3 + $0x451] sm:$0xff] }
 0x7ff   :  { %18368 = vmatprep.mubr.f32.mxu1 %v23215_v27  ;;  %v15445_v27 = vld [vmem:[%s24313_s3 + $0x390] sm:$0xff] }
 0x802   :  { %18369 = vmatmul.mubr.f32.gmra.mrb[16].mxu1 %v23218_v60  ;;  %v15446_v60 = vld [vmem:[%s24313_s3 + $0x398] sm:$0xff] }
 0x803   :  { %18371 = vmatprep.mubr.f32.mxu1 %v23221_v17  ;;  %v24937_v17 = vld [vmem:[#allocation11_spill] sm:$0xff] }
 0x806   :  { %18372 = vmatmul.mubr.f32.gmra.mrb[18].mxu1 %v23224_v20  ;;  %v19043_v20 = vpack.c.bf16 %v15446_v60, %v15445_v27  ;;  %v24968_v27 = vld [vmem:[#allocation42_spill] sm:$0xff]  ;;  %v24969_v60 = vld [vmem:[#allocation43_spill] sm:$0xff] }
 0x807   :  { %18374 = vmatprep.mubr.f32.mxu1 %v23227_v18  ;;  %v15447_v18 = vld [vmem:[%s24313_s3 + $0x3a0] sm:$0xff] }
 0x80a   :  { %18375 = vmatmul.mubr.f32.gmra.mrb[20].mxu1 %v23230_v26  ;;  %v15448_v26 = vld [vmem:[%s24313_s3 + $0x3a8] sm:$0xff] }
 0x80b   :  { %18377 = vmatprep.mubr.f32.mxu1 %v23233_v33  ;;  %v24938_v33 = vld [vmem:[#allocation12_spill] sm:$0xff] }
 0x80e   :  { %18378 = vmatmul.mubr.f32.gmra.mrb[22].mxu1 %v23236_v58  ;;  %v24939_v58 = vld [vmem:[#allocation13_spill] sm:$0xff] }
 0x80f   :  { %18380 = vmatprep.mubr.f32.mxu1 %v23872_v59 }
 0x812   :  { %18381 = vmatmul.mubr.f32.gmra.mrb[24].mxu1 %v23875_v63 }
 0x813   :  { %18383 = vmatprep.mubr.f32.mxu1 %v23239_v23  ;;  %v19047_v23 = vpack.c.bf16 %v15448_v26, %v15447_v18  ;;  %v24972_v18 = vld [vmem:[#allocation46_spill] sm:$0xff]  ;;  %v24973_v26 = vld [vmem:[#allocation47_spill] sm:$0xff] }
 0x816   :  { %18384 = vmatmul.mubr.f32.gmra.mrb[26].mxu1 %v23242_v45  ;;  %v15449_v45 = vld [vmem:[%s24313_s3 + $0x3b0] sm:$0xff] }
 0x817   :  { %18386 = vmatprep.mubr.f32.mxu1 %v23245_v44  ;;  %v15450_v44 = vld [vmem:[%s24313_s3 + $0x3b8] sm:$0xff] }
 0x81a   :  { %18387 = vmatmul.mubr.f32.gmra.mrb[28].mxu1 %v23248_v47  ;;  %v24940_v47 = vld [vmem:[#allocation14_spill] sm:$0xff] }
 0x81b   :  { %18389 = vmatprep.mubr.f32.mxu1 %v23251_v49  ;;  %v24941_v49 = vld [vmem:[#allocation15_spill] sm:$0xff] }
 0x81e   :  { %18390 = vmatmul.mubr.f32.gmra.mrb[30].mxu1 %v23254_v53  ;;  %v19051_v53 = vpack.c.bf16 %v15450_v44, %v15449_v45  ;;  %v24977_v45 = vld [vmem:[#allocation51_spill] sm:$0xff]  ;;  %v24978_v44 = vld [vmem:[#allocation52_spill] sm:$0xff] }
 0x81f   :  { %18392 = vmatprep.mubr.f32.mxu1 %v23257_v57  ;;  %v15451_v57 = vld [vmem:[%s24313_s3 + $0x3c0] sm:$0xff] }
 0x822   :  { %18393 = vmatmul.mubr.f32.gmra.mrb[32].mxu1 %v23260_v61  ;;  %v15452_v61 = vld [vmem:[%s24313_s3 + $0x3c8] sm:$0xff] }
 0x823   :  { %18395 = vmatprep.mubr.f32.mxu1 %v23263_v2  ;;  %v24942_v2 = vld [vmem:[#allocation16_spill] sm:$0xff] }
 0x826   :  { %18396 = vmatmul.mubr.f32.gmra.mrb[34].mxu1 %v23266_v7  ;;  %v24943_v7 = vld [vmem:[#allocation17_spill] sm:$0xff] }
 0x827   :  { %18398 = vmatprep.mubr.f32.mxu1 %v23269_v34  ;;  %v19055_v34 = vpack.c.bf16 %v15452_v61, %v15451_v57  ;;  %v24982_v57 = vld [vmem:[#allocation56_spill] sm:$0xff]  ;;  %v24983_v61 = vld [vmem:[#allocation57_spill] sm:$0xff] }
 0x82a   :  { %18399 = vmatmul.mubr.f32.gmra.mrb[36].mxu1 %v23272_v29  ;;  %v15453_v29 = vld [vmem:[%s24313_s3 + $0x3d0] sm:$0xff] }
 0x82b   :  { %18401 = vmatprep.mubr.f32.mxu1 %v23275_v28  ;;  %v15454_v28 = vld [vmem:[%s24313_s3 + $0x3d8] sm:$0xff] }
 0x82e   :  { %18402 = vmatmul.mubr.f32.gmra.mrb[38].mxu1 %v23278_v10  ;;  %v24944_v10 = vld [vmem:[#allocation18_spill] sm:$0xff] }
 0x82f   :  { %18404 = vmatprep.mubr.f32.mxu1 %v23281_v9  ;;  %v24945_v9 = vld [vmem:[#allocation19_spill] sm:$0xff] }
 0x832   :  { %18405 = vmatmul.mubr.f32.gmra.mrb[40].mxu1 %v23284_v5  ;;  %v19059_v5 = vpack.c.bf16 %v15454_v28, %v15453_v29  ;;  %v24987_v29 = vld [vmem:[#allocation61_spill] sm:$0xff]  ;;  %v24988_v28 = vld [vmem:[#allocation62_spill] sm:$0xff] }
 0x833   :  { %18407 = vmatprep.mubr.f32.mxu1 %v23287_v14  ;;  %v15455_v14 = vld [vmem:[%s24313_s3 + $0x3e0] sm:$0xff] }
 0x836   :  { %18408 = vmatmul.mubr.f32.gmra.mrb[42].mxu1 %v23290_v38  ;;  %v15456_v38 = vld [vmem:[%s24313_s3 + $0x3e8] sm:$0xff] }
 0x837   :  { %18410 = vmatprep.mubr.f32.mxu1 %v23293_v46  ;;  %v24946_v46 = vld [vmem:[#allocation20_spill] sm:$0xff] }
 0x83a   :  { %18411 = vmatmul.mubr.f32.gmra.mrb[44].mxu1 %v23296_v56  ;;  %v24947_v56 = vld [vmem:[#allocation21_spill] sm:$0xff] }
 0x83b   :  { %18413 = vmatprep.mubr.f32.mxu1 %v23299_v8  ;;  %v19063_v8 = vpack.c.bf16 %v15456_v38, %v15455_v14  ;;  %v24992_v14 = vld [vmem:[#allocation66_spill] sm:$0xff]  ;;  %v24993_v38 = vld [vmem:[#allocation67_spill] sm:$0xff] }
 0x83e   :  { %18414 = vmatmul.mubr.f32.gmra.mrb[46].mxu1 %v23302_v35  ;;  %v15457_v35 = vld [vmem:[%s24313_s3 + $0x3f0] sm:$0xff] }
 0x83f   :  { %18416 = vmatprep.mubr.f32.mxu1 %v23305_v52  ;;  %v15458_v52 = vld [vmem:[%s24313_s3 + $0x3f8] sm:$0xff] }
 0x840   :  { %v19067_v41 = vpack.c.bf16 %v15458_v52, %v15457_v35  ;;  %v24996_v35 = vld [vmem:[#allocation70_spill] sm:$0xff] }
 0x841   :  { %v12384_v52 = vld [vmem:[#allocation3 + $0x46f] sm:$0xff] }
 0x842   :  { %18417 = vmatmul.mubr.f32.gmra.mrb[48].mxu1 %v23308_v16  ;;  %v24948_v16 = vld [vmem:[#allocation22_spill] sm:$0xff] }
 0x843   :  { %18419 = vmatprep.mubr.f32.mxu1 %v24931_v50  ;;  %v24964_v50 = vld [vmem:[#allocation38_spill] sm:$0xff] }
 0x846   :  { %18420 = vmatmul.mubr.f32.gmra.mrb[50].mxu1 %v24932_v37  ;;  %v24965_v37 = vld [vmem:[#allocation39_spill] sm:$0xff] }
 0x847   :  { %18422 = vmatprep.mubr.f32.mxu1 %v24933_v3  ;;  %v12351_v3 = vld [vmem:[#allocation3 + $0x227] sm:$0xff] }
 0x84a   :  { %18423 = vmatmul.mubr.f32.gmra.mrb[52].mxu1 %v24934_v36  ;;  %v24966_v36 = vld [vmem:[#allocation40_spill] sm:$0xff] }
 0x84b   :  { %18425 = vmatprep.mubr.f32.mxu1 %v24935_v24  ;;  %v12352_v24 = vld [vmem:[#allocation3 + $0x22f] sm:$0xff] }
 0x84e   :  { %18426 = vmatmul.mubr.f32.gmra.mrb[54].mxu1 %v24936_v4  ;;  %v24967_v4 = vld [vmem:[#allocation41_spill] sm:$0xff] }
 0x84f   :  { %18428 = vmatprep.mubr.f32.mxu1 %v23908_v25 }
 0x852   :  { %18429 = vmatmul.mubr.f32.gmra.mrb[56].mxu1 %v23911_v11 }
 0x853   :  { %18463 = vmatprep.mubr.f32.mxu1 %v24937_v17  ;;  %v24970_v17 = vld [vmem:[#allocation44_spill] sm:$0xff] }
 0x856   :  { %18464 = vmatmul.mubr.f32.vlgmr.msra.gmra.mrb[58].mxu1 %v24938_v33  ;;  %v24974_v33 = vld [vmem:[#allocation48_spill] sm:$0xff] }
 0x857   :  { %19042 = vmatpush3.bf16.msra.mxu1 %v19039_v12  ;;  %18466 = vmatprep.mubr.f32.mxu1 %v24939_v58  ;;  %v24963_v12 = vld [vmem:[#allocation37_spill] sm:$0xff] }
 0x858   :  { %19044 = vmatprep.subr.bf16.mxu1 %v19043_v20  ;;  %v24975_v58 = vld [vmem:[#allocation49_spill] sm:$0xff] }
 0x85a   :  { %18467 = vmatmul.mubr.f32.gmra.mrb[60].mxu1 %v24940_v47  ;;  %v24979_v47 = vld [vmem:[#allocation53_spill] sm:$0xff] }
 0x85b   :  { %18469 = vmatprep.mubr.f32.mxu1 %v24941_v49  ;;  %19046 = vmatpush3.bf16.msra.mxu1 %v19043_v20  ;;  %v24971_v20 = vld [vmem:[#allocation45_spill] sm:$0xff]  ;;  %v24980_v49 = vld [vmem:[#allocation54_spill] sm:$0xff] }
 0x85c   :  { %19048 = vmatprep.subr.bf16.mxu1 %v19047_v23 }
 0x85e   :  { %18470 = vmatmul.mubr.f32.gmra.mrb[62].mxu1 %v24942_v2  ;;  %v24984_v2 = vld [vmem:[#allocation58_spill] sm:$0xff] }
 0x85f   :  { %18472 = vmatprep.mubr.f32.mxu1 %v24943_v7  ;;  %19050 = vmatpush3.bf16.msra.mxu1 %v19047_v23  ;;  %v24976_v23 = vld [vmem:[#allocation50_spill] sm:$0xff]  ;;  %v24985_v7 = vld [vmem:[#allocation59_spill] sm:$0xff] }
 0x860   :  { %19052 = vmatprep.subr.bf16.mxu1 %v19051_v53 }
 0x862   :  { %18473 = vmatmul.mubr.f32.gmra.mrb[0].mxu1 %v24944_v10  ;;  %v24989_v10 = vld [vmem:[#allocation63_spill] sm:$0xff] }
 0x863   :  { %18475 = vmatprep.mubr.f32.mxu1 %v24945_v9  ;;  %19054 = vmatpush3.bf16.msra.mxu1 %v19051_v53  ;;  %v24981_v53 = vld [vmem:[#allocation55_spill] sm:$0xff]  ;;  %v24990_v9 = vld [vmem:[#allocation64_spill] sm:$0xff] }
 0x864   :  { %19056 = vmatprep.subr.bf16.mxu1 %v19055_v34 }
 0x866   :  { %18476 = vmatmul.mubr.f32.gmra.mrb[2].mxu1 %v24946_v46  ;;  %v24994_v46 = vld [vmem:[#allocation68_spill] sm:$0xff] }
 0x867   :  { %18478 = vmatprep.mubr.f32.mxu1 %v24947_v56  ;;  %19058 = vmatpush3.bf16.msra.mxu1 %v19055_v34  ;;  %v24986_v34 = vld [vmem:[#allocation60_spill] sm:$0xff]  ;;  %v24995_v56 = vld [vmem:[#allocation69_spill] sm:$0xff] }
 0x868   :  { %19060 = vmatprep.subr.bf16.mxu1 %v19059_v5 }
 0x86a   :  { %18479 = vmatmul.mubr.f32.gmra.mrb[4].mxu1 %v24948_v16  ;;  %v15461_v16 = vld [vmem:[%s24313_s3 + $0x410] sm:$0xff] }
 0x86b   :  { %18481 = vmatprep.mubr.f32.mxu1 %v24949_v51  ;;  %19062 = vmatpush3.bf16.msra.mxu1 %v19059_v5  ;;  %v24991_v5 = vld [vmem:[#allocation65_spill] sm:$0xff]  ;;  %v15462_v51 = vld [vmem:[%s24313_s3 + $0x418] sm:$0xff] }
 0x86c   :  { %19064 = vmatprep.subr.bf16.mxu1 %v19063_v8  ;;  %v19075_v19 = vpack.c.bf16 %v15462_v51, %v15461_v16  ;;  %v25034_v16 = vld [vmem:[#allocation108_spill] sm:$0xff]  ;;  %v25035_v51 = vld [vmem:[#allocation109_spill] sm:$0xff] }
 0x86e   :  { %18482 = vmatmul.mubr.f32.gmra.mrb[6].mxu1 %v24950_v32  ;;  %v15464_v32 = vld [vmem:[%s24313_s3 + $0x428] sm:$0xff] }
 0x86f   :  { %18484 = vmatprep.mubr.f32.mxu1 %v24951_v1  ;;  %19066 = vmatpush3.bf16.msra.mxu1 %v19063_v8  ;;  %v12383_v8 = vld [vmem:[#allocation3 + $0x467] sm:$0xff]  ;;  %v24998_v1 = vld [vmem:[#allocation72_spill] sm:$0xff] }
 0x870   :  { %19068 = vmatprep.subr.bf16.mxu1 %v19067_v41 }
 0x872   :  { %18485 = vmatmul.mubr.f32.gmra.mrb[8].mxu1 %v24952_v13  ;;  %v24999_v13 = vld [vmem:[#allocation73_spill] sm:$0xff] }
 0x873   :  { %18487 = vmatprep.mubr.f32.mxu1 %v24953_v40  ;;  %19070 = vmatpush3.bf16.msra.mxu1 %v19067_v41  ;;  %v24997_v41 = vld [vmem:[#allocation71_spill] sm:$0xff]  ;;  %v19079_v40 = vpack.c.bf16 %v15464_v32, %v15463_v62  ;;  %v25038_v62 = vld [vmem:[#allocation112_spill] sm:$0xff]  ;;  %v25039_v32 = vld [vmem:[#allocation113_spill] sm:$0xff] }
 0x874   :  { %19072 = vmatprep.subr.bf16.mxu1 %v19071_v42 }
 0x876   :  { %18488 = vmatmul.mubr.f32.gmra.mrb[10].mxu1 %v24954_v0  ;;  %v15465_v0 = vld [vmem:[%s24313_s3 + $0x430] sm:$0xff] }
 0x877   :  { %18490 = vmatprep.mubr.f32.mxu1 %v24955_v31  ;;  %v15466_v31 = vld [vmem:[%s24313_s3 + $0x438] sm:$0xff] }
 0x87a   :  { %18491 = vmatmul.mubr.f32.gmra.mrb[12].mxu1 %v24956_v39  ;;  %v25000_v39 = vld [vmem:[#allocation74_spill] sm:$0xff] }
 0x87b   :  { %18493 = vmatprep.mubr.f32.mxu1 %v24957_v6  ;;  %v25001_v6 = vld [vmem:[#allocation75_spill] sm:$0xff] }
 0x87e   :  { %18494 = vmatmul.mubr.f32.gmra.mrb[14].mxu1 %v24958_v48  ;;  %v19083_v48 = vpack.c.bf16 %v15466_v31, %v15465_v0  ;;  %v25043_v0 = vld [vmem:[#allocation117_spill] sm:$0xff]  ;;  %v25044_v31 = vld [vmem:[#allocation118_spill] sm:$0xff] }
 0x87f   :  { %18496 = vmatprep.mubr.f32.mxu1 %v24959_v21  ;;  %v15468_v21 = vld [vmem:[%s24313_s3 + $0x448] sm:$0xff] }
 0x882   :  { %18497 = vmatmul.mubr.f32.gmra.mrb[16].mxu1 %v24960_v54  ;;  %v25002_v54 = vld [vmem:[#allocation76_spill] sm:$0xff] }
 0x883   :  { %18499 = vmatprep.mubr.f32.mxu1 %v24961_v55  ;;  %v25003_v55 = vld [vmem:[#allocation77_spill] sm:$0xff] }
 0x886   :  { %18500 = vmatmul.mubr.f32.gmra.mrb[18].mxu1 %v24962_v15 }
 0x887   :  { %18502 = vmatprep.mubr.f32.mxu1 %v24963_v12  ;;  %v15469_v12 = vld [vmem:[%s24313_s3 + $0x450] sm:$0xff] }
 0x88a   :  { %18503 = vmatmul.mubr.f32.gmra.mrb[20].mxu1 %v24964_v50  ;;  %v15470_v50 = vld [vmem:[%s24313_s3 + $0x458] sm:$0xff] }
 0x88b   :  { %18505 = vmatprep.mubr.f32.mxu1 %v24965_v37  ;;  %v25004_v37 = vld [vmem:[#allocation78_spill] sm:$0xff] }
 0x88e   :  { %18506 = vmatmul.mubr.f32.gmra.mrb[22].mxu1 %v24966_v36  ;;  %v19091_v36 = vpack.c.bf16 %v15470_v50, %v15469_v12  ;;  %v25053_v12 = vld [vmem:[#allocation127_spill] sm:$0xff] }
 0x88f   :  { %18508 = vmatprep.mubr.f32.mxu1 %v12351_v3  ;;  %v25005_v3 = vld [vmem:[#allocation79_spill] sm:$0xff] }
 0x890   :  { %v13637_v50 = vld [vmem:[#allocation3 + $0x49] sm:$0xff] }
 0x892   :  { %18509 = vmatmul.mubr.f32.gmra.mrb[24].mxu1 %v12352_v24  ;;  %v15471_v24 = vld [vmem:[%s24313_s3 + $0x460] sm:$0xff] }
 0x893   :  { %18511 = vmatprep.mubr.f32.mxu1 %v24967_v4  ;;  %v15472_v4 = vld [vmem:[%s24313_s3 + $0x468] sm:$0xff] }
 0x896   :  { %18512 = vmatmul.mubr.f32.gmra.mrb[26].mxu1 %v24968_v27  ;;  %v25006_v27 = vld [vmem:[#allocation80_spill] sm:$0xff] }
 0x897   :  { %18514 = vmatprep.mubr.f32.mxu1 %v24969_v60  ;;  %v19095_v60 = vpack.c.bf16 %v15472_v4, %v15471_v24  ;;  %v13641_v24 = vld [vmem:[#allocation3 + $0x89] sm:$0xff]  ;;  %v13642_v4 = vld [vmem:[#allocation3 + $0x91] sm:$0xff] }
 0x89a   :  { %18515 = vmatmul.mubr.f32.gmra.mrb[28].mxu1 %v24970_v17  ;;  %v15473_v17 = vld [vmem:[%s24313_s3 + $0x470] sm:$0xff] }
 0x89b   :  { %18517 = vmatprep.mubr.f32.mxu1 %v24971_v20  ;;  %v15474_v20 = vld [vmem:[%s24313_s3 + $0x478] sm:$0xff] }
 0x89e   :  { %18518 = vmatmul.mubr.f32.gmra.mrb[30].mxu1 %v24972_v18  ;;  %v25007_v18 = vld [vmem:[#allocation81_spill] sm:$0xff] }
 0x89f   :  { %18520 = vmatprep.mubr.f32.mxu1 %v24973_v26  ;;  %v25008_v26 = vld [vmem:[#allocation82_spill] sm:$0xff] }
 0x8a2   :  { %18521 = vmatmul.mubr.f32.gmra.mrb[32].mxu1 %v24974_v33  ;;  %v19099_v33 = vpack.c.bf16 %v15474_v20, %v15473_v17  ;;  %v13646_v17 = vld [vmem:[#allocation3 + $0xd1] sm:$0xff]  ;;  %v13647_v20 = vld [vmem:[#allocation3 + $0xe9] sm:$0xff] }
 0x8a3   :  { %18523 = vmatprep.mubr.f32.mxu1 %v24975_v58  ;;  %v25010_v58 = vld [vmem:[#allocation84_spill] sm:$0xff] }
 0x8a6   :  { %18524 = vmatmul.mubr.f32.gmra.mrb[34].mxu1 %v24976_v23  ;;  %v25011_v23 = vld [vmem:[#allocation85_spill] sm:$0xff] }
 0x8a7   :  { %18526 = vmatprep.mubr.f32.mxu1 %v24977_v45  ;;  %v25012_v45 = vld [vmem:[#allocation86_spill] sm:$0xff] }
 0x8aa   :  { %18527 = vmatmul.mubr.f32.gmra.mrb[36].mxu1 %v24978_v44  ;;  %v25013_v44 = vld [vmem:[#allocation87_spill] sm:$0xff] }
 0x8ab   :  { %18529 = vmatprep.mubr.f32.mxu1 %v24979_v47  ;;  %v25014_v47 = vld [vmem:[#allocation88_spill] sm:$0xff] }
 0x8ae   :  { %18530 = vmatmul.mubr.f32.gmra.mrb[38].mxu1 %v24980_v49  ;;  %v25015_v49 = vld [vmem:[#allocation89_spill] sm:$0xff] }
 0x8af   :  { %18532 = vmatprep.mubr.f32.mxu1 %v24981_v53  ;;  %v25016_v53 = vld [vmem:[#allocation90_spill] sm:$0xff] }
 0x8b2   :  { %18533 = vmatmul.mubr.f32.gmra.mrb[40].mxu1 %v24982_v57  ;;  %v25018_v57 = vld [vmem:[#allocation92_spill] sm:$0xff] }
 0x8b3   :  { %18535 = vmatprep.mubr.f32.mxu1 %v24983_v61  ;;  %v25019_v61 = vld [vmem:[#allocation93_spill] sm:$0xff] }
 0x8b6   :  { %18536 = vmatmul.mubr.f32.gmra.mrb[42].mxu1 %v24984_v2  ;;  %v25020_v2 = vld [vmem:[#allocation94_spill] sm:$0xff] }
 0x8b7   :  { %18538 = vmatprep.mubr.f32.mxu1 %v24985_v7  ;;  %v25021_v7 = vld [vmem:[#allocation95_spill] sm:$0xff] }
 0x8ba   :  { %18539 = vmatmul.mubr.f32.gmra.mrb[44].mxu1 %v24986_v34  ;;  %v25022_v34 = vld [vmem:[#allocation96_spill] sm:$0xff] }
 0x8bb   :  { %18541 = vmatprep.mubr.f32.mxu1 %v24987_v29  ;;  %v25023_v29 = vld [vmem:[#allocation97_spill] sm:$0xff] }
 0x8be   :  { %18542 = vmatmul.mubr.f32.gmra.mrb[46].mxu1 %v24988_v28  ;;  %v25024_v28 = vld [vmem:[#allocation98_spill] sm:$0xff] }
 0x8bf   :  { %18544 = vmatprep.mubr.f32.mxu1 %v24989_v10  ;;  %v24094_v10 = vld [vmem:[#allocation3] sm:$0xff] }
 0x8c2   :  { %18545 = vmatmul.mubr.f32.gmra.mrb[48].mxu1 %v24990_v9  ;;  %v25025_v9 = vld [vmem:[#allocation99_spill] sm:$0xff] }
 0x8c3   :  { %18547 = vmatprep.mubr.f32.mxu1 %v24991_v5  ;;  %v25026_v5 = vld [vmem:[#allocation100_spill] sm:$0xff] }
 0x8c6   :  { %18548 = vmatmul.mubr.f32.gmra.mrb[50].mxu1 %v24992_v14  ;;  %v25027_v14 = vld [vmem:[#allocation101_spill] sm:$0xff] }
 0x8c7   :  { %18550 = vmatprep.mubr.f32.mxu1 %v24993_v38  ;;  %v25028_v38 = vld [vmem:[#allocation102_spill] sm:$0xff] }
 0x8ca   :  { %18551 = vmatmul.mubr.f32.gmra.mrb[52].mxu1 %v24994_v46  ;;  %v25029_v46 = vld [vmem:[#allocation103_spill] sm:$0xff] }
 0x8cb   :  { %18553 = vmatprep.mubr.f32.mxu1 %v24995_v56  ;;  %v25030_v56 = vld [vmem:[#allocation104_spill] sm:$0xff] }
 0x8ce   :  { %18554 = vmatmul.mubr.f32.gmra.mrb[54].mxu1 %v24996_v35  ;;  %v25032_v35 = vld [vmem:[#allocation106_spill] sm:$0xff] }
 0x8cf   :  { %18556 = vmatprep.mubr.f32.mxu1 %v12383_v8  ;;  %v25031_v8 = vld [vmem:[#allocation105_spill] sm:$0xff] }
 0x8d2   :  { %18557 = vmatmul.mubr.f32.gmra.mrb[56].mxu1 %v12384_v52  ;;  %v25033_v52 = vld [vmem:[#allocation107_spill] sm:$0xff] }
 0x8d3   :  { %18591 = vmatprep.mubr.f32.mxu1 %v24997_v41  ;;  %v25036_v41 = vld [vmem:[#allocation110_spill] sm:$0xff] }
 0x8d6   :  { %18592 = vmatmul.mubr.f32.vlgmr.msra.gmra.mrb[58].mxu1 %v24998_v1  ;;  %v25040_v1 = vld [vmem:[#allocation114_spill] sm:$0xff] }
 0x8d7   :  { %19074 = vmatpush3.bf16.msra.mxu1 %v19071_v42  ;;  %18594 = vmatprep.mubr.f32.mxu1 %v24999_v13  ;;  %v15467_v42 = vld [vmem:[%s24313_s3 + $0x440] sm:$0xff]  ;;  %v25041_v13 = vld [vmem:[#allocation115_spill] sm:$0xff] }
 0x8d8   :  { %19076 = vmatprep.subr.bf16.mxu1 %v19075_v19  ;;  %v19087_v15 = vpack.c.bf16 %v15468_v21, %v15467_v42  ;;  %v25048_v42 = vld [vmem:[#allocation122_spill] sm:$0xff]  ;;  %v25049_v21 = vld [vmem:[#allocation123_spill] sm:$0xff] }
 0x8da   :  { %18595 = vmatmul.mubr.f32.gmra.mrb[60].mxu1 %v25000_v39  ;;  %v25045_v39 = vld [vmem:[#allocation119_spill] sm:$0xff] }
 0x8db   :  { %18597 = vmatprep.mubr.f32.mxu1 %v25001_v6  ;;  %19078 = vmatpush3.bf16.msra.mxu1 %v19075_v19  ;;  %v25037_v19 = vld [vmem:[#allocation111_spill] sm:$0xff]  ;;  %v25046_v6 = vld [vmem:[#allocation120_spill] sm:$0xff] }
 0x8dc   :  { %19080 = vmatprep.subr.bf16.mxu1 %v19079_v40 }
 0x8de   :  { %18598 = vmatmul.mubr.f32.gmra.mrb[62].mxu1 %v25002_v54  ;;  %v25050_v54 = vld [vmem:[#allocation124_spill] sm:$0xff] }
 0x8df   :  { %18600 = vmatprep.mubr.f32.mxu1 %v25003_v55  ;;  %19082 = vmatpush3.bf16.msra.mxu1 %v19079_v40  ;;  %v25042_v40 = vld [vmem:[#allocation116_spill] sm:$0xff]  ;;  %v25051_v55 = vld [vmem:[#allocation125_spill] sm:$0xff] }
 0x8e0   :  { %19084 = vmatprep.subr.bf16.mxu1 %v19083_v48 }
 0x8e2   :  { %18601 = vmatmul.mubr.f32.gmra.mrb[0].mxu1 %v25004_v37  ;;  %v13638_v37 = vld [vmem:[#allocation3 + $0x51] sm:$0xff] }
 0x8e3   :  { %18603 = vmatprep.mubr.f32.mxu1 %v25005_v3  ;;  %19086 = vmatpush3.bf16.msra.mxu1 %v19083_v48  ;;  %v25047_v48 = vld [vmem:[#allocation121_spill] sm:$0xff]  ;;  %v13639_v3 = vld [vmem:[#allocation3 + $0x69] sm:$0xff] }
 0x8e4   :  { %19088 = vmatprep.subr.bf16.mxu1 %v19087_v15 }
 0x8e6   :  { %18604 = vmatmul.mubr.f32.gmra.mrb[2].mxu1 %v25006_v27  ;;  %v13643_v27 = vld [vmem:[#allocation3 + $0xa9] sm:$0xff] }
 0x8e7   :  { %18606 = vmatprep.mubr.f32.mxu1 %v23634_v43  ;;  %19090 = vmatpush3.bf16.msra.mxu1 %v19087_v15  ;;  %v25009_v43 = vld [vmem:[#allocation83_spill] sm:$0xff]  ;;  %v25052_v15 = vld [vmem:[#allocation126_spill] sm:$0xff] }
 0x8e8   :  { %19092 = vmatprep.subr.bf16.mxu1 %v19091_v36 }
 0x8ea   :  { %18607 = vmatmul.mubr.f32.gmra.mrb[4].mxu1 %v25007_v18  ;;  %v13648_v18 = vld [vmem:[#allocation3 + $0xf1] sm:$0xff] }
 0x8eb   :  { %18609 = vmatprep.mubr.f32.mxu1 %v25008_v26  ;;  %19094 = vmatpush3.bf16.msra.mxu1 %v19091_v36  ;;  %v13640_v36 = vld [vmem:[#allocation3 + $0x71] sm:$0xff]  ;;  %v13649_v26 = vld [vmem:[#allocation3 + $0x109] sm:$0xff] }
 0x8ec   :  { %19096 = vmatprep.subr.bf16.mxu1 %v19095_v60 }
 0x8ee   :  { %18610 = vmatmul.mubr.f32.gmra.mrb[6].mxu1 %v23651_v30  ;;  %v25017_v30 = vld [vmem:[#allocation91_spill] sm:$0xff] }
 0x8ef   :  { %18612 = vmatprep.mubr.f32.mxu1 %v25009_v43  ;;  %19098 = vmatpush3.bf16.msra.mxu1 %v19095_v60  ;;  %v13644_v60 = vld [vmem:[#allocation3 + $0xb1] sm:$0xff]  ;;  %v13651_v43 = vld [vmem:[#allocation3 + $0x129] sm:$0xff] }
 0x8f0   :  { %19100 = vmatprep.subr.bf16.mxu1 %v19099_v33 }
 0x8f2   :  { %18613 = vmatmul.mubr.f32.gmra.mrb[8].mxu1 %v25010_v58  ;;  %v13652_v58 = vld [vmem:[#allocation3 + $0x131] sm:$0xff] }
 0x8f3   :  { %18615 = vmatprep.mubr.f32.mxu1 %v25011_v23  ;;  %19102 = vmatpush3.bf16.msra.mxu1 %v19099_v33  ;;  %v13650_v33 = vld [vmem:[#allocation3 + $0x111] sm:$0xff]  ;;  %v13653_v23 = vld [vmem:[#allocation3 + $0x149] sm:$0xff] }
 0x8f6   :  { %18616 = vmatmul.mubr.f32.gmra.mrb[10].mxu1 %v25012_v45  ;;  %v13654_v45 = vld [vmem:[#allocation3 + $0x151] sm:$0xff] }
 0x8f7   :  { %18618 = vmatprep.mubr.f32.mxu1 %v25013_v44  ;;  %v13655_v44 = vld [vmem:[#allocation3 + $0x169] sm:$0xff] }
 0x8fa   :  { %18619 = vmatmul.mubr.f32.gmra.mrb[12].mxu1 %v25014_v47  ;;  %v13656_v47 = vld [vmem:[#allocation3 + $0x171] sm:$0xff] }
 0x8fb   :  { %18621 = vmatprep.mubr.f32.mxu1 %v25015_v49  ;;  %v13657_v49 = vld [vmem:[#allocation3 + $0x189] sm:$0xff] }
 0x8fe   :  { %18622 = vmatmul.mubr.f32.gmra.mrb[14].mxu1 %v25016_v53  ;;  %v13658_v53 = vld [vmem:[#allocation3 + $0x191] sm:$0xff] }
 0x8ff   :  { %18624 = vmatprep.mubr.f32.mxu1 %v25017_v30  ;;  %v13659_v30 = vld [vmem:[#allocation3 + $0x1a9] sm:$0xff] }
 0x902   :  { %18625 = vmatmul.mubr.f32.gmra.mrb[16].mxu1 %v25018_v57  ;;  %v13660_v57 = vld [vmem:[#allocation3 + $0x1b1] sm:$0xff] }
 0x903   :  { %18627 = vmatprep.mubr.f32.mxu1 %v25019_v61  ;;  %v13661_v61 = vld [vmem:[#allocation3 + $0x1c9] sm:$0xff] }
 0x906   :  { %18628 = vmatmul.mubr.f32.gmra.mrb[18].mxu1 %v25020_v2  ;;  %v13662_v2 = vld [vmem:[#allocation3 + $0x1d1] sm:$0xff] }
 0x907   :  { %18630 = vmatprep.mubr.f32.mxu1 %v25021_v7  ;;  %v13663_v7 = vld [vmem:[#allocation3 + $0x1e9] sm:$0xff] }
 0x90a   :  { %18631 = vmatmul.mubr.f32.gmra.mrb[20].mxu1 %v25022_v34  ;;  %v13664_v34 = vld [vmem:[#allocation3 + $0x1f1] sm:$0xff] }
 0x90b   :  { %18633 = vmatprep.mubr.f32.mxu1 %v25023_v29  ;;  %v13667_v29 = vld [vmem:[#allocation3 + $0x229] sm:$0xff] }
 0x90e   :  { %18634 = vmatmul.mubr.f32.gmra.mrb[22].mxu1 %v25024_v28  ;;  %v13668_v28 = vld [vmem:[#allocation3 + $0x231] sm:$0xff] }
 0x90f   :  { %18636 = vmatprep.mubr.f32.mxu1 %v24094_v10 }
 0x912   :  { %18637 = vmatmul.mubr.f32.gmra.mrb[24].mxu1 %v24094_v10 }
 0x913   :  { %18639 = vmatprep.mubr.f32.mxu1 %v25025_v9  ;;  %v13669_v9 = vld [vmem:[#allocation3 + $0x289] sm:$0xff] }
 0x916   :  { %18640 = vmatmul.mubr.f32.gmra.mrb[26].mxu1 %v25026_v5  ;;  %v13670_v5 = vld [vmem:[#allocation3 + $0x291] sm:$0xff] }
 0x917   :  { %18642 = vmatprep.mubr.f32.mxu1 %v25027_v14  ;;  %v13671_v14 = vld [vmem:[#allocation3 + $0x2a9] sm:$0xff] }
 0x91a   :  { %18643 = vmatmul.mubr.f32.gmra.mrb[28].mxu1 %v25028_v38  ;;  %v13672_v38 = vld [vmem:[#allocation3 + $0x2b1] sm:$0xff] }
 0x91b   :  { %18645 = vmatprep.mubr.f32.mxu1 %v25029_v46  ;;  %v13673_v46 = vld [vmem:[#allocation3 + $0x2c9] sm:$0xff] }
 0x91e   :  { %18646 = vmatmul.mubr.f32.gmra.mrb[30].mxu1 %v25030_v56  ;;  %v13674_v56 = vld [vmem:[#allocation3 + $0x2d1] sm:$0xff] }
 0x91f   :  { %18648 = vmatprep.mubr.f32.mxu1 %v25031_v8  ;;  %v13675_v8 = vld [vmem:[#allocation3 + $0x2e9] sm:$0xff] }
 0x922   :  { %18649 = vmatmul.mubr.f32.gmra.mrb[32].mxu1 %v25032_v35  ;;  %v13678_v35 = vld [vmem:[#allocation3 + $0x311] sm:$0xff] }
 0x923   :  { %18651 = vmatprep.mubr.f32.mxu1 %v25033_v52  ;;  %v13679_v52 = vld [vmem:[#allocation3 + $0x329] sm:$0xff] }
 0x926   :  { %18652 = vmatmul.mubr.f32.gmra.mrb[34].mxu1 %v25034_v16  ;;  %v13680_v16 = vld [vmem:[#allocation3 + $0x331] sm:$0xff] }
 0x927   :  { %18654 = vmatprep.mubr.f32.mxu1 %v25035_v51  ;;  %v13681_v51 = vld [vmem:[#allocation3 + $0x349] sm:$0xff] }
 0x92a   :  { %18655 = vmatmul.mubr.f32.gmra.mrb[36].mxu1 %v25036_v41  ;;  %v13682_v41 = vld [vmem:[#allocation3 + $0x351] sm:$0xff] }
 0x92b   :  { %18657 = vmatprep.mubr.f32.mxu1 %v25037_v19  ;;  %v13683_v19 = vld [vmem:[#allocation3 + $0x369] sm:$0xff] }
 0x92e   :  { %18658 = vmatmul.mubr.f32.gmra.mrb[38].mxu1 %v25038_v62  ;;  %v13684_v62 = vld [vmem:[#allocation3 + $0x371] sm:$0xff] }
 0x92f   :  { %18660 = vmatprep.mubr.f32.mxu1 %v25039_v32  ;;  %v13685_v32 = vld [vmem:[#allocation3 + $0x389] sm:$0xff] }
 0x932   :  { %18661 = vmatmul.mubr.f32.gmra.mrb[40].mxu1 %v25040_v1  ;;  %v13686_v1 = vld [vmem:[#allocation3 + $0x391] sm:$0xff] }
 0x933   :  { %18663 = vmatprep.mubr.f32.mxu1 %v25041_v13  ;;  %v13687_v13 = vld [vmem:[#allocation3 + $0x3a9] sm:$0xff] }
 0x936   :  { %18664 = vmatmul.mubr.f32.gmra.mrb[42].mxu1 %v25042_v40  ;;  %v13688_v40 = vld [vmem:[#allocation3 + $0x3b1] sm:$0xff] }
 0x937   :  { %18666 = vmatprep.mubr.f32.mxu1 %v25043_v0  ;;  %v13689_v0 = vld [vmem:[#allocation3 + $0x3c9] sm:$0xff] }
 0x93a   :  { %18667 = vmatmul.mubr.f32.gmra.mrb[44].mxu1 %v25044_v31  ;;  %v13690_v31 = vld [vmem:[#allocation3 + $0x3d1] sm:$0xff] }
 0x93b   :  { %18669 = vmatprep.mubr.f32.mxu1 %v25045_v39  ;;  %v13691_v39 = vld [vmem:[#allocation3 + $0x3e9] sm:$0xff] }
 0x93e   :  { %18670 = vmatmul.mubr.f32.gmra.mrb[46].mxu1 %v25046_v6  ;;  %v13692_v6 = vld [vmem:[#allocation3 + $0x3f1] sm:$0xff] }
 0x93f   :  { %18672 = vmatprep.mubr.f32.mxu1 %v25047_v48  ;;  %v13693_v48 = vld [vmem:[#allocation3 + $0x409] sm:$0xff] }
 0x942   :  { %18673 = vmatmul.mubr.f32.gmra.mrb[48].mxu1 %v25048_v42  ;;  %v13694_v42 = vld [vmem:[#allocation3 + $0x411] sm:$0xff] }
 0x943   :  { %18675 = vmatprep.mubr.f32.mxu1 %v25049_v21  ;;  %v13695_v21 = vld [vmem:[#allocation3 + $0x429] sm:$0xff] }
 0x946   :  { %18676 = vmatmul.mubr.f32.gmra.mrb[50].mxu1 %v25050_v54  ;;  %v13696_v54 = vld [vmem:[#allocation3 + $0x431] sm:$0xff] }
 0x947   :  { %18678 = vmatprep.mubr.f32.mxu1 %v25051_v55  ;;  %v13699_v55 = vld [vmem:[#allocation3 + $0x469] sm:$0xff] }
 0x94a   :  { %18679 = vmatmul.mubr.f32.gmra.mrb[52].mxu1 %v25052_v15  ;;  %v13700_v15 = vld [vmem:[#allocation3 + $0x471] sm:$0xff] }
 0x94b   :  { %18681 = vmatprep.mubr.f32.mxu1 %v25053_v12  ;;  %v19313_v12 = vld [vmem:[#allocation4 + $0x8] sm:$0xff] }
 0x94e   :  { %18682 = vmatmul.mubr.f32.gmra.mrb[54].mxu1 %v23790_v22  ;;  %v13645_v22 = vld [vmem:[#allocation3 + $0xc9] sm:$0xff] }
 0x94f   :  { %18684 = vmatprep.mubr.f32.mxu1 %v24094_v10 }
 0x952   :  { %18685 = vmatmul.mubr.f32.gmra.mrb[56].mxu1 %v24094_v10 }
 0x953   :  { %18719 = vmatprep.mubr.f32.mxu1 %v13637_v50  ;;  %v19317_v50 = vld [vmem:[#allocation4] sm:$0xff] }
 0x956   :  { %18720 = vmatmul.mubr.f32.vlgmr.msra.gmra.mrb[58].mxu1 %v13638_v37 }
 0x957   :  { %18722 = vmatprep.mubr.f32.mxu1 %v13639_v3  ;;  %v24137_v3 = vld [vmem:[%s24315_s4] ss:$0 sm:$0xff] }
 0x95a   :  { %18723 = vmatmul.mubr.f32.gmra.mrb[60].mxu1 %v13640_v36 }
 0x95b   :  { %18725 = vmatprep.mubr.f32.mxu1 %v13641_v24 }
 0x95e   :  { %18726 = vmatmul.mubr.f32.gmra.mrb[62].mxu1 %v13642_v4 }
 0x95f   :  { %18728 = vmatprep.mubr.f32.mxu1 %v13643_v27 }
 0x962   :  { %18729 = vmatmul.mubr.f32.gmra.mrb[0].mxu1 %v13644_v60 }
 0x963   :  { %18731 = vmatprep.mubr.f32.mxu1 %v13645_v22 }
 0x966   :  { %18732 = vmatmul.mubr.f32.gmra.mrb[2].mxu1 %v13646_v17 }
 0x967   :  { %18734 = vmatprep.mubr.f32.mxu1 %v13647_v20 }
 0x96a   :  { %18735 = vmatmul.mubr.f32.gmra.mrb[4].mxu1 %v13648_v18  ;;  %v19325_v18 = vld [vmem:[#allocation4 + $0x10] sm:$0xff] }
 0x96b   :  { %18737 = vmatprep.mubr.f32.mxu1 %v13649_v26 }
 0x96e   :  { %18738 = vmatmul.mubr.f32.gmra.mrb[6].mxu1 %v13650_v33 }
 0x96f   :  { %18740 = vmatprep.mubr.f32.mxu1 %v13651_v43 }
 0x972   :  { %18741 = vmatmul.mubr.f32.gmra.mrb[8].mxu1 %v13652_v58 }
 0x973   :  { %18743 = vmatprep.mubr.f32.mxu1 %v13653_v23 }
 0x976   :  { %18744 = vmatmul.mubr.f32.gmra.mrb[10].mxu1 %v13654_v45  ;;  %v19329_v45 = vld [vmem:[#allocation4 + $0x28] sm:$0xff] }
 0x977   :  { %18746 = vmatprep.mubr.f32.mxu1 %v13655_v44 }
 0x97a   :  { %18747 = vmatmul.mubr.f32.gmra.mrb[12].mxu1 %v13656_v47 }
 0x97b   :  { %18749 = vmatprep.mubr.f32.mxu1 %v13657_v49 }
 0x97e   :  { %18750 = vmatmul.mubr.f32.gmra.mrb[14].mxu1 %v13658_v53  ;;  %v19333_v53 = vld [vmem:[#allocation4 + $0x20] sm:$0xff] }
 0x97f   :  { %18752 = vmatprep.mubr.f32.mxu1 %v13659_v30 }
 0x982   :  { %18753 = vmatmul.mubr.f32.gmra.mrb[16].mxu1 %v13660_v57 }
 0x983   :  { %18755 = vmatprep.mubr.f32.mxu1 %v13661_v61 }
 0x986   :  { %18756 = vmatmul.mubr.f32.gmra.mrb[18].mxu1 %v13662_v2 }
 0x987   :  { %18758 = vmatprep.mubr.f32.mxu1 %v13663_v7 }
 0x98a   :  { %18759 = vmatmul.mubr.f32.gmra.mrb[20].mxu1 %v13664_v34 }
 0x98b   :  { %18761 = vmatprep.mubr.f32.mxu1 %v23872_v59  ;;  %v13676_v59 = vld [vmem:[#allocation3 + $0x2f1] sm:$0xff] }
 0x98e   :  { %18762 = vmatmul.mubr.f32.gmra.mrb[22].mxu1 %v23875_v63  ;;  %v13677_v63 = vld [vmem:[#allocation3 + $0x309] sm:$0xff] }
 0x98f   :  { %18764 = vmatprep.mubr.f32.mxu1 %v13667_v29 }
 0x992   :  { %18765 = vmatmul.mubr.f32.gmra.mrb[24].mxu1 %v13668_v28 }
 0x993   :  { %18767 = vmatprep.mubr.f32.mxu1 %v13669_v9 }
 0x996   :  { %18768 = vmatmul.mubr.f32.gmra.mrb[26].mxu1 %v13670_v5 }
 0x997   :  { %18770 = vmatprep.mubr.f32.mxu1 %v13671_v14 }
 0x99a   :  { %18771 = vmatmul.mubr.f32.gmra.mrb[28].mxu1 %v13672_v38 }
 0x99b   :  { %18773 = vmatprep.mubr.f32.mxu1 %v13673_v46 }
 0x99e   :  { %18774 = vmatmul.mubr.f32.gmra.mrb[30].mxu1 %v13674_v56 }
 0x99f   :  { %18776 = vmatprep.mubr.f32.mxu1 %v13675_v8 }
 0x9a2   :  { %18777 = vmatmul.mubr.f32.gmra.mrb[32].mxu1 %v13676_v59 }
 0x9a3   :  { %18779 = vmatprep.mubr.f32.mxu1 %v13677_v63 }
 0x9a6   :  { %18780 = vmatmul.mubr.f32.gmra.mrb[34].mxu1 %v13678_v35 }
 0x9a7   :  { %18782 = vmatprep.mubr.f32.mxu1 %v13679_v52 }
 0x9aa   :  { %18783 = vmatmul.mubr.f32.gmra.mrb[36].mxu1 %v13680_v16 }
 0x9ab   :  { %18785 = vmatprep.mubr.f32.mxu1 %v13681_v51 }
 0x9ae   :  { %18786 = vmatmul.mubr.f32.gmra.mrb[38].mxu1 %v13682_v41 }
 0x9af   :  { %18788 = vmatprep.mubr.f32.mxu1 %v13683_v19 }
 0x9b2   :  { %18789 = vmatmul.mubr.f32.gmra.mrb[40].mxu1 %v13684_v62 }
 0x9b3   :  { %18791 = vmatprep.mubr.f32.mxu1 %v13685_v32 }
 0x9b6   :  { %18792 = vmatmul.mubr.f32.gmra.mrb[42].mxu1 %v13686_v1 }
 0x9b7   :  { %18794 = vmatprep.mubr.f32.mxu1 %v13687_v13 }
 0x9ba   :  { %18795 = vmatmul.mubr.f32.gmra.mrb[44].mxu1 %v13688_v40 }
 0x9bb   :  { %18797 = vmatprep.mubr.f32.mxu1 %v13689_v0 }
 0x9be   :  { %18798 = vmatmul.mubr.f32.gmra.mrb[46].mxu1 %v13690_v31 }
 0x9bf   :  { %18800 = vmatprep.mubr.f32.mxu1 %v13691_v39 }
 0x9c2   :  { %18801 = vmatmul.mubr.f32.gmra.mrb[48].mxu1 %v13692_v6 }
 0x9c3   :  { %18803 = vmatprep.mubr.f32.mxu1 %v13693_v48 }
 0x9c6   :  { %18804 = vmatmul.mubr.f32.gmra.mrb[50].mxu1 %v13694_v42 }
 0x9c7   :  { %18806 = vmatprep.mubr.f32.mxu1 %v13695_v21 }
 0x9ca   :  { %18807 = vmatmul.mubr.f32.gmra.mrb[52].mxu1 %v13696_v54 }
 0x9cb   :  { %18809 = vmatprep.mubr.f32.mxu1 %v23908_v25 }
 0x9ce   :  { %18810 = vmatmul.mubr.f32.gmra.mrb[54].mxu1 %v23911_v11  ;;  %v19321_v11 = vld [vmem:[#allocation4 + $0x18] sm:$0xff] }
 0x9cf   :  { %18812 = vmatprep.mubr.f32.mxu1 %v13699_v55 }
 0x9d2   :  { %18813 = vmatmul.mubr.f32.gmra.mrb[56].mxu1 %v13700_v15 }
 0xa29   :  { %v18721_v37 = vpop.f32.mrb[58].mxu1 }
 0xa2a   :  { %v19314_v36 = vadd.f32 %v19313_v12, %v18721_v37  ;;  %v13848_v24 = vpop.f32.mrb[59].mxu1 }
 0xa2b   :  { %v19318_v4 = vadd.f32 %v19317_v50, %v13848_v24 }
 0xa2c   :  { %v14367_v27 = vadd.f32 %v19314_v36, %v24137_v3 }
 0xa2d   :  { %v14366_v25 = vadd.f32 %v19318_v4, %v24137_v3  ;;  %v18724_v60 = vpop.f32.mrb[60].mxu1 }
 0xa2e   :  { %v14431_v22 = vmax.f32 %v14367_v27, 0.0  ;;  %v19322_v17 = vadd.f32 %v19321_v11, %v18724_v60  ;;  %v13858_v20 = vpop.f32.mrb[61].mxu1 }
 0xa2f   :  { %v14430_v26 = vmax.f32 %v14366_v25, 0.0  ;;  %v19326_v33 = vadd.f32 %v19325_v18, %v13858_v20 }
 0xa30   :  { %14495 = vst [vmem:[#allocation4 + $0x8] sm:$0xff] %v14431_v22  ;;  %v14369_v43 = vadd.f32 %v19322_v17, %v24137_v3 }
 0xa31   :  { %14494 = vst [vmem:[#allocation4] sm:$0xff] %v14430_v26  ;;  %v14368_v58 = vadd.f32 %v19326_v33, %v24137_v3  ;;  %v18727_v23 = vpop.f32.mrb[62].mxu1 }
 0xa32   :  { %v14433_v44 = vmax.f32 %v14369_v43, 0.0  ;;  %v19330_v47 = vadd.f32 %v19329_v45, %v18727_v23  ;;  %v13868_v49 = vpop.f32.mrb[63].mxu1 }
 0xa33   :  { %v14432_v30 = vmax.f32 %v14368_v58, 0.0  ;;  %v19334_v57 = vadd.f32 %v19333_v53, %v13868_v49 }
 0xa34   :  { %14497 = vst [vmem:[#allocation4 + $0x18] sm:$0xff] %v14433_v44  ;;  %v14371_v61 = vadd.f32 %v19330_v47, %v24137_v3 }
 0xa35   :  { %14496 = vst [vmem:[#allocation4 + $0x10] sm:$0xff] %v14432_v30  ;;  %v14370_v2 = vadd.f32 %v19334_v57, %v24137_v3  ;;  %v18730_v7 = vpop.f32.mrb[0].mxu1 }
 0xa36   :  { %v14435_v34 = vmax.f32 %v14371_v61, 0.0  ;;  %v19337_v29 = vadd.f32 %v24094_v10, %v18730_v7  ;;  %v13878_v28 = vpop.f32.mrb[1].mxu1 }
 0xa37   :  { %v14434_v9 = vmax.f32 %v14370_v2, 0.0  ;;  %v19340_v5 = vadd.f32 %v24094_v10, %v13878_v28 }
 0xa38   :  { %14499 = vst [vmem:[#allocation4 + $0x28] sm:$0xff] %v14435_v34  ;;  %v14373_v14 = vadd.f32 %v19337_v29, %v24137_v3  ;;  %v14558_v56 = vld [vmem:[#allocation4] ss:$2 sm:$0xff]  ;;  %v14622_v8 = vld [vmem:[#allocation4 + $0x1] ss:$2 sm:$0xff] }
 0xa39   :  { %14498 = vst [vmem:[#allocation4 + $0x20] sm:$0xff] %v14434_v9  ;;  %v14372_v38 = vadd.f32 %v19340_v5, %v24137_v3  ;;  %v18733_v46 = vpop.f32.mrb[2].mxu1  ;;  %v14685_v62 = vmax.f32 %v14558_v56, %v14622_v8 }
 0xa3a   :  { %v14437_v59 = vmax.f32 %v14373_v14, 0.0  ;;  %v19343_v63 = vadd.f32 %v24094_v10, %v18733_v46  ;;  %v13888_v35 = vpop.f32.mrb[3].mxu1 }
 0xa3b   :  { %v14436_v52 = vmax.f32 %v14372_v38, 0.0  ;;  %v19346_v16 = vadd.f32 %v24094_v10, %v13888_v35 }
 0xa3c   :  { %v14560_v51 = vld [vmem:[#allocation4 + $0x10] ss:$2 sm:$0xff]  ;;  %v14624_v41 = vld [vmem:[#allocation4 + $0x11] ss:$2 sm:$0xff]  ;;  %14501 = vst [vmem:[#allocation4 + $0x38] sm:$0xff] %v14437_v59  ;;  %v14375_v19 = vadd.f32 %v19343_v63, %v24137_v3 }
 0xa3d   :  { %v14686_v32 = vmax.f32 %v14560_v51, %v14624_v41  ;;  %14500 = vst [vmem:[#allocation4 + $0x30] sm:$0xff] %v14436_v52  ;;  %v14374_v1 = vadd.f32 %v19346_v16, %v24137_v3  ;;  %v18736_v13 = vpop.f32.mrb[4].mxu1 }
 0xa3e   :  { %v14439_v40 = vmax.f32 %v14375_v19, 0.0  ;;  %v19349_v0 = vadd.f32 %v24094_v10, %v18736_v13  ;;  %v13898_v31 = vpop.f32.mrb[5].mxu1 }
 0xa3f   :  { %v14717_v39 = vmax.f32 %v14685_v62, %v14686_v32  ;;  %v14438_v6 = vmax.f32 %v14374_v1, 0.0  ;;  %v19352_v48 = vadd.f32 %v24094_v10, %v13898_v31 }
 0xa40   :  { %14503 = vst [vmem:[#allocation4 + $0x48] sm:$0xff] %v14439_v40  ;;  %v14377_v42 = vadd.f32 %v19349_v0, %v24137_v3  ;;  %v14562_v55 = vld [vmem:[#allocation4 + $0x20] ss:$2 sm:$0xff]  ;;  %v14626_v15 = vld [vmem:[#allocation4 + $0x21] ss:$2 sm:$0xff] }
 0xa41   :  { %14733 = vst [vmem:[%s24316_s5] sm:$0xff] %v14717_v39  ;;  %14502 = vst [vmem:[#allocation4 + $0x40] sm:$0xff] %v14438_v6  ;;  %v14376_v21 = vadd.f32 %v19352_v48, %v24137_v3  ;;  %v18739_v54 = vpop.f32.mrb[6].mxu1  ;;  %v14687_v60 = vmax.f32 %v14562_v55, %v14626_v15 }
 0xa42   :  { %v14441_v12 = vmax.f32 %v14377_v42, 0.0  ;;  %v19355_v50 = vadd.f32 %v24094_v10, %v18739_v54  ;;  %v13908_v37 = vpop.f32.mrb[7].mxu1 }
 0xa43   :  { %v14440_v36 = vmax.f32 %v14376_v21, 0.0  ;;  %v19358_v24 = vadd.f32 %v24094_v10, %v13908_v37 }
 0xa44   :  { %v14564_v4 = vld [vmem:[#allocation4 + $0x30] ss:$2 sm:$0xff]  ;;  %v14628_v27 = vld [vmem:[#allocation4 + $0x31] ss:$2 sm:$0xff]  ;;  %14505 = vst [vmem:[#allocation4 + $0x58] sm:$0xff] %v14441_v12  ;;  %v14379_v25 = vadd.f32 %v19355_v50, %v24137_v3 }
 0xa45   :  { %v14688_v11 = vmax.f32 %v14564_v4, %v14628_v27  ;;  %14504 = vst [vmem:[#allocation4 + $0x50] sm:$0xff] %v14440_v36  ;;  %v14378_v22 = vadd.f32 %v19358_v24, %v24137_v3  ;;  %v18742_v17 = vpop.f32.mrb[8].mxu1 }
 0xa46   :  { %v14443_v20 = vmax.f32 %v14379_v25, 0.0  ;;  %v19361_v18 = vadd.f32 %v24094_v10, %v18742_v17  ;;  %v13918_v26 = vpop.f32.mrb[9].mxu1 }
 0xa47   :  { %v14718_v33 = vmax.f32 %v14687_v60, %v14688_v11  ;;  %v14442_v43 = vmax.f32 %v14378_v22, 0.0  ;;  %v19364_v58 = vadd.f32 %v24094_v10, %v13918_v26 }
 0xa48   :  { %14507 = vst [vmem:[#allocation4 + $0x68] sm:$0xff] %v14443_v20  ;;  %v14381_v23 = vadd.f32 %v19361_v18, %v24137_v3  ;;  %v14566_v47 = vld [vmem:[#allocation4 + $0x40] ss:$2 sm:$0xff]  ;;  %v14630_v49 = vld [vmem:[#allocation4 + $0x41] ss:$2 sm:$0xff] }
 0xa49   :  { %14734 = vst [vmem:[%s24316_s5 + $0x8] sm:$0xff] %v14718_v33  ;;  %14506 = vst [vmem:[#allocation4 + $0x60] sm:$0xff] %v14442_v43  ;;  %v14380_v45 = vadd.f32 %v19364_v58, %v24137_v3  ;;  %v18745_v44 = vpop.f32.mrb[10].mxu1  ;;  %v14689_v28 = vmax.f32 %v14566_v47, %v14630_v49 }
 0xa4a   :  { %v14445_v53 = vmax.f32 %v14381_v23, 0.0  ;;  %v19367_v30 = vadd.f32 %v24094_v10, %v18745_v44  ;;  %v13928_v57 = vpop.f32.mrb[11].mxu1 }
 0xa4b   :  { %v14444_v61 = vmax.f32 %v14380_v45, 0.0  ;;  %v19370_v2 = vadd.f32 %v24094_v10, %v13928_v57 }
 0xa4c   :  { %v14568_v7 = vld [vmem:[#allocation4 + $0x50] ss:$2 sm:$0xff]  ;;  %v14632_v34 = vld [vmem:[#allocation4 + $0x51] ss:$2 sm:$0xff]  ;;  %14509 = vst [vmem:[#allocation4 + $0x78] sm:$0xff] %v14445_v53  ;;  %v14383_v29 = vadd.f32 %v19367_v30, %v24137_v3 }
 0xa4d   :  { %v14690_v9 = vmax.f32 %v14568_v7, %v14632_v34  ;;  %14508 = vst [vmem:[#allocation4 + $0x70] sm:$0xff] %v14444_v61  ;;  %v14382_v5 = vadd.f32 %v19370_v2, %v24137_v3  ;;  %v18748_v14 = vpop.f32.mrb[12].mxu1 }
 0xa4e   :  { %v14447_v38 = vmax.f32 %v14383_v29, 0.0  ;;  %v19373_v46 = vadd.f32 %v24094_v10, %v18748_v14  ;;  %v13938_v56 = vpop.f32.mrb[13].mxu1 }
 0xa4f   :  { %v14719_v8 = vmax.f32 %v14689_v28, %v14690_v9  ;;  %v14446_v59 = vmax.f32 %v14382_v5, 0.0  ;;  %v19376_v63 = vadd.f32 %v24094_v10, %v13938_v56 }
 0xa50   :  { %14511 = vst [vmem:[#allocation4 + $0x88] sm:$0xff] %v14447_v38  ;;  %v14385_v35 = vadd.f32 %v19373_v46, %v24137_v3  ;;  %v14570_v51 = vld [vmem:[#allocation4 + $0x60] ss:$2 sm:$0xff]  ;;  %v14634_v41 = vld [vmem:[#allocation4 + $0x61] ss:$2 sm:$0xff] }
 0xa51   :  { %14735 = vst [vmem:[%s24316_s5 + $0x10] sm:$0xff] %v14719_v8  ;;  %14510 = vst [vmem:[#allocation4 + $0x80] sm:$0xff] %v14446_v59  ;;  %v14384_v52 = vadd.f32 %v19376_v63, %v24137_v3  ;;  %v18751_v16 = vpop.f32.mrb[14].mxu1  ;;  %v14691_v39 = vmax.f32 %v14570_v51, %v14634_v41 }
 0xa52   :  { %v14449_v19 = vmax.f32 %v14385_v35, 0.0  ;;  %v19379_v62 = vadd.f32 %v24094_v10, %v18751_v16  ;;  %v13948_v32 = vpop.f32.mrb[15].mxu1 }
 0xa53   :  { %v14448_v1 = vmax.f32 %v14384_v52, 0.0  ;;  %v19382_v13 = vadd.f32 %v24094_v10, %v13948_v32 }
 0xa54   :  { %v14572_v40 = vld [vmem:[#allocation4 + $0x70] ss:$2 sm:$0xff]  ;;  %v14636_v0 = vld [vmem:[#allocation4 + $0x71] ss:$2 sm:$0xff]  ;;  %14513 = vst [vmem:[#allocation4 + $0x98] sm:$0xff] %v14449_v19  ;;  %v14387_v31 = vadd.f32 %v19379_v62, %v24137_v3 }
 0xa55   :  { %v14692_v6 = vmax.f32 %v14572_v40, %v14636_v0  ;;  %14512 = vst [vmem:[#allocation4 + $0x90] sm:$0xff] %v14448_v1  ;;  %v14386_v48 = vadd.f32 %v19382_v13, %v24137_v3  ;;  %v18754_v42 = vpop.f32.mrb[16].mxu1 }
 0xa56   :  { %v14451_v21 = vmax.f32 %v14387_v31, 0.0  ;;  %v19385_v54 = vadd.f32 %v24094_v10, %v18754_v42  ;;  %v13958_v55 = vpop.f32.mrb[17].mxu1 }
 0xa57   :  { %v14720_v15 = vmax.f32 %v14691_v39, %v14692_v6  ;;  %v14450_v12 = vmax.f32 %v14386_v48, 0.0  ;;  %v19388_v50 = vadd.f32 %v24094_v10, %v13958_v55 }
 0xa58   :  { %14515 = vst [vmem:[#allocation4 + $0xa8] sm:$0xff] %v14451_v21  ;;  %v14389_v37 = vadd.f32 %v19385_v54, %v24137_v3  ;;  %v14574_v4 = vld [vmem:[#allocation4 + $0x80] ss:$2 sm:$0xff]  ;;  %v14638_v27 = vld [vmem:[#allocation4 + $0x81] ss:$2 sm:$0xff] }
 0xa59   :  { %14736 = vst [vmem:[%s24316_s5 + $0x18] sm:$0xff] %v14720_v15  ;;  %14514 = vst [vmem:[#allocation4 + $0xa0] sm:$0xff] %v14450_v12  ;;  %v14388_v36 = vadd.f32 %v19388_v50, %v24137_v3  ;;  %v18757_v24 = vpop.f32.mrb[18].mxu1  ;;  %v14693_v33 = vmax.f32 %v14574_v4, %v14638_v27 }
 0xa5a   :  { %v14453_v25 = vmax.f32 %v14389_v37, 0.0  ;;  %v19391_v60 = vadd.f32 %v24094_v10, %v18757_v24  ;;  %v13968_v11 = vpop.f32.mrb[19].mxu1 }
 0xa5b   :  { %v14452_v22 = vmax.f32 %v14388_v36, 0.0  ;;  %v19394_v17 = vadd.f32 %v24094_v10, %v13968_v11 }
 0xa5c   :  { %v14576_v20 = vld [vmem:[#allocation4 + $0x90] ss:$2 sm:$0xff]  ;;  %v14640_v18 = vld [vmem:[#allocation4 + $0x91] ss:$2 sm:$0xff]  ;;  %14517 = vst [vmem:[#allocation4 + $0xb8] sm:$0xff] %v14453_v25  ;;  %v14391_v26 = vadd.f32 %v19391_v60, %v24137_v3 }
 0xa5d   :  { %v14694_v43 = vmax.f32 %v14576_v20, %v14640_v18  ;;  %14516 = vst [vmem:[#allocation4 + $0xb0] sm:$0xff] %v14452_v22  ;;  %v14390_v58 = vadd.f32 %v19394_v17, %v24137_v3  ;;  %v18760_v23 = vpop.f32.mrb[20].mxu1 }
 0xa5e   :  { %v14455_v45 = vmax.f32 %v14391_v26, 0.0  ;;  %v19397_v44 = vadd.f32 %v24094_v10, %v18760_v23  ;;  %v13978_v47 = vpop.f32.mrb[21].mxu1 }
 0xa5f   :  { %v14721_v49 = vmax.f32 %v14693_v33, %v14694_v43  ;;  %v14454_v53 = vmax.f32 %v14390_v58, 0.0  ;;  %v19400_v30 = vadd.f32 %v24094_v10, %v13978_v47 }
 0xa60   :  { %14519 = vst [vmem:[#allocation4 + $0xc8] sm:$0xff] %v14455_v45  ;;  %v14393_v57 = vadd.f32 %v19397_v44, %v24137_v3  ;;  %v14578_v7 = vld [vmem:[#allocation4 + $0xa0] ss:$2 sm:$0xff]  ;;  %v14642_v34 = vld [vmem:[#allocation4 + $0xa1] ss:$2 sm:$0xff] }
 0xa61   :  { %14737 = vst [vmem:[%s24316_s5 + $0x20] sm:$0xff] %v14721_v49  ;;  %14518 = vst [vmem:[#allocation4 + $0xc0] sm:$0xff] %v14454_v53  ;;  %v14392_v61 = vadd.f32 %v19400_v30, %v24137_v3  ;;  %v18763_v2 = vpop.f32.mrb[22].mxu1  ;;  %v14695_v8 = vmax.f32 %v14578_v7, %v14642_v34 }
 0xa62   :  { %v14457_v29 = vmax.f32 %v14393_v57, 0.0  ;;  %v19403_v28 = vadd.f32 %v24094_v10, %v18763_v2  ;;  %v13988_v9 = vpop.f32.mrb[23].mxu1 }
 0xa63   :  { %v14456_v5 = vmax.f32 %v14392_v61, 0.0  ;;  %v19406_v14 = vadd.f32 %v24094_v10, %v13988_v9 }
 0xa64   :  { %v14580_v38 = vld [vmem:[#allocation4 + $0xb0] ss:$2 sm:$0xff]  ;;  %v14644_v46 = vld [vmem:[#allocation4 + $0xb1] ss:$2 sm:$0xff]  ;;  %14521 = vst [vmem:[#allocation4 + $0xd8] sm:$0xff] %v14457_v29  ;;  %v14395_v56 = vadd.f32 %v19403_v28, %v24137_v3 }
 0xa65   :  { %v14696_v59 = vmax.f32 %v14580_v38, %v14644_v46  ;;  %14520 = vst [vmem:[#allocation4 + $0xd0] sm:$0xff] %v14456_v5  ;;  %v14394_v63 = vadd.f32 %v19406_v14, %v24137_v3  ;;  %v18766_v35 = vpop.f32.mrb[24].mxu1 }
 0xa66   :  { %v14459_v52 = vmax.f32 %v14395_v56, 0.0  ;;  %v19409_v16 = vadd.f32 %v24094_v10, %v18766_v35  ;;  %v13998_v51 = vpop.f32.mrb[25].mxu1 }
 0xa67   :  { %v14722_v41 = vmax.f32 %v14695_v8, %v14696_v59  ;;  %v14458_v19 = vmax.f32 %v14394_v63, 0.0  ;;  %v19412_v62 = vadd.f32 %v24094_v10, %v13998_v51 }
 0xa68   :  { %14523 = vst [vmem:[#allocation4 + $0xe8] sm:$0xff] %v14459_v52  ;;  %v14397_v32 = vadd.f32 %v19409_v16, %v24137_v3  ;;  %v14582_v40 = vld [vmem:[#allocation4 + $0xc0] ss:$2 sm:$0xff]  ;;  %v14646_v0 = vld [vmem:[#allocation4 + $0xc1] ss:$2 sm:$0xff] }
 0xa69   :  { %14738 = vst [vmem:[%s24316_s5 + $0x28] sm:$0xff] %v14722_v41  ;;  %14522 = vst [vmem:[#allocation4 + $0xe0] sm:$0xff] %v14458_v19  ;;  %v14396_v1 = vadd.f32 %v19412_v62, %v24137_v3  ;;  %v18769_v13 = vpop.f32.mrb[26].mxu1  ;;  %v14697_v15 = vmax.f32 %v14582_v40, %v14646_v0 }
 0xa6a   :  { %v14461_v31 = vmax.f32 %v14397_v32, 0.0  ;;  %v19415_v39 = vadd.f32 %v24094_v10, %v18769_v13  ;;  %v14008_v6 = vpop.f32.mrb[27].mxu1 }
 0xa6b   :  { %v14460_v48 = vmax.f32 %v14396_v1, 0.0  ;;  %v19418_v42 = vadd.f32 %v24094_v10, %v14008_v6 }
 0xa6c   :  { %v14584_v21 = vld [vmem:[#allocation4 + $0xd0] ss:$2 sm:$0xff]  ;;  %v14648_v54 = vld [vmem:[#allocation4 + $0xd1] ss:$2 sm:$0xff]  ;;  %14525 = vst [vmem:[#allocation4 + $0xf8] sm:$0xff] %v14461_v31  ;;  %v14399_v55 = vadd.f32 %v19415_v39, %v24137_v3 }
 0xa6d   :  { %v14698_v12 = vmax.f32 %v14584_v21, %v14648_v54  ;;  %14524 = vst [vmem:[#allocation4 + $0xf0] sm:$0xff] %v14460_v48  ;;  %v14398_v50 = vadd.f32 %v19418_v42, %v24137_v3  ;;  %v18772_v37 = vpop.f32.mrb[28].mxu1 }
 0xa6e   :  { %v14463_v36 = vmax.f32 %v14399_v55, 0.0  ;;  %v19421_v24 = vadd.f32 %v24094_v10, %v18772_v37  ;;  %v14018_v4 = vpop.f32.mrb[29].mxu1 }
 0xa6f   :  { %v14723_v27 = vmax.f32 %v14697_v15, %v14698_v12  ;;  %v14462_v25 = vmax.f32 %v14398_v50, 0.0  ;;  %v19424_v60 = vadd.f32 %v24094_v10, %v14018_v4 }
 0xa70   :  { %14527 = vst [vmem:[#allocation4 + $0x108] sm:$0xff] %v14463_v36  ;;  %v14401_v11 = vadd.f32 %v19421_v24, %v24137_v3  ;;  %v14586_v20 = vld [vmem:[#allocation4 + $0xe0] ss:$2 sm:$0xff]  ;;  %v14650_v18 = vld [vmem:[#allocation4 + $0xe1] ss:$2 sm:$0xff] }
 0xa71   :  { %14739 = vst [vmem:[%s24316_s5 + $0x30] sm:$0xff] %v14723_v27  ;;  %14526 = vst [vmem:[#allocation4 + $0x100] sm:$0xff] %v14462_v25  ;;  %v14400_v22 = vadd.f32 %v19424_v60, %v24137_v3  ;;  %v18775_v17 = vpop.f32.mrb[30].mxu1  ;;  %v14699_v49 = vmax.f32 %v14586_v20, %v14650_v18 }
 0xa72   :  { %v14465_v26 = vmax.f32 %v14401_v11, 0.0  ;;  %v19427_v33 = vadd.f32 %v24094_v10, %v18775_v17  ;;  %v14028_v43 = vpop.f32.mrb[31].mxu1 }
 0xa73   :  { %v14464_v58 = vmax.f32 %v14400_v22, 0.0  ;;  %v19430_v23 = vadd.f32 %v24094_v10, %v14028_v43 }
 0xa74   :  { %v14588_v45 = vld [vmem:[#allocation4 + $0xf0] ss:$2 sm:$0xff]  ;;  %v14652_v44 = vld [vmem:[#allocation4 + $0xf1] ss:$2 sm:$0xff]  ;;  %14529 = vst [vmem:[#allocation4 + $0x118] sm:$0xff] %v14465_v26  ;;  %v14403_v47 = vadd.f32 %v19427_v33, %v24137_v3 }
 0xa75   :  { %v14700_v53 = vmax.f32 %v14588_v45, %v14652_v44  ;;  %14528 = vst [vmem:[#allocation4 + $0x110] sm:$0xff] %v14464_v58  ;;  %v14402_v30 = vadd.f32 %v19430_v23, %v24137_v3  ;;  %v18778_v57 = vpop.f32.mrb[32].mxu1 }
 0xa76   :  { %v14467_v61 = vmax.f32 %v14403_v47, 0.0  ;;  %v19433_v2 = vadd.f32 %v24094_v10, %v18778_v57  ;;  %v14038_v7 = vpop.f32.mrb[33].mxu1 }
 0xa77   :  { %v14724_v34 = vmax.f32 %v14699_v49, %v14700_v53  ;;  %v14466_v29 = vmax.f32 %v14402_v30, 0.0  ;;  %v19436_v28 = vadd.f32 %v24094_v10, %v14038_v7 }
 0xa78   :  { %14531 = vst [vmem:[#allocation4 + $0x128] sm:$0xff] %v14467_v61  ;;  %v14405_v9 = vadd.f32 %v19433_v2, %v24137_v3  ;;  %v14590_v38 = vld [vmem:[#allocation4 + $0x100] ss:$2 sm:$0xff]  ;;  %v14654_v46 = vld [vmem:[#allocation4 + $0x101] ss:$2 sm:$0xff] }
 0xa79   :  { %14740 = vst [vmem:[%s24316_s5 + $0x38] sm:$0xff] %v14724_v34  ;;  %14530 = vst [vmem:[#allocation4 + $0x120] sm:$0xff] %v14466_v29  ;;  %v14404_v5 = vadd.f32 %v19436_v28, %v24137_v3  ;;  %v18781_v14 = vpop.f32.mrb[34].mxu1  ;;  %v14701_v41 = vmax.f32 %v14590_v38, %v14654_v46 }
 0xa7a   :  { %v14469_v56 = vmax.f32 %v14405_v9, 0.0  ;;  %v19439_v8 = vadd.f32 %v24094_v10, %v18781_v14  ;;  %v14048_v59 = vpop.f32.mrb[35].mxu1 }
 0xa7b   :  { %v14468_v63 = vmax.f32 %v14404_v5, 0.0  ;;  %v19442_v35 = vadd.f32 %v24094_v10, %v14048_v59 }
 0xa7c   :  { %v14592_v52 = vld [vmem:[#allocation4 + $0x110] ss:$2 sm:$0xff]  ;;  %v14656_v16 = vld [vmem:[#allocation4 + $0x111] ss:$2 sm:$0xff]  ;;  %14533 = vst [vmem:[#allocation4 + $0x138] sm:$0xff] %v14469_v56  ;;  %v14407_v51 = vadd.f32 %v19439_v8, %v24137_v3 }
 0xa7d   :  { %v14702_v19 = vmax.f32 %v14592_v52, %v14656_v16  ;;  %14532 = vst [vmem:[#allocation4 + $0x130] sm:$0xff] %v14468_v63  ;;  %v14406_v62 = vadd.f32 %v19442_v35, %v24137_v3  ;;  %v18784_v32 = vpop.f32.mrb[36].mxu1 }
 0xa7e   :  { %v14471_v1 = vmax.f32 %v14407_v51, 0.0  ;;  %v19445_v13 = vadd.f32 %v24094_v10, %v18784_v32  ;;  %v14058_v40 = vpop.f32.mrb[37].mxu1 }
 0xa7f   :  { %v14725_v0 = vmax.f32 %v14701_v41, %v14702_v19  ;;  %v14470_v31 = vmax.f32 %v14406_v62, 0.0  ;;  %v19448_v39 = vadd.f32 %v24094_v10, %v14058_v40  ;;  %v24270_v41 = vld [vmem:[#allocation3] sm:$0xff] }
 0xa80   :  { %14535 = vst [vmem:[#allocation4 + $0x148] sm:$0xff] %v14471_v1  ;;  %v14409_v6 = vadd.f32 %v19445_v13, %v24137_v3  ;;  %v14594_v21 = vld [vmem:[#allocation4 + $0x120] ss:$2 sm:$0xff]  ;;  %v14658_v54 = vld [vmem:[#allocation4 + $0x121] ss:$2 sm:$0xff] }
 0xa81   :  { %14741 = vst [vmem:[%s24316_s5 + $0x40] sm:$0xff] %v14725_v0  ;;  %14534 = vst [vmem:[#allocation4 + $0x140] sm:$0xff] %v14470_v31  ;;  %v14408_v48 = vadd.f32 %v19448_v39, %v24137_v3  ;;  %v18787_v42 = vpop.f32.mrb[38].mxu1  ;;  %v14703_v27 = vmax.f32 %v14594_v21, %v14658_v54 }
 0xa82   :  { %v14473_v55 = vmax.f32 %v14409_v6, 0.0  ;;  %v19451_v15 = vadd.f32 %v24094_v10, %v18787_v42  ;;  %v14068_v12 = vpop.f32.mrb[39].mxu1 }
 0xa83   :  { %v14472_v50 = vmax.f32 %v14408_v48, 0.0  ;;  %v19454_v37 = vadd.f32 %v24094_v10, %v14068_v12 }
 0xa84   :  { %v14596_v36 = vld [vmem:[#allocation4 + $0x130] ss:$2 sm:$0xff]  ;;  %v14660_v24 = vld [vmem:[#allocation4 + $0x131] ss:$2 sm:$0xff]  ;;  %14537 = vst [vmem:[#allocation4 + $0x158] sm:$0xff] %v14473_v55  ;;  %v14411_v4 = vadd.f32 %v19451_v15, %v24137_v3 }
 0xa85   :  { %v14704_v25 = vmax.f32 %v14596_v36, %v14660_v24  ;;  %14536 = vst [vmem:[#allocation4 + $0x150] sm:$0xff] %v14472_v50  ;;  %v14410_v60 = vadd.f32 %v19454_v37, %v24137_v3  ;;  %v18790_v11 = vpop.f32.mrb[40].mxu1 }
 0xa86   :  { %v14475_v22 = vmax.f32 %v14411_v4, 0.0  ;;  %v19457_v17 = vadd.f32 %v24094_v10, %v18790_v11  ;;  %v14078_v20 = vpop.f32.mrb[41].mxu1 }
 0xa87   :  { %v14726_v18 = vmax.f32 %v14703_v27, %v14704_v25  ;;  %v14474_v26 = vmax.f32 %v14410_v60, 0.0  ;;  %v19460_v33 = vadd.f32 %v24094_v10, %v14078_v20 }
 0xa88   :  { %14539 = vst [vmem:[#allocation4 + $0x168] sm:$0xff] %v14475_v22  ;;  %v14413_v43 = vadd.f32 %v19457_v17, %v24137_v3  ;;  %v14598_v45 = vld [vmem:[#allocation4 + $0x140] ss:$2 sm:$0xff]  ;;  %v14662_v44 = vld [vmem:[#allocation4 + $0x141] ss:$2 sm:$0xff] }
 0xa89   :  { %14742 = vst [vmem:[%s24316_s5 + $0x48] sm:$0xff] %v14726_v18  ;;  %14538 = vst [vmem:[#allocation4 + $0x160] sm:$0xff] %v14474_v26  ;;  %v14412_v58 = vadd.f32 %v19460_v33, %v24137_v3  ;;  %v18793_v23 = vpop.f32.mrb[42].mxu1  ;;  %v14705_v34 = vmax.f32 %v14598_v45, %v14662_v44 }
 0xa8a   :  { %v14477_v47 = vmax.f32 %v14413_v43, 0.0  ;;  %v19463_v49 = vadd.f32 %v24094_v10, %v18793_v23  ;;  %v14088_v53 = vpop.f32.mrb[43].mxu1 }
 0xa8b   :  { %v14476_v30 = vmax.f32 %v14412_v58, 0.0  ;;  %v19466_v57 = vadd.f32 %v24094_v10, %v14088_v53 }
 0xa8c   :  { %v14600_v61 = vld [vmem:[#allocation4 + $0x150] ss:$2 sm:$0xff]  ;;  %v14664_v2 = vld [vmem:[#allocation4 + $0x151] ss:$2 sm:$0xff]  ;;  %14541 = vst [vmem:[#allocation4 + $0x178] sm:$0xff] %v14477_v47  ;;  %v14415_v7 = vadd.f32 %v19463_v49, %v24137_v3 }
 0xa8d   :  { %v14706_v29 = vmax.f32 %v14600_v61, %v14664_v2  ;;  %14540 = vst [vmem:[#allocation4 + $0x170] sm:$0xff] %v14476_v30  ;;  %v14414_v28 = vadd.f32 %v19466_v57, %v24137_v3  ;;  %v18796_v9 = vpop.f32.mrb[44].mxu1 }
 0xa8e   :  { %v14479_v5 = vmax.f32 %v14415_v7, 0.0  ;;  %v19469_v14 = vadd.f32 %v24094_v10, %v18796_v9  ;;  %v14098_v38 = vpop.f32.mrb[45].mxu1 }
 0xa8f   :  { %v14727_v46 = vmax.f32 %v14705_v34, %v14706_v29  ;;  %v14478_v56 = vmax.f32 %v14414_v28, 0.0  ;;  %v19472_v8 = vadd.f32 %v24094_v10, %v14098_v38 }
 0xa90   :  { %14543 = vst [vmem:[#allocation4 + $0x188] sm:$0xff] %v14479_v5  ;;  %v14417_v59 = vadd.f32 %v19469_v14, %v24137_v3  ;;  %v14602_v52 = vld [vmem:[#allocation4 + $0x160] ss:$2 sm:$0xff]  ;;  %v14666_v16 = vld [vmem:[#allocation4 + $0x161] ss:$2 sm:$0xff] }
 0xa91   :  { %14743 = vst [vmem:[%s24316_s5 + $0x50] sm:$0xff] %v14727_v46  ;;  %14542 = vst [vmem:[#allocation4 + $0x180] sm:$0xff] %v14478_v56  ;;  %v14416_v63 = vadd.f32 %v19472_v8, %v24137_v3  ;;  %v18799_v35 = vpop.f32.mrb[46].mxu1  ;;  %v14707_v0 = vmax.f32 %v14602_v52, %v14666_v16 }
 0xa92   :  { %v14481_v51 = vmax.f32 %v14417_v59, 0.0  ;;  %v19475_v19 = vadd.f32 %v24270_v41, %v18799_v35  ;;  %v14108_v62 = vpop.f32.mrb[47].mxu1 }
 0xa93   :  { %v14480_v10 = vmax.f32 %v14416_v63, 0.0  ;;  %v19478_v32 = vadd.f32 %v24270_v41, %v14108_v62 }
 0xa94   :  { %v14604_v1 = vld [vmem:[#allocation4 + $0x170] ss:$2 sm:$0xff]  ;;  %v14668_v13 = vld [vmem:[#allocation4 + $0x171] ss:$2 sm:$0xff]  ;;  %14545 = vst [vmem:[#allocation4 + $0x198] sm:$0xff] %v14481_v51  ;;  %v14419_v40 = vadd.f32 %v19475_v19, %v24137_v3 }
 0xa95   :  { %v14708_v31 = vmax.f32 %v14604_v1, %v14668_v13  ;;  %14544 = vst [vmem:[#allocation4 + $0x190] sm:$0xff] %v14480_v10  ;;  %v14418_v39 = vadd.f32 %v19478_v32, %v24137_v3  ;;  %v18802_v6 = vpop.f32.mrb[48].mxu1 }
 0xa96   :  { %v14483_v48 = vmax.f32 %v14419_v40, 0.0  ;;  %v19481_v42 = vadd.f32 %v24270_v41, %v18802_v6  ;;  %v14118_v21 = vpop.f32.mrb[49].mxu1 }
 0xa97   :  { %v14728_v54 = vmax.f32 %v14707_v0, %v14708_v31  ;;  %v14482_v55 = vmax.f32 %v14418_v39, 0.0  ;;  %v19484_v15 = vadd.f32 %v24270_v41, %v14118_v21 }
 0xa98   :  { %14547 = vst [vmem:[#allocation4 + $0x1a8] sm:$0xff] %v14483_v48  ;;  %v14421_v12 = vadd.f32 %v19481_v42, %v24137_v3  ;;  %v14606_v36 = vld [vmem:[#allocation4 + $0x180] ss:$2 sm:$0xff]  ;;  %v14670_v24 = vld [vmem:[#allocation4 + $0x181] ss:$2 sm:$0xff] }
 0xa99   :  { %14744 = vst [vmem:[%s24316_s5 + $0x58] sm:$0xff] %v14728_v54  ;;  %14546 = vst [vmem:[#allocation4 + $0x1a0] sm:$0xff] %v14482_v55  ;;  %v14420_v50 = vadd.f32 %v19484_v15, %v24137_v3  ;;  %v18805_v37 = vpop.f32.mrb[50].mxu1  ;;  %v14709_v18 = vmax.f32 %v14606_v36, %v14670_v24 }
 0xa9a   :  { %v14485_v4 = vmax.f32 %v14421_v12, 0.0  ;;  %v19487_v27 = vadd.f32 %v24270_v41, %v18805_v37  ;;  %v14128_v25 = vpop.f32.mrb[51].mxu1 }
 0xa9b   :  { %v14484_v60 = vmax.f32 %v14420_v50, 0.0  ;;  %v19490_v11 = vadd.f32 %v24270_v41, %v14128_v25 }
 0xa9c   :  { %v14608_v22 = vld [vmem:[#allocation4 + $0x190] ss:$2 sm:$0xff]  ;;  %v14672_v17 = vld [vmem:[#allocation4 + $0x191] ss:$2 sm:$0xff]  ;;  %14549 = vst [vmem:[#allocation4 + $0x1b8] sm:$0xff] %v14485_v4  ;;  %v14423_v20 = vadd.f32 %v19487_v27, %v24137_v3 }
 0xa9d   :  { %v14710_v26 = vmax.f32 %v14608_v22, %v14672_v17  ;;  %14548 = vst [vmem:[#allocation4 + $0x1b0] sm:$0xff] %v14484_v60  ;;  %v14422_v33 = vadd.f32 %v19490_v11, %v24137_v3  ;;  %v18808_v43 = vpop.f32.mrb[52].mxu1 }
 0xa9e   :  { %v14487_v58 = vmax.f32 %v14423_v20, 0.0  ;;  %v19493_v23 = vadd.f32 %v24270_v41, %v18808_v43  ;;  %v14138_v45 = vpop.f32.mrb[53].mxu1 }
 0xa9f   :  { %v14729_v44 = vmax.f32 %v14709_v18, %v14710_v26  ;;  %v14486_v47 = vmax.f32 %v14422_v33, 0.0  ;;  %v19496_v49 = vadd.f32 %v24270_v41, %v14138_v45 }
 0xaa0   :  { %14551 = vst [vmem:[#allocation4 + $0x1c8] sm:$0xff] %v14487_v58  ;;  %v14425_v53 = vadd.f32 %v19493_v23, %v24137_v3  ;;  %v14610_v61 = vld [vmem:[#allocation4 + $0x1a0] ss:$2 sm:$0xff]  ;;  %v14674_v2 = vld [vmem:[#allocation4 + $0x1a1] ss:$2 sm:$0xff] }
 0xaa1   :  { %14745 = vst [vmem:[%s24316_s5 + $0x60] sm:$0xff] %v14729_v44  ;;  %14550 = vst [vmem:[#allocation4 + $0x1c0] sm:$0xff] %v14486_v47  ;;  %v14424_v30 = vadd.f32 %v19496_v49, %v24137_v3  ;;  %v18811_v57 = vpop.f32.mrb[54].mxu1  ;;  %v14711_v46 = vmax.f32 %v14610_v61, %v14674_v2 }
 0xaa2   :  { %v14489_v7 = vmax.f32 %v14425_v53, 0.0  ;;  %v19499_v34 = vadd.f32 %v24270_v41, %v18811_v57  ;;  %v14148_v29 = vpop.f32.mrb[55].mxu1 }
 0xaa3   :  { %v14488_v28 = vmax.f32 %v14424_v30, 0.0  ;;  %v19502_v9 = vadd.f32 %v24270_v41, %v14148_v29 }
 0xaa4   :  { %v14612_v5 = vld [vmem:[#allocation4 + $0x1b0] ss:$2 sm:$0xff]  ;;  %v14676_v14 = vld [vmem:[#allocation4 + $0x1b1] ss:$2 sm:$0xff]  ;;  %14553 = vst [vmem:[#allocation4 + $0x1d8] sm:$0xff] %v14489_v7  ;;  %v14427_v38 = vadd.f32 %v19499_v34, %v24137_v3 }
 0xaa5   :  { %v14712_v56 = vmax.f32 %v14612_v5, %v14676_v14  ;;  %14552 = vst [vmem:[#allocation4 + $0x1d0] sm:$0xff] %v14488_v28  ;;  %v14426_v8 = vadd.f32 %v19502_v9, %v24137_v3  ;;  %v18814_v59 = vpop.f32.mrb[56].mxu1 }
 0xaa6   :  { %v14491_v63 = vmax.f32 %v14427_v38, 0.0  ;;  %v19505_v35 = vadd.f32 %v24270_v41, %v18814_v59  ;;  %v14158_v52 = vpop.f32.mrb[57].mxu1 }
 0xaa7   :  { %v14730_v16 = vmax.f32 %v14711_v46, %v14712_v56  ;;  %v14490_v51 = vmax.f32 %v14426_v8, 0.0  ;;  %v19508_v19 = vadd.f32 %v24270_v41, %v14158_v52 }
 0xaa8   :  { %14555 = vst [vmem:[#allocation4 + $0x1e8] sm:$0xff] %v14491_v63  ;;  %v14429_v62 = vadd.f32 %v19505_v35, %v24137_v3  ;;  %v14614_v32 = vld [vmem:[#allocation4 + $0x1c0] ss:$2 sm:$0xff]  ;;  %v14678_v1 = vld [vmem:[#allocation4 + $0x1c1] ss:$2 sm:$0xff] }
 0xaa9   :  { %14746 = vst [vmem:[%s24316_s5 + $0x68] sm:$0xff] %v14730_v16  ;;  %14554 = vst [vmem:[#allocation4 + $0x1e0] sm:$0xff] %v14490_v51  ;;  %v14428_v10 = vadd.f32 %v19508_v19, %v24137_v3  ;;  %v14713_v39 = vmax.f32 %v14614_v32, %v14678_v1 }
 0xaaa   :  { %v14493_v13 = vmax.f32 %v14429_v62, 0.0 }
 0xaab   :  { %v14492_v40 = vmax.f32 %v14428_v10, 0.0 }
 0xaac   :  { %v14616_v0 = vld [vmem:[#allocation4 + $0x1d0] ss:$2 sm:$0xff]  ;;  %v14680_v31 = vld [vmem:[#allocation4 + $0x1d1] ss:$2 sm:$0xff]  ;;  %14557 = vst [vmem:[#allocation4 + $0x1f8] sm:$0xff] %v14493_v13 }
 0xaad   :  { %v14714_v6 = vmax.f32 %v14616_v0, %v14680_v31  ;;  %14556 = vst [vmem:[#allocation4 + $0x1f0] sm:$0xff] %v14492_v40 }
 0xaaf   :  { %v14731_v41 = vmax.f32 %v14713_v39, %v14714_v6 }
 0xab0   :  { %v14618_v48 = vld [vmem:[#allocation4 + $0x1e0] ss:$2 sm:$0xff]  ;;  %v14682_v42 = vld [vmem:[#allocation4 + $0x1e1] ss:$2 sm:$0xff] }
 0xab1   :  { %14747 = vst [vmem:[%s24316_s5 + $0x70] sm:$0xff] %v14731_v41  ;;  %v14715_v3 = vmax.f32 %v14618_v48, %v14682_v42 }
 0xab4   :  { %v14620_v21 = vld [vmem:[#allocation4 + $0x1f0] ss:$2 sm:$0xff]  ;;  %v14684_v54 = vld [vmem:[#allocation4 + $0x1f1] ss:$2 sm:$0xff] }
 0xab5   :  { %v14716_v55 = vmax.f32 %v14620_v21, %v14684_v54 }
 0xab7   :  { %v14732_v15 = vmax.f32 %v14715_v3, %v14716_v55 }
 0xab9   :  { %14748 = vst [vmem:[%s24316_s5 + $0x78] sm:$0xff] %v14732_v15 }

</bundles_post_ra>
